<compile_context>
chip_gen: v5e
topology: v5e:2x2
jax: 0.10.0
libtpu: 0.0.40
codegen_flags: <defaults>
</compile_context>

<pallas_src>
import functools

import jax
import jax.numpy as jnp
from jax.experimental import pallas as pl
from jax.experimental.pallas import tpu as pltpu


# ------------------------------ helpers ------------------------------------- #

def _round_up(x, m):
    return ((x + m - 1) // m) * m


def _pick_tm(mp, cap=1024):
    """Largest multiple-of-8 tile that divides mp and is <= cap (mp % 8 == 0)."""
    if mp <= cap:
        return mp
    for tm in range(cap - cap % 8, 7, -8):
        if mp % tm == 0:
            return tm
    return 8


# ----------------------------- Pallas kernels -------------------------------- #

def _fused_gemm_kernel(x_ref, w_ref, b_ref, o_ref, *, relu):
    # x_ref: (TM, K) bf16, w_ref: (K, Np) bf16, b_ref: (1, Np) f32, o_ref: (TM, Np)
    acc = jnp.dot(x_ref[...], w_ref[...], preferred_element_type=jnp.float32)
    y = acc + b_ref[...]
    if relu:
        y = jnp.maximum(y, 0.0)
    o_ref[...] = y.astype(o_ref.dtype)


def _mlp_tail_kernel(x_ref, w1_ref, b1_ref, w2_ref, b2_ref, o_ref):
    # x: (B, 2304) bf16, w1: (2304, 512) bf16, b1: (1, 512) f32,
    # w2: (512, 128) bf16, b2: (1, 128) f32, o: (B, 128) f32.
    h = jnp.dot(x_ref[...], w1_ref[...], preferred_element_type=jnp.float32)
    h = jnp.maximum(h + b1_ref[...], 0.0)
    q = jnp.dot(h.astype(jnp.bfloat16), w2_ref[...],
                preferred_element_type=jnp.float32)
    o_ref[...] = (q + b2_ref[...]).astype(o_ref.dtype)


# ------------------------------ GEMM wrappers -------------------------------- #

def fused_gemm(x, w, bias, *, relu, out_dtype):
    """y = maybe_relu(x @ w + bias).  x:(M,K) bf16, w:(K,Np) bf16, bias:(1,Np) f32."""
    M, K = x.shape
    Np = w.shape[1]
    Mp = _round_up(M, 8)
    if Mp != M:                      # never triggered for this model's shapes
        x = jnp.pad(x, ((0, Mp - M), (0, 0)))
    tm = _pick_tm(Mp)
    out = pl.pallas_call(
        functools.partial(_fused_gemm_kernel, relu=relu),
        out_shape=jax.ShapeDtypeStruct((Mp, Np), out_dtype),
        grid=(Mp // tm,),
        in_specs=[
            pl.BlockSpec((tm, K), lambda i: (i, 0)),   # activations / patches
            pl.BlockSpec((K, Np), lambda i: (0, 0)),   # weights (resident)
            pl.BlockSpec((1, Np), lambda i: (0, 0)),   # fused per-channel bias
        ],
        out_specs=pl.BlockSpec((tm, Np), lambda i: (i, 0)),
        compiler_params=pltpu.CompilerParams(dimension_semantics=("parallel",)),
    )(x, w, bias)
    return out if Mp == M else out[:M]


def mlp_tail(x_flat, lin_w, lin_b, q_w, q_b):
    """relu(x @ lin_w.T + lin_b) @ q_w.T + q_b, fused in one pallas_call."""
    B, K = x_flat.shape                      # (2, 2304)
    H = lin_w.shape[0]                       # 512
    A = q_w.shape[0]                         # 5
    Ap = _round_up(A, 128)                   # 128 (lane-dense output)
    w1 = lin_w.T.astype(jnp.bfloat16)                                    # (K, H)
    b1 = lin_b.reshape(1, H).astype(jnp.float32)
    w2 = jnp.pad(q_w.T, ((0, 0), (0, Ap - A))).astype(jnp.bfloat16)      # (H, Ap)
    b2 = jnp.pad(q_b, (0, Ap - A)).reshape(1, Ap).astype(jnp.float32)
    out = pl.pallas_call(
        _mlp_tail_kernel,
        out_shape=jax.ShapeDtypeStruct((B, Ap), jnp.float32),
        grid=(1,),
        in_specs=[
            pl.BlockSpec((B, K), lambda i: (0, 0)),
            pl.BlockSpec((K, H), lambda i: (0, 0)),
            pl.BlockSpec((1, H), lambda i: (0, 0)),
            pl.BlockSpec((H, Ap), lambda i: (0, 0)),
            pl.BlockSpec((1, Ap), lambda i: (0, 0)),
        ],
        out_specs=pl.BlockSpec((B, Ap), lambda i: (0, 0)),
    )(x_flat.astype(jnp.bfloat16), w1, b1, w2, b2)
    return out[:, :A]


# ------------------------------- glue (JAX) ---------------------------------- #

def _im2col(x, ksize, stride):
    """x: (B, H, W, C) NHWC -> patches (B*OH*OW, KH*KW*C) ordered (kh, kw, c)."""
    B, H, W, C = x.shape
    OH = (H - ksize) // stride + 1
    OW = (W - ksize) // stride + 1
    cols = []
    for kh in range(ksize):
        for kw in range(ksize):
            sl = x[:, kh:kh + stride * (OH - 1) + 1:stride,
                      kw:kw + stride * (OW - 1) + 1:stride, :]
            cols.append(sl)
    patches = jnp.stack(cols, axis=3)              # (B, OH, OW, KH*KW, C)
    return patches.reshape(B * OH * OW, ksize * ksize * C), OH, OW


def conv_bn_relu(x, c_in, w_oihw, conv_b, gamma, beta, rmean, rvar,
                 *, stride, eps=1e-5):
    """Conv2d(k=3, no pad) + BatchNorm2d(eval) + ReLU.

    x: (B, H, W, Cpad) bf16 where only the first `c_in` channels are real.
    Returns ((B, OH, OW, 128) bf16 with padded output channels, true Cout).
    """
    Cout, Cin, KH, KW = w_oihw.shape
    B = x.shape[0]
    patches, OH, OW = _im2col(x[..., :c_in], KH, stride)     # bf16 (M, KH*KW*Cin)
    s = gamma * jax.lax.rsqrt(rvar + eps)
    # (Cout,Cin,KH,KW) -> (KH,KW,Cin,Cout) -> (KH*KW*Cin, Cout); matches im2col
    # (kh,kw,c) ordering. Fold BN scale into the weight columns.
    w_mat = jnp.transpose(w_oihw, (2, 3, 1, 0)).reshape(KH * KW * Cin, Cout) * s
    bias = (conv_b - rmean) * s + beta
    Np = _round_up(Cout, 128)
    w_mat = jnp.pad(w_mat, ((0, 0), (0, Np - Cout))).astype(jnp.bfloat16)
    bias = jnp.pad(bias, (0, Np - Cout)).reshape(1, Np).astype(jnp.float32)
    y = fused_gemm(patches, w_mat, bias, relu=True, out_dtype=jnp.bfloat16)
    return y.reshape(B, OH, OW, Np), Cout


def qnetwork_conv_forward(params, x_nchw):
    x = jnp.transpose(x_nchw, (0, 2, 3, 1)).astype(jnp.bfloat16)  # NCHW -> NHWC
    x, c = conv_bn_relu(x, 12, params["conv1_w"], params["conv1_b"],
                        *params["bn1"], stride=1)
    x, c = conv_bn_relu(x, c, params["conv2_w"], params["conv2_b"],
                        *params["bn2"], stride=2)
    x, c = conv_bn_relu(x, c, params["conv3_w"], params["conv3_b"],
                        *params["bn3"], stride=2)
    B = x.shape[0]
    # PyTorch flatten order: (B, C, H, W) -> (B, C*H*W); x is (B, 6, 6, 128pad).
    x_flat = jnp.transpose(x[..., :c], (0, 3, 1, 2)).reshape(B, c * 6 * 6)
    return mlp_tail(x_flat, params["lin_w"], params["lin_b"],
                    params["q_w"], params["q_b"])


# -------------------------- deterministic params ----------------------------- #

def init_params(key):
    ks = list(jax.random.split(key, 24))

    def norm(shape, s=0.05):
        return jax.random.normal(ks.pop(0), shape, jnp.float32) * s

    def bn(c):
        gamma = 1.0 + norm((c,))
        beta = norm((c,))
        rmean = norm((c,))
        rvar = 1.0 + jnp.abs(norm((c,)))
        return (gamma, beta, rmean, rvar)

    return {
        "conv1_w": norm((32, 12, 3, 3)), "conv1_b": norm((32,)), "bn1": bn(32),
        "conv2_w": norm((64, 32, 3, 3)), "conv2_b": norm((64,)), "bn2": bn(64),
        "conv3_w": norm((64, 64, 3, 3)), "conv3_b": norm((64,)), "bn3": bn(64),
        "lin_w": norm((512, 64 * 6 * 6)), "lin_b": norm((512,)),
        "q_w": norm((5, 512)), "q_b": norm((5,)),
    }


# ---------------------------------- main -------------------------------------- #

if __name__ == "__main__":
    key = jax.random.PRNGKey(0)
    pkey, xkey = jax.random.split(key)
    params = init_params(pkey)

    # Input spatial size must be 32x32 so conv3 outputs 6x6 (=> 64*6*6 flatten).
    x = jax.random.normal(xkey, (2, 12, 32, 32), jnp.float32)  # NCHW, like PyTorch

    q_vals = jax.jit(qnetwork_conv_forward)(params, x)
    q_vals = jax.block_until_ready(q_vals)
    assert q_vals.shape == (2, 5) and q_vals.dtype == jnp.float32
    print("KERNEL_OK")
</pallas_src>

<mosaic_0001>
module attributes {stable_mosaic.version = 11 : i64} {
  func.func @_fused_gemm_kernel(%arg0: i32, %arg1: memref<600x108xbf16, #tpu.memory_space<vmem>>, %arg2: memref<108x128xbf16, #tpu.memory_space<vmem>>, %arg3: memref<1x128xf32, #tpu.memory_space<vmem>>, %arg4: memref<600x128xbf16, #tpu.memory_space<vmem>>) attributes {dimension_semantics = [#tpu.dimension_semantics<parallel>], iteration_bounds = array<i64: 3>, scalar_prefetch = 0 : i64, scratch_operands = 0 : i64, tpu.core_type = #tpu.core_type<tc>, window_params = [{transform_indices = @transform_0, window_bounds = array<i64: 600, 108>}, {pipeline_mode = #tpu.pipeline_mode<synchronous>, transform_indices = @transform_1, window_bounds = array<i64: 108, 128>}, {pipeline_mode = #tpu.pipeline_mode<synchronous>, transform_indices = @transform_2, window_bounds = array<i64: 1, 128>}, {transform_indices = @transform_3, window_bounds = array<i64: 600, 128>}]} {
    %c0 = arith.constant 0 : index
    %c0_0 = arith.constant 0 : index
    %0 = vector.load %arg1[%c0, %c0_0] : memref<600x108xbf16, #tpu.memory_space<vmem>>, vector<600x108xbf16>
    %c0_1 = arith.constant 0 : index
    %c0_2 = arith.constant 0 : index
    %1 = vector.load %arg2[%c0_1, %c0_2] : memref<108x128xbf16, #tpu.memory_space<vmem>>, vector<108x128xbf16>
    %cst = arith.constant dense<0.000000e+00> : vector<600x128xf32>
    %2 = tpu.matmul %0, %1, %cst {dimension_numbers = #tpu.dot_dimension_numbers<[1], [0], [0], [1], [0, 0, 1, 1], [], []>} : vector<600x108xbf16>, vector<108x128xbf16>, vector<600x128xf32> -> vector<600x128xf32>
    %c0_3 = arith.constant 0 : index
    %c0_4 = arith.constant 0 : index
    %3 = vector.load %arg3[%c0_3, %c0_4] : memref<1x128xf32, #tpu.memory_space<vmem>>, vector<1x128xf32>
    %4 = vector.broadcast %3 : vector<1x128xf32> to vector<600x128xf32>
    %5 = arith.addf %2, %4 : vector<600x128xf32>
    %cst_5 = arith.constant 0.000000e+00 : f32
    %6 = vector.broadcast %cst_5 : f32 to vector<600x128xf32>
    %7 = arith.maximumf %5, %6 : vector<600x128xf32>
    %8 = arith.truncf %7 : vector<600x128xf32> to vector<600x128xbf16>
    %c0_6 = arith.constant 0 : index
    %c0_7 = arith.constant 0 : index
    %9 = vector.load %arg4[%c0_6, %c0_7] : memref<600x128xbf16, #tpu.memory_space<vmem>>, vector<600x128xbf16>
    tpu.vector_store %arg4[%c0_6, %c0_7], %8 {strides = array<i32>} : memref<600x128xbf16, #tpu.memory_space<vmem>>, vector<600x128xbf16>,
    return
  }
  func.func @transform_0(%arg0: i32) -> (i32, i32) {
    %c0_i32 = arith.constant 0 : i32
    %c0_i32_0 = arith.constant 0 : i32
    return %arg0, %c0_i32 : i32, i32
  }
  func.func @transform_1(%arg0: i32) -> (i32, i32) {
    %c0_i32 = arith.constant 0 : i32
    %c0_i32_0 = arith.constant 0 : i32
    %c0_i32_1 = arith.constant 0 : i32
    return %c0_i32, %c0_i32_0 : i32, i32
  }
  func.func @transform_2(%arg0: i32) -> (i32, i32) {
    %c0_i32 = arith.constant 0 : i32
    %c0_i32_0 = arith.constant 0 : i32
    %c0_i32_1 = arith.constant 0 : i32
    return %c0_i32, %c0_i32_0 : i32, i32
  }
  func.func @transform_3(%arg0: i32) -> (i32, i32) {
    %c0_i32 = arith.constant 0 : i32
    %c0_i32_0 = arith.constant 0 : i32
    return %arg0, %c0_i32 : i32, i32
  }
}

module attributes {stable_mosaic.version = 11 : i64} {
  func.func @_fused_gemm_kernel(%arg0: i32, %arg1: memref<392x288xbf16, #tpu.memory_space<vmem>>, %arg2: memref<288x128xbf16, #tpu.memory_space<vmem>>, %arg3: memref<1x128xf32, #tpu.memory_space<vmem>>, %arg4: memref<392x128xbf16, #tpu.memory_space<vmem>>) attributes {dimension_semantics = [#tpu.dimension_semantics<parallel>], iteration_bounds = array<i64: 1>, scalar_prefetch = 0 : i64, scratch_operands = 0 : i64, tpu.core_type = #tpu.core_type<tc>, window_params = [{transform_indices = @transform_0, window_bounds = array<i64: 392, 288>}, {pipeline_mode = #tpu.pipeline_mode<synchronous>, transform_indices = @transform_1, window_bounds = array<i64: 288, 128>}, {pipeline_mode = #tpu.pipeline_mode<synchronous>, transform_indices = @transform_2, window_bounds = array<i64: 1, 128>}, {transform_indices = @transform_3, window_bounds = array<i64: 392, 128>}]} {
    %c0 = arith.constant 0 : index
    %c0_0 = arith.constant 0 : index
    %0 = vector.load %arg1[%c0, %c0_0] : memref<392x288xbf16, #tpu.memory_space<vmem>>, vector<392x288xbf16>
    %c0_1 = arith.constant 0 : index
    %c0_2 = arith.constant 0 : index
    %1 = vector.load %arg2[%c0_1, %c0_2] : memref<288x128xbf16, #tpu.memory_space<vmem>>, vector<288x128xbf16>
    %cst = arith.constant dense<0.000000e+00> : vector<392x128xf32>
    %2 = tpu.matmul %0, %1, %cst {dimension_numbers = #tpu.dot_dimension_numbers<[1], [0], [0], [1], [0, 0, 1, 1], [], []>} : vector<392x288xbf16>, vector<288x128xbf16>, vector<392x128xf32> -> vector<392x128xf32>
    %c0_3 = arith.constant 0 : index
    %c0_4 = arith.constant 0 : index
    %3 = vector.load %arg3[%c0_3, %c0_4] : memref<1x128xf32, #tpu.memory_space<vmem>>, vector<1x128xf32>
    %4 = vector.broadcast %3 : vector<1x128xf32> to vector<392x128xf32>
    %5 = arith.addf %2, %4 : vector<392x128xf32>
    %cst_5 = arith.constant 0.000000e+00 : f32
    %6 = vector.broadcast %cst_5 : f32 to vector<392x128xf32>
    %7 = arith.maximumf %5, %6 : vector<392x128xf32>
    %8 = arith.truncf %7 : vector<392x128xf32> to vector<392x128xbf16>
    %c0_6 = arith.constant 0 : index
    %c0_7 = arith.constant 0 : index
    %9 = vector.load %arg4[%c0_6, %c0_7] : memref<392x128xbf16, #tpu.memory_space<vmem>>, vector<392x128xbf16>
    tpu.vector_store %arg4[%c0_6, %c0_7], %8 {strides = array<i32>} : memref<392x128xbf16, #tpu.memory_space<vmem>>, vector<392x128xbf16>,
    return
  }
  func.func @transform_0(%arg0: i32) -> (i32, i32) {
    %c0_i32 = arith.constant 0 : i32
    %c0_i32_0 = arith.constant 0 : i32
    return %arg0, %c0_i32 : i32, i32
  }
  func.func @transform_1(%arg0: i32) -> (i32, i32) {
    %c0_i32 = arith.constant 0 : i32
    %c0_i32_0 = arith.constant 0 : i32
    %c0_i32_1 = arith.constant 0 : i32
    return %c0_i32, %c0_i32_0 : i32, i32
  }
  func.func @transform_2(%arg0: i32) -> (i32, i32) {
    %c0_i32 = arith.constant 0 : i32
    %c0_i32_0 = arith.constant 0 : i32
    %c0_i32_1 = arith.constant 0 : i32
    return %c0_i32, %c0_i32_0 : i32, i32
  }
  func.func @transform_3(%arg0: i32) -> (i32, i32) {
    %c0_i32 = arith.constant 0 : i32
    %c0_i32_0 = arith.constant 0 : i32
    return %arg0, %c0_i32 : i32, i32
  }
}

module attributes {stable_mosaic.version = 11 : i64} {
  func.func @_fused_gemm_kernel(%arg0: i32, %arg1: memref<72x576xbf16, #tpu.memory_space<vmem>>, %arg2: memref<576x128xbf16, #tpu.memory_space<vmem>>, %arg3: memref<1x128xf32, #tpu.memory_space<vmem>>, %arg4: memref<72x128xbf16, #tpu.memory_space<vmem>>) attributes {dimension_semantics = [#tpu.dimension_semantics<parallel>], iteration_bounds = array<i64: 1>, scalar_prefetch = 0 : i64, scratch_operands = 0 : i64, tpu.core_type = #tpu.core_type<tc>, window_params = [{transform_indices = @transform_0, window_bounds = array<i64: 72, 576>}, {pipeline_mode = #tpu.pipeline_mode<synchronous>, transform_indices = @transform_1, window_bounds = array<i64: 576, 128>}, {pipeline_mode = #tpu.pipeline_mode<synchronous>, transform_indices = @transform_2, window_bounds = array<i64: 1, 128>}, {transform_indices = @transform_3, window_bounds = array<i64: 72, 128>}]} {
    %c0 = arith.constant 0 : index
    %c0_0 = arith.constant 0 : index
    %0 = vector.load %arg1[%c0, %c0_0] : memref<72x576xbf16, #tpu.memory_space<vmem>>, vector<72x576xbf16>
    %c0_1 = arith.constant 0 : index
    %c0_2 = arith.constant 0 : index
    %1 = vector.load %arg2[%c0_1, %c0_2] : memref<576x128xbf16, #tpu.memory_space<vmem>>, vector<576x128xbf16>
    %cst = arith.constant dense<0.000000e+00> : vector<72x128xf32>
    %2 = tpu.matmul %0, %1, %cst {dimension_numbers = #tpu.dot_dimension_numbers<[1], [0], [0], [1], [0, 0, 1, 1], [], []>} : vector<72x576xbf16>, vector<576x128xbf16>, vector<72x128xf32> -> vector<72x128xf32>
    %c0_3 = arith.constant 0 : index
    %c0_4 = arith.constant 0 : index
    %3 = vector.load %arg3[%c0_3, %c0_4] : memref<1x128xf32, #tpu.memory_space<vmem>>, vector<1x128xf32>
    %4 = vector.broadcast %3 : vector<1x128xf32> to vector<72x128xf32>
    %5 = arith.addf %2, %4 : vector<72x128xf32>
    %cst_5 = arith.constant 0.000000e+00 : f32
    %6 = vector.broadcast %cst_5 : f32 to vector<72x128xf32>
    %7 = arith.maximumf %5, %6 : vector<72x128xf32>
    %8 = arith.truncf %7 : vector<72x128xf32> to vector<72x128xbf16>
    %c0_6 = arith.constant 0 : index
    %c0_7 = arith.constant 0 : index
    %9 = vector.load %arg4[%c0_6, %c0_7] : memref<72x128xbf16, #tpu.memory_space<vmem>>, vector<72x128xbf16>
    tpu.vector_store %arg4[%c0_6, %c0_7], %8 {strides = array<i32>} : memref<72x128xbf16, #tpu.memory_space<vmem>>, vector<72x128xbf16>,
    return
  }
  func.func @transform_0(%arg0: i32) -> (i32, i32) {
    %c0_i32 = arith.constant 0 : i32
    %c0_i32_0 = arith.constant 0 : i32
    return %arg0, %c0_i32 : i32, i32
  }
  func.func @transform_1(%arg0: i32) -> (i32, i32) {
    %c0_i32 = arith.constant 0 : i32
    %c0_i32_0 = arith.constant 0 : i32
    %c0_i32_1 = arith.constant 0 : i32
    return %c0_i32, %c0_i32_0 : i32, i32
  }
  func.func @transform_2(%arg0: i32) -> (i32, i32) {
    %c0_i32 = arith.constant 0 : i32
    %c0_i32_0 = arith.constant 0 : i32
    %c0_i32_1 = arith.constant 0 : i32
    return %c0_i32, %c0_i32_0 : i32, i32
  }
  func.func @transform_3(%arg0: i32) -> (i32, i32) {
    %c0_i32 = arith.constant 0 : i32
    %c0_i32_0 = arith.constant 0 : i32
    return %arg0, %c0_i32 : i32, i32
  }
}

module attributes {stable_mosaic.version = 11 : i64} {
  func.func @_mlp_tail_kernel(%arg0: i32, %arg1: memref<2x2304xbf16, #tpu.memory_space<vmem>>, %arg2: memref<2304x512xbf16, #tpu.memory_space<vmem>>, %arg3: memref<1x512xf32, #tpu.memory_space<vmem>>, %arg4: memref<512x128xbf16, #tpu.memory_space<vmem>>, %arg5: memref<1x128xf32, #tpu.memory_space<vmem>>, %arg6: memref<2x128xf32, #tpu.memory_space<vmem>>) attributes {dimension_semantics = [#tpu.dimension_semantics<arbitrary>], iteration_bounds = array<i64: 1>, scalar_prefetch = 0 : i64, scratch_operands = 0 : i64, tpu.core_type = #tpu.core_type<tc>, window_params = [{pipeline_mode = #tpu.pipeline_mode<synchronous>, transform_indices = @transform_0, window_bounds = array<i64: 2, 2304>}, {pipeline_mode = #tpu.pipeline_mode<synchronous>, transform_indices = @transform_1, window_bounds = array<i64: 2304, 512>}, {pipeline_mode = #tpu.pipeline_mode<synchronous>, transform_indices = @transform_2, window_bounds = array<i64: 1, 512>}, {pipeline_mode = #tpu.pipeline_mode<synchronous>, transform_indices = @transform_3, window_bounds = array<i64: 512, 128>}, {pipeline_mode = #tpu.pipeline_mode<synchronous>, transform_indices = @transform_4, window_bounds = array<i64: 1, 128>}, {pipeline_mode = #tpu.pipeline_mode<synchronous>, transform_indices = @transform_5, window_bounds = array<i64: 2, 128>}]} {
    %c0 = arith.constant 0 : index
    %c0_0 = arith.constant 0 : index
    %0 = vector.load %arg1[%c0, %c0_0] : memref<2x2304xbf16, #tpu.memory_space<vmem>>, vector<2x2304xbf16>
    %c0_1 = arith.constant 0 : index
    %c0_2 = arith.constant 0 : index
    %1 = vector.load %arg2[%c0_1, %c0_2] : memref<2304x512xbf16, #tpu.memory_space<vmem>>, vector<2304x512xbf16>
    %cst = arith.constant dense<0.000000e+00> : vector<2x512xf32>
    %2 = tpu.matmul %0, %1, %cst {dimension_numbers = #tpu.dot_dimension_numbers<[1], [0], [0], [1], [0, 0, 1, 1], [], []>} : vector<2x2304xbf16>, vector<2304x512xbf16>, vector<2x512xf32> -> vector<2x512xf32>
    %c0_3 = arith.constant 0 : index
    %c0_4 = arith.constant 0 : index
    %3 = vector.load %arg3[%c0_3, %c0_4] : memref<1x512xf32, #tpu.memory_space<vmem>>, vector<1x512xf32>
    %4 = vector.broadcast %3 : vector<1x512xf32> to vector<2x512xf32>
    %5 = arith.addf %2, %4 : vector<2x512xf32>
    %cst_5 = arith.constant 0.000000e+00 : f32
    %6 = vector.broadcast %cst_5 : f32 to vector<2x512xf32>
    %7 = arith.maximumf %5, %6 : vector<2x512xf32>
    %8 = arith.truncf %7 : vector<2x512xf32> to vector<2x512xbf16>
    %c0_6 = arith.constant 0 : index
    %c0_7 = arith.constant 0 : index
    %9 = vector.load %arg4[%c0_6, %c0_7] : memref<512x128xbf16, #tpu.memory_space<vmem>>, vector<512x128xbf16>
    %cst_8 = arith.constant dense<0.000000e+00> : vector<2x128xf32>
    %10 = tpu.matmul %8, %9, %cst_8 {dimension_numbers = #tpu.dot_dimension_numbers<[1], [0], [0], [1], [0, 0, 1, 1], [], []>} : vector<2x512xbf16>, vector<512x128xbf16>, vector<2x128xf32> -> vector<2x128xf32>
    %c0_9 = arith.constant 0 : index
    %c0_10 = arith.constant 0 : index
    %11 = vector.load %arg5[%c0_9, %c0_10] : memref<1x128xf32, #tpu.memory_space<vmem>>, vector<1x128xf32>
    %12 = vector.broadcast %11 : vector<1x128xf32> to vector<2x128xf32>
    %13 = arith.addf %10, %12 : vector<2x128xf32>
    %c0_11 = arith.constant 0 : index
    %c0_12 = arith.constant 0 : index
    %14 = vector.load %arg6[%c0_11, %c0_12] : memref<2x128xf32, #tpu.memory_space<vmem>>, vector<2x128xf32>
    tpu.vector_store %arg6[%c0_11, %c0_12], %13 {strides = array<i32>} : memref<2x128xf32, #tpu.memory_space<vmem>>, vector<2x128xf32>,
    return
  }
  func.func @transform_0(%arg0: i32) -> (i32, i32) {
    %c0_i32 = arith.constant 0 : i32
    %c0_i32_0 = arith.constant 0 : i32
    %c0_i32_1 = arith.constant 0 : i32
    return %c0_i32, %c0_i32_0 : i32, i32
  }
  func.func @transform_1(%arg0: i32) -> (i32, i32) {
    %c0_i32 = arith.constant 0 : i32
    %c0_i32_0 = arith.constant 0 : i32
    %c0_i32_1 = arith.constant 0 : i32
    return %c0_i32, %c0_i32_0 : i32, i32
  }
  func.func @transform_2(%arg0: i32) -> (i32, i32) {
    %c0_i32 = arith.constant 0 : i32
    %c0_i32_0 = arith.constant 0 : i32
    %c0_i32_1 = arith.constant 0 : i32
    return %c0_i32, %c0_i32_0 : i32, i32
  }
  func.func @transform_3(%arg0: i32) -> (i32, i32) {
    %c0_i32 = arith.constant 0 : i32
    %c0_i32_0 = arith.constant 0 : i32
    %c0_i32_1 = arith.constant 0 : i32
    return %c0_i32, %c0_i32_0 : i32, i32
  }
  func.func @transform_4(%arg0: i32) -> (i32, i32) {
    %c0_i32 = arith.constant 0 : i32
    %c0_i32_0 = arith.constant 0 : i32
    %c0_i32_1 = arith.constant 0 : i32
    return %c0_i32, %c0_i32_0 : i32, i32
  }
  func.func @transform_5(%arg0: i32) -> (i32, i32) {
    %c0_i32 = arith.constant 0 : i32
    %c0_i32_0 = arith.constant 0 : i32
    %c0_i32_1 = arith.constant 0 : i32
    return %c0_i32, %c0_i32_0 : i32, i32
  }
}

</mosaic_0001>

<bundles_post_ra>
// kernel: qnetwork_conv_forward.4
= control target key start
LH: loop header
LB: loop body
LE: loop exit
PB: predicated region body
PF: predicated region fallthrough
CT: control target
= control target key end

     0   :  { %s1641_s12 = smov 0   ;;  %s1887_s0 = inlined_call_operand.vmem [shape: bf16[1800,108], index: 0, kind: input, shape index: {}]   ;;  %s1888_s1 = inlined_call_operand.vmem [shape: bf16[108,128], index: 1, kind: input, shape index: {}]   ;;  %s1889_s2 = inlined_call_operand.vmem [shape: f32[1,128], index: 2, kind: input, shape index: {}]   ;;  %s1890_s3 = inlined_call_operand.vmem [shape: bf16[1800,128], index: 3, kind: output, shape index: {}]  }
   0x1 LB: > { %s1095_s13 = sadd.s32 4294967295, %s1619_s12   ;;  %p1099_p0 = scmp.ge.s32.totalorder %s1619_s12, 1  ;;  %s1619_s12 = sphi %s1641_s12, %s13_s12  }
   0x2   : > { %p138_p1 = scmp.lt.s32.totalorder %s1619_s12, 4 }
   0x4   : > { %p139_p2 = pnand %p1099_p0, %p138_p1 }
   0x5   : > { %s162_s22 = smul.u32 (!%p139_p2), 75, %s1095_s13 }
   0x6   : > { %142 = sbr.rel (%p139_p2) target bundleno = 333 (0x14d), region = 32 }
   0x7   : > { %p163_p3 = scmp.lt.s32.totalorder (!%p139_p2), %s162_s22, 224 }
   0xb   : > { %v1276_v0 = vld [vmem:[%s1888_s1 + $0x30] sm:$0xf]  ;;  %v1361_v1 = vld [vmem:[%s1888_s1 + $0x30] sm:$0x30]  ;;  %vm612_vm0 = vcmask 1045504   ;;  %v1360_v4 = vld [vmem:[%s1888_s1 + $0x28] sm:$0xff] }
   0xc   : > { %v1277_v2 = vor.u32 %v1361_v1, %v1276_v0  ;;  %v1359_v5 = vld [vmem:[%s1888_s1 + $0x20] sm:$0xff]  ;;  %v1358_v6 = vld [vmem:[%s1888_s1 + $0x18] sm:$0xff]  ;;  %v1357_v7 = vld [vmem:[%s1888_s1 + $0x10] sm:$0xff]  ;;  %s1892_s22 = smov (!%p163_p3, %s162_s22), 224  ;;  %vm497_vm1 = vcmask 883712  }
   0xd   : > { %v1356_v8 = vld [vmem:[%s1888_s1 + $0x8] sm:$0xff]  ;;  %s1100_s29 = sshll.u32 %s1892_s22, 2  ;;  %v1355_v9 = vld [vmem:[%s1888_s1] sm:$0xff] }
   0xe   : > { %v614_v3 = vsel %vm612_vm0, %v1277_v2, 0  ;;  %s1681_s7 = scalar_lea.vmem %s1887_s0, %s1100_s29  ;;  %v1754_v50 = vld [vmem:[%s1889_s2] ss:$0 sm:$0xff]  ;;  %s1769_s13 = scalar_lea.vmem %s1890_s3, %s1100_s29 }
   0xf   : > { %1583 = vmatpush.bf16.msra.mxu1 %v614_v3  ;;  %1584 = vmatpush.bf16.msra.mxu2 %v614_v3  ;;  %v1327_v10 = vld [vmem:[%s1681_s7 + $0x48] sm:$0xff]  ;;  %v1337_v11 = vld [vmem:[%s1681_s7 + $0x98] sm:$0xff]  ;;  %v1318_v12 = vld [vmem:[%s1681_s7] sm:$0xff] }
  0x10   : > { %617 = vmatpush.bf16.msra.mxu0 %v614_v3  ;;  %1585 = vmatpush.bf16.msra.mxu3 %v614_v3  ;;  %v1347_v13 = vld [vmem:[%s1681_s7 + $0xe8] sm:$0xff]  ;;  %v1328_v14 = vld [vmem:[%s1681_s7 + $0x50] sm:$0xff]  ;;  %v1338_v15 = vld [vmem:[%s1681_s7 + $0xa0] sm:$0xff] }
  0x11   : > { %v1319_v16 = vld [vmem:[%s1681_s7 + $0x8] sm:$0xff]  ;;  %v1348_v17 = vld [vmem:[%s1681_s7 + $0xf0] sm:$0xff]  ;;  %v1329_v18 = vld [vmem:[%s1681_s7 + $0x58] sm:$0xff] }
  0x12   : > { %v1339_v19 = vld [vmem:[%s1681_s7 + $0xa8] sm:$0xff]  ;;  %v1320_v20 = vld [vmem:[%s1681_s7 + $0x10] sm:$0xff]  ;;  %v1349_v21 = vld [vmem:[%s1681_s7 + $0xf8] sm:$0xff] }
  0x13   : > { %1586 = vmatpush.bf16.msra.mxu1 %v1360_v4  ;;  %1587 = vmatpush.bf16.msra.mxu2 %v1360_v4  ;;  %v1330_v22 = vld [vmem:[%s1681_s7 + $0x60] sm:$0xff]  ;;  %v1340_v23 = vld [vmem:[%s1681_s7 + $0xb0] sm:$0xff]  ;;  %v1321_v24 = vld [vmem:[%s1681_s7 + $0x18] sm:$0xff] }
  0x14   : > { %618 = vmatpush.bf16.msra.mxu0 %v1360_v4  ;;  %1588 = vmatpush.bf16.msra.mxu3 %v1360_v4  ;;  %v1350_v25 = vld [vmem:[%s1681_s7 + $0x100] sm:$0xff]  ;;  %v1331_v26 = vld [vmem:[%s1681_s7 + $0x68] sm:$0xff]  ;;  %v1341_v27 = vld [vmem:[%s1681_s7 + $0xb8] sm:$0xff] }
  0x15   : > { %v1322_v28 = vld [vmem:[%s1681_s7 + $0x20] sm:$0xff]  ;;  %v1351_v29 = vld [vmem:[%s1681_s7 + $0x108] sm:$0xff]  ;;  %v1332_v30 = vld [vmem:[%s1681_s7 + $0x70] sm:$0xff] }
  0x16   : > { %v1342_v31 = vld [vmem:[%s1681_s7 + $0xc0] sm:$0xff]  ;;  %v1323_v32 = vld [vmem:[%s1681_s7 + $0x28] sm:$0xff]  ;;  %v1352_v33 = vld [vmem:[%s1681_s7 + $0x110] sm:$0xff] }
  0x17   : > { %1589 = vmatpush.bf16.msra.mxu1 %v1359_v5  ;;  %1590 = vmatpush.bf16.msra.mxu2 %v1359_v5  ;;  %v1333_v34 = vld [vmem:[%s1681_s7 + $0x78] sm:$0xff]  ;;  %v1343_v35 = vld [vmem:[%s1681_s7 + $0xc8] sm:$0xff]  ;;  %v1324_v36 = vld [vmem:[%s1681_s7 + $0x30] sm:$0xff] }
  0x18   : > { %619 = vmatpush.bf16.msra.mxu0 %v1359_v5  ;;  %1591 = vmatpush.bf16.msra.mxu3 %v1359_v5  ;;  %v1353_v37 = vld [vmem:[%s1681_s7 + $0x118] sm:$0xff]  ;;  %v1334_v38 = vld [vmem:[%s1681_s7 + $0x80] sm:$0xff]  ;;  %v1344_v39 = vld [vmem:[%s1681_s7 + $0xd0] sm:$0xff] }
  0x19   : > { %v1325_v40 = vld [vmem:[%s1681_s7 + $0x38] sm:$0xff]  ;;  %v1354_v41 = vld [vmem:[%s1681_s7 + $0x120] sm:$0xff]  ;;  %v249_v42 = vld [vmem:[%s1681_s7 + $0x128] sm:$0xf] }
  0x1a   : > { %v417_v43 = vunpack.c.l.b16 %v249_v42  ;;  %v1335_v44 = vld [vmem:[%s1681_s7 + $0x88] sm:$0xff]  ;;  %v1345_v45 = vld [vmem:[%s1681_s7 + $0xd8] sm:$0xff]  ;;  %v1326_v47 = vld [vmem:[%s1681_s7 + $0x40] sm:$0xff] }
  0x1b   : > { %1592 = vmatpush.bf16.msra.mxu1 %v1358_v6  ;;  %1593 = vmatpush.bf16.msra.mxu2 %v1358_v6  ;;  %v1336_v5 = vld [vmem:[%s1681_s7 + $0x90] sm:$0xff] }
  0x1c   : > { %620 = vmatpush.bf16.msra.mxu0 %v1358_v6  ;;  %1594 = vmatpush.bf16.msra.mxu3 %v1358_v6  ;;  %v455_v48 = vpack.c.b16 %v417_v43, %v417_v43  ;;  %v1346_v6 = vld [vmem:[%s1681_s7 + $0xe0] sm:$0xff] }
  0x1f   : > { %1595 = vmatpush.bf16.msra.mxu1 %v1357_v7  ;;  %1596 = vmatpush.bf16.msra.mxu2 %v1357_v7 }
  0x20   : > { %621 = vmatpush.bf16.msra.mxu0 %v1357_v7  ;;  %1597 = vmatpush.bf16.msra.mxu3 %v1357_v7 }
  0x23   : > { %1598 = vmatpush.bf16.msra.mxu1 %v1356_v8  ;;  %1599 = vmatpush.bf16.msra.mxu2 %v1356_v8 }
  0x24   : > { %622 = vmatpush.bf16.msra.mxu0 %v1356_v8  ;;  %1600 = vmatpush.bf16.msra.mxu3 %v1356_v8 }
  0x27   : > { %1601 = vmatpush.bf16.msra.mxu1 %v1355_v9  ;;  %1602 = vmatpush.bf16.msra.mxu2 %v1355_v9 }
  0x28   : > { %623 = vmatpush.bf16.msra.mxu0 %v1355_v9  ;;  %1603 = vmatpush.bf16.msra.mxu3 %v1355_v9 }
  0x2a   : > { %1287 = vmatmul.msk.bf16.vlgmr.msra.gmra.mxu1 %vm497_vm1, %v1327_v10  ;;  %1297 = vmatmul.msk.bf16.vlgmr.msra.gmra.mxu2 %vm497_vm1, %v1337_v11 }
  0x2b   : > { %1278 = vmatmul.msk.bf16.vlgmr.msra.gmra.mxu0 %vm497_vm1, %v1318_v12  ;;  %1307 = vmatmul.msk.bf16.vlgmr.msra.gmra.mxu3 %vm497_vm1, %v1347_v13 }
  0x3a   : > { %1288 = vmatmul.msk.bf16.gmra.mxu1 %vm497_vm1, %v1328_v14  ;;  %1298 = vmatmul.msk.bf16.gmra.mxu2 %vm497_vm1, %v1338_v15 }
  0x3b   : > { %1279 = vmatmul.msk.bf16.gmra.mxu0 %vm497_vm1, %v1319_v16  ;;  %1308 = vmatmul.msk.bf16.gmra.mxu3 %vm497_vm1, %v1348_v17 }
  0x4a   : > { %1289 = vmatmul.msk.bf16.gmra.mxu1 %vm497_vm1, %v1329_v18  ;;  %1299 = vmatmul.msk.bf16.gmra.mxu2 %vm497_vm1, %v1339_v19 }
  0x4b   : > { %1280 = vmatmul.msk.bf16.gmra.mxu0 %vm497_vm1, %v1320_v20  ;;  %1309 = vmatmul.msk.bf16.gmra.mxu3 %vm497_vm1, %v1349_v21 }
  0x5a   : > { %1290 = vmatmul.msk.bf16.gmra.mxu1 %vm497_vm1, %v1330_v22  ;;  %1300 = vmatmul.msk.bf16.gmra.mxu2 %vm497_vm1, %v1340_v23 }
  0x5b   : > { %1281 = vmatmul.msk.bf16.gmra.mxu0 %vm497_vm1, %v1321_v24  ;;  %1310 = vmatmul.msk.bf16.gmra.mxu3 %vm497_vm1, %v1350_v25 }
  0x6a   : > { %1291 = vmatmul.msk.bf16.gmra.mxu1 %vm497_vm1, %v1331_v26  ;;  %1301 = vmatmul.msk.bf16.gmra.mxu2 %vm497_vm1, %v1341_v27 }
  0x6b   : > { %1282 = vmatmul.msk.bf16.gmra.mxu0 %vm497_vm1, %v1322_v28  ;;  %1311 = vmatmul.msk.bf16.gmra.mxu3 %vm497_vm1, %v1351_v29 }
  0x7a   : > { %1292 = vmatmul.msk.bf16.gmra.mxu1 %vm497_vm1, %v1332_v30  ;;  %1302 = vmatmul.msk.bf16.gmra.mxu2 %vm497_vm1, %v1342_v31 }
  0x7b   : > { %1283 = vmatmul.msk.bf16.gmra.mxu0 %vm497_vm1, %v1323_v32  ;;  %1312 = vmatmul.msk.bf16.gmra.mxu3 %vm497_vm1, %v1352_v33 }
  0x8a   : > { %1293 = vmatmul.msk.bf16.gmra.mxu1 %vm497_vm1, %v1333_v34  ;;  %1303 = vmatmul.msk.bf16.gmra.mxu2 %vm497_vm1, %v1343_v35 }
  0x8b   : > { %1284 = vmatmul.msk.bf16.gmra.mxu0 %vm497_vm1, %v1324_v36  ;;  %1313 = vmatmul.msk.bf16.gmra.mxu3 %vm497_vm1, %v1353_v37 }
  0x9a   : > { %1294 = vmatmul.msk.bf16.gmra.mxu1 %vm497_vm1, %v1334_v38  ;;  %1304 = vmatmul.msk.bf16.gmra.mxu2 %vm497_vm1, %v1344_v39 }
  0x9b   : > { %1285 = vmatmul.msk.bf16.gmra.mxu0 %vm497_vm1, %v1325_v40  ;;  %1314 = vmatmul.msk.bf16.gmra.mxu3 %vm497_vm1, %v1354_v41 }
  0xa7   : > { %v670_v46 = vpop.f32.mrf.mxu1 }
  0xa8   : > { %v625_v49 = vpop.f32.mrf.mxu0  ;;  %v671_v53 = vadd.f32 %v1754_v50, %v670_v46 }
  0xa9   : > { %v626_v52 = vadd.f32 %v1754_v50, %v625_v49 }
  0xaa   : > { %1295 = vmatmul.msk.bf16.gmra.mxu1 %vm497_vm1, %v1335_v44  ;;  %1305 = vmatmul.msk.bf16.gmra.mxu2 %vm497_vm1, %v1345_v45  ;;  %v832_v60 = vmax.f32 %v671_v53, 0.0 }
  0xab   : > { %1286 = vmatmul.msk.bf16.gmra.mxu0 %vm497_vm1, %v1326_v47  ;;  %1315 = vmatmul.msk.bf16.gmra.mxu3 %vm497_vm1, %v455_v48  ;;  %v814_v58 = vmax.f32 %v626_v52, 0.0 }
  0xad   : > { %v720_v51 = vpop.f32.mrf.mxu2 }
  0xae   : > { %v770_v54 = vpop.f32.mrf.mxu3  ;;  %v721_v0 = vadd.f32 %v1754_v50, %v720_v51 }
  0xaf   : > { %v672_v55 = vpop.f32.mrf.mxu1  ;;  %v771_v62 = vadd.f32 %v1754_v50, %v770_v54 }
  0xb0   : > { %v673_v56 = vadd.f32 %v1754_v50, %v672_v55  ;;  %v627_v57 = vpop.f32.mrf.mxu0  ;;  %v852_v11 = vmax.f32 %v721_v0, 0.0 }
  0xb1   : > { %v628_v59 = vadd.f32 %v1754_v50, %v627_v57  ;;  %v872_v9 = vmax.f32 %v771_v62, 0.0 }
  0xb2   : > { %v833_v61 = vmax.f32 %v673_v56, 0.0 }
  0xb3   : > { %v815_v63 = vmax.f32 %v628_v59, 0.0 }
  0xb4   : > { %v1410_v1 = vpack.c.bf16 %v833_v61, %v832_v60 }
  0xb5   : > { %v722_v2 = vpop.f32.mrf.mxu2  ;;  %v1365_v3 = vpack.c.bf16 %v815_v63, %v814_v58 }
  0xb6   : > { %1555 = vst [vmem:[%s1769_s13 + $0x48] sm:$0xff] %v1410_v1   ;;  %v723_v4 = vadd.f32 %v1754_v50, %v722_v2  ;;  %v772_v7 = vpop.f32.mrf.mxu3 }
  0xb7   : > { %v675_v8 = vpop.f32.mrf.mxu1  ;;  %1366 = vst [vmem:[%s1769_s13] sm:$0xff] %v1365_v3   ;;  %v773_v10 = vadd.f32 %v1754_v50, %v772_v7 }
  0xb8   : > { %v853_v12 = vmax.f32 %v723_v4, 0.0  ;;  %v630_v13 = vpop.f32.mrf.mxu0  ;;  %v676_v19 = vadd.f32 %v1754_v50, %v675_v8 }
  0xb9   : > { %v873_v14 = vmax.f32 %v773_v10, 0.0  ;;  %v631_v18 = vadd.f32 %v1754_v50, %v630_v13 }
  0xba   : > { %v1460_v15 = vpack.c.bf16 %v853_v12, %v852_v11  ;;  %1296 = vmatmul.msk.bf16.gmra.mxu1 %vm497_vm1, %v1336_v5  ;;  %1306 = vmatmul.msk.bf16.gmra.mxu2 %vm497_vm1, %v1346_v6  ;;  %v834_v26 = vmax.f32 %v676_v19, 0.0 }
  0xbb   : > { %v1510_v16 = vpack.c.bf16 %v873_v14, %v872_v9  ;;  %v816_v24 = vmax.f32 %v631_v18, 0.0 }
  0xbc   : > { %1565 = vst [vmem:[%s1769_s13 + $0x98] sm:$0xff] %v1460_v15  }
  0xbd   : > { %v725_v17 = vpop.f32.mrf.mxu2  ;;  %1575 = vst [vmem:[%s1769_s13 + $0xe8] sm:$0xff] %v1510_v16  }
  0xbe   : > { %v775_v20 = vpop.f32.mrf.mxu3  ;;  %v726_v30 = vadd.f32 %v1754_v50, %v725_v17 }
  0xbf   : > { %v677_v21 = vpop.f32.mrf.mxu1  ;;  %v776_v28 = vadd.f32 %v1754_v50, %v775_v20 }
  0xc0   : > { %v678_v22 = vadd.f32 %v1754_v50, %v677_v21  ;;  %v632_v23 = vpop.f32.mrf.mxu0  ;;  %v854_v39 = vmax.f32 %v726_v30, 0.0 }
  0xc1   : > { %v633_v25 = vadd.f32 %v1754_v50, %v632_v23  ;;  %v874_v37 = vmax.f32 %v776_v28, 0.0 }
  0xc2   : > { %v835_v27 = vmax.f32 %v678_v22, 0.0 }
  0xc3   : > { %v817_v29 = vmax.f32 %v633_v25, 0.0 }
  0xc4   : > { %v1415_v31 = vpack.c.bf16 %v835_v27, %v834_v26 }
  0xc5   : > { %v727_v32 = vpop.f32.mrf.mxu2  ;;  %v1370_v33 = vpack.c.bf16 %v817_v29, %v816_v24 }
  0xc6   : > { %1556 = vst [vmem:[%s1769_s13 + $0x50] sm:$0xff] %v1415_v31   ;;  %v728_v34 = vadd.f32 %v1754_v50, %v727_v32  ;;  %v777_v35 = vpop.f32.mrf.mxu3 }
  0xc7   : > { %v680_v36 = vpop.f32.mrf.mxu1  ;;  %1547 = vst [vmem:[%s1769_s13 + $0x8] sm:$0xff] %v1370_v33   ;;  %v778_v38 = vadd.f32 %v1754_v50, %v777_v35 }
  0xc8   : > { %v855_v40 = vmax.f32 %v728_v34, 0.0  ;;  %v635_v41 = vpop.f32.mrf.mxu0  ;;  %v681_v47 = vadd.f32 %v1754_v50, %v680_v36 }
  0xc9   : > { %v875_v42 = vmax.f32 %v778_v38, 0.0  ;;  %v636_v46 = vadd.f32 %v1754_v50, %v635_v41 }
  0xca   : > { %v1465_v43 = vpack.c.bf16 %v855_v40, %v854_v39  ;;  %v836_v55 = vmax.f32 %v681_v47, 0.0 }
  0xcb   : > { %v1515_v44 = vpack.c.bf16 %v875_v42, %v874_v37  ;;  %v818_v53 = vmax.f32 %v636_v46, 0.0 }
  0xcc   : > { %1566 = vst [vmem:[%s1769_s13 + $0xa0] sm:$0xff] %v1465_v43  }
  0xcd   : > { %v730_v45 = vpop.f32.mrf.mxu2  ;;  %1576 = vst [vmem:[%s1769_s13 + $0xf0] sm:$0xff] %v1515_v44  }
  0xce   : > { %v780_v48 = vpop.f32.mrf.mxu3  ;;  %v731_v59 = vadd.f32 %v1754_v50, %v730_v45 }
  0xcf   : > { %v682_v49 = vpop.f32.mrf.mxu1  ;;  %v781_v57 = vadd.f32 %v1754_v50, %v780_v48 }
  0xd0   : > { %v683_v51 = vadd.f32 %v1754_v50, %v682_v49  ;;  %v637_v52 = vpop.f32.mrf.mxu0  ;;  %v856_v4 = vmax.f32 %v731_v59, 0.0 }
  0xd1   : > { %v638_v54 = vadd.f32 %v1754_v50, %v637_v52  ;;  %v876_v2 = vmax.f32 %v781_v57, 0.0 }
  0xd2   : > { %v837_v56 = vmax.f32 %v683_v51, 0.0 }
  0xd3   : > { %v819_v58 = vmax.f32 %v638_v54, 0.0 }
  0xd4   : > { %v1420_v60 = vpack.c.bf16 %v837_v56, %v836_v55 }
  0xd5   : > { %v732_v61 = vpop.f32.mrf.mxu2  ;;  %v1375_v62 = vpack.c.bf16 %v819_v58, %v818_v53 }
  0xd6   : > { %1557 = vst [vmem:[%s1769_s13 + $0x58] sm:$0xff] %v1420_v60   ;;  %v733_v63 = vadd.f32 %v1754_v50, %v732_v61  ;;  %v782_v0 = vpop.f32.mrf.mxu3 }
  0xd7   : > { %v685_v1 = vpop.f32.mrf.mxu1  ;;  %1548 = vst [vmem:[%s1769_s13 + $0x10] sm:$0xff] %v1375_v62   ;;  %v783_v3 = vadd.f32 %v1754_v50, %v782_v0 }
  0xd8   : > { %v857_v5 = vmax.f32 %v733_v63, 0.0  ;;  %v640_v6 = vpop.f32.mrf.mxu0  ;;  %v686_v12 = vadd.f32 %v1754_v50, %v685_v1 }
  0xd9   : > { %v877_v7 = vmax.f32 %v783_v3, 0.0  ;;  %v641_v11 = vadd.f32 %v1754_v50, %v640_v6 }
  0xda   : > { %v1470_v8 = vpack.c.bf16 %v857_v5, %v856_v4  ;;  %v838_v19 = vmax.f32 %v686_v12, 0.0 }
  0xdb   : > { %v1520_v9 = vpack.c.bf16 %v877_v7, %v876_v2  ;;  %v820_v17 = vmax.f32 %v641_v11, 0.0 }
  0xdc   : > { %1567 = vst [vmem:[%s1769_s13 + $0xa8] sm:$0xff] %v1470_v8  }
  0xdd   : > { %v735_v10 = vpop.f32.mrf.mxu2  ;;  %1577 = vst [vmem:[%s1769_s13 + $0xf8] sm:$0xff] %v1520_v9  }
  0xde   : > { %v785_v13 = vpop.f32.mrf.mxu3  ;;  %v736_v23 = vadd.f32 %v1754_v50, %v735_v10 }
  0xdf   : > { %v687_v14 = vpop.f32.mrf.mxu1  ;;  %v786_v21 = vadd.f32 %v1754_v50, %v785_v13 }
  0xe0   : > { %v688_v15 = vadd.f32 %v1754_v50, %v687_v14  ;;  %v642_v16 = vpop.f32.mrf.mxu0  ;;  %v858_v32 = vmax.f32 %v736_v23, 0.0 }
  0xe1   : > { %v643_v18 = vadd.f32 %v1754_v50, %v642_v16  ;;  %v878_v30 = vmax.f32 %v786_v21, 0.0 }
  0xe2   : > { %v839_v20 = vmax.f32 %v688_v15, 0.0 }
  0xe3   : > { %v821_v22 = vmax.f32 %v643_v18, 0.0 }
  0xe4   : > { %v1425_v24 = vpack.c.bf16 %v839_v20, %v838_v19 }
  0xe5   : > { %v737_v25 = vpop.f32.mrf.mxu2  ;;  %v1380_v26 = vpack.c.bf16 %v821_v22, %v820_v17 }
  0xe6   : > { %1558 = vst [vmem:[%s1769_s13 + $0x60] sm:$0xff] %v1425_v24   ;;  %v738_v27 = vadd.f32 %v1754_v50, %v737_v25  ;;  %v787_v28 = vpop.f32.mrf.mxu3 }
  0xe7   : > { %v690_v29 = vpop.f32.mrf.mxu1  ;;  %1549 = vst [vmem:[%s1769_s13 + $0x18] sm:$0xff] %v1380_v26   ;;  %v788_v31 = vadd.f32 %v1754_v50, %v787_v28 }
  0xe8   : > { %v859_v33 = vmax.f32 %v738_v27, 0.0  ;;  %v645_v34 = vpop.f32.mrf.mxu0  ;;  %v691_v40 = vadd.f32 %v1754_v50, %v690_v29 }
  0xe9   : > { %v879_v35 = vmax.f32 %v788_v31, 0.0  ;;  %v646_v39 = vadd.f32 %v1754_v50, %v645_v34 }
  0xea   : > { %v1475_v36 = vpack.c.bf16 %v859_v33, %v858_v32  ;;  %v840_v47 = vmax.f32 %v691_v40, 0.0 }
  0xeb   : > { %v1525_v37 = vpack.c.bf16 %v879_v35, %v878_v30  ;;  %v822_v45 = vmax.f32 %v646_v39, 0.0 }
  0xec   : > { %1568 = vst [vmem:[%s1769_s13 + $0xb0] sm:$0xff] %v1475_v36  }
  0xed   : > { %v740_v38 = vpop.f32.mrf.mxu2  ;;  %1578 = vst [vmem:[%s1769_s13 + $0x100] sm:$0xff] %v1525_v37  }
  0xee   : > { %v790_v41 = vpop.f32.mrf.mxu3  ;;  %v741_v52 = vadd.f32 %v1754_v50, %v740_v38 }
  0xef   : > { %v692_v42 = vpop.f32.mrf.mxu1  ;;  %v791_v49 = vadd.f32 %v1754_v50, %v790_v41 }
  0xf0   : > { %v693_v43 = vadd.f32 %v1754_v50, %v692_v42  ;;  %v647_v44 = vpop.f32.mrf.mxu0  ;;  %v860_v61 = vmax.f32 %v741_v52, 0.0 }
  0xf1   : > { %v648_v46 = vadd.f32 %v1754_v50, %v647_v44  ;;  %v880_v59 = vmax.f32 %v791_v49, 0.0 }
  0xf2   : > { %v841_v48 = vmax.f32 %v693_v43, 0.0 }
  0xf3   : > { %v823_v51 = vmax.f32 %v648_v46, 0.0 }
  0xf4   : > { %v1430_v53 = vpack.c.bf16 %v841_v48, %v840_v47 }
  0xf5   : > { %v742_v54 = vpop.f32.mrf.mxu2  ;;  %v1385_v55 = vpack.c.bf16 %v823_v51, %v822_v45 }
  0xf6   : > { %1559 = vst [vmem:[%s1769_s13 + $0x68] sm:$0xff] %v1430_v53   ;;  %v743_v56 = vadd.f32 %v1754_v50, %v742_v54  ;;  %v792_v57 = vpop.f32.mrf.mxu3 }
  0xf7   : > { %v695_v58 = vpop.f32.mrf.mxu1  ;;  %1550 = vst [vmem:[%s1769_s13 + $0x20] sm:$0xff] %v1385_v55   ;;  %v793_v60 = vadd.f32 %v1754_v50, %v792_v57 }
  0xf8   : > { %v861_v62 = vmax.f32 %v743_v56, 0.0  ;;  %v650_v63 = vpop.f32.mrf.mxu0  ;;  %v696_v5 = vadd.f32 %v1754_v50, %v695_v58 }
  0xf9   : > { %v881_v0 = vmax.f32 %v793_v60, 0.0  ;;  %v651_v4 = vadd.f32 %v1754_v50, %v650_v63 }
  0xfa   : > { %v1480_v1 = vpack.c.bf16 %v861_v62, %v860_v61  ;;  %v842_v12 = vmax.f32 %v696_v5, 0.0 }
  0xfb   : > { %v1530_v2 = vpack.c.bf16 %v881_v0, %v880_v59  ;;  %v824_v10 = vmax.f32 %v651_v4, 0.0 }
  0xfc   : > { %1569 = vst [vmem:[%s1769_s13 + $0xb8] sm:$0xff] %v1480_v1  }
  0xfd   : > { %v745_v3 = vpop.f32.mrf.mxu2  ;;  %1579 = vst [vmem:[%s1769_s13 + $0x108] sm:$0xff] %v1530_v2  }
  0xfe   : > { %v795_v6 = vpop.f32.mrf.mxu3  ;;  %v746_v16 = vadd.f32 %v1754_v50, %v745_v3 }
  0xff   : > { %v697_v7 = vpop.f32.mrf.mxu1  ;;  %v796_v14 = vadd.f32 %v1754_v50, %v795_v6 }
 0x100   : > { %v698_v8 = vadd.f32 %v1754_v50, %v697_v7  ;;  %v652_v9 = vpop.f32.mrf.mxu0  ;;  %v862_v25 = vmax.f32 %v746_v16, 0.0 }
 0x101   : > { %v653_v11 = vadd.f32 %v1754_v50, %v652_v9  ;;  %v882_v23 = vmax.f32 %v796_v14, 0.0 }
 0x102   : > { %v843_v13 = vmax.f32 %v698_v8, 0.0 }
 0x103   : > { %v825_v15 = vmax.f32 %v653_v11, 0.0 }
 0x104   : > { %v1435_v17 = vpack.c.bf16 %v843_v13, %v842_v12 }
 0x105   : > { %v747_v18 = vpop.f32.mrf.mxu2  ;;  %v1390_v19 = vpack.c.bf16 %v825_v15, %v824_v10 }
 0x106   : > { %1560 = vst [vmem:[%s1769_s13 + $0x70] sm:$0xff] %v1435_v17   ;;  %v748_v20 = vadd.f32 %v1754_v50, %v747_v18  ;;  %v797_v21 = vpop.f32.mrf.mxu3 }
 0x107   : > { %v700_v22 = vpop.f32.mrf.mxu1  ;;  %1551 = vst [vmem:[%s1769_s13 + $0x28] sm:$0xff] %v1390_v19   ;;  %v798_v24 = vadd.f32 %v1754_v50, %v797_v21 }
 0x108   : > { %v863_v26 = vmax.f32 %v748_v20, 0.0  ;;  %v655_v27 = vpop.f32.mrf.mxu0  ;;  %v701_v33 = vadd.f32 %v1754_v50, %v700_v22 }
 0x109   : > { %v883_v28 = vmax.f32 %v798_v24, 0.0  ;;  %v656_v32 = vadd.f32 %v1754_v50, %v655_v27 }
 0x10a   : > { %v1485_v29 = vpack.c.bf16 %v863_v26, %v862_v25  ;;  %v844_v40 = vmax.f32 %v701_v33, 0.0 }
 0x10b   : > { %v1535_v30 = vpack.c.bf16 %v883_v28, %v882_v23  ;;  %v826_v38 = vmax.f32 %v656_v32, 0.0 }
 0x10c   : > { %1570 = vst [vmem:[%s1769_s13 + $0xc0] sm:$0xff] %v1485_v29  }
 0x10d   : > { %v750_v31 = vpop.f32.mrf.mxu2  ;;  %1580 = vst [vmem:[%s1769_s13 + $0x110] sm:$0xff] %v1535_v30  }
 0x10e   : > { %v800_v34 = vpop.f32.mrf.mxu3  ;;  %v751_v44 = vadd.f32 %v1754_v50, %v750_v31 }
 0x10f   : > { %v702_v35 = vpop.f32.mrf.mxu1  ;;  %v801_v42 = vadd.f32 %v1754_v50, %v800_v34 }
 0x110   : > { %v703_v36 = vadd.f32 %v1754_v50, %v702_v35  ;;  %v657_v37 = vpop.f32.mrf.mxu0  ;;  %v864_v54 = vmax.f32 %v751_v44, 0.0 }
 0x111   : > { %v658_v39 = vadd.f32 %v1754_v50, %v657_v37  ;;  %v884_v52 = vmax.f32 %v801_v42, 0.0 }
 0x112   : > { %v845_v41 = vmax.f32 %v703_v36, 0.0 }
 0x113   : > { %v827_v43 = vmax.f32 %v658_v39, 0.0 }
 0x114   : > { %v1440_v45 = vpack.c.bf16 %v845_v41, %v844_v40 }
 0x115   : > { %v752_v46 = vpop.f32.mrf.mxu2  ;;  %v1395_v47 = vpack.c.bf16 %v827_v43, %v826_v38 }
 0x116   : > { %1561 = vst [vmem:[%s1769_s13 + $0x78] sm:$0xff] %v1440_v45   ;;  %v753_v48 = vadd.f32 %v1754_v50, %v752_v46  ;;  %v802_v49 = vpop.f32.mrf.mxu3 }
 0x117   : > { %v705_v51 = vpop.f32.mrf.mxu1  ;;  %1552 = vst [vmem:[%s1769_s13 + $0x30] sm:$0xff] %v1395_v47   ;;  %v803_v53 = vadd.f32 %v1754_v50, %v802_v49 }
 0x118   : > { %v865_v55 = vmax.f32 %v753_v48, 0.0  ;;  %v660_v56 = vpop.f32.mrf.mxu0  ;;  %v706_v62 = vadd.f32 %v1754_v50, %v705_v51 }
 0x119   : > { %v885_v57 = vmax.f32 %v803_v53, 0.0  ;;  %v661_v61 = vadd.f32 %v1754_v50, %v660_v56 }
 0x11a   : > { %v1490_v58 = vpack.c.bf16 %v865_v55, %v864_v54  ;;  %v846_v5 = vmax.f32 %v706_v62, 0.0 }
 0x11b   : > { %v1540_v59 = vpack.c.bf16 %v885_v57, %v884_v52  ;;  %v828_v3 = vmax.f32 %v661_v61, 0.0 }
 0x11c   : > { %1571 = vst [vmem:[%s1769_s13 + $0xc8] sm:$0xff] %v1490_v58  }
 0x11d   : > { %v755_v60 = vpop.f32.mrf.mxu2  ;;  %1581 = vst [vmem:[%s1769_s13 + $0x118] sm:$0xff] %v1540_v59  }
 0x11e   : > { %v805_v63 = vpop.f32.mrf.mxu3  ;;  %v756_v9 = vadd.f32 %v1754_v50, %v755_v60 }
 0x11f   : > { %v707_v0 = vpop.f32.mrf.mxu1  ;;  %v806_v7 = vadd.f32 %v1754_v50, %v805_v63 }
 0x120   : > { %v708_v1 = vadd.f32 %v1754_v50, %v707_v0  ;;  %v662_v2 = vpop.f32.mrf.mxu0  ;;  %v866_v18 = vmax.f32 %v756_v9, 0.0 }
 0x121   : > { %v663_v4 = vadd.f32 %v1754_v50, %v662_v2  ;;  %v886_v16 = vmax.f32 %v806_v7, 0.0 }
 0x122   : > { %v847_v6 = vmax.f32 %v708_v1, 0.0 }
 0x123   : > { %v829_v8 = vmax.f32 %v663_v4, 0.0 }
 0x124   : > { %v1445_v10 = vpack.c.bf16 %v847_v6, %v846_v5 }
 0x125   : > { %v757_v11 = vpop.f32.mrf.mxu2  ;;  %v1400_v12 = vpack.c.bf16 %v829_v8, %v828_v3 }
 0x126   : > { %1562 = vst [vmem:[%s1769_s13 + $0x80] sm:$0xff] %v1445_v10   ;;  %v758_v13 = vadd.f32 %v1754_v50, %v757_v11  ;;  %v807_v14 = vpop.f32.mrf.mxu3 }
 0x127   : > { %v710_v15 = vpop.f32.mrf.mxu1  ;;  %1553 = vst [vmem:[%s1769_s13 + $0x38] sm:$0xff] %v1400_v12   ;;  %v808_v17 = vadd.f32 %v1754_v50, %v807_v14 }
 0x128   : > { %v867_v19 = vmax.f32 %v758_v13, 0.0  ;;  %v665_v20 = vpop.f32.mrf.mxu0  ;;  %v711_v26 = vadd.f32 %v1754_v50, %v710_v15 }
 0x129   : > { %v887_v21 = vmax.f32 %v808_v17, 0.0  ;;  %v666_v25 = vadd.f32 %v1754_v50, %v665_v20 }
 0x12a   : > { %v1495_v22 = vpack.c.bf16 %v867_v19, %v866_v18  ;;  %v848_v35 = vmax.f32 %v711_v26, 0.0 }
 0x12b   : > { %v1545_v23 = vpack.c.bf16 %v887_v21, %v886_v16  ;;  %v830_v32 = vmax.f32 %v666_v25, 0.0 }
 0x12c   : > { %1572 = vst [vmem:[%s1769_s13 + $0xd0] sm:$0xff] %v1495_v22  }
 0x12d   : > { %v760_v24 = vpop.f32.mrf.mxu2  ;;  %1582 = vst [vmem:[%s1769_s13 + $0x120] sm:$0xff] %v1545_v23  }
 0x12e   : > { %v810_v27 = vpop.f32.mrf.mxu3  ;;  %v761_v39 = vadd.f32 %v1754_v50, %v760_v24 }
 0x12f   : > { %v712_v28 = vpop.f32.mrf.mxu1  ;;  %v811_v29 = vadd.f32 %v1754_v50, %v810_v27 }
 0x130   : > { %v713_v30 = vadd.f32 %v1754_v50, %v712_v28  ;;  %v667_v31 = vpop.f32.mrf.mxu0  ;;  %v868_v46 = vmax.f32 %v761_v39, 0.0 }
 0x131   : > { %v888_v33 = vmax.f32 %v811_v29, 0.0  ;;  %v668_v34 = vadd.f32 %v1754_v50, %v667_v31 }
 0x132   : > { %v849_v36 = vmax.f32 %v713_v30, 0.0 }
 0x133   : > { %v963_v37 = vpack.c.bf16 %v888_v33, %v888_v33  ;;  %v831_v38 = vmax.f32 %v668_v34, 0.0 }
 0x134   : > { %v1450_v40 = vpack.c.bf16 %v849_v36, %v848_v35 }
 0x135   : > { %v762_v41 = vpop.f32.mrf.mxu2  ;;  %1038 = vst [vmem:[%s1769_s13 + $0x128] sm:$0xf] %v963_v37  ;;  %v1405_v42 = vpack.c.bf16 %v831_v38, %v830_v32 }
 0x136   : > { %1563 = vst [vmem:[%s1769_s13 + $0x88] sm:$0xff] %v1450_v40   ;;  %v763_v43 = vadd.f32 %v1754_v50, %v762_v41  ;;  %v812_v44 = vpop.f32.mrf.mxu3 }
 0x137   : > { %v715_v45 = vpop.f32.mrf.mxu1  ;;  %1554 = vst [vmem:[%s1769_s13 + $0x40] sm:$0xff] %v1405_v42  }
 0x138   : > { %v869_v47 = vmax.f32 %v763_v43, 0.0  ;;  %v716_v51 = vadd.f32 %v1754_v50, %v715_v45 }
 0x13a   : > { %v1500_v48 = vpack.c.bf16 %v869_v47, %v868_v46  ;;  %v850_v54 = vmax.f32 %v716_v51, 0.0 }
 0x13c   : > { %1573 = vst [vmem:[%s1769_s13 + $0xd8] sm:$0xff] %v1500_v48  }
 0x13d   : > { %v765_v49 = vpop.f32.mrf.mxu2 }
 0x13e   : > { %v766_v56 = vadd.f32 %v1754_v50, %v765_v49 }
 0x13f   : > { %v717_v52 = vpop.f32.mrf.mxu1 }
 0x140   : > { %v718_v53 = vadd.f32 %v1754_v50, %v717_v52  ;;  %v870_v60 = vmax.f32 %v766_v56, 0.0 }
 0x142   : > { %v851_v55 = vmax.f32 %v718_v53, 0.0 }
 0x144   : > { %v1455_v57 = vpack.c.bf16 %v851_v55, %v850_v54 }
 0x145   : > { %v767_v58 = vpop.f32.mrf.mxu2 }
 0x146   : > { %1564 = vst [vmem:[%s1769_s13 + $0x90] sm:$0xff] %v1455_v57   ;;  %v768_v59 = vadd.f32 %v1754_v50, %v767_v58 }
 0x148   : > { %v871_v61 = vmax.f32 %v768_v59, 0.0 }
 0x14a   : > { %v1505_v62 = vpack.c.bf16 %v871_v61, %v870_v60 }
 0x14c   : > { %1574 = vst [vmem:[%s1769_s13 + $0xe0] sm:$0xff] %v1505_v62  }
 0x14d PF: > { %s13_s12 = sadd.s32 1, %s1619_s12  }
 0x14e   : > { %p10_p4 = scmp.ge.s32.totalorder %s13_s12, 5  }
 0x150   :  { %12 = sbr.rel (!%p10_p4) target bundleno = 1 (0x1), region = 62 }

// kernel: qnetwork_conv_forward.5
= control target key start
LH: loop header
LB: loop body
LE: loop exit
PB: predicated region body
PF: predicated region fallthrough
CT: control target
= control target key end

     0   :  { %vm631_vm0 = vcmask 261120   ;;  %s2638_s1 = inlined_call_operand.vmem [shape: bf16[288,128], index: 1, kind: input, shape index: {}]   ;;  %s2639_s0 = inlined_call_operand.vmem [shape: bf16[392,288], index: 0, kind: input, shape index: {}]   ;;  %s2640_s2 = inlined_call_operand.vmem [shape: f32[1,128], index: 2, kind: input, shape index: {}]   ;;  %s2641_s3 = inlined_call_operand.vmem [shape: bf16[392,128], index: 3, kind: output, shape index: {}]  }
   0x1   :  { %v1721_v0 = vld [vmem:[%s2638_s1 + $0x38] sm:$0xff]  ;;  %v1924_v2 = vld [vmem:[%s2638_s1 + $0x88] sm:$0xff]  ;;  %v1720_v3 = vld [vmem:[%s2638_s1 + $0x30] sm:$0xff] }
   0x2   :  { %v1729_v1 = vld [vmem:[%s2638_s1 + $0x78] sm:$0xff]  ;;  %707 = vmatpush.bf16.msra.mxu0 %v1721_v0  ;;  %1875 = vmatpush.bf16.msra.mxu3 %v1721_v0  ;;  %v1728_v4 = vld [vmem:[%s2638_s1 + $0x70] sm:$0xff]  ;;  %v1936_v5 = vld [vmem:[%s2638_s1 + $0x80] sm:$0xff] }
   0x3   :  { %840 = vmatpush.bf16.msra.mxu1 %v1729_v1  ;;  %979 = vmatpush.bf16.msra.mxu2 %v1924_v2  ;;  %v1267_v6 = vld [vmem:[%s2639_s0 + $0x8] sm:$0xf]  ;;  %v1644_v7 = vld [vmem:[%s2639_s0 + $0x10] sm:$0xf0]  ;;  %v1718_v11 = vld [vmem:[%s2638_s1 + $0x20] sm:$0xff] }
   0x4   :  { %v1268_v8 = vor.u32 %v1644_v7, %v1267_v6  ;;  %v1719_v9 = vld [vmem:[%s2638_s1 + $0x28] sm:$0xff]  ;;  %v1726_v12 = vld [vmem:[%s2638_s1 + $0x60] sm:$0xff]  ;;  %v1717_v13 = vld [vmem:[%s2638_s1 + $0x18] sm:$0xff] }
   0x5   :  { %v1727_v10 = vld [vmem:[%s2638_s1 + $0x68] sm:$0xff]  ;;  %v1725_v14 = vld [vmem:[%s2638_s1 + $0x58] sm:$0xff]  ;;  %v1716_v15 = vld [vmem:[%s2638_s1 + $0x10] sm:$0xff] }
   0x6   :  { %708 = vmatpush.bf16.msra.mxu0 %v1720_v3  ;;  %1876 = vmatpush.bf16.msra.mxu3 %v1720_v3  ;;  %v1724_v16 = vld [vmem:[%s2638_s1 + $0x50] sm:$0xff]  ;;  %v1279_v17 = vld [vmem:[%s2639_s0 + $0x20] sm:$0xf]  ;;  %v1647_v18 = vld [vmem:[%s2639_s0 + $0x28] sm:$0xf0] }
   0x7   :  { %841 = vmatpush.bf16.msra.mxu1 %v1728_v4  ;;  %980 = vmatpush.bf16.msra.mxu2 %v1936_v5  ;;  %v1280_v19 = vor.u32 %v1647_v18, %v1279_v17  ;;  %v1715_v20 = vld [vmem:[%s2638_s1 + $0x8] sm:$0xff]  ;;  %v1714_v22 = vld [vmem:[%s2638_s1] sm:$0xff]  ;;  %v1700_v27 = vld [vmem:[%s2639_s0 + $0x1d0] sm:$0xf0] }
   0x8   :  { %v1723_v21 = vld [vmem:[%s2638_s1 + $0x48] sm:$0xff]  ;;  %v1722_v23 = vld [vmem:[%s2638_s1 + $0x40] sm:$0xff]  ;;  %v1261_v29 = vld [vmem:[%s2639_s0 + $0xc] sm:$0xf0] }
   0x9   :  { %v1259_v24 = vld [vmem:[%s2639_s0] sm:$0xf]  ;;  %v1643_v25 = vld [vmem:[%s2639_s0 + $0x8] sm:$0xf0]  ;;  %v1487_v26 = vld [vmem:[%s2639_s0 + $0x1c8] sm:$0xf] }
   0xa   :  { %1617 = vmatmul.msk.bf16.vlgmr.msra.gmra.mxu2 %vm631_vm0, %v1268_v8  ;;  %709 = vmatpush.bf16.msra.mxu0 %v1719_v9  ;;  %v1642_v28 = vld [vmem:[%s2639_s0 + $0x4] sm:$0xf]  ;;  %v1260_v30 = vor.u32 %v1643_v25, %v1259_v24  ;;  %v1488_v31 = vor.u32 %v1700_v27, %v1487_v26  ;;  %v1291_v33 = vld [vmem:[%s2639_s0 + $0x38] sm:$0xf]  ;;  %v1499_v38 = vld [vmem:[%s2639_s0 + $0x1e0] sm:$0xf] }
   0xb   :  { %1877 = vmatpush.bf16.msra.mxu3 %v1719_v9  ;;  %842 = vmatpush.bf16.msra.mxu1 %v1727_v10  ;;  %v1264_v32 = vor.u32 %v1642_v28, %v1261_v29  ;;  %v1650_v34 = vld [vmem:[%s2639_s0 + $0x40] sm:$0xf0]  ;;  %v1271_v36 = vld [vmem:[%s2639_s0 + $0x18] sm:$0xf]  ;;  %v1703_v39 = vld [vmem:[%s2639_s0 + $0x1e8] sm:$0xf0] }
   0xc   :  { %v1292_v35 = vor.u32 %v1650_v34, %v1291_v33  ;;  %v1646_v37 = vld [vmem:[%s2639_s0 + $0x20] sm:$0xf0]  ;;  %v1645_v40 = vld [vmem:[%s2639_s0 + $0x1c] sm:$0xf]  ;;  %v1273_v41 = vld [vmem:[%s2639_s0 + $0x24] sm:$0xf0]  ;;  %v1500_v43 = vor.u32 %v1703_v39, %v1499_v38 }
   0xd   :  { %v1272_v42 = vor.u32 %v1646_v37, %v1271_v36  ;;  %v1276_v44 = vor.u32 %v1645_v40, %v1273_v41  ;;  %v1303_v45 = vld [vmem:[%s2639_s0 + $0x50] sm:$0xf]  ;;  %v1653_v46 = vld [vmem:[%s2639_s0 + $0x58] sm:$0xf0]  ;;  %v1511_v50 = vld [vmem:[%s2639_s0 + $0x1f8] sm:$0xf] }
   0xe   :  { %710 = vmatpush.bf16.msra.mxu0 %v1718_v11  ;;  %v1304_v47 = vor.u32 %v1653_v46, %v1303_v45  ;;  %v1283_v48 = vld [vmem:[%s2639_s0 + $0x30] sm:$0xf]  ;;  %v1649_v49 = vld [vmem:[%s2639_s0 + $0x38] sm:$0xf0]  ;;  %v1706_v51 = vld [vmem:[%s2639_s0 + $0x200] sm:$0xf0] }
   0xf   :  { %1878 = vmatpush.bf16.msra.mxu3 %v1718_v11  ;;  %843 = vmatpush.bf16.msra.mxu1 %v1726_v12  ;;  %v1648_v52 = vld [vmem:[%s2639_s0 + $0x34] sm:$0xf]  ;;  %v1285_v53 = vld [vmem:[%s2639_s0 + $0x3c] sm:$0xf0]  ;;  %v1284_v54 = vor.u32 %v1649_v49, %v1283_v48  ;;  %v1512_v55 = vor.u32 %v1706_v51, %v1511_v50  ;;  %v1315_v57 = vld [vmem:[%s2639_s0 + $0x68] sm:$0xf] }
  0x10   :  { %v1288_v56 = vor.u32 %v1648_v52, %v1285_v53  ;;  %v1656_v58 = vld [vmem:[%s2639_s0 + $0x70] sm:$0xf0]  ;;  %v1295_v60 = vld [vmem:[%s2639_s0 + $0x48] sm:$0xf]  ;;  %v1523_v62 = vld [vmem:[%s2639_s0 + $0x210] sm:$0xf] }
  0x11   :  { %v1316_v59 = vor.u32 %v1656_v58, %v1315_v57  ;;  %v1652_v61 = vld [vmem:[%s2639_s0 + $0x50] sm:$0xf0]  ;;  %v1709_v63 = vld [vmem:[%s2639_s0 + $0x218] sm:$0xf0]  ;;  %v1651_v0 = vld [vmem:[%s2639_s0 + $0x4c] sm:$0xf] }
  0x12   :  { %711 = vmatpush.bf16.msra.mxu0 %v1717_v13  ;;  %v1524_v3 = vor.u32 %v1709_v63, %v1523_v62  ;;  %v1659_v6 = vld [vmem:[%s2639_s0 + $0x88] sm:$0xf0]  ;;  %v1307_v8 = vld [vmem:[%s2639_s0 + $0x60] sm:$0xf]  ;;  %v1712_v11 = vld [vmem:[%s2639_s0 + $0x230] sm:$0xf0] }
  0x13   :  { %1879 = vmatpush.bf16.msra.mxu3 %v1717_v13  ;;  %844 = vmatpush.bf16.msra.mxu1 %v1725_v14  ;;  %v1655_v9 = vld [vmem:[%s2639_s0 + $0x68] sm:$0xf0]  ;;  %v1309_v13 = vld [vmem:[%s2639_s0 + $0x6c] sm:$0xf0]  ;;  %v1339_v17 = vld [vmem:[%s2639_s0 + $0x98] sm:$0xf] }
  0x14   :  { %v1662_v18 = vld [vmem:[%s2639_s0 + $0xa0] sm:$0xf0]  ;;  %v1657_v24 = vld [vmem:[%s2639_s0 + $0x7c] sm:$0xf]  ;;  %v1321_v25 = vld [vmem:[%s2639_s0 + $0x84] sm:$0xf0] }
  0x15   :  { %v1324_v28 = vor.u32 %v1657_v24, %v1321_v25  ;;  %v1351_v29 = vld [vmem:[%s2639_s0 + $0xb0] sm:$0xf]  ;;  %v1661_v33 = vld [vmem:[%s2639_s0 + $0x98] sm:$0xf0]  ;;  %v1660_v34 = vld [vmem:[%s2639_s0 + $0x94] sm:$0xf] }
  0x16   :  { %712 = vmatpush.bf16.msra.mxu0 %v1716_v15  ;;  %v1699_v36 = vld [vmem:[%s2639_s0 + $0x1cc] sm:$0xf]  ;;  %v1489_v37 = vld [vmem:[%s2639_s0 + $0x1d4] sm:$0xf0]  ;;  %v1363_v41 = vld [vmem:[%s2639_s0 + $0xc8] sm:$0xf] }
  0x17   :  { %1880 = vmatpush.bf16.msra.mxu3 %v1716_v15  ;;  %845 = vmatpush.bf16.msra.mxu1 %v1724_v16  ;;  %v1492_v40 = vor.u32 %v1699_v36, %v1489_v37  ;;  %v1664_v45 = vld [vmem:[%s2639_s0 + $0xb0] sm:$0xf0]  ;;  %v1663_v46 = vld [vmem:[%s2639_s0 + $0xac] sm:$0xf]  ;;  %v1702_v48 = vld [vmem:[%s2639_s0 + $0x1e4] sm:$0xf] }
  0x18   :  { %v1501_v49 = vld [vmem:[%s2639_s0 + $0x1ec] sm:$0xf0]  ;;  %v1355_v58 = vld [vmem:[%s2639_s0 + $0xc0] sm:$0xf]  ;;  %v1705_v62 = vld [vmem:[%s2639_s0 + $0x1fc] sm:$0xf] }
  0x19   :  { %v1504_v53 = vor.u32 %v1702_v48, %v1501_v49  ;;  %v1513_v63 = vld [vmem:[%s2639_s0 + $0x204] sm:$0xf0]  ;;  %v1708_v25 = vld [vmem:[%s2639_s0 + $0x214] sm:$0xf]  ;;  %v1379_v49 = vld [vmem:[%s2639_s0 + $0xf0] sm:$0xf] }
  0x1a   :  { %1618 = vmatmul.msk.bf16.gmra.mxu2 %vm631_vm0, %v1280_v19  ;;  %713 = vmatpush.bf16.msra.mxu0 %v1715_v20  ;;  %v1340_v19 = vor.u32 %v1662_v18, %v1339_v17  ;;  %v1369_v24 = vld [vmem:[%s2639_s0 + $0xe4] sm:$0xf0] }
  0x1b   :  { %1881 = vmatpush.bf16.msra.mxu3 %v1715_v20  ;;  %846 = vmatpush.bf16.msra.mxu1 %v1723_v21  ;;  %v2118_v20 = vld [vmem:[%s2639_s0 + $0x240] sm:$0xff] }
  0x1e   :  { %714 = vmatpush.bf16.msra.mxu0 %v1714_v22 }
  0x1f   :  { %1882 = vmatpush.bf16.msra.mxu3 %v1714_v22  ;;  %847 = vmatpush.bf16.msra.mxu1 %v1722_v23  ;;  %v1658_v22 = vld [vmem:[%s2639_s0 + $0x80] sm:$0xf0] }
  0x21   :  { %715 = vmatmul.bf16.vlgmr.msra.gmra.mxu0 %v1260_v30  ;;  %v1665_v30 = vld [vmem:[%s2639_s0 + $0xb8] sm:$0xf0] }
  0x22   :  { %810 = vmatmul.bf16.vlgmr.msra.gmra.mxu3 %v1488_v31  ;;  %848 = vmatmul.bf16.vlgmr.msra.gmra.mxu1 %v1264_v32  ;;  %v1352_v31 = vor.u32 %v1665_v30, %v1351_v29  ;;  %v1331_v32 = vld [vmem:[%s2639_s0 + $0x90] sm:$0xf] }
  0x23   :  { %1883 = vmatpush.bf16.msrb.mxu3 %v1729_v1  ;;  %v1297_v1 = vld [vmem:[%s2639_s0 + $0x54] sm:$0xf0]  ;;  %v1332_v38 = vor.u32 %v1661_v33, %v1331_v32 }
  0x27   :  { %1884 = vmatpush.bf16.msrb.mxu3 %v1728_v4  ;;  %v1300_v4 = vor.u32 %v1651_v0, %v1297_v1  ;;  %v2212_v1 = vld [vmem:[%s2640_s2] ss:$0 sm:$0xff] }
  0x2a   :  { %1619 = vmatmul.msk.bf16.gmra.mxu2 %vm631_vm0, %v1292_v35  ;;  %v1333_v35 = vld [vmem:[%s2639_s0 + $0x9c] sm:$0xf0] }
  0x2b   :  { %1885 = vmatpush.bf16.msrb.mxu3 %v1727_v10  ;;  %v1535_v10 = vld [vmem:[%s2639_s0 + $0x228] sm:$0xf]  ;;  %v1336_v39 = vor.u32 %v1660_v34, %v1333_v35 }
  0x2c   :  { %v1536_v15 = vor.u32 %v1712_v11, %v1535_v10 }
  0x2f   :  { %1886 = vmatpush.bf16.msrb.mxu3 %v1726_v12  ;;  %v1654_v12 = vld [vmem:[%s2639_s0 + $0x64] sm:$0xf] }
  0x31   :  { %720 = vmatmul.bf16.gmra.mxu0 %v1272_v42  ;;  %v1668_v42 = vld [vmem:[%s2639_s0 + $0xd0] sm:$0xf0] }
  0x32   :  { %815 = vmatmul.bf16.gmra.mxu3 %v1500_v43  ;;  %853 = vmatmul.bf16.gmra.mxu1 %v1276_v44  ;;  %v1364_v43 = vor.u32 %v1668_v42, %v1363_v41  ;;  %v1343_v44 = vld [vmem:[%s2639_s0 + $0xa8] sm:$0xf] }
  0x33   :  { %1887 = vmatpush.bf16.msrb.mxu3 %v1725_v14  ;;  %v1308_v14 = vor.u32 %v1655_v9, %v1307_v8  ;;  %v1344_v51 = vor.u32 %v1664_v45, %v1343_v44  ;;  %v1387_v8 = vld [vmem:[%s2639_s0 + $0xf8] sm:$0xf]  ;;  %v1674_v9 = vld [vmem:[%s2639_s0 + $0x100] sm:$0xf0] }
  0x37   :  { %1888 = vmatpush.bf16.msrb.mxu3 %v1724_v16  ;;  %v1312_v16 = vor.u32 %v1654_v12, %v1309_v13 }
  0x3a   :  { %1620 = vmatmul.msk.bf16.gmra.mxu2 %vm631_vm0, %v1304_v47  ;;  %v1345_v47 = vld [vmem:[%s2639_s0 + $0xb4] sm:$0xf0] }
  0x3b   :  { %1889 = vmatpush.bf16.msrb.mxu3 %v1723_v21  ;;  %v1319_v21 = vld [vmem:[%s2639_s0 + $0x78] sm:$0xf]  ;;  %v1348_v52 = vor.u32 %v1663_v46, %v1345_v47 }
  0x3c   :  { %v1320_v26 = vor.u32 %v1658_v22, %v1319_v21  ;;  %v1670_v21 = vld [vmem:[%s2639_s0 + $0xe0] sm:$0xf0]  ;;  %v1669_v22 = vld [vmem:[%s2639_s0 + $0xdc] sm:$0xf] }
  0x3d   :  { %v1372_v33 = vor.u32 %v1669_v22, %v1369_v24  ;;  %v1393_v22 = vld [vmem:[%s2639_s0 + $0x114] sm:$0xf0] }
  0x3f   :  { %1890 = vmatpush.bf16.msrb.mxu3 %v1722_v23  ;;  %v395_v23 = vunpack.c.l.b16 %v2118_v20 }
  0x41   :  { %725 = vmatmul.bf16.gmra.mxu0 %v1284_v54  ;;  %v470_v27 = vpack.c.b16 %v395_v23, %v395_v23  ;;  %v1375_v54 = vld [vmem:[%s2639_s0 + $0xe0] sm:$0xf] }
  0x42   :  { %820 = vmatmul.bf16.gmra.mxu3 %v1512_v55  ;;  %858 = vmatmul.bf16.gmra.mxu1 %v1288_v56  ;;  %v1671_v55 = vld [vmem:[%s2639_s0 + $0xe8] sm:$0xf0] }
  0x43   :  { %1891 = vmatpush.bf16.msra.mxu3 %v1924_v2  ;;  %v1296_v2 = vor.u32 %v1652_v61, %v1295_v60  ;;  %v1376_v57 = vor.u32 %v1671_v55, %v1375_v54  ;;  %v1666_v60 = vld [vmem:[%s2639_s0 + $0xc4] sm:$0xf]  ;;  %v1357_v61 = vld [vmem:[%s2639_s0 + $0xcc] sm:$0xf0]  ;;  %v1711_v54 = vld [vmem:[%s2639_s0 + $0x22c] sm:$0xf] }
  0x44   :  { %v1537_v55 = vld [vmem:[%s2639_s0 + $0x234] sm:$0xf0] }
  0x47   :  { %1892 = vmatpush.bf16.msra.mxu3 %v1936_v5  ;;  %v1327_v5 = vld [vmem:[%s2639_s0 + $0x80] sm:$0xf] }
  0x48   :  { %v1328_v7 = vor.u32 %v1659_v6, %v1327_v5  ;;  %v1516_v5 = vor.u32 %v1705_v62, %v1513_v63  ;;  %v1540_v63 = vor.u32 %v1711_v54, %v1537_v55 }
  0x4a   :  { %1621 = vmatmul.msk.bf16.gmra.mxu2 %vm631_vm0, %v1316_v59  ;;  %v1667_v59 = vld [vmem:[%s2639_s0 + $0xc8] sm:$0xf0] }
  0x51   :  { %730 = vmatmul.bf16.gmra.mxu0 %v1296_v2  ;;  %v1356_v2 = vor.u32 %v1667_v59, %v1355_v58 }
  0x52   :  { %825 = vmatmul.bf16.gmra.mxu3 %v1524_v3  ;;  %863 = vmatmul.bf16.gmra.mxu1 %v1300_v4  ;;  %v1360_v4 = vor.u32 %v1666_v60, %v1357_v61 }
  0x5a   :  { %1622 = vmatmul.msk.bf16.gmra.mxu2 %vm631_vm0, %v1328_v7 }
  0x61   :  { %735 = vmatmul.bf16.gmra.mxu0 %v1308_v14  ;;  %v1388_v14 = vor.u32 %v1674_v9, %v1387_v8 }
  0x62   :  { %830 = vmatmul.bf16.gmra.mxu3 %v1536_v15  ;;  %868 = vmatmul.bf16.gmra.mxu1 %v1312_v16 }
  0x6a   :  { %1623 = vmatmul.msk.bf16.gmra.mxu2 %vm631_vm0, %v1340_v19  ;;  %v1367_v19 = vld [vmem:[%s2639_s0 + $0xd8] sm:$0xf] }
  0x71   :  { %740 = vmatmul.bf16.gmra.mxu0 %v1320_v26  ;;  %v1525_v26 = vld [vmem:[%s2639_s0 + $0x21c] sm:$0xf0] }
  0x72   :  { %835 = vmatmul.bf16.gmra.mxu3 %v470_v27  ;;  %873 = vmatmul.bf16.gmra.mxu1 %v1324_v28  ;;  %v1528_v34 = vor.u32 %v1708_v25, %v1525_v26 }
  0x7a   :  { %1624 = vmatmul.msk.bf16.gmra.mxu2 %vm631_vm0, %v1352_v31  ;;  %v1368_v31 = vor.u32 %v1670_v21, %v1367_v19  ;;  %v1675_v21 = vld [vmem:[%s2639_s0 + $0x10c] sm:$0xf] }
  0x81   :  { %745 = vmatmul.bf16.gmra.mxu0 %v1332_v38  ;;  %v1399_v38 = vld [vmem:[%s2639_s0 + $0x110] sm:$0xf] }
  0x82   :  { %878 = vmatmul.bf16.gmra.mxu1 %v1336_v39  ;;  %943 = vmatmul.bf16.vlgmr.msrb.gmra.mxu3 %v1492_v40  ;;  %v1677_v39 = vld [vmem:[%s2639_s0 + $0x118] sm:$0xf0] }
  0x83   :  { %v1400_v44 = vor.u32 %v1677_v39, %v1399_v38 }
  0x8a   :  { %1625 = vmatmul.msk.bf16.gmra.mxu2 %vm631_vm0, %v1364_v43 }
  0x8d   :  { %v982_v50 = vpop.f32.mrf.mxu2 }
  0x91   :  { %750 = vmatmul.bf16.gmra.mxu0 %v1344_v51  ;;  %v1672_v51 = vld [vmem:[%s2639_s0 + $0xf4] sm:$0xf] }
  0x92   :  { %883 = vmatmul.bf16.gmra.mxu1 %v1348_v52  ;;  %948 = vmatmul.bf16.gmra.mxu3 %v1504_v53  ;;  %v1381_v53 = vld [vmem:[%s2639_s0 + $0xfc] sm:$0xf0] }
  0x93   :  { %v1384_v62 = vor.u32 %v1672_v51, %v1381_v53  ;;  %v1507_v51 = vld [vmem:[%s2639_s0 + $0x1e8] sm:$0xf] }
  0x95   :  { %v984_v56 = vpop.f32.mrf.mxu2 }
  0x9a   :  { %1626 = vmatmul.msk.bf16.gmra.mxu2 %vm631_vm0, %v1376_v57 }
  0x9d   :  { %v987_v0 = vpop.f32.mrf.mxu2 }
  0x9e   :  { %v716_v3 = vpop.f32.mrf.mxu0 }
  0x9f   :  { %v849_v6 = vpop.f32.mrf.mxu1  ;;  %v717_v7 = vadd.f32 %v2212_v1, %v716_v3 }
  0xa1   :  { %755 = vmatmul.bf16.gmra.mxu0 %v1356_v2  ;;  %v850_v10 = vadd.f32 %v849_v6, %v717_v7 }
  0xa2   :  { %888 = vmatmul.bf16.gmra.mxu1 %v1360_v4  ;;  %953 = vmatmul.bf16.gmra.mxu3 %v1516_v5  ;;  %v1411_v4 = vld [vmem:[%s2639_s0 + $0x128] sm:$0xf]  ;;  %v1680_v5 = vld [vmem:[%s2639_s0 + $0x130] sm:$0xf0] }
  0xa3   :  { %v983_v17 = vadd.f32 %v982_v50, %v850_v10  ;;  %v1673_v50 = vld [vmem:[%s2639_s0 + $0xf8] sm:$0xf0]  ;;  %v1412_v10 = vor.u32 %v1680_v5, %v1411_v4 }
  0xa4   :  { %v1380_v60 = vor.u32 %v1673_v50, %v1379_v49  ;;  %v1405_v50 = vld [vmem:[%s2639_s0 + $0x12c] sm:$0xf0] }
  0xa5   :  { %v2221_v11 = vpop.f32.mrf.mxu3  ;;  %v989_v12 = vpop.f32.mrf.mxu2  ;;  %v1106_v27 = vmax.f32 %v983_v17, 0.0  ;;  %v1676_v17 = vld [vmem:[%s2639_s0 + $0x110] sm:$0xf0] }
  0xa6   :  { %v718_v13 = vpop.f32.mrf.mxu0 }
  0xa7   :  { %v719_v15 = vadd.f32 %v2212_v1, %v718_v13  ;;  %v851_v16 = vpop.f32.mrf.mxu1 }
  0xa9   :  { %v852_v18 = vadd.f32 %v851_v16, %v719_v15  ;;  %v1391_v16 = vld [vmem:[%s2639_s0 + $0x108] sm:$0xf] }
  0xaa   :  { %1627 = vmatmul.msk.bf16.gmra.mxu2 %vm631_vm0, %v1388_v14 }
  0xab   :  { %v985_v23 = vadd.f32 %v984_v56, %v852_v18  ;;  %v396_v18 = vunpack.c.h.b16 %v2118_v20 }
  0xad   :  { %v1107_v28 = vmax.f32 %v985_v23, 0.0  ;;  %v2243_v29 = vpop.f32.mrf.mxu3  ;;  %v992_v30 = vpop.f32.mrf.mxu2 }
  0xae   :  { %v721_v32 = vpop.f32.mrf.mxu0 }
  0xaf   :  { %v1735_v35 = vpack.c.bf16 %v1107_v28, %v1106_v27  ;;  %v854_v36 = vpop.f32.mrf.mxu1  ;;  %v722_v37 = vadd.f32 %v2212_v1, %v721_v32  ;;  %v1392_v27 = vor.u32 %v1676_v17, %v1391_v16  ;;  %v1682_v16 = vld [vmem:[%s2639_s0 + $0x140] sm:$0xf0]  ;;  %v1681_v17 = vld [vmem:[%s2639_s0 + $0x13c] sm:$0xf] }
  0xb1   :  { %1736 = vst [vmem:[%s2641_s3] sm:$0xff] %v1735_v35   ;;  %760 = vmatmul.bf16.gmra.mxu0 %v1368_v31  ;;  %v855_v40 = vadd.f32 %v854_v36, %v722_v37  ;;  %v471_v31 = vpack.c.b16 %v396_v18, %v396_v18  ;;  %v1683_v35 = vld [vmem:[%s2639_s0 + $0x148] sm:$0xf0] }
  0xb2   :  { %893 = vmatmul.bf16.gmra.mxu1 %v1372_v33  ;;  %958 = vmatmul.bf16.gmra.mxu3 %v1528_v34  ;;  %v1423_v34 = vld [vmem:[%s2639_s0 + $0x140] sm:$0xf] }
  0xb3   :  { %v988_v47 = vadd.f32 %v987_v0, %v855_v40  ;;  %v1424_v40 = vor.u32 %v1683_v35, %v1423_v34  ;;  %v1447_v35 = vld [vmem:[%s2639_s0 + $0x170] sm:$0xf] }
  0xb5   :  { %v2255_v41 = vpop.f32.mrf.mxu3  ;;  %v994_v42 = vpop.f32.mrf.mxu2  ;;  %v1108_v56 = vmax.f32 %v988_v47, 0.0  ;;  %v1679_v47 = vld [vmem:[%s2639_s0 + $0x128] sm:$0xf0] }
  0xb6   :  { %v723_v43 = vpop.f32.mrf.mxu0 }
  0xb7   :  { %v724_v45 = vadd.f32 %v2212_v1, %v723_v43  ;;  %v856_v46 = vpop.f32.mrf.mxu1 }
  0xb9   :  { %v857_v48 = vadd.f32 %v856_v46, %v724_v45  ;;  %v1403_v46 = vld [vmem:[%s2639_s0 + $0x120] sm:$0xf] }
  0xba   :  { %1628 = vmatmul.msk.bf16.gmra.mxu2 %vm631_vm0, %v1400_v44 }
  0xbb   :  { %v990_v52 = vadd.f32 %v989_v12, %v857_v48  ;;  %v1678_v48 = vld [vmem:[%s2639_s0 + $0x124] sm:$0xf] }
  0xbd   :  { %v1109_v57 = vmax.f32 %v990_v52, 0.0  ;;  %v2277_v58 = vpop.f32.mrf.mxu3  ;;  %v997_v59 = vpop.f32.mrf.mxu2  ;;  %v1704_v52 = vld [vmem:[%s2639_s0 + $0x1f0] sm:$0xf0] }
  0xbe   :  { %v726_v61 = vpop.f32.mrf.mxu0 }
  0xbf   :  { %v1740_v0 = vpack.c.bf16 %v1109_v57, %v1108_v56  ;;  %v859_v2 = vpop.f32.mrf.mxu1  ;;  %v727_v3 = vadd.f32 %v2212_v1, %v726_v61  ;;  %v1404_v57 = vor.u32 %v1679_v47, %v1403_v46  ;;  %v1508_v61 = vor.u32 %v1704_v52, %v1507_v51  ;;  %v1429_v52 = vld [vmem:[%s2639_s0 + $0x15c] sm:$0xf0] }
  0xc1   :  { %1852 = vst [vmem:[%s2641_s3 + $0x8] sm:$0xff] %v1740_v0   ;;  %765 = vmatmul.bf16.gmra.mxu0 %v1380_v60  ;;  %v860_v6 = vadd.f32 %v859_v2, %v727_v3  ;;  %v1408_v60 = vor.u32 %v1678_v48, %v1405_v50  ;;  %v1435_v2 = vld [vmem:[%s2639_s0 + $0x158] sm:$0xf]  ;;  %v1686_v3 = vld [vmem:[%s2639_s0 + $0x160] sm:$0xf0] }
  0xc2   :  { %898 = vmatmul.bf16.gmra.mxu1 %v1384_v62  ;;  %963 = vmatmul.bf16.gmra.mxu3 %v1540_v63  ;;  %v1427_v48 = vld [vmem:[%s2639_s0 + $0x150] sm:$0xf]  ;;  %v1684_v50 = vld [vmem:[%s2639_s0 + $0x154] sm:$0xf] }
  0xc3   :  { %v993_v14 = vadd.f32 %v992_v30, %v860_v6  ;;  %v1396_v30 = vor.u32 %v1675_v21, %v1393_v22  ;;  %v1519_v21 = vld [vmem:[%s2639_s0 + $0x200] sm:$0xf]  ;;  %v1707_v22 = vld [vmem:[%s2639_s0 + $0x208] sm:$0xf0] }
  0xc5   :  { %v2289_v7 = vpop.f32.mrf.mxu3  ;;  %v999_v8 = vpop.f32.mrf.mxu2  ;;  %v1110_v23 = vmax.f32 %v993_v14, 0.0 }
  0xc6   :  { %v728_v9 = vpop.f32.mrf.mxu0 }
  0xc7   :  { %v729_v12 = vadd.f32 %v2212_v1, %v728_v9  ;;  %v861_v13 = vpop.f32.mrf.mxu1  ;;  %v1436_v9 = vor.u32 %v1686_v3, %v1435_v2 }
  0xc9   :  { %v862_v15 = vadd.f32 %v861_v13, %v729_v12 }
  0xca   :  { %1629 = vmatmul.msk.bf16.gmra.mxu2 %vm631_vm0, %v1412_v10 }
  0xcb   :  { %v995_v19 = vadd.f32 %v994_v42, %v862_v15  ;;  %v1415_v15 = vld [vmem:[%s2639_s0 + $0x138] sm:$0xf] }
  0xcd   :  { %v1111_v24 = vmax.f32 %v995_v19, 0.0  ;;  %v2306_v25 = vpop.f32.mrf.mxu3  ;;  %v1002_v26 = vpop.f32.mrf.mxu2  ;;  %v1417_v19 = vld [vmem:[%s2639_s0 + $0x144] sm:$0xf0] }
  0xce   :  { %v731_v28 = vpop.f32.mrf.mxu0 }
  0xcf   :  { %v1745_v32 = vpack.c.bf16 %v1111_v24, %v1110_v23  ;;  %v864_v20 = vpop.f32.mrf.mxu1  ;;  %v732_v33 = vadd.f32 %v2212_v1, %v731_v28  ;;  %v1416_v28 = vor.u32 %v1682_v16, %v1415_v15 }
  0xd1   :  { %1853 = vst [vmem:[%s2641_s3 + $0x10] sm:$0xff] %v1745_v32   ;;  %770 = vmatmul.bf16.gmra.mxu0 %v1392_v27  ;;  %v865_v36 = vadd.f32 %v864_v20, %v732_v33  ;;  %v1520_v32 = vor.u32 %v1707_v22, %v1519_v21  ;;  %v1439_v22 = vld [vmem:[%s2639_s0 + $0x168] sm:$0xf] }
  0xd2   :  { %903 = vmatmul.bf16.gmra.mxu1 %v1396_v30  ;;  %968 = vmatmul.bf16.gmra.mxu3 %v471_v31  ;;  %v1420_v31 = vor.u32 %v1681_v17, %v1417_v19 }
  0xd3   :  { %v998_v44 = vadd.f32 %v997_v59, %v865_v36  ;;  %v1689_v36 = vld [vmem:[%s2639_s0 + $0x178] sm:$0xf0] }
  0xd5   :  { %v2318_v37 = vpop.f32.mrf.mxu3  ;;  %v1004_v38 = vpop.f32.mrf.mxu2  ;;  %v1112_v53 = vmax.f32 %v998_v44, 0.0 }
  0xd6   :  { %v733_v39 = vpop.f32.mrf.mxu0 }
  0xd7   :  { %v734_v42 = vadd.f32 %v2212_v1, %v733_v39  ;;  %v866_v43 = vpop.f32.mrf.mxu1 }
  0xd9   :  { %v867_v45 = vadd.f32 %v866_v43, %v734_v42  ;;  %v1448_v43 = vor.u32 %v1689_v36, %v1447_v35 }
  0xda   :  { %1630 = vmatmul.msk.bf16.gmra.mxu2 %vm631_vm0, %v1424_v40 }
  0xdb   :  { %v1000_v49 = vadd.f32 %v999_v8, %v867_v45 }
  0xdd   :  { %v1113_v54 = vmax.f32 %v1000_v49, 0.0  ;;  %v2340_v55 = vpop.f32.mrf.mxu3  ;;  %v1007_v56 = vpop.f32.mrf.mxu2  ;;  %v1685_v49 = vld [vmem:[%s2639_s0 + $0x158] sm:$0xf0] }
  0xde   :  { %v736_v59 = vpop.f32.mrf.mxu0 }
  0xdf   :  { %v1750_v62 = vpack.c.bf16 %v1113_v54, %v1112_v53  ;;  %v869_v63 = vpop.f32.mrf.mxu1  ;;  %v737_v0 = vadd.f32 %v2212_v1, %v736_v59  ;;  %v1531_v53 = vld [vmem:[%s2639_s0 + $0x218] sm:$0xf]  ;;  %v1710_v54 = vld [vmem:[%s2639_s0 + $0x220] sm:$0xf0] }
  0xe1   :  { %1854 = vst [vmem:[%s2641_s3 + $0x18] sm:$0xff] %v1750_v62   ;;  %775 = vmatmul.bf16.gmra.mxu0 %v1404_v57  ;;  %v870_v4 = vadd.f32 %v869_v63, %v737_v0  ;;  %v1432_v63 = vor.u32 %v1684_v50, %v1429_v52  ;;  %v1532_v0 = vor.u32 %v1710_v54, %v1531_v53 }
  0xe2   :  { %908 = vmatmul.bf16.gmra.mxu1 %v1408_v60  ;;  %1637 = vmatmul.msk.bf16.vlgmr.msra.gmra.mxu3 %vm631_vm0, %v1508_v61  ;;  %v1428_v61 = vor.u32 %v1685_v49, %v1427_v48 }
  0xe3   :  { %v1003_v13 = vadd.f32 %v1002_v26, %v870_v4 }
  0xe5   :  { %v2353_v5 = vpop.f32.mrf.mxu3  ;;  %v1009_v6 = vpop.f32.mrf.mxu2  ;;  %v1114_v23 = vmax.f32 %v1003_v13, 0.0 }
  0xe6   :  { %v738_v8 = vpop.f32.mrf.mxu0 }
  0xe7   :  { %v739_v10 = vadd.f32 %v2212_v1, %v738_v8  ;;  %v871_v12 = vpop.f32.mrf.mxu1  ;;  %v1692_v8 = vld [vmem:[%s2639_s0 + $0x190] sm:$0xf0] }
  0xe9   :  { %v872_v14 = vadd.f32 %v871_v12, %v739_v10 }
  0xea   :  { %1631 = vmatmul.msk.bf16.gmra.mxu2 %vm631_vm0, %v1436_v9  ;;  %v812_v9 = vadd.f32 %v2212_v1, %v2221_v11  ;;  %v1688_v11 = vld [vmem:[%s2639_s0 + $0x170] sm:$0xf0] }
  0xeb   :  { %v1005_v18 = vadd.f32 %v1004_v38, %v872_v14  ;;  %v1440_v35 = vor.u32 %v1688_v11, %v1439_v22  ;;  %v822_v22 = vadd.f32 %v2212_v1, %v2289_v7  ;;  %v1694_v7 = vld [vmem:[%s2639_s0 + $0x1a0] sm:$0xf0] }
  0xed   :  { %v1115_v24 = vmax.f32 %v1005_v18, 0.0  ;;  %v2375_v26 = vpop.f32.mrf.mxu3  ;;  %v1012_v27 = vpop.f32.mrf.mxu2 }
  0xee   :  { %v741_v30 = vpop.f32.mrf.mxu0 }
  0xef   :  { %v1755_v20 = vpack.c.bf16 %v1115_v24, %v1114_v23  ;;  %v874_v33 = vpop.f32.mrf.mxu1  ;;  %v742_v34 = vadd.f32 %v2212_v1, %v741_v30  ;;  %v1687_v23 = vld [vmem:[%s2639_s0 + $0x16c] sm:$0xf]  ;;  %v1713_v30 = vld [vmem:[%s2639_s0 + $0x238] sm:$0xf0] }
  0xf1   :  { %1855 = vst [vmem:[%s2641_s3 + $0x20] sm:$0xff] %v1755_v20   ;;  %780 = vmatmul.bf16.gmra.mxu0 %v1416_v28  ;;  %v875_v38 = vadd.f32 %v874_v33, %v742_v34  ;;  %v1543_v28 = vld [vmem:[%s2639_s0 + $0x230] sm:$0xf] }
  0xf2   :  { %913 = vmatmul.bf16.gmra.mxu1 %v1420_v31  ;;  %1638 = vmatmul.msk.bf16.gmra.mxu3 %vm631_vm0, %v1520_v32  ;;  %v814_v31 = vadd.f32 %v2212_v1, %v2243_v29  ;;  %v1471_v29 = vld [vmem:[%s2639_s0 + $0x1a0] sm:$0xf] }
  0xf3   :  { %v1008_v46 = vadd.f32 %v1007_v56, %v875_v38 }
  0xf5   :  { %v2388_v39 = vpop.f32.mrf.mxu3  ;;  %v1014_v40 = vpop.f32.mrf.mxu2  ;;  %v1116_v56 = vmax.f32 %v1008_v46, 0.0  ;;  %v1695_v46 = vld [vmem:[%s2639_s0 + $0x1a8] sm:$0xf0] }
  0xf6   :  { %v743_v42 = vpop.f32.mrf.mxu0  ;;  %v1472_v53 = vor.u32 %v1695_v46, %v1471_v29 }
  0xf7   :  { %v744_v44 = vadd.f32 %v2212_v1, %v743_v42  ;;  %v876_v45 = vpop.f32.mrf.mxu1  ;;  %v1544_v42 = vor.u32 %v1713_v30, %v1543_v28 }
  0xf9   :  { %v877_v47 = vadd.f32 %v876_v45, %v744_v44 }
  0xfa   :  { %1632 = vmatmul.msk.bf16.gmra.mxu2 %vm631_vm0, %v1448_v43 }
  0xfb   :  { %v1010_v51 = vadd.f32 %v1009_v6, %v877_v47  ;;  %v1459_v6 = vld [vmem:[%s2639_s0 + $0x188] sm:$0xf]  ;;  %v817_v47 = vadd.f32 %v2212_v1, %v2255_v41  ;;  %v1451_v41 = vld [vmem:[%s2639_s0 + $0x180] sm:$0xf] }
  0xfc   :  { %v1460_v16 = vor.u32 %v1692_v8, %v1459_v6 }
  0xfd   :  { %v1117_v57 = vmax.f32 %v1010_v51, 0.0  ;;  %v838_v59 = vpop.f32.mrf.mxu3  ;;  %v1017_v60 = vpop.f32.mrf.mxu2 }
  0xfe   :  { %v746_v62 = vpop.f32.mrf.mxu0 }
  0xff   :  { %v1760_v2 = vpack.c.bf16 %v1117_v57, %v1116_v56  ;;  %v879_v3 = vpop.f32.mrf.mxu1  ;;  %v747_v4 = vadd.f32 %v2212_v1, %v746_v62  ;;  %v112_v57 = vld [vmem:[%s2639_s0 + $0x248] sm:$0xf]  ;;  %v1691_v62 = vld [vmem:[%s2639_s0 + $0x188] sm:$0xf0] }
 0x101   :  { %1856 = vst [vmem:[%s2641_s3 + $0x28] sm:$0xff] %v1760_v2   ;;  %785 = vmatmul.bf16.gmra.mxu0 %v1428_v61  ;;  %v880_v10 = vadd.f32 %v879_v3, %v747_v4  ;;  %v1690_v2 = vld [vmem:[%s2639_s0 + $0x184] sm:$0xf]  ;;  %v819_v3 = vadd.f32 %v2212_v1, %v2277_v58  ;;  %v1483_v58 = vld [vmem:[%s2639_s0 + $0x1b8] sm:$0xf] }
 0x102   :  { %918 = vmatmul.bf16.gmra.mxu1 %v1432_v63  ;;  %1639 = vmatmul.msk.bf16.gmra.mxu3 %vm631_vm0, %v1532_v0  ;;  %v397_v63 = vunpack.c.l.b16 %v112_v57 }
 0x103   :  { %v1013_v19 = vadd.f32 %v1012_v27, %v880_v10  ;;  %v1441_v27 = vld [vmem:[%s2639_s0 + $0x174] sm:$0xf0]  ;;  %v1452_v10 = vor.u32 %v1691_v62, %v1451_v41 }
 0x105   :  { %v944_v12 = vpop.f32.mrf.mxu3  ;;  %v1019_v13 = vpop.f32.mrf.mxu2  ;;  %v1118_v32 = vmax.f32 %v1013_v19, 0.0 }
 0x106   :  { %v2423_v14 = vadd.f32 %v944_v12, %v812_v9  ;;  %v748_v15 = vpop.f32.mrf.mxu0 }
 0x107   :  { %v749_v17 = vadd.f32 %v2212_v1, %v748_v15  ;;  %v881_v18 = vpop.f32.mrf.mxu1 }
 0x109   :  { %v882_v21 = vadd.f32 %v881_v18, %v749_v17 }
 0x10a   :  { %1633 = vmatmul.msk.bf16.gmra.mxu2 %vm631_vm0, %v1460_v16  ;;  %v472_v16 = vpack.c.b16 %v397_v63, %v397_v63 }
 0x10b   :  { %v1015_v24 = vadd.f32 %v1014_v40, %v882_v21  ;;  %v1444_v40 = vor.u32 %v1687_v23, %v1441_v27  ;;  %v1698_v21 = vld [vmem:[%s2639_s0 + $0x1c0] sm:$0xf0] }
 0x10c   :  { %v1484_v30 = vor.u32 %v1698_v21, %v1483_v58 }
 0x10d   :  { %v1119_v20 = vmax.f32 %v1015_v24, 0.0  ;;  %v946_v33 = vpop.f32.mrf.mxu3  ;;  %v1022_v34 = vpop.f32.mrf.mxu2 }
 0x10e   :  { %v2447_v36 = vadd.f32 %v946_v33, %v814_v31  ;;  %v751_v38 = vpop.f32.mrf.mxu0 }
 0x10f   :  { %v1765_v43 = vpack.c.bf16 %v1119_v20, %v1118_v32  ;;  %v884_v44 = vpop.f32.mrf.mxu1  ;;  %v752_v45 = vadd.f32 %v2212_v1, %v751_v38 }
 0x111   :  { %1857 = vst [vmem:[%s2641_s3 + $0x30] sm:$0xff] %v1765_v43   ;;  %790 = vmatmul.bf16.gmra.mxu0 %v1440_v35  ;;  %v885_v48 = vadd.f32 %v884_v44, %v752_v45  ;;  %v1463_v35 = vld [vmem:[%s2639_s0 + $0x198] sm:$0xf] }
 0x112   :  { %923 = vmatmul.bf16.gmra.mxu1 %v1444_v40  ;;  %1640 = vmatmul.msk.bf16.gmra.mxu3 %vm631_vm0, %v1544_v42  ;;  %v1693_v40 = vld [vmem:[%s2639_s0 + $0x19c] sm:$0xf]  ;;  %v824_v42 = vadd.f32 %v2212_v1, %v2306_v25  ;;  %v1464_v46 = vor.u32 %v1694_v7, %v1463_v35  ;;  %v1495_v25 = vld [vmem:[%s2639_s0 + $0x1d0] sm:$0xf] }
 0x113   :  { %v1018_v59 = vadd.f32 %v1017_v60, %v885_v48  ;;  %v1453_v60 = vld [vmem:[%s2639_s0 + $0x18c] sm:$0xf0] }
 0x115   :  { %v949_v49 = vpop.f32.mrf.mxu3  ;;  %v1024_v50 = vpop.f32.mrf.mxu2  ;;  %v1120_v4 = vmax.f32 %v1018_v59, 0.0 }
 0x116   :  { %v2462_v51 = vadd.f32 %v949_v49, %v817_v47  ;;  %v753_v52 = vpop.f32.mrf.mxu0 }
 0x117   :  { %v754_v54 = vadd.f32 %v2212_v1, %v753_v52  ;;  %v886_v56 = vpop.f32.mrf.mxu1 }
 0x119   :  { %v887_v61 = vadd.f32 %v886_v56, %v754_v54  ;;  %v1701_v54 = vld [vmem:[%s2639_s0 + $0x1d8] sm:$0xf0]  ;;  %v827_v56 = vadd.f32 %v2212_v1, %v2318_v37 }
 0x11a   :  { %1634 = vmatmul.msk.bf16.gmra.mxu2 %vm631_vm0, %v1472_v53  ;;  %v1496_v63 = vor.u32 %v1701_v54, %v1495_v25  ;;  %v1697_v37 = vld [vmem:[%s2639_s0 + $0x1b8] sm:$0xf0] }
 0x11b   :  { %v1020_v0 = vadd.f32 %v1019_v13, %v887_v61  ;;  %v1456_v13 = vor.u32 %v1690_v2, %v1453_v60 }
 0x11d   :  { %v1121_v6 = vmax.f32 %v1020_v0, 0.0  ;;  %v951_v8 = vpop.f32.mrf.mxu3  ;;  %v1027_v9 = vpop.f32.mrf.mxu2 }
 0x11e   :  { %v2483_v12 = vadd.f32 %v951_v8, %v819_v3  ;;  %v756_v15 = vpop.f32.mrf.mxu0  ;;  %v1696_v8 = vld [vmem:[%s2639_s0 + $0x1b4] sm:$0xf] }
 0x11f   :  { %v1770_v17 = vpack.c.bf16 %v1121_v6, %v1120_v4  ;;  %v889_v18 = vpop.f32.mrf.mxu1  ;;  %v757_v19 = vadd.f32 %v2212_v1, %v756_v15  ;;  %v1475_v4 = vld [vmem:[%s2639_s0 + $0x1b0] sm:$0xf] }
 0x121   :  { %1858 = vst [vmem:[%s2641_s3 + $0x38] sm:$0xff] %v1770_v17   ;;  %795 = vmatmul.bf16.gmra.mxu0 %v1452_v10  ;;  %v890_v11 = vadd.f32 %v889_v18, %v757_v19  ;;  %v829_v10 = vadd.f32 %v2212_v1, %v2340_v55  ;;  %v1476_v18 = vor.u32 %v1697_v37, %v1475_v4 }
 0x122   :  { %928 = vmatmul.bf16.gmra.mxu1 %v1456_v13  ;;  %1641 = vmatmul.msk.bf16.gmra.mxu3 %vm631_vm0, %v472_v16  ;;  %v832_v55 = vadd.f32 %v2212_v1, %v2353_v5 }
 0x123   :  { %v1023_v20 = vadd.f32 %v1022_v34, %v890_v11  ;;  %v1465_v34 = vld [vmem:[%s2639_s0 + $0x1a4] sm:$0xf0] }
 0x124   :  { %v1468_v49 = vor.u32 %v1693_v40, %v1465_v34  ;;  %v834_v40 = vadd.f32 %v2212_v1, %v2375_v26 }
 0x125   :  { %v954_v23 = vpop.f32.mrf.mxu3  ;;  %v1029_v24 = vpop.f32.mrf.mxu2  ;;  %v1122_v43 = vmax.f32 %v1023_v20, 0.0 }
 0x126   :  { %v2498_v27 = vadd.f32 %v954_v23, %v822_v22  ;;  %v758_v28 = vpop.f32.mrf.mxu0 }
 0x127   :  { %v759_v31 = vadd.f32 %v2212_v1, %v758_v28  ;;  %v891_v32 = vpop.f32.mrf.mxu1 }
 0x129   :  { %v892_v33 = vadd.f32 %v891_v32, %v759_v31 }
 0x12a   :  { %1635 = vmatmul.msk.bf16.gmra.mxu2 %vm631_vm0, %v1484_v30 }
 0x12b   :  { %v1025_v38 = vadd.f32 %v1024_v50, %v892_v33 }
 0x12d   :  { %v1123_v44 = vmax.f32 %v1025_v38, 0.0  ;;  %v956_v45 = vpop.f32.mrf.mxu3  ;;  %v1032_v29 = vpop.f32.mrf.mxu2 }
 0x12e   :  { %v2516_v47 = vadd.f32 %v956_v45, %v824_v42  ;;  %v761_v48 = vpop.f32.mrf.mxu0 }
 0x12f   :  { %v1775_v50 = vpack.c.bf16 %v1123_v44, %v1122_v43  ;;  %v894_v52 = vpop.f32.mrf.mxu1  ;;  %v762_v53 = vadd.f32 %v2212_v1, %v761_v48 }
 0x131   :  { %1859 = vst [vmem:[%s2641_s3 + $0x40] sm:$0xff] %v1775_v50   ;;  %800 = vmatmul.bf16.gmra.mxu0 %v1464_v46  ;;  %v895_v57 = vadd.f32 %v894_v52, %v762_v53 }
 0x132   :  { %933 = vmatmul.bf16.gmra.mxu1 %v1468_v49  ;;  %v837_v49 = vadd.f32 %v2212_v1, %v2388_v39 }
 0x133   :  { %v1028_v60 = vadd.f32 %v1027_v9, %v895_v57  ;;  %v1477_v9 = vld [vmem:[%s2639_s0 + $0x1bc] sm:$0xf0] }
 0x134   :  { %v1480_v21 = vor.u32 %v1696_v8, %v1477_v9 }
 0x135   :  { %v959_v59 = vpop.f32.mrf.mxu3  ;;  %v1034_v61 = vpop.f32.mrf.mxu2  ;;  %v1124_v15 = vmax.f32 %v1028_v60, 0.0 }
 0x136   :  { %v2530_v41 = vadd.f32 %v959_v59, %v827_v56  ;;  %v763_v62 = vpop.f32.mrf.mxu0 }
 0x137   :  { %v764_v0 = vadd.f32 %v2212_v1, %v763_v62  ;;  %v896_v2 = vpop.f32.mrf.mxu1 }
 0x139   :  { %v897_v3 = vadd.f32 %v896_v2, %v764_v0 }
 0x13a   :  { %1636 = vmatmul.msk.bf16.gmra.mxu2 %vm631_vm0, %v1496_v63 }
 0x13b   :  { %v1030_v6 = vadd.f32 %v1029_v24, %v897_v3 }
 0x13d   :  { %v1125_v13 = vmax.f32 %v1030_v6, 0.0  ;;  %v961_v16 = vpop.f32.mrf.mxu3  ;;  %v1037_v17 = vpop.f32.mrf.mxu2 }
 0x13e   :  { %v2548_v19 = vadd.f32 %v961_v16, %v829_v10  ;;  %v766_v58 = vpop.f32.mrf.mxu0 }
 0x13f   :  { %v1780_v22 = vpack.c.bf16 %v1125_v13, %v1124_v15  ;;  %v899_v11 = vpop.f32.mrf.mxu1  ;;  %v767_v23 = vadd.f32 %v2212_v1, %v766_v58 }
 0x141   :  { %1860 = vst [vmem:[%s2641_s3 + $0x48] sm:$0xff] %v1780_v22   ;;  %805 = vmatmul.bf16.gmra.mxu0 %v1476_v18  ;;  %v900_v24 = vadd.f32 %v899_v11, %v767_v23 }
 0x142   :  { %938 = vmatmul.bf16.gmra.mxu1 %v1480_v21 }
 0x143   :  { %v1033_v35 = vadd.f32 %v1032_v29, %v900_v24 }
 0x145   :  { %v964_v28 = vpop.f32.mrf.mxu3  ;;  %v1039_v30 = vpop.f32.mrf.mxu2  ;;  %v1126_v34 = vmax.f32 %v1033_v35, 0.0 }
 0x146   :  { %v2556_v31 = vadd.f32 %v964_v28, %v832_v55  ;;  %v768_v32 = vpop.f32.mrf.mxu0 }
 0x147   :  { %v769_v20 = vadd.f32 %v2212_v1, %v768_v32  ;;  %v901_v33 = vpop.f32.mrf.mxu1 }
 0x149   :  { %v902_v7 = vadd.f32 %v901_v33, %v769_v20 }
 0x14b   :  { %v1035_v38 = vadd.f32 %v1034_v61, %v902_v7 }
 0x14d   :  { %v1127_v42 = vmax.f32 %v1035_v38, 0.0  ;;  %v966_v43 = vpop.f32.mrf.mxu3  ;;  %v1042_v44 = vpop.f32.mrf.mxu2 }
 0x14e   :  { %v2561_v5 = vadd.f32 %v966_v43, %v834_v40  ;;  %v771_v45 = vpop.f32.mrf.mxu0 }
 0x14f   :  { %v1785_v46 = vpack.c.bf16 %v1127_v42, %v1126_v34  ;;  %v904_v48 = vpop.f32.mrf.mxu1  ;;  %v772_v29 = vadd.f32 %v2212_v1, %v771_v45 }
 0x151   :  { %1861 = vst [vmem:[%s2641_s3 + $0x50] sm:$0xff] %v1785_v46   ;;  %v905_v50 = vadd.f32 %v904_v48, %v772_v29 }
 0x153   :  { %v1038_v57 = vadd.f32 %v1037_v17, %v905_v50 }
 0x155   :  { %v969_v26 = vpop.f32.mrf.mxu3  ;;  %v1044_v52 = vpop.f32.mrf.mxu2  ;;  %v1128_v62 = vmax.f32 %v1038_v57, 0.0 }
 0x156   :  { %v2569_v53 = vadd.f32 %v969_v26, %v837_v49  ;;  %v773_v25 = vpop.f32.mrf.mxu0 }
 0x157   :  { %v774_v54 = vadd.f32 %v2212_v1, %v773_v25  ;;  %v906_v56 = vpop.f32.mrf.mxu1 }
 0x159   :  { %v907_v59 = vadd.f32 %v906_v56, %v774_v54 }
 0x15b   :  { %v1040_v61 = vadd.f32 %v1039_v30, %v907_v59 }
 0x15d   :  { %v1129_v63 = vmax.f32 %v1040_v61, 0.0  ;;  %v971_v0 = vpop.f32.mrf.mxu3  ;;  %v1047_v2 = vpop.f32.mrf.mxu2 }
 0x15e   :  { %v776_v60 = vpop.f32.mrf.mxu0 }
 0x15f   :  { %v1790_v3 = vpack.c.bf16 %v1129_v63, %v1128_v62  ;;  %v909_v4 = vpop.f32.mrf.mxu1  ;;  %v777_v39 = vadd.f32 %v2212_v1, %v776_v60 }
 0x161   :  { %1862 = vst [vmem:[%s2641_s3 + $0x58] sm:$0xff] %v1790_v3   ;;  %v910_v37 = vadd.f32 %v909_v4, %v777_v39 }
 0x163   :  { %v1043_v13 = vadd.f32 %v1042_v44, %v910_v37 }
 0x165   :  { %v1049_v6 = vpop.f32.mrf.mxu2  ;;  %v1082_v8 = vpop.f32.mrf.mxu3  ;;  %v1130_v58 = vmax.f32 %v1043_v13, 0.0 }
 0x166   :  { %v778_v9 = vpop.f32.mrf.mxu0  ;;  %v1083_v18 = vadd.f32 %v1082_v8, %v2462_v51 }
 0x167   :  { %v779_v10 = vadd.f32 %v2212_v1, %v778_v9  ;;  %v911_v15 = vpop.f32.mrf.mxu1 }
 0x168   :  { %v1146_v30 = vmax.f32 %v1083_v18, 0.0 }
 0x169   :  { %v912_v16 = vadd.f32 %v911_v15, %v779_v10 }
 0x16b   :  { %v1045_v17 = vadd.f32 %v1044_v52, %v912_v16 }
 0x16d   :  { %v1131_v21 = vmax.f32 %v1045_v17, 0.0  ;;  %v1052_v22 = vpop.f32.mrf.mxu2  ;;  %v1084_v11 = vpop.f32.mrf.mxu3 }
 0x16e   :  { %v1085_v23 = vadd.f32 %v1084_v11, %v2483_v12  ;;  %v781_v55 = vpop.f32.mrf.mxu0 }
 0x16f   :  { %v1795_v24 = vpack.c.bf16 %v1131_v21, %v1130_v58  ;;  %v914_v28 = vpop.f32.mrf.mxu1  ;;  %v782_v20 = vadd.f32 %v2212_v1, %v781_v55 }
 0x170   :  { %v1147_v32 = vmax.f32 %v1085_v23, 0.0 }
 0x171   :  { %1863 = vst [vmem:[%s2641_s3 + $0x60] sm:$0xff] %v1795_v24   ;;  %v915_v51 = vadd.f32 %v914_v28, %v782_v20 }
 0x172   :  { %v1835_v33 = vpack.c.bf16 %v1147_v32, %v1146_v30 }
 0x173   :  { %v1048_v34 = vadd.f32 %v1047_v2, %v915_v51 }
 0x174   :  { %1871 = vst [vmem:[%s2641_s3 + $0xa0] sm:$0xff] %v1835_v33  }
 0x175   :  { %v1054_v35 = vpop.f32.mrf.mxu2  ;;  %v1087_v7 = vpop.f32.mrf.mxu3  ;;  %v1132_v45 = vmax.f32 %v1048_v34, 0.0 }
 0x176   :  { %v783_v12 = vpop.f32.mrf.mxu0  ;;  %v1088_v44 = vadd.f32 %v1087_v7, %v2498_v27 }
 0x177   :  { %v784_v38 = vadd.f32 %v2212_v1, %v783_v12  ;;  %v916_v40 = vpop.f32.mrf.mxu1 }
 0x178   :  { %v1148_v25 = vmax.f32 %v1088_v44, 0.0 }
 0x179   :  { %v917_v42 = vadd.f32 %v916_v40, %v784_v38 }
 0x17b   :  { %v1050_v43 = vadd.f32 %v1049_v6, %v917_v42 }
 0x17d   :  { %v1133_v46 = vmax.f32 %v1050_v43, 0.0  ;;  %v1057_v48 = vpop.f32.mrf.mxu2  ;;  %v1089_v29 = vpop.f32.mrf.mxu3 }
 0x17e   :  { %v1090_v49 = vadd.f32 %v1089_v29, %v2516_v47  ;;  %v786_v50 = vpop.f32.mrf.mxu0 }
 0x17f   :  { %v1800_v26 = vpack.c.bf16 %v1133_v46, %v1132_v45  ;;  %v919_v52 = vpop.f32.mrf.mxu1  ;;  %v787_v56 = vadd.f32 %v2212_v1, %v786_v50 }
 0x180   :  { %v1149_v54 = vmax.f32 %v1090_v49, 0.0 }
 0x181   :  { %1864 = vst [vmem:[%s2641_s3 + $0x68] sm:$0xff] %v1800_v26   ;;  %v920_v27 = vadd.f32 %v919_v52, %v787_v56 }
 0x182   :  { %v1840_v57 = vpack.c.bf16 %v1149_v54, %v1148_v25 }
 0x183   :  { %v1053_v0 = vadd.f32 %v1052_v22, %v920_v27 }
 0x184   :  { %1872 = vst [vmem:[%s2641_s3 + $0xa8] sm:$0xff] %v1840_v57  }
 0x185   :  { %v1059_v59 = vpop.f32.mrf.mxu2  ;;  %v1092_v61 = vpop.f32.mrf.mxu3  ;;  %v1134_v4 = vmax.f32 %v1053_v0, 0.0 }
 0x186   :  { %v788_v47 = vpop.f32.mrf.mxu0  ;;  %v1093_v3 = vadd.f32 %v1092_v61, %v2530_v41 }
 0x187   :  { %v789_v62 = vadd.f32 %v2212_v1, %v788_v47  ;;  %v921_v63 = vpop.f32.mrf.mxu1 }
 0x188   :  { %v1150_v13 = vmax.f32 %v1093_v3, 0.0 }
 0x189   :  { %v922_v2 = vadd.f32 %v921_v63, %v789_v62 }
 0x18b   :  { %v1055_v60 = vadd.f32 %v1054_v35, %v922_v2 }
 0x18d   :  { %v1135_v39 = vmax.f32 %v1055_v60, 0.0  ;;  %v1062_v37 = vpop.f32.mrf.mxu2  ;;  %v1094_v6 = vpop.f32.mrf.mxu3 }
 0x18e   :  { %v1095_v8 = vadd.f32 %v1094_v6, %v2548_v19  ;;  %v791_v9 = vpop.f32.mrf.mxu0 }
 0x18f   :  { %v1805_v10 = vpack.c.bf16 %v1135_v39, %v1134_v4  ;;  %v924_v15 = vpop.f32.mrf.mxu1  ;;  %v792_v17 = vadd.f32 %v2212_v1, %v791_v9 }
 0x190   :  { %v1151_v16 = vmax.f32 %v1095_v8, 0.0 }
 0x191   :  { %1865 = vst [vmem:[%s2641_s3 + $0x70] sm:$0xff] %v1805_v10   ;;  %v925_v41 = vadd.f32 %v924_v15, %v792_v17 }
 0x192   :  { %v1845_v18 = vpack.c.bf16 %v1151_v16, %v1150_v13 }
 0x193   :  { %v1058_v23 = vadd.f32 %v1057_v48, %v925_v41 }
 0x194   :  { %1873 = vst [vmem:[%s2641_s3 + $0xb0] sm:$0xff] %v1845_v18  }
 0x195   :  { %v1064_v58 = vpop.f32.mrf.mxu2  ;;  %v1097_v21 = vpop.f32.mrf.mxu3  ;;  %v1136_v30 = vmax.f32 %v1058_v23, 0.0 }
 0x196   :  { %v793_v19 = vpop.f32.mrf.mxu0  ;;  %v1098_v28 = vadd.f32 %v1097_v21, %v2556_v31 }
 0x197   :  { %v794_v22 = vadd.f32 %v2212_v1, %v793_v19  ;;  %v926_v11 = vpop.f32.mrf.mxu1 }
 0x198   :  { %v1152_v38 = vmax.f32 %v1098_v28, 0.0 }
 0x199   :  { %v927_v55 = vadd.f32 %v926_v11, %v794_v22 }
 0x19b   :  { %v1060_v24 = vadd.f32 %v1059_v59, %v927_v55 }
 0x19d   :  { %v1137_v32 = vmax.f32 %v1060_v24, 0.0  ;;  %v1067_v20 = vpop.f32.mrf.mxu2  ;;  %v1099_v33 = vpop.f32.mrf.mxu3 }
 0x19e   :  { %v1100_v51 = vadd.f32 %v1099_v33, %v2561_v5  ;;  %v796_v35 = vpop.f32.mrf.mxu0 }
 0x19f   :  { %v1810_v7 = vpack.c.bf16 %v1137_v32, %v1136_v30  ;;  %v929_v12 = vpop.f32.mrf.mxu1  ;;  %v797_v34 = vadd.f32 %v2212_v1, %v796_v35 }
 0x1a0   :  { %v1153_v40 = vmax.f32 %v1100_v51, 0.0 }
 0x1a1   :  { %1866 = vst [vmem:[%s2641_s3 + $0x78] sm:$0xff] %v1810_v7   ;;  %v930_v31 = vadd.f32 %v929_v12, %v797_v34 }
 0x1a2   :  { %v1850_v42 = vpack.c.bf16 %v1153_v40, %v1152_v38 }
 0x1a3   :  { %v1063_v49 = vadd.f32 %v1062_v37, %v930_v31 }
 0x1a4   :  { %1874 = vst [vmem:[%s2641_s3 + $0xb8] sm:$0xff] %v1850_v42  }
 0x1a5   :  { %v1069_v43 = vpop.f32.mrf.mxu2  ;;  %v1102_v44 = vpop.f32.mrf.mxu3  ;;  %v1138_v25 = vmax.f32 %v1063_v49, 0.0 }
 0x1a6   :  { %v1103_v5 = vadd.f32 %v1102_v44, %v2569_v53  ;;  %v798_v45 = vpop.f32.mrf.mxu0 }
 0x1a7   :  { %v799_v46 = vadd.f32 %v2212_v1, %v798_v45  ;;  %v931_v48 = vpop.f32.mrf.mxu1  ;;  %v1894_v1 = vld [vmem:[%s2640_s2] ss:$0 sm:$0xff] }
 0x1a8   :  { %v1154_v29 = vmax.f32 %v1103_v5, 0.0 }
 0x1a9   :  { %v932_v50 = vadd.f32 %v931_v48, %v799_v46 }
 0x1aa   :  { %v1203_v26 = vpack.c.bf16 %v1154_v29, %v1154_v29 }
 0x1ab   :  { %v1065_v52 = vadd.f32 %v1064_v58, %v932_v50 }
 0x1ac   :  { %1252 = vst [vmem:[%s2641_s3 + $0xc0] sm:$0xf] %v1203_v26 }
 0x1ad   :  { %v1139_v54 = vmax.f32 %v1065_v52, 0.0  ;;  %v1072_v56 = vpop.f32.mrf.mxu2  ;;  %v1104_v57 = vpop.f32.mrf.mxu3 }
 0x1ae   :  { %v801_v27 = vpop.f32.mrf.mxu0 }
 0x1af   :  { %v1815_v59 = vpack.c.bf16 %v1139_v54, %v1138_v25  ;;  %v934_v53 = vpop.f32.mrf.mxu1  ;;  %v802_v61 = vadd.f32 %v1894_v1, %v801_v27 }
 0x1b1   :  { %1867 = vst [vmem:[%s2641_s3 + $0x80] sm:$0xff] %v1815_v59   ;;  %v935_v47 = vadd.f32 %v934_v53, %v802_v61 }
 0x1b3   :  { %v1068_v60 = vadd.f32 %v1067_v20, %v935_v47 }
 0x1b5   :  { %v1074_v62 = vpop.f32.mrf.mxu2  ;;  %v1140_v39 = vmax.f32 %v1068_v60, 0.0 }
 0x1b6   :  { %v803_v63 = vpop.f32.mrf.mxu0 }
 0x1b7   :  { %v804_v0 = vadd.f32 %v1894_v1, %v803_v63  ;;  %v936_v2 = vpop.f32.mrf.mxu1 }
 0x1b9   :  { %v937_v3 = vadd.f32 %v936_v2, %v804_v0 }
 0x1bb   :  { %v1070_v4 = vadd.f32 %v1069_v43, %v937_v3 }
 0x1bd   :  { %v1141_v37 = vmax.f32 %v1070_v4, 0.0  ;;  %v1077_v6 = vpop.f32.mrf.mxu2 }
 0x1be   :  { %v806_v8 = vpop.f32.mrf.mxu0  ;;  %v1078_v13 = vadd.f32 %v1077_v6, %v2423_v14 }
 0x1bf   :  { %v1820_v9 = vpack.c.bf16 %v1141_v37, %v1140_v39  ;;  %v939_v10 = vpop.f32.mrf.mxu1  ;;  %v807_v15 = vadd.f32 %v1894_v1, %v806_v8 }
 0x1c0   :  { %v1144_v21 = vmax.f32 %v1078_v13, 0.0 }
 0x1c1   :  { %1868 = vst [vmem:[%s2641_s3 + $0x88] sm:$0xff] %v1820_v9   ;;  %v940_v16 = vadd.f32 %v939_v10, %v807_v15 }
 0x1c3   :  { %v1073_v11 = vadd.f32 %v1072_v56, %v940_v16 }
 0x1c5   :  { %v1079_v17 = vpop.f32.mrf.mxu2  ;;  %v1142_v28 = vmax.f32 %v1073_v11, 0.0 }
 0x1c6   :  { %v1080_v18 = vadd.f32 %v1079_v17, %v2447_v36  ;;  %v808_v41 = vpop.f32.mrf.mxu0 }
 0x1c7   :  { %v809_v58 = vadd.f32 %v1894_v1, %v808_v41  ;;  %v941_v22 = vpop.f32.mrf.mxu1 }
 0x1c8   :  { %v1145_v19 = vmax.f32 %v1080_v18, 0.0 }
 0x1c9   :  { %v942_v23 = vadd.f32 %v941_v22, %v809_v58 }
 0x1ca   :  { %v1830_v55 = vpack.c.bf16 %v1145_v19, %v1144_v21 }
 0x1cb   :  { %v1075_v24 = vadd.f32 %v1074_v62, %v942_v23 }
 0x1cc   :  { %1870 = vst [vmem:[%s2641_s3 + $0x98] sm:$0xff] %v1830_v55  }
 0x1cd   :  { %v1143_v30 = vmax.f32 %v1075_v24, 0.0 }
 0x1cf   :  { %v1825_v14 = vpack.c.bf16 %v1143_v30, %v1142_v28 }
 0x1d1   :  { %1869 = vst [vmem:[%s2641_s3 + $0x90] sm:$0xff] %v1825_v14  }

// kernel: qnetwork_conv_forward.6
= control target key start
LH: loop header
LB: loop body
LE: loop exit
PB: predicated region body
PF: predicated region fallthrough
CT: control target
= control target key end

     0   :  { %vm451_vm0 = vcmask 523264   ;;  %s1292_s1 = inlined_call_operand.vmem [shape: bf16[576,128], index: 1, kind: input, shape index: {}]   ;;  %s1293_s2 = inlined_call_operand.vmem [shape: f32[1,128], index: 2, kind: input, shape index: {}]   ;;  %s1294_s0 = inlined_call_operand.vmem [shape: bf16[72,576], index: 0, kind: input, shape index: {}]   ;;  %s1295_s3 = inlined_call_operand.vmem [shape: bf16[72,128], index: 3, kind: output, shape index: {}]  }
   0x1   :  { %v919_v0 = vld [vmem:[%s1292_s1 + $0x38] sm:$0xff]  ;;  %v918_v1 = vld [vmem:[%s1292_s1 + $0x30] sm:$0xff]  ;;  %v917_v4 = vld [vmem:[%s1292_s1 + $0x28] sm:$0xff] }
   0x2   :  { %467 = vmatpush.bf16.msra.mxu0 %v919_v0  ;;  %971 = vmatpush.bf16.msra.mxu1 %v919_v0  ;;  %v943_v2 = vld [vmem:[%s1292_s1 + $0xf8] sm:$0xff]  ;;  %v942_v3 = vld [vmem:[%s1292_s1 + $0xf0] sm:$0xff]  ;;  %v941_v5 = vld [vmem:[%s1292_s1 + $0xe8] sm:$0xff] }
   0x3   :  { %972 = vmatpush.bf16.msra.mxu2 %v919_v0  ;;  %566 = vmatpush.bf16.msra.mxu3 %v943_v2  ;;  %v916_v6 = vld [vmem:[%s1292_s1 + $0x20] sm:$0xff]  ;;  %v915_v8 = vld [vmem:[%s1292_s1 + $0x18] sm:$0xff]  ;;  %v914_v10 = vld [vmem:[%s1292_s1 + $0x10] sm:$0xff] }
   0x4   :  { %v940_v7 = vld [vmem:[%s1292_s1 + $0xe0] sm:$0xff]  ;;  %v939_v9 = vld [vmem:[%s1292_s1 + $0xd8] sm:$0xff]  ;;  %v938_v11 = vld [vmem:[%s1292_s1 + $0xd0] sm:$0xff] }
   0x5   :  { %v913_v12 = vld [vmem:[%s1292_s1 + $0x8] sm:$0xff]  ;;  %v1050_v13 = vld [vmem:[%s1294_s0 + $0xa0] sm:$0xff]  ;;  %v894_v17 = vld [vmem:[%s1294_s0 + $0x10] sm:$0xf0] }
   0x6   :  { %468 = vmatpush.bf16.msra.mxu0 %v918_v1  ;;  %973 = vmatpush.bf16.msra.mxu1 %v918_v1  ;;  %v937_v14 = vld [vmem:[%s1292_s1 + $0xc8] sm:$0xff]  ;;  %v912_v15 = vld [vmem:[%s1292_s1] sm:$0xff]  ;;  %v705_v18 = vld [vmem:[%s1294_s0 + $0x50] sm:$0xf]  ;;  %v185_v20 = vunpack.c.l.b16 %v1050_v13 }
   0x7   :  { %974 = vmatpush.bf16.msra.mxu2 %v918_v1  ;;  %567 = vmatpush.bf16.msra.mxu3 %v942_v3  ;;  %v665_v16 = vld [vmem:[%s1294_s0] sm:$0xf]  ;;  %v904_v19 = vld [vmem:[%s1294_s0 + $0x60] sm:$0xf0]  ;;  %v927_v21 = vld [vmem:[%s1292_s1 + $0x78] sm:$0xff] }
   0x8   :  { %v935_v22 = vld [vmem:[%s1292_s1 + $0xb8] sm:$0xff]  ;;  %v666_v24 = vor.u32 %v894_v17, %v665_v16  ;;  %v706_v25 = vor.u32 %v904_v19, %v705_v18  ;;  %v210_v26 = vpack.c.b16 %v185_v20, %v185_v20  ;;  %v936_v27 = vld [vmem:[%s1292_s1 + $0xc0] sm:$0xff]  ;;  %v893_v28 = vld [vmem:[%s1294_s0 + $0xc] sm:$0xf] }
   0x9   :  { %v947_v23 = vld [vmem:[%s1292_s1 + $0x118] sm:$0xff]  ;;  %v675_v29 = vld [vmem:[%s1294_s0 + $0x1c] sm:$0xf0]  ;;  %v926_v30 = vld [vmem:[%s1292_s1 + $0x70] sm:$0xff] }
   0xa   :  { %469 = vmatpush.bf16.msra.mxu0 %v917_v4  ;;  %975 = vmatpush.bf16.msra.mxu1 %v917_v4  ;;  %v934_v31 = vld [vmem:[%s1292_s1 + $0xb0] sm:$0xff]  ;;  %v678_v33 = vor.u32 %v893_v28, %v675_v29  ;;  %v925_v34 = vld [vmem:[%s1292_s1 + $0x68] sm:$0xff]  ;;  %v924_v37 = vld [vmem:[%s1292_s1 + $0x60] sm:$0xff] }
   0xb   :  { %976 = vmatpush.bf16.msra.mxu2 %v917_v4  ;;  %568 = vmatpush.bf16.msra.mxu3 %v941_v5  ;;  %v946_v32 = vld [vmem:[%s1292_s1 + $0x110] sm:$0xff]  ;;  %v933_v35 = vld [vmem:[%s1292_s1 + $0xa8] sm:$0xff]  ;;  %v932_v38 = vld [vmem:[%s1292_s1 + $0xa0] sm:$0xff] }
   0xc   :  { %v945_v36 = vld [vmem:[%s1292_s1 + $0x108] sm:$0xff]  ;;  %v944_v39 = vld [vmem:[%s1292_s1 + $0x100] sm:$0xff]  ;;  %v899_v41 = vld [vmem:[%s1294_s0 + $0x38] sm:$0xf0] }
   0xd   :  { %v685_v40 = vld [vmem:[%s1294_s0 + $0x28] sm:$0xf]  ;;  %v725_v42 = vld [vmem:[%s1294_s0 + $0x78] sm:$0xf]  ;;  %v909_v43 = vld [vmem:[%s1294_s0 + $0x88] sm:$0xf0] }
   0xe   :  { %470 = vmatpush.bf16.msra.mxu0 %v916_v6  ;;  %977 = vmatpush.bf16.msra.mxu1 %v916_v6  ;;  %v923_v44 = vld [vmem:[%s1292_s1 + $0x58] sm:$0xff]  ;;  %v686_v46 = vor.u32 %v899_v41, %v685_v40  ;;  %v726_v47 = vor.u32 %v909_v43, %v725_v42  ;;  %v898_v48 = vld [vmem:[%s1294_s0 + $0x34] sm:$0xf]  ;;  %v695_v49 = vld [vmem:[%s1294_s0 + $0x44] sm:$0xf0]  ;;  %v186_v41 = vunpack.c.h.b16 %v1050_v13 }
   0xf   :  { %978 = vmatpush.bf16.msra.mxu2 %v916_v6  ;;  %569 = vmatpush.bf16.msra.mxu3 %v940_v7  ;;  %v931_v45 = vld [vmem:[%s1292_s1 + $0x98] sm:$0xff]  ;;  %v922_v50 = vld [vmem:[%s1292_s1 + $0x50] sm:$0xff]  ;;  %v698_v52 = vor.u32 %v898_v48, %v695_v49  ;;  %v921_v53 = vld [vmem:[%s1292_s1 + $0x48] sm:$0xff] }
  0x10   :  { %v930_v51 = vld [vmem:[%s1292_s1 + $0x90] sm:$0xff]  ;;  %v929_v54 = vld [vmem:[%s1292_s1 + $0x88] sm:$0xff]  ;;  %v920_v55 = vld [vmem:[%s1292_s1 + $0x40] sm:$0xff] }
  0x11   :  { %v928_v56 = vld [vmem:[%s1292_s1 + $0x80] sm:$0xff]  ;;  %v673_v57 = vld [vmem:[%s1294_s0 + $0x8] sm:$0xf]  ;;  %v895_v58 = vld [vmem:[%s1294_s0 + $0x18] sm:$0xf0] }
  0x12   :  { %471 = vmatpush.bf16.msra.mxu0 %v915_v8  ;;  %979 = vmatpush.bf16.msra.mxu1 %v915_v8  ;;  %v892_v59 = vld [vmem:[%s1294_s0 + $0x4] sm:$0xf]  ;;  %v667_v60 = vld [vmem:[%s1294_s0 + $0x14] sm:$0xf0]  ;;  %v681_v61 = vld [vmem:[%s1294_s0 + $0x10] sm:$0xf]  ;;  %v674_v63 = vor.u32 %v895_v58, %v673_v57 }
  0x13   :  { %980 = vmatpush.bf16.msra.mxu2 %v915_v8  ;;  %570 = vmatpush.bf16.msra.mxu3 %v939_v9  ;;  %v896_v62 = vld [vmem:[%s1294_s0 + $0x20] sm:$0xf0]  ;;  %v670_v0 = vor.u32 %v892_v59, %v667_v60  ;;  %v903_v2 = vld [vmem:[%s1294_s0 + $0x5c] sm:$0xf]  ;;  %v715_v3 = vld [vmem:[%s1294_s0 + $0x6c] sm:$0xf0] }
  0x14   :  { %v682_v1 = vor.u32 %v896_v62, %v681_v61  ;;  %v718_v4 = vor.u32 %v903_v2, %v715_v3  ;;  %v693_v5 = vld [vmem:[%s1294_s0 + $0x30] sm:$0xf]  ;;  %v900_v6 = vld [vmem:[%s1294_s0 + $0x40] sm:$0xf0]  ;;  %v897_v7 = vld [vmem:[%s1294_s0 + $0x2c] sm:$0xf] }
  0x15   :  { %v687_v8 = vld [vmem:[%s1294_s0 + $0x3c] sm:$0xf0]  ;;  %v701_v9 = vld [vmem:[%s1294_s0 + $0x38] sm:$0xf]  ;;  %v905_v19 = vld [vmem:[%s1294_s0 + $0x68] sm:$0xf0] }
  0x16   :  { %472 = vmatpush.bf16.msra.mxu0 %v914_v10  ;;  %981 = vmatpush.bf16.msra.mxu1 %v914_v10  ;;  %v735_v16 = vld [vmem:[%s1294_s0 + $0x94] sm:$0xf0]  ;;  %v902_v20 = vld [vmem:[%s1294_s0 + $0x54] sm:$0xf]  ;;  %v1263_v58 = vld [vmem:[%s1293_s2] ss:$0 sm:$0xff] }
  0x17   :  { %982 = vmatpush.bf16.msra.mxu2 %v914_v10  ;;  %571 = vmatpush.bf16.msra.mxu3 %v938_v11  ;;  %v901_v10 = vld [vmem:[%s1294_s0 + $0x48] sm:$0xf0]  ;;  %v694_v11 = vor.u32 %v900_v6, %v693_v5  ;;  %v713_v18 = vld [vmem:[%s1294_s0 + $0x58] sm:$0xf] }
  0x1a   :  { %473 = vmatpush.bf16.msra.mxu0 %v913_v12  ;;  %983 = vmatpush.bf16.msra.mxu1 %v913_v12 }
  0x1b   :  { %984 = vmatpush.bf16.msra.mxu2 %v913_v12  ;;  %572 = vmatpush.bf16.msra.mxu3 %v937_v14  ;;  %v690_v12 = vor.u32 %v897_v7, %v687_v8  ;;  %v702_v14 = vor.u32 %v901_v10, %v701_v9 }
  0x1e   :  { %474 = vmatpush.bf16.msra.mxu0 %v912_v15  ;;  %985 = vmatpush.bf16.msra.mxu1 %v912_v15 }
  0x1f   :  { %986 = vmatpush.bf16.msra.mxu2 %v912_v15  ;;  %573 = vmatpush.bf16.msra.mxu3 %v936_v27  ;;  %v908_v15 = vld [vmem:[%s1294_s0 + $0x84] sm:$0xf] }
  0x20   :  { %v738_v17 = vor.u32 %v908_v15, %v735_v16 }
  0x21   :  { %475 = vmatmul.bf16.vlgmr.msra.gmra.mxu0 %v666_v24  ;;  %485 = vmatmul.bf16.vlgmr.msra.gmra.mxu1 %v706_v25  ;;  %v40_v24 = vld [vmem:[%s1294_s0 + $0xa8] sm:$0xff]  ;;  %v714_v25 = vor.u32 %v905_v19, %v713_v18 }
  0x22   :  { %500 = vmatpush.bf16.msrb.mxu1 %v927_v21  ;;  %603 = vmatpush.bf16.msrb.mxu0 %v947_v23  ;;  %v707_v21 = vld [vmem:[%s1294_s0 + $0x64] sm:$0xf0]  ;;  %v906_v23 = vld [vmem:[%s1294_s0 + $0x70] sm:$0xf0]  ;;  %v188_v28 = vunpack.c.h.b16 %v40_v24  ;;  %v187_v40 = vunpack.c.l.b16 %v40_v24 }
  0x23   :  { %533 = vmatpush.bf16.msrb.mxu2 %v935_v22  ;;  %574 = vmatmul.bf16.vlgmr.msra.gmra.mxu3 %v678_v33  ;;  %v721_v22 = vld [vmem:[%s1294_s0 + $0x60] sm:$0xf]  ;;  %v727_v33 = vld [vmem:[%s1294_s0 + $0x8c] sm:$0xf0] }
  0x24   :  { %495 = vmatmul.bf16.vlgmr.msra.gmra.mxu2 %v210_v26  ;;  %v710_v26 = vor.u32 %v902_v20, %v707_v21  ;;  %v722_v27 = vor.u32 %v906_v23, %v721_v22  ;;  %v213_v29 = vpack.c.b16 %v188_v28, %v188_v28  ;;  %v212_v43 = vpack.c.b16 %v187_v40, %v187_v40 }
  0x26   :  { %501 = vmatpush.bf16.msrb.mxu1 %v926_v30  ;;  %604 = vmatpush.bf16.msrb.mxu0 %v946_v32  ;;  %v733_v30 = vld [vmem:[%s1294_s0 + $0x80] sm:$0xf]  ;;  %v907_v32 = vld [vmem:[%s1294_s0 + $0x7c] sm:$0xf] }
  0x27   :  { %534 = vmatpush.bf16.msrb.mxu2 %v934_v31  ;;  %v910_v31 = vld [vmem:[%s1294_s0 + $0x90] sm:$0xf0] }
  0x2a   :  { %502 = vmatpush.bf16.msrb.mxu1 %v925_v34  ;;  %605 = vmatpush.bf16.msrb.mxu0 %v945_v36  ;;  %v741_v34 = vld [vmem:[%s1294_s0 + $0x88] sm:$0xf]  ;;  %v734_v36 = vor.u32 %v910_v31, %v733_v30 }
  0x2b   :  { %535 = vmatpush.bf16.msrb.mxu2 %v933_v35  ;;  %v911_v35 = vld [vmem:[%s1294_s0 + $0x98] sm:$0xf0] }
  0x2e   :  { %503 = vmatpush.bf16.msrb.mxu1 %v924_v37  ;;  %606 = vmatpush.bf16.msrb.mxu0 %v944_v39  ;;  %v730_v37 = vor.u32 %v907_v32, %v727_v33  ;;  %v41_v39 = vld [vmem:[%s1294_s0 + $0xb0] sm:$0xf] }
  0x2f   :  { %536 = vmatpush.bf16.msrb.mxu2 %v932_v38  ;;  %v742_v38 = vor.u32 %v911_v35, %v741_v34  ;;  %v189_v42 = vunpack.c.l.b16 %v41_v39 }
  0x31   :  { %480 = vmatmul.bf16.gmra.mxu0 %v686_v46  ;;  %490 = vmatmul.bf16.gmra.mxu1 %v726_v47 }
  0x32   :  { %504 = vmatpush.bf16.msrb.mxu1 %v923_v44  ;;  %v211_v44 = vpack.c.b16 %v186_v41, %v186_v41 }
  0x33   :  { %537 = vmatpush.bf16.msrb.mxu2 %v931_v45  ;;  %579 = vmatmul.bf16.gmra.mxu3 %v698_v52  ;;  %v214_v45 = vpack.c.b16 %v189_v42, %v189_v42 }
  0x36   :  { %505 = vmatpush.bf16.msrb.mxu1 %v922_v50 }
  0x37   :  { %538 = vmatpush.bf16.msrb.mxu2 %v930_v51 }
  0x3a   :  { %506 = vmatpush.bf16.msrb.mxu1 %v921_v53 }
  0x3b   :  { %539 = vmatpush.bf16.msrb.mxu2 %v929_v54 }
  0x3e   :  { %507 = vmatpush.bf16.msrb.mxu1 %v920_v55 }
  0x3f   :  { %540 = vmatpush.bf16.msrb.mxu2 %v928_v56 }
  0x41   :  { %508 = vmatmul.bf16.vlgmr.msrb.gmra.mxu1 %v670_v0  ;;  %887 = vmatmul.msk.bf16.vlgmr.msrb.gmra.mxu0 %vm451_vm0, %v682_v1 }
  0x42   :  { %541 = vmatmul.bf16.vlgmr.msrb.gmra.mxu2 %v674_v63 }
  0x43   :  { %584 = vmatmul.bf16.gmra.mxu3 %v718_v4 }
  0x51   :  { %513 = vmatmul.bf16.gmra.mxu1 %v690_v12  ;;  %888 = vmatmul.msk.bf16.gmra.mxu0 %vm451_vm0, %v702_v14 }
  0x52   :  { %546 = vmatmul.bf16.gmra.mxu2 %v694_v11 }
  0x53   :  { %589 = vmatmul.bf16.gmra.mxu3 %v738_v17 }
  0x61   :  { %518 = vmatmul.bf16.gmra.mxu1 %v710_v26  ;;  %889 = vmatmul.msk.bf16.gmra.mxu0 %vm451_vm0, %v722_v27 }
  0x62   :  { %551 = vmatmul.bf16.gmra.mxu2 %v714_v25 }
  0x63   :  { %594 = vmatmul.bf16.gmra.mxu3 %v213_v29 }
  0x71   :  { %523 = vmatmul.bf16.gmra.mxu1 %v730_v37  ;;  %890 = vmatmul.msk.bf16.gmra.mxu0 %vm451_vm0, %v742_v38 }
  0x72   :  { %556 = vmatmul.bf16.gmra.mxu2 %v734_v36 }
  0x81   :  { %528 = vmatmul.bf16.gmra.mxu1 %v211_v44  ;;  %891 = vmatmul.msk.bf16.gmra.mxu0 %vm451_vm0, %v214_v45 }
  0x82   :  { %561 = vmatmul.bf16.gmra.mxu2 %v212_v43 }
  0x9e   :  { %v476_v46 = vpop.f32.mrf.mxu0  ;;  %v486_v47 = vpop.f32.mrf.mxu1 }
  0x9f   :  { %v477_v61 = vadd.f32 %v1263_v58, %v476_v46  ;;  %v487_v36 = vadd.f32 %v1263_v58, %v486_v47 }
  0xa6   :  { %v478_v49 = vpop.f32.mrf.mxu0  ;;  %v488_v50 = vpop.f32.mrf.mxu1 }
  0xa7   :  { %v1254_v48 = vpop.f32.mrf.mxu2  ;;  %v575_v51 = vpop.f32.mrf.mxu3  ;;  %v479_v1 = vadd.f32 %v1263_v58, %v478_v49  ;;  %v489_v44 = vadd.f32 %v1263_v58, %v488_v50 }
  0xae   :  { %v481_v53 = vpop.f32.mrf.mxu0  ;;  %v1256_v54 = vpop.f32.mrf.mxu1 }
  0xaf   :  { %v498_v52 = vpop.f32.mrf.mxu2  ;;  %v577_v13 = vpop.f32.mrf.mxu3  ;;  %v482_v15 = vadd.f32 %v1263_v58, %v481_v53 }
  0xb6   :  { %v483_v55 = vpop.f32.mrf.mxu0  ;;  %v1258_v56 = vpop.f32.mrf.mxu1 }
  0xb7   :  { %v580_v57 = vpop.f32.mrf.mxu3  ;;  %v484_v23 = vadd.f32 %v1263_v58, %v483_v55 }
  0xbe   :  { %v509_v59 = vpop.f32.mrf.mxu1  ;;  %v608_v60 = vpop.f32.mrf.mxu0 }
  0xbf   :  { %v582_v62 = vpop.f32.mrf.mxu3  ;;  %v510_v63 = vadd.f32 %v509_v59, %v477_v61  ;;  %v492_v61 = vadd.f32 %v1263_v58, %v1256_v54 }
  0xc5   :  { %v542_v0 = vpop.f32.mrf.mxu2 }
  0xc6   :  { %v543_v2 = vadd.f32 %v542_v0, %v510_v63  ;;  %v511_v3 = vpop.f32.mrf.mxu1  ;;  %v610_v4 = vpop.f32.mrf.mxu0 }
  0xc7   :  { %v512_v5 = vadd.f32 %v511_v3, %v479_v1  ;;  %v585_v6 = vpop.f32.mrf.mxu3 }
  0xc8   :  { %v576_v7 = vadd.f32 %v575_v51, %v543_v2 }
  0xca   :  { %v609_v10 = vadd.f32 %v608_v60, %v576_v7 }
  0xcc   :  { %v632_v18 = vmax.f32 %v609_v10, 0.0 }
  0xcd   :  { %v544_v8 = vpop.f32.mrf.mxu2 }
  0xce   :  { %v545_v9 = vadd.f32 %v544_v8, %v512_v5  ;;  %v514_v12 = vpop.f32.mrf.mxu1  ;;  %v613_v14 = vpop.f32.mrf.mxu0 }
  0xcf   :  { %v587_v17 = vpop.f32.mrf.mxu3  ;;  %v515_v20 = vadd.f32 %v514_v12, %v482_v15 }
  0xd0   :  { %v578_v11 = vadd.f32 %v577_v13, %v545_v9 }
  0xd2   :  { %v611_v16 = vadd.f32 %v610_v4, %v578_v11  ;;  %v494_v4 = vadd.f32 %v1263_v58, %v1258_v56  ;;  %v497_v11 = vadd.f32 %v1263_v58, %v1254_v48 }
  0xd4   :  { %v633_v19 = vmax.f32 %v611_v16, 0.0 }
  0xd5   :  { %v547_v21 = vpop.f32.mrf.mxu2 }
  0xd6   :  { %v951_v22 = vpack.c.bf16 %v633_v19, %v632_v18  ;;  %v548_v24 = vadd.f32 %v547_v21, %v515_v20  ;;  %v516_v25 = vpop.f32.mrf.mxu1  ;;  %v615_v26 = vpop.f32.mrf.mxu0 }
  0xd7   :  { %v517_v27 = vadd.f32 %v516_v25, %v484_v23  ;;  %v590_v28 = vpop.f32.mrf.mxu3 }
  0xd8   :  { %952 = vst [vmem:[%s1295_s3] sm:$0xff] %v951_v22   ;;  %v581_v29 = vadd.f32 %v580_v57, %v548_v24 }
  0xda   :  { %v614_v32 = vadd.f32 %v613_v14, %v581_v29 }
  0xdc   :  { %v634_v39 = vmax.f32 %v614_v32, 0.0 }
  0xdd   :  { %v549_v30 = vpop.f32.mrf.mxu2 }
  0xde   :  { %v550_v31 = vadd.f32 %v549_v30, %v517_v27  ;;  %v519_v34 = vpop.f32.mrf.mxu1  ;;  %v618_v35 = vpop.f32.mrf.mxu0 }
  0xdf   :  { %v592_v38 = vpop.f32.mrf.mxu3  ;;  %v520_v41 = vadd.f32 %v519_v34, %v487_v36 }
  0xe0   :  { %v583_v33 = vadd.f32 %v582_v62, %v550_v31 }
  0xe2   :  { %v616_v37 = vadd.f32 %v615_v26, %v583_v33 }
  0xe4   :  { %v635_v40 = vmax.f32 %v616_v37, 0.0 }
  0xe5   :  { %v552_v42 = vpop.f32.mrf.mxu2 }
  0xe6   :  { %v956_v43 = vpack.c.bf16 %v635_v40, %v634_v39  ;;  %v553_v45 = vadd.f32 %v552_v42, %v520_v41  ;;  %v521_v46 = vpop.f32.mrf.mxu1  ;;  %v620_v49 = vpop.f32.mrf.mxu0 }
  0xe7   :  { %v522_v51 = vadd.f32 %v521_v46, %v489_v44  ;;  %v595_v52 = vpop.f32.mrf.mxu3 }
  0xe8   :  { %968 = vst [vmem:[%s1295_s3 + $0x8] sm:$0xff] %v956_v43   ;;  %v586_v53 = vadd.f32 %v585_v6, %v553_v45 }
  0xea   :  { %v619_v55 = vadd.f32 %v618_v35, %v586_v53 }
  0xec   :  { %v636_v63 = vmax.f32 %v619_v55, 0.0 }
  0xed   :  { %v554_v47 = vpop.f32.mrf.mxu2 }
  0xee   :  { %v555_v13 = vadd.f32 %v554_v47, %v522_v51  ;;  %v524_v59 = vpop.f32.mrf.mxu1  ;;  %v623_v60 = vpop.f32.mrf.mxu0 }
  0xef   :  { %v597_v62 = vpop.f32.mrf.mxu3  ;;  %v525_v1 = vadd.f32 %v524_v59, %v492_v61 }
  0xf0   :  { %v588_v57 = vadd.f32 %v587_v17, %v555_v13 }
  0xf2   :  { %v621_v50 = vadd.f32 %v620_v49, %v588_v57 }
  0xf4   :  { %v637_v0 = vmax.f32 %v621_v50, 0.0 }
  0xf5   :  { %v557_v2 = vpop.f32.mrf.mxu2 }
  0xf6   :  { %v961_v3 = vpack.c.bf16 %v637_v0, %v636_v63  ;;  %v558_v5 = vadd.f32 %v557_v2, %v525_v1  ;;  %v526_v6 = vpop.f32.mrf.mxu1  ;;  %v625_v7 = vpop.f32.mrf.mxu0 }
  0xf7   :  { %v527_v8 = vadd.f32 %v526_v6, %v494_v4 }
  0xf8   :  { %969 = vst [vmem:[%s1295_s3 + $0x10] sm:$0xff] %v961_v3   ;;  %v591_v9 = vadd.f32 %v590_v28, %v558_v5 }
  0xfa   :  { %v624_v12 = vadd.f32 %v623_v60, %v591_v9 }
  0xfc   :  { %v638_v18 = vmax.f32 %v624_v12, 0.0 }
  0xfd   :  { %v559_v54 = vpop.f32.mrf.mxu2 }
  0xfe   :  { %v560_v10 = vadd.f32 %v559_v54, %v527_v8  ;;  %v529_v15 = vpop.f32.mrf.mxu1  ;;  %v628_v16 = vpop.f32.mrf.mxu0 }
  0xff   :  { %v530_v56 = vadd.f32 %v529_v15, %v497_v11 }
 0x100   :  { %v593_v14 = vadd.f32 %v592_v38, %v560_v10 }
 0x102   :  { %v626_v17 = vadd.f32 %v625_v7, %v593_v14 }
 0x104   :  { %v639_v19 = vmax.f32 %v626_v17, 0.0 }
 0x105   :  { %v562_v20 = vpop.f32.mrf.mxu2 }
 0x106   :  { %v966_v21 = vpack.c.bf16 %v639_v19, %v638_v18  ;;  %v563_v22 = vadd.f32 %v562_v20, %v530_v56  ;;  %v531_v24 = vpop.f32.mrf.mxu1  ;;  %v630_v25 = vpop.f32.mrf.mxu0 }
 0x108   :  { %970 = vst [vmem:[%s1295_s3 + $0x18] sm:$0xff] %v966_v21   ;;  %v596_v23 = vadd.f32 %v595_v52, %v563_v22 }
 0x10a   :  { %v629_v26 = vadd.f32 %v628_v16, %v596_v23 }
 0x10c   :  { %v640_v48 = vmax.f32 %v629_v26, 0.0 }
 0x10d   :  { %v564_v58 = vpop.f32.mrf.mxu2 }
 0x10e   :  { %v649_v27 = vpack.c.bf16 %v640_v48, %v640_v48 }
 0x110   :  { %658 = vst [vmem:[%s1295_s3 + $0x20] sm:$0xf] %v649_v27 }

// kernel: qnetwork_conv_forward.7
= control target key start
LH: loop header
LB: loop body
LE: loop exit
PB: predicated region body
PF: predicated region fallthrough
CT: control target
= control target key end

     0   :  { %s11645_s0 = inlined_call_operand.vmem [shape: bf16[2,2304], index: 0, kind: input, shape index: {}]   ;;  %s11646_s1 = inlined_call_operand.vmem [shape: bf16[2304,512], index: 1, kind: input, shape index: {}]   ;;  %s11647_s2 = inlined_call_operand.vmem [shape: f32[1,512], index: 2, kind: input, shape index: {}]   ;;  %s11648_s3 = inlined_call_operand.vmem [shape: bf16[512,128], index: 3, kind: input, shape index: {}]   ;;  %s11649_s4 = inlined_call_operand.vmem [shape: f32[1,128], index: 4, kind: input, shape index: {}]   ;;  %s11650_s5 = inlined_call_operand.hbm [shape: f32[2,128], index: 5, kind: output, shape index: {}]  }
   0x1   :  { %v4919_v0 = vld [vmem:[%s11646_s1 + $0xe0] sm:$0xf]  ;;  %v7267_v1 = vld [vmem:[%s11646_s1 + $0xec] sm:$0xf0] }
   0x2   :  { %v5047_v2 = vld [vmem:[%s11646_s1 + $0x1e0] sm:$0xf]  ;;  %v4920_v3 = vor.u32 %v7267_v1, %v4919_v0  ;;  %v7299_v4 = vld [vmem:[%s11646_s1 + $0x1ec] sm:$0xf0] }
   0x3   :  { %v5175_v5 = vld [vmem:[%s11646_s1 + $0x2e0] sm:$0xf]  ;;  %v7331_v6 = vld [vmem:[%s11646_s1 + $0x2ec] sm:$0xf0]  ;;  %v5048_v7 = vor.u32 %v7299_v4, %v5047_v2 }
   0x4   :  { %v5176_v8 = vor.u32 %v7331_v6, %v5175_v5  ;;  %v5303_v9 = vld [vmem:[%s11646_s1 + $0x3e0] sm:$0xf]  ;;  %v7363_v10 = vld [vmem:[%s11646_s1 + $0x3ec] sm:$0xf0]  ;;  %3532 = vmatpush.bf16.msra.mxu0 %v4920_v3 }
   0x5   :  { %v4903_v11 = vld [vmem:[%s11646_s1 + $0xc0] sm:$0xf]  ;;  %v5304_v12 = vor.u32 %v7363_v10, %v5303_v9  ;;  %v7263_v13 = vld [vmem:[%s11646_s1 + $0xcc] sm:$0xf0]  ;;  %3545 = vmatpush.bf16.msra.mxu1 %v5048_v7 }
   0x6   :  { %v5031_v14 = vld [vmem:[%s11646_s1 + $0x1c0] sm:$0xf]  ;;  %v7295_v15 = vld [vmem:[%s11646_s1 + $0x1cc] sm:$0xf0]  ;;  %3558 = vmatpush.bf16.msra.mxu2 %v5176_v8  ;;  %v4904_v16 = vor.u32 %v7263_v13, %v4903_v11 }
   0x7   :  { %v5032_v17 = vor.u32 %v7295_v15, %v5031_v14  ;;  %v5159_v18 = vld [vmem:[%s11646_s1 + $0x2c0] sm:$0xf]  ;;  %v7327_v19 = vld [vmem:[%s11646_s1 + $0x2cc] sm:$0xf0]  ;;  %3571 = vmatpush.bf16.msra.mxu3 %v5304_v12 }
   0x8   :  { %v5287_v20 = vld [vmem:[%s11646_s1 + $0x3c0] sm:$0xf]  ;;  %v5160_v21 = vor.u32 %v7327_v19, %v5159_v18  ;;  %v7359_v22 = vld [vmem:[%s11646_s1 + $0x3cc] sm:$0xf0]  ;;  %3533 = vmatpush.bf16.msra.mxu0 %v4904_v16 }
   0x9   :  { %v4887_v23 = vld [vmem:[%s11646_s1 + $0xa0] sm:$0xf]  ;;  %v7259_v24 = vld [vmem:[%s11646_s1 + $0xac] sm:$0xf0]  ;;  %v5288_v25 = vor.u32 %v7359_v22, %v5287_v20  ;;  %3546 = vmatpush.bf16.msra.mxu1 %v5032_v17 }
   0xa   :  { %v5015_v26 = vld [vmem:[%s11646_s1 + $0x1a0] sm:$0xf]  ;;  %v7291_v27 = vld [vmem:[%s11646_s1 + $0x1ac] sm:$0xf0]  ;;  %v4888_v29 = vor.u32 %v7259_v24, %v4887_v23  ;;  %3559 = vmatpush.bf16.msra.mxu2 %v5160_v21 }
   0xb   :  { %v5143_v28 = vld [vmem:[%s11646_s1 + $0x2a0] sm:$0xf]  ;;  %v7323_v30 = vld [vmem:[%s11646_s1 + $0x2ac] sm:$0xf0]  ;;  %v5016_v33 = vor.u32 %v7291_v27, %v5015_v26  ;;  %3572 = vmatpush.bf16.msra.mxu3 %v5288_v25 }
   0xc   :  { %v5271_v31 = vld [vmem:[%s11646_s1 + $0x3a0] sm:$0xf]  ;;  %v7355_v32 = vld [vmem:[%s11646_s1 + $0x3ac] sm:$0xf0]  ;;  %v5144_v34 = vor.u32 %v7323_v30, %v5143_v28  ;;  %3534 = vmatpush.bf16.msra.mxu0 %v4888_v29 }
   0xd   :  { %v4871_v35 = vld [vmem:[%s11646_s1 + $0x80] sm:$0xf]  ;;  %v7255_v36 = vld [vmem:[%s11646_s1 + $0x8c] sm:$0xf0]  ;;  %v5272_v38 = vor.u32 %v7355_v32, %v5271_v31  ;;  %3547 = vmatpush.bf16.msra.mxu1 %v5016_v33 }
   0xe   :  { %v4999_v37 = vld [vmem:[%s11646_s1 + $0x180] sm:$0xf]  ;;  %v7287_v39 = vld [vmem:[%s11646_s1 + $0x18c] sm:$0xf0]  ;;  %v4872_v44 = vor.u32 %v7255_v36, %v4871_v35  ;;  %3560 = vmatpush.bf16.msra.mxu2 %v5144_v34 }
   0xf   :  { %v5127_v40 = vld [vmem:[%s11646_s1 + $0x280] sm:$0xf]  ;;  %v7319_v41 = vld [vmem:[%s11646_s1 + $0x28c] sm:$0xf0]  ;;  %v5000_v45 = vor.u32 %v7287_v39, %v4999_v37  ;;  %3573 = vmatpush.bf16.msra.mxu3 %v5272_v38 }
  0x10   :  { %v5255_v42 = vld [vmem:[%s11646_s1 + $0x380] sm:$0xf]  ;;  %v7351_v43 = vld [vmem:[%s11646_s1 + $0x38c] sm:$0xf0]  ;;  %v5128_v46 = vor.u32 %v7319_v41, %v5127_v40  ;;  %3535 = vmatpush.bf16.msra.mxu0 %v4872_v44 }
  0x11   :  { %v4855_v47 = vld [vmem:[%s11646_s1 + $0x60] sm:$0xf]  ;;  %v7251_v48 = vld [vmem:[%s11646_s1 + $0x6c] sm:$0xf0]  ;;  %v5256_v50 = vor.u32 %v7351_v43, %v5255_v42  ;;  %3548 = vmatpush.bf16.msra.mxu1 %v5000_v45 }
  0x12   :  { %v4983_v49 = vld [vmem:[%s11646_s1 + $0x160] sm:$0xf]  ;;  %v7283_v51 = vld [vmem:[%s11646_s1 + $0x16c] sm:$0xf0]  ;;  %v4856_v56 = vor.u32 %v7251_v48, %v4855_v47  ;;  %3561 = vmatpush.bf16.msra.mxu2 %v5128_v46 }
  0x13   :  { %v5111_v52 = vld [vmem:[%s11646_s1 + $0x260] sm:$0xf]  ;;  %v7315_v53 = vld [vmem:[%s11646_s1 + $0x26c] sm:$0xf0]  ;;  %v4984_v57 = vor.u32 %v7283_v51, %v4983_v49  ;;  %3574 = vmatpush.bf16.msra.mxu3 %v5256_v50 }
  0x14   :  { %v5239_v54 = vld [vmem:[%s11646_s1 + $0x360] sm:$0xf]  ;;  %v7347_v55 = vld [vmem:[%s11646_s1 + $0x36c] sm:$0xf0]  ;;  %v5112_v58 = vor.u32 %v7315_v53, %v5111_v52  ;;  %3536 = vmatpush.bf16.msra.mxu0 %v4856_v56 }
  0x15   :  { %v4839_v59 = vld [vmem:[%s11646_s1 + $0x40] sm:$0xf]  ;;  %v7247_v60 = vld [vmem:[%s11646_s1 + $0x4c] sm:$0xf0]  ;;  %v5240_v62 = vor.u32 %v7347_v55, %v5239_v54  ;;  %3549 = vmatpush.bf16.msra.mxu1 %v4984_v57 }
  0x16   :  { %v4967_v61 = vld [vmem:[%s11646_s1 + $0x140] sm:$0xf]  ;;  %v7279_v63 = vld [vmem:[%s11646_s1 + $0x14c] sm:$0xf0]  ;;  %v4840_v4 = vor.u32 %v7247_v60, %v4839_v59  ;;  %3562 = vmatpush.bf16.msra.mxu2 %v5112_v58 }
  0x17   :  { %v5095_v0 = vld [vmem:[%s11646_s1 + $0x240] sm:$0xf]  ;;  %v7311_v1 = vld [vmem:[%s11646_s1 + $0x24c] sm:$0xf0]  ;;  %v4968_v5 = vor.u32 %v7279_v63, %v4967_v61  ;;  %3575 = vmatpush.bf16.msra.mxu3 %v5240_v62 }
  0x18   :  { %v5223_v2 = vld [vmem:[%s11646_s1 + $0x340] sm:$0xf]  ;;  %v7343_v3 = vld [vmem:[%s11646_s1 + $0x34c] sm:$0xf0]  ;;  %v5096_v6 = vor.u32 %v7311_v1, %v5095_v0  ;;  %3537 = vmatpush.bf16.msra.mxu0 %v4840_v4 }
  0x19   :  { %v4823_v7 = vld [vmem:[%s11646_s1 + $0x20] sm:$0xf]  ;;  %v7243_v8 = vld [vmem:[%s11646_s1 + $0x2c] sm:$0xf0]  ;;  %v5224_v10 = vor.u32 %v7343_v3, %v5223_v2  ;;  %3550 = vmatpush.bf16.msra.mxu1 %v4968_v5 }
  0x1a   :  { %v4951_v9 = vld [vmem:[%s11646_s1 + $0x120] sm:$0xf]  ;;  %v7275_v11 = vld [vmem:[%s11646_s1 + $0x12c] sm:$0xf0]  ;;  %v4824_v16 = vor.u32 %v7243_v8, %v4823_v7  ;;  %3563 = vmatpush.bf16.msra.mxu2 %v5096_v6 }
  0x1b   :  { %v5079_v12 = vld [vmem:[%s11646_s1 + $0x220] sm:$0xf]  ;;  %v7307_v13 = vld [vmem:[%s11646_s1 + $0x22c] sm:$0xf0]  ;;  %v4952_v19 = vor.u32 %v7275_v11, %v4951_v9  ;;  %3576 = vmatpush.bf16.msra.mxu3 %v5224_v10 }
  0x1c   :  { %v5207_v14 = vld [vmem:[%s11646_s1 + $0x320] sm:$0xf]  ;;  %v7339_v15 = vld [vmem:[%s11646_s1 + $0x32c] sm:$0xf0]  ;;  %v5080_v20 = vor.u32 %v7307_v13, %v5079_v12  ;;  %3538 = vmatpush.bf16.msra.mxu0 %v4824_v16 }
  0x1d   :  { %v4807_v17 = vld [vmem:[%s11646_s1] sm:$0xf]  ;;  %v7239_v18 = vld [vmem:[%s11646_s1 + $0xc] sm:$0xf0]  ;;  %v5208_v24 = vor.u32 %v7339_v15, %v5207_v14  ;;  %3551 = vmatpush.bf16.msra.mxu1 %v4952_v19 }
  0x1e   :  { %v4935_v21 = vld [vmem:[%s11646_s1 + $0x100] sm:$0xf]  ;;  %v7271_v22 = vld [vmem:[%s11646_s1 + $0x10c] sm:$0xf0]  ;;  %v4808_v31 = vor.u32 %v7239_v18, %v4807_v17  ;;  %3564 = vmatpush.bf16.msra.mxu2 %v5080_v20 }
  0x1f   :  { %v5063_v23 = vld [vmem:[%s11646_s1 + $0x200] sm:$0xf]  ;;  %v7303_v25 = vld [vmem:[%s11646_s1 + $0x20c] sm:$0xf0]  ;;  %v4936_v35 = vor.u32 %v7271_v22, %v4935_v21  ;;  %3577 = vmatpush.bf16.msra.mxu3 %v5208_v24 }
  0x20   :  { %v5191_v26 = vld [vmem:[%s11646_s1 + $0x300] sm:$0xf]  ;;  %v7335_v27 = vld [vmem:[%s11646_s1 + $0x30c] sm:$0xf0]  ;;  %v5064_v36 = vor.u32 %v7303_v25, %v5063_v23  ;;  %3539 = vmatpush.bf16.msra.mxu0 %v4808_v31 }
  0x21   :  { %v5431_v28 = vld [vmem:[%s11646_s1 + $0x4e0] sm:$0xf]  ;;  %v7395_v29 = vld [vmem:[%s11646_s1 + $0x4ec] sm:$0xf0]  ;;  %v5192_v39 = vor.u32 %v7335_v27, %v5191_v26  ;;  %3552 = vmatpush.bf16.msra.mxu1 %v4936_v35 }
  0x22   :  { %v5559_v30 = vld [vmem:[%s11646_s1 + $0x5e0] sm:$0xf]  ;;  %v7427_v32 = vld [vmem:[%s11646_s1 + $0x5ec] sm:$0xf0]  ;;  %v5432_v40 = vor.u32 %v7395_v29, %v5431_v28  ;;  %3565 = vmatpush.bf16.msra.mxu2 %v5064_v36 }
  0x23   :  { %v5687_v33 = vld [vmem:[%s11646_s1 + $0x6e0] sm:$0xf]  ;;  %v7459_v34 = vld [vmem:[%s11646_s1 + $0x6ec] sm:$0xf0]  ;;  %v5560_v41 = vor.u32 %v7427_v32, %v5559_v30  ;;  %3578 = vmatpush.bf16.msra.mxu3 %v5192_v39 }
  0x24   :  { %v5815_v37 = vld [vmem:[%s11646_s1 + $0x7e0] sm:$0xf]  ;;  %v7491_v38 = vld [vmem:[%s11646_s1 + $0x7ec] sm:$0xf0]  ;;  %v5688_v42 = vor.u32 %v7459_v34, %v5687_v33  ;;  %3584 = vmatpush.bf16.msrb.mxu0 %v5432_v40 }
  0x25   :  { %v5415_v43 = vld [vmem:[%s11646_s1 + $0x4c0] sm:$0xf]  ;;  %v7391_v44 = vld [vmem:[%s11646_s1 + $0x4cc] sm:$0xf0]  ;;  %v5816_v46 = vor.u32 %v7491_v38, %v5815_v37  ;;  %3597 = vmatpush.bf16.msrb.mxu1 %v5560_v41 }
  0x26   :  { %v5543_v45 = vld [vmem:[%s11646_s1 + $0x5c0] sm:$0xf]  ;;  %v7423_v47 = vld [vmem:[%s11646_s1 + $0x5cc] sm:$0xf0]  ;;  %v5416_v52 = vor.u32 %v7391_v44, %v5415_v43  ;;  %3610 = vmatpush.bf16.msrb.mxu2 %v5688_v42 }
  0x27   :  { %v5671_v48 = vld [vmem:[%s11646_s1 + $0x6c0] sm:$0xf]  ;;  %v7455_v49 = vld [vmem:[%s11646_s1 + $0x6cc] sm:$0xf0]  ;;  %v5544_v53 = vor.u32 %v7423_v47, %v5543_v45  ;;  %3623 = vmatpush.bf16.msrb.mxu3 %v5816_v46 }
  0x28   :  { %v5799_v50 = vld [vmem:[%s11646_s1 + $0x7c0] sm:$0xf]  ;;  %v7487_v51 = vld [vmem:[%s11646_s1 + $0x7cc] sm:$0xf0]  ;;  %v5672_v54 = vor.u32 %v7455_v49, %v5671_v48  ;;  %3585 = vmatpush.bf16.msrb.mxu0 %v5416_v52 }
  0x29   :  { %v5399_v55 = vld [vmem:[%s11646_s1 + $0x4a0] sm:$0xf]  ;;  %v7387_v56 = vld [vmem:[%s11646_s1 + $0x4ac] sm:$0xf0]  ;;  %v5800_v58 = vor.u32 %v7487_v51, %v5799_v50  ;;  %3598 = vmatpush.bf16.msrb.mxu1 %v5544_v53 }
  0x2a   :  { %v5527_v57 = vld [vmem:[%s11646_s1 + $0x5a0] sm:$0xf]  ;;  %v7419_v59 = vld [vmem:[%s11646_s1 + $0x5ac] sm:$0xf0]  ;;  %v5400_v0 = vor.u32 %v7387_v56, %v5399_v55  ;;  %3611 = vmatpush.bf16.msrb.mxu2 %v5672_v54 }
  0x2b   :  { %v5655_v60 = vld [vmem:[%s11646_s1 + $0x6a0] sm:$0xf]  ;;  %v7451_v61 = vld [vmem:[%s11646_s1 + $0x6ac] sm:$0xf0]  ;;  %v5528_v3 = vor.u32 %v7419_v59, %v5527_v57  ;;  %3624 = vmatpush.bf16.msrb.mxu3 %v5800_v58 }
  0x2c   :  { %v5783_v62 = vld [vmem:[%s11646_s1 + $0x7a0] sm:$0xf]  ;;  %v7483_v63 = vld [vmem:[%s11646_s1 + $0x7ac] sm:$0xf0]  ;;  %v5656_v4 = vor.u32 %v7451_v61, %v5655_v60  ;;  %3586 = vmatpush.bf16.msrb.mxu0 %v5400_v0  ;;  %v22_v61 = vld [vmem:[%s11645_s0 + $0x8] sm:$0xff] }
  0x2d   :  { %v5383_v1 = vld [vmem:[%s11646_s1 + $0x480] sm:$0xf]  ;;  %v7383_v5 = vld [vmem:[%s11646_s1 + $0x48c] sm:$0xf0]  ;;  %v5784_v7 = vor.u32 %v7483_v63, %v5783_v62  ;;  %3599 = vmatpush.bf16.msrb.mxu1 %v5528_v3 }
  0x2e   :  { %v21_v2 = vld [vmem:[%s11645_s0] sm:$0xff]  ;;  %v7415_v8 = vld [vmem:[%s11646_s1 + $0x58c] sm:$0xf0]  ;;  %v5384_v13 = vor.u32 %v7383_v5, %v5383_v1  ;;  %3612 = vmatpush.bf16.msrb.mxu2 %v5656_v4 }
  0x2f   :  { %v5511_v6 = vld [vmem:[%s11646_s1 + $0x580] sm:$0xf]  ;;  %611 = vst [vmem:[#allocation1] ss:$9 sm:$0xff] %v21_v2  ;;  %v7447_v10 = vld [vmem:[%s11646_s1 + $0x68c] sm:$0xf0]  ;;  %3625 = vmatpush.bf16.msrb.mxu3 %v5784_v7 }
  0x30   :  { %v5639_v9 = vld [vmem:[%s11646_s1 + $0x680] sm:$0xf]  ;;  %v7479_v12 = vld [vmem:[%s11646_s1 + $0x78c] sm:$0xf0]  ;;  %v5512_v14 = vor.u32 %v7415_v8, %v5511_v6  ;;  %3587 = vmatpush.bf16.msrb.mxu0 %v5384_v13 }
  0x31   :  { %v5767_v11 = vld [vmem:[%s11646_s1 + $0x780] sm:$0xf]  ;;  %v5640_v15 = vor.u32 %v7447_v10, %v5639_v9  ;;  %v7379_v17 = vld [vmem:[%s11646_s1 + $0x46c] sm:$0xf0] }
  0x32   :  { %v5367_v16 = vld [vmem:[%s11646_s1 + $0x460] sm:$0xf]  ;;  %v5768_v19 = vor.u32 %v7479_v12, %v5767_v11  ;;  %v7411_v20 = vld [vmem:[%s11646_s1 + $0x56c] sm:$0xf0]  ;;  %3600 = vmatpush.bf16.msrb.mxu1 %v5512_v14 }
  0x33   :  { %v5495_v18 = vld [vmem:[%s11646_s1 + $0x560] sm:$0xf]  ;;  %v7443_v22 = vld [vmem:[%s11646_s1 + $0x66c] sm:$0xf0]  ;;  %v5368_v26 = vor.u32 %v7379_v17, %v5367_v16  ;;  %3613 = vmatpush.bf16.msrb.mxu2 %v5640_v15 }
  0x34   :  { %v5623_v21 = vld [vmem:[%s11646_s1 + $0x660] sm:$0xf]  ;;  %v7475_v24 = vld [vmem:[%s11646_s1 + $0x76c] sm:$0xf0]  ;;  %v5496_v30 = vor.u32 %v7411_v20, %v5495_v18  ;;  %3626 = vmatpush.bf16.msrb.mxu3 %v5768_v19 }
  0x35   :  { %v5751_v23 = vld [vmem:[%s11646_s1 + $0x760] sm:$0xf]  ;;  %v5624_v31 = vor.u32 %v7443_v22, %v5623_v21  ;;  %v7375_v32 = vld [vmem:[%s11646_s1 + $0x44c] sm:$0xf0]  ;;  %3588 = vmatpush.bf16.msrb.mxu0 %v5368_v26 }
  0x36   :  { %v5351_v25 = vld [vmem:[%s11646_s1 + $0x440] sm:$0xf]  ;;  %v8231_v27 = vld [vmem:[#allocation1 + $0x12] sm:$0xff]  ;;  %v8243_v34 = vld [vmem:[#allocation1 + $0x9] sm:$0xff]  ;;  %v5752_v35 = vor.u32 %v7475_v24, %v5751_v23  ;;  %3601 = vmatpush.bf16.msrb.mxu1 %v5496_v30 }
  0x37   :  { %v8233_v28 = vld [vmem:[#allocation1] sm:$0xff]  ;;  %v7407_v36 = vld [vmem:[%s11646_s1 + $0x54c] sm:$0xf0]  ;;  %3566 = vmatmul.bf16.vlgmr.msra.gmra.mxu2 %v8231_v27  ;;  %v5352_v41 = vor.u32 %v7375_v32, %v5351_v25  ;;  %3553 = vmatmul.bf16.vlgmr.msra.gmra.mxu1 %v8243_v34  ;;  %v8306_v60 = vld [vmem:[#allocation1 + $0x36] sm:$0xff] }
  0x38   :  { %v8235_v29 = vld [vmem:[#allocation1 + $0x1b] sm:$0xff]  ;;  %v7439_v38 = vld [vmem:[%s11646_s1 + $0x64c] sm:$0xf0]  ;;  %3540 = vmatmul.bf16.vlgmr.msra.gmra.mxu0 %v8233_v28  ;;  %3614 = vmatpush.bf16.msrb.mxu2 %v5624_v31  ;;  %v8311_v0 = vld [vmem:[#allocation1 + $0x24] sm:$0xff] }
  0x39   :  { %v5479_v33 = vld [vmem:[%s11646_s1 + $0x540] sm:$0xf]  ;;  %v7471_v40 = vld [vmem:[%s11646_s1 + $0x74c] sm:$0xf0]  ;;  %3579 = vmatmul.bf16.vlgmr.msra.gmra.mxu3 %v8235_v29  ;;  %3589 = vmatpush.bf16.msrb.mxu0 %v5352_v41 }
  0x3a   :  { %v5607_v37 = vld [vmem:[%s11646_s1 + $0x640] sm:$0xf]  ;;  %v5480_v43 = vor.u32 %v7407_v36, %v5479_v33  ;;  %v7371_v45 = vld [vmem:[%s11646_s1 + $0x42c] sm:$0xf0]  ;;  %3627 = vmatpush.bf16.msrb.mxu3 %v5752_v35 }
  0x3b   :  { %v5735_v39 = vld [vmem:[%s11646_s1 + $0x740] sm:$0xf]  ;;  %v5608_v44 = vor.u32 %v7439_v38, %v5607_v37  ;;  %v7403_v47 = vld [vmem:[%s11646_s1 + $0x52c] sm:$0xf0] }
  0x3c   :  { %v5335_v42 = vld [vmem:[%s11646_s1 + $0x420] sm:$0xf]  ;;  %v5736_v48 = vor.u32 %v7471_v40, %v5735_v39  ;;  %v7435_v50 = vld [vmem:[%s11646_s1 + $0x62c] sm:$0xf0]  ;;  %3602 = vmatpush.bf16.msrb.mxu1 %v5480_v43 }
  0x3d   :  { %v5463_v46 = vld [vmem:[%s11646_s1 + $0x520] sm:$0xf]  ;;  %v7467_v52 = vld [vmem:[%s11646_s1 + $0x72c] sm:$0xf0]  ;;  %v5336_v55 = vor.u32 %v7371_v45, %v5335_v42  ;;  %3615 = vmatpush.bf16.msrb.mxu2 %v5608_v44 }
  0x3e   :  { %v5591_v49 = vld [vmem:[%s11646_s1 + $0x620] sm:$0xf]  ;;  %v7367_v54 = vld [vmem:[%s11646_s1 + $0x40c] sm:$0xf0]  ;;  %v5464_v62 = vor.u32 %v7403_v47, %v5463_v46  ;;  %3628 = vmatpush.bf16.msrb.mxu3 %v5736_v48 }
  0x3f   :  { %v5719_v51 = vld [vmem:[%s11646_s1 + $0x720] sm:$0xf]  ;;  %v7399_v57 = vld [vmem:[%s11646_s1 + $0x50c] sm:$0xf0]  ;;  %v5592_v63 = vor.u32 %v7435_v50, %v5591_v49  ;;  %3590 = vmatpush.bf16.msrb.mxu0 %v5336_v55 }
  0x40   :  { %v5319_v53 = vld [vmem:[%s11646_s1 + $0x400] sm:$0xf]  ;;  %v7431_v59 = vld [vmem:[%s11646_s1 + $0x60c] sm:$0xf0]  ;;  %v5720_v3 = vor.u32 %v7467_v52, %v5719_v51  ;;  %3603 = vmatpush.bf16.msrb.mxu1 %v5464_v62 }
  0x41   :  { %v5447_v56 = vld [vmem:[%s11646_s1 + $0x500] sm:$0xf]  ;;  %v8315_v2 = vld [vmem:[#allocation1 + $0x2d] sm:$0xff]  ;;  %v5320_v9 = vor.u32 %v7367_v54, %v5319_v53  ;;  %3616 = vmatpush.bf16.msrb.mxu2 %v5592_v63 }
  0x42   :  { %v5575_v58 = vld [vmem:[%s11646_s1 + $0x600] sm:$0xf]  ;;  %v7463_v5 = vld [vmem:[%s11646_s1 + $0x70c] sm:$0xf0]  ;;  %v5448_v13 = vor.u32 %v7399_v57, %v5447_v56  ;;  %3629 = vmatpush.bf16.msrb.mxu3 %v5720_v3 }
  0x43   :  { %v8313_v1 = vld [vmem:[#allocation1 + $0x3f] sm:$0xff]  ;;  %v7523_v7 = vld [vmem:[%s11646_s1 + $0x8ec] sm:$0xf0]  ;;  %v5576_v14 = vor.u32 %v7431_v59, %v5575_v58  ;;  %3591 = vmatpush.bf16.msrb.mxu0 %v5320_v9 }
  0x44   :  { %v5703_v4 = vld [vmem:[%s11646_s1 + $0x700] sm:$0xf]  ;;  %621 = vst [vmem:[#allocation1] ss:$9 sm:$0xff] %v22_v61  ;;  %v7555_v10 = vld [vmem:[%s11646_s1 + $0x9ec] sm:$0xf0]  ;;  %3604 = vmatpush.bf16.msrb.mxu1 %v5448_v13 }
  0x45   :  { %v5943_v6 = vld [vmem:[%s11646_s1 + $0x8e0] sm:$0xf]  ;;  %v7587_v12 = vld [vmem:[%s11646_s1 + $0xaec] sm:$0xf0]  ;;  %v5704_v17 = vor.u32 %v7463_v5, %v5703_v4  ;;  %3617 = vmatpush.bf16.msrb.mxu2 %v5576_v14 }
  0x46   :  { %v6071_v8 = vld [vmem:[%s11646_s1 + $0x9e0] sm:$0xf]  ;;  %v7619_v16 = vld [vmem:[%s11646_s1 + $0xbec] sm:$0xf0]  ;;  %v5944_v18 = vor.u32 %v7523_v7, %v5943_v6 }
  0x47   :  { %v6199_v11 = vld [vmem:[%s11646_s1 + $0xae0] sm:$0xf]  ;;  %v6072_v19 = vor.u32 %v7555_v10, %v6071_v8  ;;  %v7519_v22 = vld [vmem:[%s11646_s1 + $0x8cc] sm:$0xf0]  ;;  %3630 = vmatpush.bf16.msrb.mxu3 %v5704_v17  ;;  %3605 = vmatmul.bf16.vlgmr.msrb.gmra.mxu1 %v8315_v2 }
  0x48   :  { %v6327_v15 = vld [vmem:[%s11646_s1 + $0xbe0] sm:$0xf]  ;;  %v6200_v20 = vor.u32 %v7587_v12, %v6199_v11  ;;  %v7551_v25 = vld [vmem:[%s11646_s1 + $0x9cc] sm:$0xf0]  ;;  %3636 = vmatpush.bf16.msra.mxu0 %v5944_v18  ;;  %3618 = vmatmul.bf16.vlgmr.msrb.gmra.mxu2 %v8306_v60 }
  0x49   :  { %v5927_v21 = vld [vmem:[%s11646_s1 + $0x8c0] sm:$0xf]  ;;  %v6328_v24 = vor.u32 %v7619_v16, %v6327_v15  ;;  %v7583_v30 = vld [vmem:[%s11646_s1 + $0xacc] sm:$0xf0]  ;;  %3649 = vmatpush.bf16.msra.mxu1 %v6072_v19  ;;  %3592 = vmatmul.bf16.vlgmr.msrb.gmra.mxu0 %v8311_v0 }
  0x4a   :  { %v6055_v23 = vld [vmem:[%s11646_s1 + $0x9c0] sm:$0xf]  ;;  %v7615_v32 = vld [vmem:[%s11646_s1 + $0xbcc] sm:$0xf0]  ;;  %v5928_v33 = vor.u32 %v7519_v22, %v5927_v21  ;;  %3662 = vmatpush.bf16.msra.mxu2 %v6200_v20  ;;  %3631 = vmatmul.bf16.vlgmr.msrb.gmra.mxu3 %v8313_v1 }
  0x4b   :  { %v6183_v26 = vld [vmem:[%s11646_s1 + $0xac0] sm:$0xf]  ;;  %v6056_v35 = vor.u32 %v7551_v25, %v6055_v23  ;;  %v7515_v38 = vld [vmem:[%s11646_s1 + $0x8ac] sm:$0xf0]  ;;  %3675 = vmatpush.bf16.msra.mxu3 %v6328_v24 }
  0x4c   :  { %v6311_v31 = vld [vmem:[%s11646_s1 + $0xbc0] sm:$0xf]  ;;  %v6184_v36 = vor.u32 %v7583_v30, %v6183_v26  ;;  %v7547_v41 = vld [vmem:[%s11646_s1 + $0x9ac] sm:$0xf0]  ;;  %3637 = vmatpush.bf16.msra.mxu0 %v5928_v33 }
  0x4d   :  { %v5911_v37 = vld [vmem:[%s11646_s1 + $0x8a0] sm:$0xf]  ;;  %v6312_v40 = vor.u32 %v7615_v32, %v6311_v31  ;;  %v7579_v43 = vld [vmem:[%s11646_s1 + $0xaac] sm:$0xf0]  ;;  %3650 = vmatpush.bf16.msra.mxu1 %v6056_v35 }
  0x4e   :  { %v6039_v39 = vld [vmem:[%s11646_s1 + $0x9a0] sm:$0xf]  ;;  %v7611_v45 = vld [vmem:[%s11646_s1 + $0xbac] sm:$0xf0]  ;;  %v5912_v46 = vor.u32 %v7515_v38, %v5911_v37  ;;  %3663 = vmatpush.bf16.msra.mxu2 %v6184_v36 }
  0x4f   :  { %v6167_v42 = vld [vmem:[%s11646_s1 + $0xaa0] sm:$0xf]  ;;  %v6040_v47 = vor.u32 %v7547_v41, %v6039_v39  ;;  %v7511_v50 = vld [vmem:[%s11646_s1 + $0x88c] sm:$0xf0]  ;;  %3676 = vmatpush.bf16.msra.mxu3 %v6312_v40 }
  0x50   :  { %v6295_v44 = vld [vmem:[%s11646_s1 + $0xba0] sm:$0xf]  ;;  %v6168_v48 = vor.u32 %v7579_v43, %v6167_v42  ;;  %v7543_v53 = vld [vmem:[%s11646_s1 + $0x98c] sm:$0xf0]  ;;  %3638 = vmatpush.bf16.msra.mxu0 %v5912_v46 }
  0x51   :  { %v5895_v49 = vld [vmem:[%s11646_s1 + $0x880] sm:$0xf]  ;;  %v6296_v52 = vor.u32 %v7611_v45, %v6295_v44  ;;  %v7575_v55 = vld [vmem:[%s11646_s1 + $0xa8c] sm:$0xf0]  ;;  %3651 = vmatpush.bf16.msra.mxu1 %v6040_v47 }
  0x52   :  { %v6023_v51 = vld [vmem:[%s11646_s1 + $0x980] sm:$0xf]  ;;  %v7607_v57 = vld [vmem:[%s11646_s1 + $0xb8c] sm:$0xf0]  ;;  %v5896_v58 = vor.u32 %v7511_v50, %v5895_v49  ;;  %3664 = vmatpush.bf16.msra.mxu2 %v6168_v48 }
  0x53   :  { %v6151_v54 = vld [vmem:[%s11646_s1 + $0xa80] sm:$0xf]  ;;  %v6024_v59 = vor.u32 %v7543_v53, %v6023_v51  ;;  %v7507_v63 = vld [vmem:[%s11646_s1 + $0x86c] sm:$0xf0]  ;;  %3677 = vmatpush.bf16.msra.mxu3 %v6296_v52 }
  0x54   :  { %v6279_v56 = vld [vmem:[%s11646_s1 + $0xb80] sm:$0xf]  ;;  %v6152_v61 = vor.u32 %v7575_v55, %v6151_v54  ;;  %v7539_v5 = vld [vmem:[%s11646_s1 + $0x96c] sm:$0xf0]  ;;  %3639 = vmatpush.bf16.msra.mxu0 %v5896_v58 }
  0x55   :  { %v5879_v62 = vld [vmem:[%s11646_s1 + $0x860] sm:$0xf]  ;;  %v6280_v4 = vor.u32 %v7607_v57, %v6279_v56  ;;  %v7571_v7 = vld [vmem:[%s11646_s1 + $0xa6c] sm:$0xf0]  ;;  %3652 = vmatpush.bf16.msra.mxu1 %v6024_v59 }
  0x56   :  { %v6007_v3 = vld [vmem:[%s11646_s1 + $0x960] sm:$0xf]  ;;  %v7603_v9 = vld [vmem:[%s11646_s1 + $0xb6c] sm:$0xf0]  ;;  %v5880_v10 = vor.u32 %v7507_v63, %v5879_v62  ;;  %3665 = vmatpush.bf16.msra.mxu2 %v6152_v61 }
  0x57   :  { %v6135_v6 = vld [vmem:[%s11646_s1 + $0xa60] sm:$0xf]  ;;  %v6008_v11 = vor.u32 %v7539_v5, %v6007_v3  ;;  %v7503_v14 = vld [vmem:[%s11646_s1 + $0x84c] sm:$0xf0]  ;;  %3678 = vmatpush.bf16.msra.mxu3 %v6280_v4 }
  0x58   :  { %v6263_v8 = vld [vmem:[%s11646_s1 + $0xb60] sm:$0xf]  ;;  %v6136_v12 = vor.u32 %v7571_v7, %v6135_v6  ;;  %v7535_v17 = vld [vmem:[%s11646_s1 + $0x94c] sm:$0xf0]  ;;  %3640 = vmatpush.bf16.msra.mxu0 %v5880_v10 }
  0x59   :  { %v5863_v13 = vld [vmem:[%s11646_s1 + $0x840] sm:$0xf]  ;;  %v6264_v16 = vor.u32 %v7603_v9, %v6263_v8  ;;  %v7567_v19 = vld [vmem:[%s11646_s1 + $0xa4c] sm:$0xf0]  ;;  %3653 = vmatpush.bf16.msra.mxu1 %v6008_v11 }
  0x5a   :  { %v5991_v15 = vld [vmem:[%s11646_s1 + $0x940] sm:$0xf]  ;;  %v7599_v21 = vld [vmem:[%s11646_s1 + $0xb4c] sm:$0xf0]  ;;  %v5864_v22 = vor.u32 %v7503_v14, %v5863_v13  ;;  %3666 = vmatpush.bf16.msra.mxu2 %v6136_v12 }
  0x5b   :  { %v6119_v18 = vld [vmem:[%s11646_s1 + $0xa40] sm:$0xf]  ;;  %v5992_v23 = vor.u32 %v7535_v17, %v5991_v15  ;;  %v7499_v26 = vld [vmem:[%s11646_s1 + $0x82c] sm:$0xf0]  ;;  %3679 = vmatpush.bf16.msra.mxu3 %v6264_v16 }
  0x5c   :  { %v6247_v20 = vld [vmem:[%s11646_s1 + $0xb40] sm:$0xf]  ;;  %v6120_v24 = vor.u32 %v7567_v19, %v6119_v18  ;;  %v7531_v32 = vld [vmem:[%s11646_s1 + $0x92c] sm:$0xf0]  ;;  %3641 = vmatpush.bf16.msra.mxu0 %v5864_v22 }
  0x5d   :  { %v5847_v25 = vld [vmem:[%s11646_s1 + $0x820] sm:$0xf]  ;;  %v6248_v31 = vor.u32 %v7599_v21, %v6247_v20  ;;  %v7563_v35 = vld [vmem:[%s11646_s1 + $0xa2c] sm:$0xf0]  ;;  %3654 = vmatpush.bf16.msra.mxu1 %v5992_v23 }
  0x5e   :  { %v5975_v30 = vld [vmem:[%s11646_s1 + $0x920] sm:$0xf]  ;;  %v7595_v37 = vld [vmem:[%s11646_s1 + $0xb2c] sm:$0xf0]  ;;  %v5848_v38 = vor.u32 %v7499_v26, %v5847_v25  ;;  %3667 = vmatpush.bf16.msra.mxu2 %v6120_v24 }
  0x5f   :  { %v6103_v33 = vld [vmem:[%s11646_s1 + $0xa20] sm:$0xf]  ;;  %v7495_v40 = vld [vmem:[%s11646_s1 + $0x80c] sm:$0xf0]  ;;  %v5976_v41 = vor.u32 %v7531_v32, %v5975_v30  ;;  %3680 = vmatpush.bf16.msra.mxu3 %v6248_v31 }
  0x60   :  { %v6231_v36 = vld [vmem:[%s11646_s1 + $0xb20] sm:$0xf]  ;;  %v6104_v42 = vor.u32 %v7563_v35, %v6103_v33  ;;  %v7527_v44 = vld [vmem:[%s11646_s1 + $0x90c] sm:$0xf0]  ;;  %3642 = vmatpush.bf16.msra.mxu0 %v5848_v38 }
  0x61   :  { %v5831_v39 = vld [vmem:[%s11646_s1 + $0x800] sm:$0xf]  ;;  %v6232_v46 = vor.u32 %v7595_v37, %v6231_v36  ;;  %v7559_v47 = vld [vmem:[%s11646_s1 + $0xa0c] sm:$0xf0]  ;;  %3655 = vmatpush.bf16.msra.mxu1 %v5976_v41 }
  0x62   :  { %v5959_v43 = vld [vmem:[%s11646_s1 + $0x900] sm:$0xf]  ;;  %v7591_v49 = vld [vmem:[%s11646_s1 + $0xb0c] sm:$0xf0]  ;;  %v5832_v53 = vor.u32 %v7495_v40, %v5831_v39  ;;  %3668 = vmatpush.bf16.msra.mxu2 %v6104_v42 }
  0x63   :  { %v6087_v45 = vld [vmem:[%s11646_s1 + $0xa00] sm:$0xf]  ;;  %v7651_v51 = vld [vmem:[%s11646_s1 + $0xcec] sm:$0xf0]  ;;  %v5960_v57 = vor.u32 %v7527_v44, %v5959_v43  ;;  %3681 = vmatpush.bf16.msra.mxu3 %v6232_v46 }
  0x64   :  { %v6215_v48 = vld [vmem:[%s11646_s1 + $0xb00] sm:$0xf]  ;;  %v7683_v54 = vld [vmem:[%s11646_s1 + $0xdec] sm:$0xf0]  ;;  %v6088_v58 = vor.u32 %v7559_v47, %v6087_v45  ;;  %3643 = vmatpush.bf16.msra.mxu0 %v5832_v53 }
  0x65   :  { %v6455_v50 = vld [vmem:[%s11646_s1 + $0xce0] sm:$0xf]  ;;  %v7715_v56 = vld [vmem:[%s11646_s1 + $0xeec] sm:$0xf0]  ;;  %v6216_v62 = vor.u32 %v7591_v49, %v6215_v48  ;;  %3656 = vmatpush.bf16.msra.mxu1 %v5960_v57 }
  0x66   :  { %v6583_v52 = vld [vmem:[%s11646_s1 + $0xde0] sm:$0xf]  ;;  %v7747_v61 = vld [vmem:[%s11646_s1 + $0xfec] sm:$0xf0]  ;;  %v6456_v63 = vor.u32 %v7651_v51, %v6455_v50  ;;  %3669 = vmatpush.bf16.msra.mxu2 %v6088_v58 }
  0x67   :  { %v6711_v55 = vld [vmem:[%s11646_s1 + $0xee0] sm:$0xf]  ;;  %v6584_v3 = vor.u32 %v7683_v54, %v6583_v52  ;;  %v7647_v6 = vld [vmem:[%s11646_s1 + $0xccc] sm:$0xf0]  ;;  %3682 = vmatpush.bf16.msra.mxu3 %v6216_v62 }
  0x68   :  { %v6839_v59 = vld [vmem:[%s11646_s1 + $0xfe0] sm:$0xf]  ;;  %v6712_v4 = vor.u32 %v7715_v56, %v6711_v55  ;;  %v7679_v9 = vld [vmem:[%s11646_s1 + $0xdcc] sm:$0xf0]  ;;  %3688 = vmatpush.bf16.msrb.mxu0 %v6456_v63 }
  0x69   :  { %v6439_v5 = vld [vmem:[%s11646_s1 + $0xcc0] sm:$0xf]  ;;  %v6840_v8 = vor.u32 %v7747_v61, %v6839_v59  ;;  %v7711_v11 = vld [vmem:[%s11646_s1 + $0xecc] sm:$0xf0]  ;;  %3701 = vmatpush.bf16.msrb.mxu1 %v6584_v3 }
  0x6a   :  { %v6567_v7 = vld [vmem:[%s11646_s1 + $0xdc0] sm:$0xf]  ;;  %v7743_v14 = vld [vmem:[%s11646_s1 + $0xfcc] sm:$0xf0]  ;;  %v6440_v18 = vor.u32 %v7647_v6, %v6439_v5  ;;  %3714 = vmatpush.bf16.msrb.mxu2 %v6712_v4 }
  0x6b   :  { %v6695_v10 = vld [vmem:[%s11646_s1 + $0xec0] sm:$0xf]  ;;  %v8569_v15 = vld [vmem:[#allocation1 + $0x12] sm:$0xff]  ;;  %v8571_v16 = vld [vmem:[#allocation1 + $0x9] sm:$0xff]  ;;  %v6568_v19 = vor.u32 %v7679_v9, %v6567_v7  ;;  %3727 = vmatpush.bf16.msrb.mxu3 %v6840_v8 }
  0x6c   :  { %v8561_v12 = vld [vmem:[#allocation1] sm:$0xff]  ;;  %v6696_v20 = vor.u32 %v7711_v11, %v6695_v10  ;;  %v7643_v22 = vld [vmem:[%s11646_s1 + $0xcac] sm:$0xf0]  ;;  %3670 = vmatmul.bf16.vlgmr.msra.gmra.mxu2 %v8569_v15  ;;  %3657 = vmatmul.bf16.vlgmr.msra.gmra.mxu1 %v8571_v16 }
  0x6d   :  { %v6823_v13 = vld [vmem:[%s11646_s1 + $0xfc0] sm:$0xf]  ;;  %3644 = vmatmul.bf16.vlgmr.msra.gmra.mxu0 %v8561_v12  ;;  %v7675_v25 = vld [vmem:[%s11646_s1 + $0xdac] sm:$0xf0]  ;;  %3702 = vmatpush.bf16.msrb.mxu1 %v6568_v19 }
  0x6e   :  { %v8573_v17 = vld [vmem:[#allocation1 + $0x1b] sm:$0xff]  ;;  %v6824_v24 = vor.u32 %v7743_v14, %v6823_v13  ;;  %v7707_v30 = vld [vmem:[%s11646_s1 + $0xeac] sm:$0xf0]  ;;  %3689 = vmatpush.bf16.msrb.mxu0 %v6440_v18  ;;  %3715 = vmatpush.bf16.msrb.mxu2 %v6696_v20 }
  0x6f   :  { %v6423_v21 = vld [vmem:[%s11646_s1 + $0xca0] sm:$0xf]  ;;  %v7739_v32 = vld [vmem:[%s11646_s1 + $0xfac] sm:$0xf0]  ;;  %3683 = vmatmul.bf16.vlgmr.msra.gmra.mxu3 %v8573_v17 }
  0x70   :  { %v6551_v23 = vld [vmem:[%s11646_s1 + $0xda0] sm:$0xf]  ;;  %v6424_v33 = vor.u32 %v7643_v22, %v6423_v21  ;;  %v7639_v38 = vld [vmem:[%s11646_s1 + $0xc8c] sm:$0xf0]  ;;  %3728 = vmatpush.bf16.msrb.mxu3 %v6824_v24 }
  0x71   :  { %v6679_v26 = vld [vmem:[%s11646_s1 + $0xea0] sm:$0xf]  ;;  %v6552_v36 = vor.u32 %v7675_v25, %v6551_v23  ;;  %v7671_v40 = vld [vmem:[%s11646_s1 + $0xd8c] sm:$0xf0] }
  0x72   :  { %v6807_v31 = vld [vmem:[%s11646_s1 + $0xfa0] sm:$0xf]  ;;  %v6680_v37 = vor.u32 %v7707_v30, %v6679_v26  ;;  %v7703_v43 = vld [vmem:[%s11646_s1 + $0xe8c] sm:$0xf0] }
  0x73   :  { %v6407_v35 = vld [vmem:[%s11646_s1 + $0xc80] sm:$0xf]  ;;  %v6808_v41 = vor.u32 %v7739_v32, %v6807_v31  ;;  %v7735_v45 = vld [vmem:[%s11646_s1 + $0xf8c] sm:$0xf0] }
  0x74   :  { %v6535_v39 = vld [vmem:[%s11646_s1 + $0xd80] sm:$0xf] }
  0x75   :  { %v6663_v42 = vld [vmem:[%s11646_s1 + $0xe80] sm:$0xf] }
  0x76   :  { %v6791_v44 = vld [vmem:[%s11646_s1 + $0xf80] sm:$0xf] }
  0x77   :  { %10 = vsyncpa [#allocation3], 0  ;;  %3690 = vmatpush.bf16.msrb.mxu0 %v6424_v33  ;;  %v6408_v46 = vor.u32 %v7639_v38, %v6407_v35  ;;  %3703 = vmatpush.bf16.msrb.mxu1 %v6552_v36  ;;  %v6536_v47 = vor.u32 %v7671_v40, %v6535_v39  ;;  %v6664_v48 = vor.u32 %v7703_v43, %v6663_v42  ;;  %v6391_v49 = vld [vmem:[%s11646_s1 + $0xc60] sm:$0xf]  ;;  %v7635_v50 = vld [vmem:[%s11646_s1 + $0xc6c] sm:$0xf0] }
  0x78   :  { %3716 = vmatpush.bf16.msrb.mxu2 %v6680_v37  ;;  %v6519_v51 = vld [vmem:[%s11646_s1 + $0xd60] sm:$0xf]  ;;  %3729 = vmatpush.bf16.msrb.mxu3 %v6808_v41  ;;  %v6792_v52 = vor.u32 %v7735_v45, %v6791_v44  ;;  %v7667_v53 = vld [vmem:[%s11646_s1 + $0xd6c] sm:$0xf0]  ;;  %v6392_v58 = vor.u32 %v7635_v50, %v6391_v49  ;;  %s4796_s28 = sshll.u32 %s11650_s5, 4  ;;  %s4797_s28 = int_to_ptr.hbm [resolvable:$true] %s4796_s28 }
  0x79   :  { %v6647_v54 = vld [vmem:[%s11646_s1 + $0xe60] sm:$0xf]  ;;  %v7699_v55 = vld [vmem:[%s11646_s1 + $0xe6c] sm:$0xf0]  ;;  %v6520_v59 = vor.u32 %v7667_v53, %v6519_v51  ;;  %v4921_v53 = vld [vmem:[%s11646_s1 + $0xf0] sm:$0xf0] }
  0x7a   :  { %v6775_v56 = vld [vmem:[%s11646_s1 + $0xf60] sm:$0xf]  ;;  %v7731_v57 = vld [vmem:[%s11646_s1 + $0xf6c] sm:$0xf0]  ;;  %v6648_v61 = vor.u32 %v7699_v55, %v6647_v54 }
  0x7b   :  { %3691 = vmatpush.bf16.msrb.mxu0 %v6408_v46  ;;  %3704 = vmatpush.bf16.msrb.mxu1 %v6536_v47  ;;  %v6375_v62 = vld [vmem:[%s11646_s1 + $0xc40] sm:$0xf]  ;;  %v7631_v63 = vld [vmem:[%s11646_s1 + $0xc4c] sm:$0xf0]  ;;  %v6776_v4 = vor.u32 %v7731_v57, %v6775_v56  ;;  %v8735_v46 = vld [vmem:[#allocation1 + $0x24] sm:$0xff] }
  0x7c   :  { %3717 = vmatpush.bf16.msrb.mxu2 %v6664_v48  ;;  %v6503_v3 = vld [vmem:[%s11646_s1 + $0xd40] sm:$0xf]  ;;  %3730 = vmatpush.bf16.msrb.mxu3 %v6792_v52  ;;  %v7663_v5 = vld [vmem:[%s11646_s1 + $0xd4c] sm:$0xf0]  ;;  %v6376_v10 = vor.u32 %v7631_v63, %v6375_v62  ;;  %v8737_v47 = vld [vmem:[#allocation1 + $0x36] sm:$0xff] }
  0x7d   :  { %v6631_v6 = vld [vmem:[%s11646_s1 + $0xe40] sm:$0xf]  ;;  %v7695_v7 = vld [vmem:[%s11646_s1 + $0xe4c] sm:$0xf0]  ;;  %v6504_v13 = vor.u32 %v7663_v5, %v6503_v3  ;;  %v7265_v52 = vld [vmem:[%s11646_s1 + $0xe4] sm:$0xf] }
  0x7e   :  { %v6759_v8 = vld [vmem:[%s11646_s1 + $0xf40] sm:$0xf]  ;;  %v7727_v9 = vld [vmem:[%s11646_s1 + $0xf4c] sm:$0xf0]  ;;  %v6632_v14 = vor.u32 %v7695_v7, %v6631_v6  ;;  %v7297_v56 = vld [vmem:[%s11646_s1 + $0x1e4] sm:$0xf]  ;;  %v4924_v62 = vor.u32 %v7265_v52, %v4921_v53 }
  0x7f   :  { %3692 = vmatpush.bf16.msrb.mxu0 %v6392_v58  ;;  %v6359_v11 = vld [vmem:[%s11646_s1 + $0xc20] sm:$0xf]  ;;  %3705 = vmatpush.bf16.msrb.mxu1 %v6520_v59  ;;  %v7627_v18 = vld [vmem:[%s11646_s1 + $0xc2c] sm:$0xf0]  ;;  %v6760_v21 = vor.u32 %v7727_v9, %v6759_v8  ;;  %v5049_v57 = vld [vmem:[%s11646_s1 + $0x1f0] sm:$0xf0] }
  0x80   :  { %3718 = vmatpush.bf16.msrb.mxu2 %v6648_v61  ;;  %v6487_v19 = vld [vmem:[%s11646_s1 + $0xd20] sm:$0xf]  ;;  %v7659_v20 = vld [vmem:[%s11646_s1 + $0xd2c] sm:$0xf0]  ;;  %3731 = vmatpush.bf16.msrb.mxu3 %v6776_v4  ;;  %v6360_v31 = vor.u32 %v7627_v18, %v6359_v11  ;;  %v5052_v5 = vor.u32 %v7297_v56, %v5049_v57  ;;  %v7261_v7 = vld [vmem:[%s11646_s1 + $0xc4] sm:$0xf] }
  0x81   :  { %v6615_v22 = vld [vmem:[%s11646_s1 + $0xe20] sm:$0xf]  ;;  %v7691_v23 = vld [vmem:[%s11646_s1 + $0xe2c] sm:$0xf0]  ;;  %v6488_v37 = vor.u32 %v7659_v20, %v6487_v19  ;;  %v4905_v8 = vld [vmem:[%s11646_s1 + $0xd0] sm:$0xf0] }
  0x82   :  { %v6743_v24 = vld [vmem:[%s11646_s1 + $0xf20] sm:$0xf]  ;;  %v7723_v25 = vld [vmem:[%s11646_s1 + $0xf2c] sm:$0xf0]  ;;  %v6616_v38 = vor.u32 %v7691_v23, %v6615_v22  ;;  %v7293_v9 = vld [vmem:[%s11646_s1 + $0x1c4] sm:$0xf] }
  0x83   :  { %v6343_v26 = vld [vmem:[%s11646_s1 + $0xc00] sm:$0xf]  ;;  %v7623_v30 = vld [vmem:[%s11646_s1 + $0xc0c] sm:$0xf0]  ;;  %3693 = vmatpush.bf16.msrb.mxu0 %v6376_v10  ;;  %3706 = vmatpush.bf16.msrb.mxu1 %v6504_v13  ;;  %v6744_v43 = vor.u32 %v7723_v25, %v6743_v24  ;;  %v5033_v10 = vld [vmem:[%s11646_s1 + $0x1d0] sm:$0xf0] }
  0x84   :  { %v6471_v32 = vld [vmem:[%s11646_s1 + $0xd00] sm:$0xf]  ;;  %v7655_v33 = vld [vmem:[%s11646_s1 + $0xd0c] sm:$0xf0]  ;;  %3719 = vmatpush.bf16.msrb.mxu2 %v6632_v14  ;;  %3732 = vmatpush.bf16.msrb.mxu3 %v6760_v21  ;;  %v6344_v51 = vor.u32 %v7623_v30, %v6343_v26  ;;  %v4908_v14 = vor.u32 %v7261_v7, %v4905_v8  ;;  %v5036_v21 = vor.u32 %v7293_v9, %v5033_v10  ;;  %v7257_v23 = vld [vmem:[%s11646_s1 + $0xa4] sm:$0xf] }
  0x85   :  { %v6599_v35 = vld [vmem:[%s11646_s1 + $0xe00] sm:$0xf]  ;;  %v7687_v36 = vld [vmem:[%s11646_s1 + $0xe0c] sm:$0xf0]  ;;  %v6472_v54 = vor.u32 %v7655_v33, %v6471_v32  ;;  %v4889_v24 = vld [vmem:[%s11646_s1 + $0xb0] sm:$0xf0] }
  0x86   :  { %v6727_v39 = vld [vmem:[%s11646_s1 + $0xf00] sm:$0xf]  ;;  %v7719_v40 = vld [vmem:[%s11646_s1 + $0xf0c] sm:$0xf0]  ;;  %v6600_v55 = vor.u32 %v7687_v36, %v6599_v35  ;;  %v7289_v25 = vld [vmem:[%s11646_s1 + $0x1a4] sm:$0xf]  ;;  %v4892_v32 = vor.u32 %v7257_v23, %v4889_v24 }
  0x87   :  { %v6967_v41 = vld [vmem:[%s11646_s1 + $0x10e0] sm:$0xf]  ;;  %v7779_v42 = vld [vmem:[%s11646_s1 + $0x10ec] sm:$0xf0]  ;;  %3694 = vmatpush.bf16.msrb.mxu0 %v6360_v31  ;;  %3707 = vmatpush.bf16.msrb.mxu1 %v6488_v37  ;;  %v6728_v58 = vor.u32 %v7719_v40, %v6727_v39  ;;  %v5017_v26 = vld [vmem:[%s11646_s1 + $0x1b0] sm:$0xf0] }
  0x88   :  { %v7095_v44 = vld [vmem:[%s11646_s1 + $0x11e0] sm:$0xf]  ;;  %v7811_v45 = vld [vmem:[%s11646_s1 + $0x11ec] sm:$0xf0]  ;;  %3720 = vmatpush.bf16.msrb.mxu2 %v6616_v38  ;;  %3733 = vmatpush.bf16.msrb.mxu3 %v6744_v43  ;;  %v6968_v59 = vor.u32 %v7779_v42, %v6967_v41  ;;  %v5020_v37 = vor.u32 %v7289_v25, %v5017_v26  ;;  %v7253_v39 = vld [vmem:[%s11646_s1 + $0x84] sm:$0xf] }
  0x89   :  { %v8739_v48 = vld [vmem:[#allocation1 + $0x2d] sm:$0xff]  ;;  %v8741_v49 = vld [vmem:[#allocation1 + $0x3f] sm:$0xff]  ;;  %v7096_v61 = vor.u32 %v7811_v45, %v7095_v44 }
  0x8a   :  { %v23_v50 = vld [vmem:[%s11645_s0 + $0x10] sm:$0x3]  ;;  %v6951_v63 = vld [vmem:[%s11646_s1 + $0x10c0] sm:$0xf]  ;;  %v4873_v40 = vld [vmem:[%s11646_s1 + $0x90] sm:$0xf0] }
  0x8b   :  { %631 = vst [vmem:[#allocation1] ss:$9 sm:$0xff] %v23_v50  ;;  %v7775_v3 = vld [vmem:[%s11646_s1 + $0x10cc] sm:$0xf0]  ;;  %v7079_v4 = vld [vmem:[%s11646_s1 + $0x11c0] sm:$0xf]  ;;  %3695 = vmatpush.bf16.msrb.mxu0 %v6344_v51  ;;  %3708 = vmatpush.bf16.msrb.mxu1 %v6472_v54  ;;  %v4876_v45 = vor.u32 %v7253_v39, %v4873_v40 }
  0x8c   :  { %v7807_v6 = vld [vmem:[%s11646_s1 + $0x11cc] sm:$0xf0]  ;;  %3721 = vmatpush.bf16.msrb.mxu2 %v6600_v55  ;;  %3734 = vmatpush.bf16.msrb.mxu3 %v6728_v58  ;;  %v6952_v11 = vor.u32 %v7775_v3, %v6951_v63  ;;  %v6935_v18 = vld [vmem:[%s11646_s1 + $0x10a0] sm:$0xf]  ;;  %v7285_v41 = vld [vmem:[%s11646_s1 + $0x184] sm:$0xf] }
  0x8d   :  { %v7080_v13 = vor.u32 %v7807_v6, %v7079_v4  ;;  %v7771_v19 = vld [vmem:[%s11646_s1 + $0x10ac] sm:$0xf0]  ;;  %v7063_v20 = vld [vmem:[%s11646_s1 + $0x11a0] sm:$0xf]  ;;  %v5001_v42 = vld [vmem:[%s11646_s1 + $0x190] sm:$0xf0] }
  0x8e   :  { %3696 = vmatmul.bf16.vlgmr.msrb.gmra.mxu0 %v8735_v46  ;;  %v7803_v22 = vld [vmem:[%s11646_s1 + $0x11ac] sm:$0xf0]  ;;  %3709 = vmatmul.bf16.vlgmr.msrb.gmra.mxu1 %v8739_v48  ;;  %v6936_v30 = vor.u32 %v7771_v19, %v6935_v18  ;;  %v6919_v33 = vld [vmem:[%s11646_s1 + $0x1080] sm:$0xf]  ;;  %v5004_v53 = vor.u32 %v7285_v41, %v5001_v42  ;;  %v7249_v55 = vld [vmem:[%s11646_s1 + $0x64] sm:$0xf] }
  0x8f   :  { %3740 = vmatpush.bf16.msra.mxu0 %v6968_v59  ;;  %3753 = vmatpush.bf16.msra.mxu1 %v7096_v61  ;;  %v7064_v31 = vor.u32 %v7803_v22, %v7063_v20  ;;  %v7767_v35 = vld [vmem:[%s11646_s1 + $0x108c] sm:$0xf0]  ;;  %v7047_v36 = vld [vmem:[%s11646_s1 + $0x1180] sm:$0xf]  ;;  %v4857_v56 = vld [vmem:[%s11646_s1 + $0x70] sm:$0xf0] }
  0x90   :  { %3766 = vmatpush.bf16.msra.mxu2 %v4924_v62  ;;  %3779 = vmatpush.bf16.msra.mxu3 %v5052_v5  ;;  %v7799_v38 = vld [vmem:[%s11646_s1 + $0x118c] sm:$0xf0]  ;;  %v6920_v43 = vor.u32 %v7767_v35, %v6919_v33  ;;  %v6903_v50 = vld [vmem:[%s11646_s1 + $0x1060] sm:$0xf]  ;;  %v7281_v57 = vld [vmem:[%s11646_s1 + $0x164] sm:$0xf]  ;;  %v4860_v62 = vor.u32 %v7249_v55, %v4857_v56 }
  0x91   :  { %3722 = vmatmul.bf16.vlgmr.msrb.gmra.mxu2 %v8737_v47  ;;  %3735 = vmatmul.bf16.vlgmr.msrb.gmra.mxu3 %v8741_v49  ;;  %v7048_v44 = vor.u32 %v7799_v38, %v7047_v36  ;;  %v7763_v51 = vld [vmem:[%s11646_s1 + $0x106c] sm:$0xf0]  ;;  %v7031_v52 = vld [vmem:[%s11646_s1 + $0x1160] sm:$0xf]  ;;  %v4985_v58 = vld [vmem:[%s11646_s1 + $0x170] sm:$0xf0] }
  0x92   :  { %v7795_v54 = vld [vmem:[%s11646_s1 + $0x116c] sm:$0xf0]  ;;  %v6904_v59 = vor.u32 %v7763_v51, %v6903_v50  ;;  %v6887_v63 = vld [vmem:[%s11646_s1 + $0x1040] sm:$0xf]  ;;  %v4988_v5 = vor.u32 %v7281_v57, %v4985_v58  ;;  %v7245_v7 = vld [vmem:[%s11646_s1 + $0x44] sm:$0xf] }
  0x93   :  { %3741 = vmatpush.bf16.msra.mxu0 %v6952_v11  ;;  %3754 = vmatpush.bf16.msra.mxu1 %v7080_v13  ;;  %v7032_v61 = vor.u32 %v7795_v54, %v7031_v52  ;;  %v7759_v3 = vld [vmem:[%s11646_s1 + $0x104c] sm:$0xf0]  ;;  %v7015_v4 = vld [vmem:[%s11646_s1 + $0x1140] sm:$0xf]  ;;  %v4841_v8 = vld [vmem:[%s11646_s1 + $0x50] sm:$0xf0] }
  0x94   :  { %3767 = vmatpush.bf16.msra.mxu2 %v4908_v14  ;;  %3780 = vmatpush.bf16.msra.mxu3 %v5036_v21  ;;  %v7791_v6 = vld [vmem:[%s11646_s1 + $0x114c] sm:$0xf0]  ;;  %v7277_v9 = vld [vmem:[%s11646_s1 + $0x144] sm:$0xf]  ;;  %v4969_v10 = vld [vmem:[%s11646_s1 + $0x150] sm:$0xf0]  ;;  %v6888_v11 = vor.u32 %v7759_v3, %v6887_v63  ;;  %v4844_v14 = vor.u32 %v7245_v7, %v4841_v8 }
  0x95   :  { %v7016_v13 = vor.u32 %v7791_v6, %v7015_v4  ;;  %v6871_v18 = vld [vmem:[%s11646_s1 + $0x1020] sm:$0xf]  ;;  %v7755_v19 = vld [vmem:[%s11646_s1 + $0x102c] sm:$0xf0]  ;;  %v4972_v21 = vor.u32 %v7277_v9, %v4969_v10  ;;  %v7241_v23 = vld [vmem:[%s11646_s1 + $0x24] sm:$0xf] }
  0x96   :  { %v6999_v20 = vld [vmem:[%s11646_s1 + $0x1120] sm:$0xf]  ;;  %v7787_v22 = vld [vmem:[%s11646_s1 + $0x112c] sm:$0xf0]  ;;  %v4825_v24 = vld [vmem:[%s11646_s1 + $0x30] sm:$0xf0] }
  0x97   :  { %3742 = vmatpush.bf16.msra.mxu0 %v6936_v30  ;;  %3755 = vmatpush.bf16.msra.mxu1 %v7064_v31  ;;  %v7273_v25 = vld [vmem:[%s11646_s1 + $0x124] sm:$0xf]  ;;  %v4953_v26 = vld [vmem:[%s11646_s1 + $0x130] sm:$0xf0]  ;;  %v6872_v30 = vor.u32 %v7755_v19, %v6871_v18  ;;  %v6855_v31 = vld [vmem:[%s11646_s1 + $0x1000] sm:$0xf]  ;;  %v7000_v33 = vor.u32 %v7787_v22, %v6999_v20  ;;  %v4828_v35 = vor.u32 %v7241_v23, %v4825_v24 }
  0x98   :  { %3768 = vmatpush.bf16.msra.mxu2 %v4892_v32  ;;  %3781 = vmatpush.bf16.msra.mxu3 %v5020_v37  ;;  %v7751_v32 = vld [vmem:[%s11646_s1 + $0x100c] sm:$0xf0]  ;;  %v6983_v36 = vld [vmem:[%s11646_s1 + $0x1100] sm:$0xf]  ;;  %v7237_v38 = vld [vmem:[%s11646_s1 + $0x4] sm:$0xf]  ;;  %v4956_v39 = vor.u32 %v7273_v25, %v4953_v26 }
  0x99   :  { %v7783_v37 = vld [vmem:[%s11646_s1 + $0x110c] sm:$0xf0]  ;;  %v4809_v40 = vld [vmem:[%s11646_s1 + $0x10] sm:$0xf0]  ;;  %v7269_v41 = vld [vmem:[%s11646_s1 + $0x104] sm:$0xf]  ;;  %v6856_v50 = vor.u32 %v7751_v32, %v6855_v31 }
  0x9a   :  { %v4937_v42 = vld [vmem:[%s11646_s1 + $0x110] sm:$0xf0]  ;;  %v7393_v52 = vld [vmem:[%s11646_s1 + $0x4e4] sm:$0xf]  ;;  %v6984_v54 = vor.u32 %v7783_v37, %v6983_v36  ;;  %v4812_v55 = vor.u32 %v7237_v38, %v4809_v40  ;;  %s7882_s0 = smov [#allocation2]  }
  0x9b   :  { %3743 = vmatpush.bf16.msra.mxu0 %v6920_v43  ;;  %3756 = vmatpush.bf16.msra.mxu1 %v7048_v44  ;;  %v7329_v43 = vld [vmem:[%s11646_s1 + $0x2e4] sm:$0xf]  ;;  %v5177_v44 = vld [vmem:[%s11646_s1 + $0x2f0] sm:$0xf0]  ;;  %v4940_v58 = vor.u32 %v7269_v41, %v4937_v42  ;;  %s4794_s25 = sshll.u32 %s7882_s0, 4  ;;  %s4795_s25 = int_to_ptr.vmem [resolvable:$true] %s4794_s25 }
  0x9c   :  { %3769 = vmatpush.bf16.msra.mxu2 %v4876_v45  ;;  %3782 = vmatpush.bf16.msra.mxu3 %v5004_v53  ;;  %v7361_v45 = vld [vmem:[%s11646_s1 + $0x3e4] sm:$0xf]  ;;  %v5305_v51 = vld [vmem:[%s11646_s1 + $0x3f0] sm:$0xf0] }
  0x9d   :  { %v5433_v53 = vld [vmem:[%s11646_s1 + $0x4f0] sm:$0xf0]  ;;  %v7425_v56 = vld [vmem:[%s11646_s1 + $0x5e4] sm:$0xf] }
  0x9e   :  { %v5561_v57 = vld [vmem:[%s11646_s1 + $0x5f0] sm:$0xf0]  ;;  %v7325_v63 = vld [vmem:[%s11646_s1 + $0x2c4] sm:$0xf] }
  0x9f   :  { %3744 = vmatpush.bf16.msra.mxu0 %v6904_v59  ;;  %3757 = vmatpush.bf16.msra.mxu1 %v7032_v61  ;;  %v5180_v59 = vor.u32 %v7329_v43, %v5177_v44  ;;  %v5308_v61 = vor.u32 %v7361_v45, %v5305_v51  ;;  %v5161_v3 = vld [vmem:[%s11646_s1 + $0x2d0] sm:$0xf0]  ;;  %v7357_v4 = vld [vmem:[%s11646_s1 + $0x3c4] sm:$0xf] }
  0xa0   :  { %3770 = vmatpush.bf16.msra.mxu2 %v4860_v62  ;;  %3783 = vmatpush.bf16.msra.mxu3 %v4988_v5  ;;  %v5436_v62 = vor.u32 %v7393_v52, %v5433_v53  ;;  %v5564_v5 = vor.u32 %v7425_v56, %v5561_v57  ;;  %v5289_v6 = vld [vmem:[%s11646_s1 + $0x3d0] sm:$0xf0]  ;;  %v7389_v7 = vld [vmem:[%s11646_s1 + $0x4c4] sm:$0xf] }
  0xa1   :  { %v5417_v8 = vld [vmem:[%s11646_s1 + $0x4d0] sm:$0xf0]  ;;  %v632_v9 = vld [vmem:[#allocation1] sm:$0xff]  ;;  %v5292_v18 = vor.u32 %v7357_v4, %v5289_v6 }
  0xa2   :  { %v7421_v10 = vld [vmem:[%s11646_s1 + $0x5c4] sm:$0xf]  ;;  %v5420_v19 = vor.u32 %v7389_v7, %v5417_v8  ;;  %v5273_v24 = vld [vmem:[%s11646_s1 + $0x3b0] sm:$0xf0] }
  0xa3   :  { %3745 = vmatpush.bf16.msra.mxu0 %v6888_v11  ;;  %3758 = vmatpush.bf16.msra.mxu1 %v7016_v13  ;;  %v5545_v11 = vld [vmem:[%s11646_s1 + $0x5d0] sm:$0xf0]  ;;  %v633_v13 = vld [vmem:[#allocation1 + $0x9] sm:$0xff]  ;;  %v7321_v20 = vld [vmem:[%s11646_s1 + $0x2a4] sm:$0xf] }
  0xa4   :  { %3771 = vmatpush.bf16.msra.mxu2 %v4844_v14  ;;  %3784 = vmatpush.bf16.msra.mxu3 %v4972_v21  ;;  %v5164_v14 = vor.u32 %v7325_v63, %v5161_v3  ;;  %v5145_v21 = vld [vmem:[%s11646_s1 + $0x2b0] sm:$0xf0]  ;;  %v7353_v22 = vld [vmem:[%s11646_s1 + $0x3a4] sm:$0xf]  ;;  %v5548_v23 = vor.u32 %v7421_v10, %v5545_v11  ;;  %v600_v11 = vld [vmem:[%s11647_s2] sm:$0xf] }
  0xa5   :  { %v7385_v25 = vld [vmem:[%s11646_s1 + $0x4a4] sm:$0xf]  ;;  %v5401_v26 = vld [vmem:[%s11646_s1 + $0x4b0] sm:$0xf0]  ;;  %v5148_v32 = vor.u32 %v7321_v20, %v5145_v21 }
  0xa6   :  { %v5529_v31 = vld [vmem:[%s11646_s1 + $0x5b0] sm:$0xf0]  ;;  %v7317_v36 = vld [vmem:[%s11646_s1 + $0x284] sm:$0xf] }
  0xa7   :  { %3746 = vmatpush.bf16.msra.mxu0 %v6872_v30  ;;  %3759 = vmatpush.bf16.msra.mxu1 %v7000_v33  ;;  %v7417_v30 = vld [vmem:[%s11646_s1 + $0x5a4] sm:$0xf]  ;;  %v5276_v33 = vor.u32 %v7353_v22, %v5273_v24  ;;  %v5129_v37 = vld [vmem:[%s11646_s1 + $0x290] sm:$0xf0]  ;;  %v602_v24 = vperm.slane %v600_v11, 0 }
  0xa8   :  { %3772 = vmatpush.bf16.msra.mxu2 %v4828_v35  ;;  %3785 = vmatpush.bf16.msra.mxu3 %v4956_v39  ;;  %v5404_v35 = vor.u32 %v7385_v25, %v5401_v26  ;;  %v7349_v38 = vld [vmem:[%s11646_s1 + $0x384] sm:$0xf]  ;;  %v5532_v39 = vor.u32 %v7417_v30, %v5529_v31  ;;  %v5257_v40 = vld [vmem:[%s11646_s1 + $0x390] sm:$0xf0]  ;;  %v5132_v45 = vor.u32 %v7317_v36, %v5129_v37 }
  0xa9   :  { %v7381_v41 = vld [vmem:[%s11646_s1 + $0x484] sm:$0xf]  ;;  %v5385_v42 = vld [vmem:[%s11646_s1 + $0x490] sm:$0xf0] }
  0xaa   :  { %v7413_v43 = vld [vmem:[%s11646_s1 + $0x584] sm:$0xf]  ;;  %v5513_v44 = vld [vmem:[%s11646_s1 + $0x590] sm:$0xf0]  ;;  %v5388_v51 = vor.u32 %v7381_v41, %v5385_v42 }
  0xab   :  { %3747 = vmatpush.bf16.msra.mxu0 %v6856_v50  ;;  %3760 = vmatpush.bf16.msra.mxu1 %v6984_v54  ;;  %v5260_v50 = vor.u32 %v7349_v38, %v5257_v40  ;;  %v7313_v52 = vld [vmem:[%s11646_s1 + $0x264] sm:$0xf]  ;;  %v5113_v53 = vld [vmem:[%s11646_s1 + $0x270] sm:$0xf0] }
  0xac   :  { %3773 = vmatpush.bf16.msra.mxu2 %v4812_v55  ;;  %3786 = vmatpush.bf16.msra.mxu3 %v4940_v58  ;;  %v7345_v54 = vld [vmem:[%s11646_s1 + $0x364] sm:$0xf]  ;;  %v5516_v55 = vor.u32 %v7413_v43, %v5513_v44  ;;  %v5241_v56 = vld [vmem:[%s11646_s1 + $0x370] sm:$0xf0] }
  0xad   :  { %v7377_v57 = vld [vmem:[%s11646_s1 + $0x464] sm:$0xf]  ;;  %v5369_v58 = vld [vmem:[%s11646_s1 + $0x470] sm:$0xf0]  ;;  %v5244_v3 = vor.u32 %v7345_v54, %v5241_v56 }
  0xae   :  { %3748 = vmatmul.bf16.vlgmr.msra.gmra.mxu0 %v632_v9  ;;  %3761 = vmatmul.bf16.vlgmr.msra.gmra.mxu1 %v633_v13  ;;  %v7309_v63 = vld [vmem:[%s11646_s1 + $0x244] sm:$0xf]  ;;  %v5372_v4 = vor.u32 %v7377_v57, %v5369_v58  ;;  %v5225_v7 = vld [vmem:[%s11646_s1 + $0x350] sm:$0xf0] }
  0xaf   :  { %3792 = vmatpush.bf16.msrb.mxu0 %v5180_v59  ;;  %3805 = vmatpush.bf16.msrb.mxu1 %v5308_v61  ;;  %v7409_v59 = vld [vmem:[%s11646_s1 + $0x564] sm:$0xf]  ;;  %v5497_v61 = vld [vmem:[%s11646_s1 + $0x570] sm:$0xf0] }
  0xb0   :  { %3818 = vmatpush.bf16.msrb.mxu2 %v5436_v62  ;;  %3831 = vmatpush.bf16.msrb.mxu3 %v5564_v5  ;;  %v5116_v62 = vor.u32 %v7313_v52, %v5113_v53  ;;  %v5097_v5 = vld [vmem:[%s11646_s1 + $0x250] sm:$0xf0]  ;;  %v7341_v6 = vld [vmem:[%s11646_s1 + $0x344] sm:$0xf]  ;;  %v5500_v8 = vor.u32 %v7409_v59, %v5497_v61 }
  0xb1   :  { %3774 = vmatmul.bf16.vlgmr.msra.gmra.mxu2 %v8233_v28  ;;  %3787 = vmatmul.bf16.vlgmr.msra.gmra.mxu3 %v8243_v34  ;;  %v7373_v9 = vld [vmem:[%s11646_s1 + $0x444] sm:$0xf]  ;;  %v5353_v10 = vld [vmem:[%s11646_s1 + $0x450] sm:$0xf0]  ;;  %v5228_v20 = vor.u32 %v7341_v6, %v5225_v7 }
  0xb2   :  { %v7405_v13 = vld [vmem:[%s11646_s1 + $0x544] sm:$0xf]  ;;  %v5356_v21 = vor.u32 %v7373_v9, %v5353_v10  ;;  %v5081_v22 = vld [vmem:[%s11646_s1 + $0x230] sm:$0xf0] }
  0xb3   :  { %3793 = vmatpush.bf16.msrb.mxu0 %v5164_v14  ;;  %3806 = vmatpush.bf16.msrb.mxu1 %v5292_v18  ;;  %v5481_v14 = vld [vmem:[%s11646_s1 + $0x550] sm:$0xf0]  ;;  %v5100_v18 = vor.u32 %v7309_v63, %v5097_v5  ;;  %v7369_v30 = vld [vmem:[%s11646_s1 + $0x424] sm:$0xf] }
  0xb4   :  { %3819 = vmatpush.bf16.msrb.mxu2 %v5420_v19  ;;  %3832 = vmatpush.bf16.msrb.mxu3 %v5548_v23  ;;  %v7305_v19 = vld [vmem:[%s11646_s1 + $0x224] sm:$0xf]  ;;  %v5484_v25 = vor.u32 %v7405_v13, %v5481_v14  ;;  %v5209_v26 = vld [vmem:[%s11646_s1 + $0x330] sm:$0xf0] }
  0xb5   :  { %v7337_v23 = vld [vmem:[%s11646_s1 + $0x324] sm:$0xf]  ;;  %v5337_v31 = vld [vmem:[%s11646_s1 + $0x430] sm:$0xf0]  ;;  %v3541_v38 = vpop.f32.mrf.mxu0 }
  0xb6   :  { %v7301_v36 = vld [vmem:[%s11646_s1 + $0x204] sm:$0xf]  ;;  %v5065_v37 = vld [vmem:[%s11646_s1 + $0x210] sm:$0xf0]  ;;  %v5340_v40 = vor.u32 %v7369_v30, %v5337_v31  ;;  %v3542_v44 = vadd.f32 %v3541_v38, %v602_v24 }
  0xb7   :  { %3794 = vmatpush.bf16.msrb.mxu0 %v5148_v32  ;;  %3807 = vmatpush.bf16.msrb.mxu1 %v5276_v33  ;;  %v7401_v32 = vld [vmem:[%s11646_s1 + $0x524] sm:$0xf]  ;;  %v5465_v33 = vld [vmem:[%s11646_s1 + $0x530] sm:$0xf0]  ;;  %v5068_v58 = vor.u32 %v7301_v36, %v5065_v37 }
  0xb8   :  { %3820 = vmatpush.bf16.msrb.mxu2 %v5404_v35  ;;  %3833 = vmatpush.bf16.msrb.mxu3 %v5532_v39  ;;  %v5084_v35 = vor.u32 %v7305_v19, %v5081_v22  ;;  %v5212_v39 = vor.u32 %v7337_v23, %v5209_v26  ;;  %v7333_v41 = vld [vmem:[%s11646_s1 + $0x304] sm:$0xf]  ;;  %v5193_v42 = vld [vmem:[%s11646_s1 + $0x310] sm:$0xf0] }
  0xb9   :  { %v7365_v43 = vld [vmem:[%s11646_s1 + $0x404] sm:$0xf]  ;;  %v5449_v53 = vld [vmem:[%s11646_s1 + $0x510] sm:$0xf0]  ;;  %v5196_v63 = vor.u32 %v7333_v41, %v5193_v42 }
  0xba   :  { %v7397_v52 = vld [vmem:[%s11646_s1 + $0x504] sm:$0xf]  ;;  %v5817_v59 = vld [vmem:[%s11646_s1 + $0x7f0] sm:$0xf0]  ;;  %v3567_v6 = vpop.f32.mrf.mxu2 }
  0xbb   :  { %3795 = vmatpush.bf16.msrb.mxu0 %v5132_v45  ;;  %3808 = vmatpush.bf16.msrb.mxu1 %v5260_v50  ;;  %v3554_v45 = vpop.f32.mrf.mxu1  ;;  %v5468_v50 = vor.u32 %v7401_v32, %v5465_v33  ;;  %v7457_v54 = vld [vmem:[%s11646_s1 + $0x6e4] sm:$0xf]  ;;  %v6073_v5 = vld [vmem:[%s11646_s1 + $0x9f0] sm:$0xf0]  ;;  %v5452_v7 = vor.u32 %v7397_v52, %v5449_v53 }
  0xbc   :  { %3821 = vmatpush.bf16.msrb.mxu2 %v5388_v51  ;;  %3834 = vmatpush.bf16.msrb.mxu3 %v5516_v55  ;;  %v5321_v51 = vld [vmem:[%s11646_s1 + $0x410] sm:$0xf0]  ;;  %v7489_v56 = vld [vmem:[%s11646_s1 + $0x7e4] sm:$0xf]  ;;  %v3555_v57 = vadd.f32 %v3554_v45, %v3542_v44  ;;  %v3580_v10 = vpop.f32.mrf.mxu3 }
  0xbd   :  { %v5689_v55 = vld [vmem:[%s11646_s1 + $0x6f0] sm:$0xf0]  ;;  %v7521_v61 = vld [vmem:[%s11646_s1 + $0x8e4] sm:$0xf]  ;;  %v5820_v11 = vor.u32 %v7489_v56, %v5817_v59 }
  0xbe   :  { %v3568_v9 = vadd.f32 %v3567_v6, %v3555_v57  ;;  %v7453_v14 = vld [vmem:[%s11646_s1 + $0x6c4] sm:$0xf]  ;;  %v5929_v23 = vld [vmem:[%s11646_s1 + $0x8d0] sm:$0xf0] }
  0xbf   :  { %3796 = vmatpush.bf16.msrb.mxu0 %v5116_v62  ;;  %3809 = vmatpush.bf16.msrb.mxu1 %v5244_v3  ;;  %v5945_v62 = vld [vmem:[%s11646_s1 + $0x8f0] sm:$0xf0]  ;;  %v5324_v3 = vor.u32 %v7365_v43, %v5321_v51  ;;  %v7485_v19 = vld [vmem:[%s11646_s1 + $0x7c4] sm:$0xf] }
  0xc0   :  { %3822 = vmatpush.bf16.msrb.mxu2 %v5372_v4  ;;  %3835 = vmatpush.bf16.msrb.mxu3 %v5500_v8  ;;  %v7553_v4 = vld [vmem:[%s11646_s1 + $0x9e4] sm:$0xf]  ;;  %v5692_v8 = vor.u32 %v7457_v54, %v5689_v55  ;;  %v5948_v13 = vor.u32 %v7521_v61, %v5945_v62  ;;  %v3581_v24 = vadd.f32 %v3580_v10, %v3568_v9  ;;  %v6057_v30 = vld [vmem:[%s11646_s1 + $0x9d0] sm:$0xf0] }
  0xc1   :  { %v7517_v22 = vld [vmem:[%s11646_s1 + $0x8c4] sm:$0xf]  ;;  %v5657_v37 = vld [vmem:[%s11646_s1 + $0x6b0] sm:$0xf0] }
  0xc2   :  { %v7549_v26 = vld [vmem:[%s11646_s1 + $0x9c4] sm:$0xf]  ;;  %v5913_v42 = vld [vmem:[%s11646_s1 + $0x8b0] sm:$0xf0]  ;;  %v3569_v45 = vpop.f32.mrf.mxu2 }
  0xc3   :  { %3797 = vmatpush.bf16.msrb.mxu0 %v5100_v18  ;;  %3810 = vmatpush.bf16.msrb.mxu1 %v5228_v20  ;;  %v5673_v18 = vld [vmem:[%s11646_s1 + $0x6d0] sm:$0xf0]  ;;  %v6076_v20 = vor.u32 %v7553_v4, %v6073_v5  ;;  %v3556_v31 = vpop.f32.mrf.mxu1  ;;  %v7449_v36 = vld [vmem:[%s11646_s1 + $0x6a4] sm:$0xf] }
  0xc4   :  { %3823 = vmatpush.bf16.msrb.mxu2 %v5356_v21  ;;  %3836 = vmatpush.bf16.msrb.mxu3 %v5484_v25  ;;  %v5801_v21 = vld [vmem:[%s11646_s1 + $0x7d0] sm:$0xf0]  ;;  %v3543_v25 = vpop.f32.mrf.mxu0  ;;  %v5676_v32 = vor.u32 %v7453_v14, %v5673_v18  ;;  %v7481_v38 = vld [vmem:[%s11646_s1 + $0x7a4] sm:$0xf]  ;;  %v3582_v51 = vpop.f32.mrf.mxu3 }
  0xc5   :  { %v5804_v33 = vor.u32 %v7485_v19, %v5801_v21  ;;  %v7513_v41 = vld [vmem:[%s11646_s1 + $0x8a4] sm:$0xf]  ;;  %v6041_v44 = vld [vmem:[%s11646_s1 + $0x9b0] sm:$0xf0] }
  0xc6   :  { %v7545_v43 = vld [vmem:[%s11646_s1 + $0x9a4] sm:$0xf]  ;;  %v5916_v53 = vor.u32 %v7513_v41, %v5913_v42  ;;  %v5641_v55 = vld [vmem:[%s11646_s1 + $0x690] sm:$0xf0] }
  0xc7   :  { %3798 = vmatpush.bf16.msrb.mxu0 %v5084_v35  ;;  %3811 = vmatpush.bf16.msrb.mxu1 %v5212_v39  ;;  %v5932_v35 = vor.u32 %v7517_v22, %v5929_v23  ;;  %v6060_v39 = vor.u32 %v7549_v26, %v6057_v30  ;;  %v7445_v54 = vld [vmem:[%s11646_s1 + $0x684] sm:$0xf]  ;;  %v6044_v57 = vor.u32 %v7545_v43, %v6041_v44  ;;  %v5897_v61 = vld [vmem:[%s11646_s1 + $0x890] sm:$0xf0] }
  0xc8   :  { %3824 = vmatpush.bf16.msrb.mxu2 %v5340_v40  ;;  %3837 = vmatpush.bf16.msrb.mxu3 %v5468_v50  ;;  %v5785_v40 = vld [vmem:[%s11646_s1 + $0x7b0] sm:$0xf0]  ;;  %v5660_v50 = vor.u32 %v7449_v36, %v5657_v37  ;;  %v7477_v56 = vld [vmem:[%s11646_s1 + $0x784] sm:$0xf] }
  0xc9   :  { %v5788_v52 = vor.u32 %v7481_v38, %v5785_v40  ;;  %v7509_v59 = vld [vmem:[%s11646_s1 + $0x884] sm:$0xf]  ;;  %v5753_v14 = vld [vmem:[%s11646_s1 + $0x770] sm:$0xf0] }
  0xca   :  { %v7541_v62 = vld [vmem:[%s11646_s1 + $0x984] sm:$0xf]  ;;  %v5900_v6 = vor.u32 %v7509_v59, %v5897_v61  ;;  %v5881_v19 = vld [vmem:[%s11646_s1 + $0x870] sm:$0xf0] }
  0xcb   :  { %3799 = vmatpush.bf16.msrb.mxu0 %v5068_v58  ;;  %3812 = vmatpush.bf16.msrb.mxu1 %v5196_v63  ;;  %v5769_v58 = vld [vmem:[%s11646_s1 + $0x790] sm:$0xf0]  ;;  %v7473_v9 = vld [vmem:[%s11646_s1 + $0x764] sm:$0xf] }
  0xcc   :  { %3825 = vmatpush.bf16.msrb.mxu2 %v5324_v3  ;;  %3838 = vmatpush.bf16.msrb.mxu3 %v5452_v7  ;;  %v6025_v63 = vld [vmem:[%s11646_s1 + $0x990] sm:$0xf0]  ;;  %v5644_v3 = vor.u32 %v7445_v54, %v5641_v55  ;;  %v3593_v4 = vpop.f32.mrf.mxu0  ;;  %v5772_v5 = vor.u32 %v7477_v56, %v5769_v58  ;;  %v7441_v7 = vld [vmem:[%s11646_s1 + $0x664] sm:$0xf] }
  0xcd   :  { %v3594_v10 = vadd.f32 %v3593_v4, %v3581_v24  ;;  %v7505_v18 = vld [vmem:[%s11646_s1 + $0x864] sm:$0xf]  ;;  %v6009_v21 = vld [vmem:[%s11646_s1 + $0x970] sm:$0xf0]  ;;  %v5756_v24 = vor.u32 %v7473_v9, %v5753_v14 }
  0xce   :  { %3800 = vmatmul.bf16.vlgmr.msrb.gmra.mxu0 %v8231_v27  ;;  %3813 = vmatmul.bf16.vlgmr.msrb.gmra.mxu1 %v8235_v29  ;;  %v5884_v25 = vor.u32 %v7505_v18, %v5881_v19  ;;  %v7437_v26 = vld [vmem:[%s11646_s1 + $0x644] sm:$0xf]  ;;  %v5609_v30 = vld [vmem:[%s11646_s1 + $0x650] sm:$0xf0] }
  0xcf   :  { %3844 = vmatpush.bf16.msra.mxu0 %v5692_v8  ;;  %3857 = vmatpush.bf16.msra.mxu1 %v5820_v11  ;;  %v5625_v8 = vld [vmem:[%s11646_s1 + $0x670] sm:$0xf0]  ;;  %v3606_v11 = vpop.f32.mrf.mxu1  ;;  %v7469_v31 = vld [vmem:[%s11646_s1 + $0x744] sm:$0xf]  ;;  %v5612_v42 = vor.u32 %v7437_v26, %v5609_v30 }
  0xd0   :  { %3870 = vmatpush.bf16.msra.mxu2 %v5948_v13  ;;  %3883 = vmatpush.bf16.msra.mxu3 %v6076_v20  ;;  %v6028_v13 = vor.u32 %v7541_v62, %v6025_v63  ;;  %v7537_v20 = vld [vmem:[%s11646_s1 + $0x964] sm:$0xf]  ;;  %v3607_v22 = vadd.f32 %v3606_v11, %v3594_v10  ;;  %v5628_v23 = vor.u32 %v7441_v7, %v5625_v8  ;;  %v5865_v37 = vld [vmem:[%s11646_s1 + $0x850] sm:$0xf0] }
  0xd1   :  { %3826 = vmatmul.bf16.vlgmr.msrb.gmra.mxu2 %v8311_v0  ;;  %3839 = vmatmul.bf16.vlgmr.msrb.gmra.mxu3 %v8315_v2  ;;  %v7501_v36 = vld [vmem:[%s11646_s1 + $0x844] sm:$0xf]  ;;  %v5993_v41 = vld [vmem:[%s11646_s1 + $0x950] sm:$0xf0] }
  0xd2   :  { %v7533_v40 = vld [vmem:[%s11646_s1 + $0x944] sm:$0xf]  ;;  %v5721_v56 = vld [vmem:[%s11646_s1 + $0x730] sm:$0xf0] }
  0xd3   :  { %3845 = vmatpush.bf16.msra.mxu0 %v5676_v32  ;;  %3858 = vmatpush.bf16.msra.mxu1 %v5804_v33  ;;  %v3619_v32 = vpop.f32.mrf.mxu2  ;;  %v6012_v33 = vor.u32 %v7537_v20, %v6009_v21  ;;  %v7433_v51 = vld [vmem:[%s11646_s1 + $0x624] sm:$0xf]  ;;  %v5996_v55 = vor.u32 %v7533_v40, %v5993_v41  ;;  %v5849_v58 = vld [vmem:[%s11646_s1 + $0x830] sm:$0xf0] }
  0xd4   :  { %3871 = vmatpush.bf16.msra.mxu2 %v5932_v35  ;;  %3884 = vmatpush.bf16.msra.mxu3 %v6060_v39  ;;  %v5737_v35 = vld [vmem:[%s11646_s1 + $0x750] sm:$0xf0]  ;;  %v3620_v38 = vadd.f32 %v3619_v32, %v3607_v22  ;;  %v3632_v39 = vpop.f32.mrf.mxu3  ;;  %v3595_v44 = vpop.f32.mrf.mxu0  ;;  %v7529_v59 = vld [vmem:[%s11646_s1 + $0x924] sm:$0xf] }
  0xd5   :  { %v5740_v45 = vor.u32 %v7469_v31, %v5737_v35  ;;  %v5977_v61 = vld [vmem:[%s11646_s1 + $0x930] sm:$0xf0]  ;;  %v7429_v63 = vld [vmem:[%s11646_s1 + $0x604] sm:$0xf] }
  0xd6   :  { %v9275_v43 = vadd.f32 %v3632_v39, %v3620_v38  ;;  %v5705_v7 = vld [vmem:[%s11646_s1 + $0x710] sm:$0xf0]  ;;  %v7493_v8 = vld [vmem:[%s11646_s1 + $0x804] sm:$0xf]  ;;  %v5980_v10 = vor.u32 %v7529_v59, %v5977_v61 }
  0xd7   :  { %3846 = vmatpush.bf16.msra.mxu0 %v5660_v50  ;;  %3859 = vmatpush.bf16.msra.mxu1 %v5788_v52  ;;  %v5868_v50 = vor.u32 %v7501_v36, %v5865_v37  ;;  %v5593_v52 = vld [vmem:[%s11646_s1 + $0x630] sm:$0xf0]  ;;  %v3608_v54 = vpop.f32.mrf.mxu1  ;;  %v7585_v19 = vld [vmem:[%s11646_s1 + $0xae4] sm:$0xf] }
  0xd8   :  { %3872 = vmatpush.bf16.msra.mxu2 %v5916_v53  ;;  %3885 = vmatpush.bf16.msra.mxu3 %v6044_v57  ;;  %v7465_v53 = vld [vmem:[%s11646_s1 + $0x724] sm:$0xf]  ;;  %v5596_v62 = vor.u32 %v7433_v51, %v5593_v52  ;;  %v5833_v11 = vld [vmem:[%s11646_s1 + $0x810] sm:$0xf0] }
  0xd9   :  { %v7497_v57 = vld [vmem:[%s11646_s1 + $0x824] sm:$0xf]  ;;  %v5724_v4 = vor.u32 %v7465_v53, %v5721_v56  ;;  %v5961_v14 = vld [vmem:[%s11646_s1 + $0x910] sm:$0xf0]  ;;  %v5836_v30 = vor.u32 %v7493_v8, %v5833_v11 }
  0xda   :  { %v6201_v20 = vld [vmem:[%s11646_s1 + $0xaf0] sm:$0xf0]  ;;  %v7617_v21 = vld [vmem:[%s11646_s1 + $0xbe4] sm:$0xf] }
  0xdb   :  { %3847 = vmatpush.bf16.msra.mxu0 %v5644_v3  ;;  %3860 = vmatpush.bf16.msra.mxu1 %v5772_v5  ;;  %v5577_v3 = vld [vmem:[%s11646_s1 + $0x610] sm:$0xf0]  ;;  %v5852_v5 = vor.u32 %v7497_v57, %v5849_v58  ;;  %v3621_v9 = vpop.f32.mrf.mxu2  ;;  %v7681_v31 = vld [vmem:[%s11646_s1 + $0xde4] sm:$0xf]  ;;  %v6204_v35 = vor.u32 %v7585_v19, %v6201_v20 }
  0xdc   :  { %3873 = vmatpush.bf16.msra.mxu2 %v5900_v6  ;;  %3886 = vmatpush.bf16.msra.mxu3 %v6028_v13  ;;  %v7461_v6 = vld [vmem:[%s11646_s1 + $0x704] sm:$0xf]  ;;  %v3634_v18 = vpop.f32.mrf.mxu3  ;;  %v5580_v22 = vor.u32 %v7429_v63, %v5577_v3  ;;  %v6585_v32 = vld [vmem:[%s11646_s1 + $0xdf0] sm:$0xf0] }
  0xdd   :  { %v7525_v13 = vld [vmem:[%s11646_s1 + $0x904] sm:$0xf]  ;;  %v5708_v26 = vor.u32 %v7461_v6, %v5705_v7  ;;  %v6185_v39 = vld [vmem:[%s11646_s1 + $0xad0] sm:$0xf0]  ;;  %v6588_v41 = vor.u32 %v7681_v31, %v6585_v32 }
  0xde   :  { %v7581_v38 = vld [vmem:[%s11646_s1 + $0xac4] sm:$0xf]  ;;  %v6569_v51 = vld [vmem:[%s11646_s1 + $0xdd0] sm:$0xf0] }
  0xdf   :  { %3848 = vmatpush.bf16.msra.mxu0 %v5628_v23  ;;  %3861 = vmatpush.bf16.msra.mxu1 %v5756_v24  ;;  %v6329_v23 = vld [vmem:[%s11646_s1 + $0xbf0] sm:$0xf0]  ;;  %v7649_v24 = vld [vmem:[%s11646_s1 + $0xce4] sm:$0xf]  ;;  %v6188_v52 = vor.u32 %v7581_v38, %v6185_v39 }
  0xe0   :  { %3874 = vmatpush.bf16.msra.mxu2 %v5884_v25  ;;  %3887 = vmatpush.bf16.msra.mxu3 %v6012_v33  ;;  %v6457_v25 = vld [vmem:[%s11646_s1 + $0xcf0] sm:$0xf0]  ;;  %v5964_v33 = vor.u32 %v7525_v13, %v5961_v14  ;;  %v6332_v36 = vor.u32 %v7617_v21, %v6329_v23  ;;  %v7613_v40 = vld [vmem:[%s11646_s1 + $0xbc4] sm:$0xf] }
  0xe1   :  { %v6460_v37 = vor.u32 %v7649_v24, %v6457_v25  ;;  %v7645_v44 = vld [vmem:[%s11646_s1 + $0xcc4] sm:$0xf]  ;;  %v6169_v56 = vld [vmem:[%s11646_s1 + $0xab0] sm:$0xf0] }
  0xe2   :  { %v7609_v57 = vld [vmem:[%s11646_s1 + $0xba4] sm:$0xf]  ;;  %v6297_v59 = vld [vmem:[%s11646_s1 + $0xbb0] sm:$0xf0] }
  0xe3   :  { %3849 = vmatpush.bf16.msra.mxu0 %v5612_v42  ;;  %3862 = vmatpush.bf16.msra.mxu1 %v5740_v45  ;;  %v6313_v42 = vld [vmem:[%s11646_s1 + $0xbd0] sm:$0xf0]  ;;  %v7641_v61 = vld [vmem:[%s11646_s1 + $0xca4] sm:$0xf] }
  0xe4   :  { %3875 = vmatpush.bf16.msra.mxu2 %v5868_v50  ;;  %3888 = vmatpush.bf16.msra.mxu3 %v5996_v55  ;;  %v6441_v45 = vld [vmem:[%s11646_s1 + $0xcd0] sm:$0xf0]  ;;  %v7677_v50 = vld [vmem:[%s11646_s1 + $0xdc4] sm:$0xf]  ;;  %v6316_v53 = vor.u32 %v7613_v40, %v6313_v42 }
  0xe5   :  { %v6444_v54 = vor.u32 %v7645_v44, %v6441_v45  ;;  %v7577_v55 = vld [vmem:[%s11646_s1 + $0xaa4] sm:$0xf]  ;;  %v6572_v58 = vor.u32 %v7677_v50, %v6569_v51  ;;  %v6553_v3 = vld [vmem:[%s11646_s1 + $0xdb0] sm:$0xf0] }
  0xe6   :  { %v7673_v63 = vld [vmem:[%s11646_s1 + $0xda4] sm:$0xf]  ;;  %v6153_v8 = vld [vmem:[%s11646_s1 + $0xa90] sm:$0xf0] }
  0xe7   :  { %3850 = vmatpush.bf16.msra.mxu0 %v5596_v62  ;;  %3863 = vmatpush.bf16.msra.mxu1 %v5724_v4  ;;  %v6425_v62 = vld [vmem:[%s11646_s1 + $0xcb0] sm:$0xf0]  ;;  %v6172_v4 = vor.u32 %v7577_v55, %v6169_v56  ;;  %v7573_v7 = vld [vmem:[%s11646_s1 + $0xa84] sm:$0xf] }
  0xe8   :  { %3876 = vmatpush.bf16.msra.mxu2 %v5852_v5  ;;  %3889 = vmatpush.bf16.msra.mxu3 %v5980_v10  ;;  %v6300_v5 = vor.u32 %v7609_v57, %v6297_v59  ;;  %v6428_v6 = vor.u32 %v7641_v61, %v6425_v62  ;;  %v7605_v9 = vld [vmem:[%s11646_s1 + $0xb84] sm:$0xf]  ;;  %v6556_v10 = vor.u32 %v7673_v63, %v6553_v3  ;;  %v6281_v11 = vld [vmem:[%s11646_s1 + $0xb90] sm:$0xf0] }
  0xe9   :  { %v7637_v13 = vld [vmem:[%s11646_s1 + $0xc84] sm:$0xf]  ;;  %v6409_v14 = vld [vmem:[%s11646_s1 + $0xc90] sm:$0xf0]  ;;  %v3658_v23 = vpop.f32.mrf.mxu1  ;;  %v6284_v24 = vor.u32 %v7605_v9, %v6281_v11 }
  0xea   :  { %v3645_v18 = vpop.f32.mrf.mxu0  ;;  %v7669_v19 = vld [vmem:[%s11646_s1 + $0xd84] sm:$0xf]  ;;  %v6537_v20 = vld [vmem:[%s11646_s1 + $0xd90] sm:$0xf0]  ;;  %v6412_v25 = vor.u32 %v7637_v13, %v6409_v14 }
  0xeb   :  { %3851 = vmatpush.bf16.msra.mxu0 %v5580_v22  ;;  %3864 = vmatpush.bf16.msra.mxu1 %v5708_v26  ;;  %v3646_v21 = vadd.f32 %v3645_v18, %v9275_v43  ;;  %v6156_v22 = vor.u32 %v7573_v7, %v6153_v8  ;;  %v7569_v26 = vld [vmem:[%s11646_s1 + $0xa64] sm:$0xf]  ;;  %v6540_v43 = vor.u32 %v7669_v19, %v6537_v20  ;;  %v6521_v38 = vld [vmem:[%s11646_s1 + $0xd70] sm:$0xf0] }
  0xec   :  { %3877 = vmatpush.bf16.msra.mxu2 %v5836_v30  ;;  %3890 = vmatpush.bf16.msra.mxu3 %v5964_v33  ;;  %v6137_v30 = vld [vmem:[%s11646_s1 + $0xa70] sm:$0xf0]  ;;  %v7601_v31 = vld [vmem:[%s11646_s1 + $0xb64] sm:$0xf] }
  0xed   :  { %v3659_v32 = vadd.f32 %v3658_v23, %v3646_v21  ;;  %v6265_v33 = vld [vmem:[%s11646_s1 + $0xb70] sm:$0xf0]  ;;  %v6140_v39 = vor.u32 %v7569_v26, %v6137_v30  ;;  %v7565_v42 = vld [vmem:[%s11646_s1 + $0xa44] sm:$0xf] }
  0xee   :  { %3852 = vmatmul.bf16.vlgmr.msra.gmra.mxu0 %v8306_v60  ;;  %3865 = vmatmul.bf16.vlgmr.msra.gmra.mxu1 %v8313_v1  ;;  %v6268_v40 = vor.u32 %v7601_v31, %v6265_v33  ;;  %v6121_v44 = vld [vmem:[%s11646_s1 + $0xa50] sm:$0xf0]  ;;  %v7597_v45 = vld [vmem:[%s11646_s1 + $0xb44] sm:$0xf] }
  0xef   :  { %3896 = vmatpush.bf16.msrb.mxu0 %v6204_v35  ;;  %3909 = vmatpush.bf16.msrb.mxu1 %v6332_v36  ;;  %v7633_v35 = vld [vmem:[%s11646_s1 + $0xc64] sm:$0xf]  ;;  %v6393_v36 = vld [vmem:[%s11646_s1 + $0xc70] sm:$0xf0]  ;;  %v3671_v51 = vpop.f32.mrf.mxu2  ;;  %v6124_v61 = vor.u32 %v7565_v42, %v6121_v44 }
  0xf0   :  { %3922 = vmatpush.bf16.msrb.mxu2 %v6460_v37  ;;  %3935 = vmatpush.bf16.msrb.mxu3 %v6588_v41  ;;  %v7665_v37 = vld [vmem:[%s11646_s1 + $0xd64] sm:$0xf]  ;;  %v6396_v41 = vor.u32 %v7633_v35, %v6393_v36  ;;  %v3672_v55 = vadd.f32 %v3671_v51, %v3659_v32  ;;  %v6233_v9 = vld [vmem:[%s11646_s1 + $0xb30] sm:$0xf0] }
  0xf1   :  { %3878 = vmatmul.bf16.vlgmr.msra.gmra.mxu2 %v8561_v12  ;;  %3891 = vmatmul.bf16.vlgmr.msra.gmra.mxu3 %v8571_v16  ;;  %v6524_v50 = vor.u32 %v7665_v37, %v6521_v38  ;;  %v7661_v57 = vld [vmem:[%s11646_s1 + $0xd44] sm:$0xf]  ;;  %v3660_v62 = vpop.f32.mrf.mxu1  ;;  %v6361_v11 = vld [vmem:[%s11646_s1 + $0xc30] sm:$0xf0] }
  0xf2   :  { %v3684_v56 = vpop.f32.mrf.mxu3  ;;  %v3647_v59 = vpop.f32.mrf.mxu0  ;;  %v7593_v7 = vld [vmem:[%s11646_s1 + $0xb24] sm:$0xf]  ;;  %v6489_v14 = vld [vmem:[%s11646_s1 + $0xd30] sm:$0xf0] }
  0xf3   :  { %3897 = vmatpush.bf16.msrb.mxu0 %v6188_v52  ;;  %3910 = vmatpush.bf16.msrb.mxu1 %v6316_v53  ;;  %v6249_v52 = vld [vmem:[%s11646_s1 + $0xb50] sm:$0xf0]  ;;  %v7629_v53 = vld [vmem:[%s11646_s1 + $0xc44] sm:$0xf]  ;;  %v9474_v63 = vadd.f32 %v3684_v56, %v3672_v55  ;;  %v6236_v21 = vor.u32 %v7593_v7, %v6233_v9 }
  0xf4   :  { %3923 = vmatpush.bf16.msrb.mxu2 %v6444_v54  ;;  %3936 = vmatpush.bf16.msrb.mxu3 %v6572_v58  ;;  %v6377_v54 = vld [vmem:[%s11646_s1 + $0xc50] sm:$0xf0]  ;;  %v6252_v3 = vor.u32 %v7597_v45, %v6249_v52  ;;  %v7657_v13 = vld [vmem:[%s11646_s1 + $0xd24] sm:$0xf] }
  0xf5   :  { %v6505_v58 = vld [vmem:[%s11646_s1 + $0xd50] sm:$0xf0]  ;;  %v7557_v19 = vld [vmem:[%s11646_s1 + $0xa04] sm:$0xf]  ;;  %v6492_v26 = vor.u32 %v7657_v13, %v6489_v14 }
  0xf6   :  { %v6508_v8 = vor.u32 %v7661_v57, %v6505_v58  ;;  %v6089_v20 = vld [vmem:[%s11646_s1 + $0xa10] sm:$0xf0]  ;;  %v7589_v23 = vld [vmem:[%s11646_s1 + $0xb04] sm:$0xf] }
  0xf7   :  { %3898 = vmatpush.bf16.msrb.mxu0 %v6172_v4  ;;  %3911 = vmatpush.bf16.msrb.mxu1 %v6300_v5  ;;  %v6380_v4 = vor.u32 %v7629_v53, %v6377_v54  ;;  %v7561_v5 = vld [vmem:[%s11646_s1 + $0xa24] sm:$0xf]  ;;  %v6345_v30 = vld [vmem:[%s11646_s1 + $0xc10] sm:$0xf0]  ;;  %v3673_v32 = vpop.f32.mrf.mxu2  ;;  %v6092_v38 = vor.u32 %v7557_v19, %v6089_v20 }
  0xf8   :  { %3924 = vmatpush.bf16.msrb.mxu2 %v6428_v6  ;;  %3937 = vmatpush.bf16.msrb.mxu3 %v6556_v10  ;;  %v6105_v6 = vld [vmem:[%s11646_s1 + $0xa30] sm:$0xf0]  ;;  %v7625_v10 = vld [vmem:[%s11646_s1 + $0xc24] sm:$0xf] }
  0xf9   :  { %v6108_v18 = vor.u32 %v7561_v5, %v6105_v6  ;;  %v7653_v31 = vld [vmem:[%s11646_s1 + $0xd04] sm:$0xf]  ;;  %v6713_v35 = vld [vmem:[%s11646_s1 + $0xef0] sm:$0xf0] }
  0xfa   :  { %v7713_v33 = vld [vmem:[%s11646_s1 + $0xee4] sm:$0xf]  ;;  %v3686_v37 = vpop.f32.mrf.mxu3  ;;  %v6697_v56 = vld [vmem:[%s11646_s1 + $0xed0] sm:$0xf0] }
  0xfb   :  { %3899 = vmatpush.bf16.msrb.mxu0 %v6156_v22  ;;  %3912 = vmatpush.bf16.msrb.mxu1 %v6284_v24  ;;  %v6364_v22 = vor.u32 %v7625_v10, %v6361_v11  ;;  %v6217_v24 = vld [vmem:[%s11646_s1 + $0xb10] sm:$0xf0]  ;;  %v7745_v36 = vld [vmem:[%s11646_s1 + $0xfe4] sm:$0xf]  ;;  %v6716_v52 = vor.u32 %v7713_v33, %v6713_v35 }
  0xfc   :  { %3925 = vmatpush.bf16.msrb.mxu2 %v6412_v25  ;;  %3938 = vmatpush.bf16.msrb.mxu3 %v6540_v43  ;;  %v7621_v25 = vld [vmem:[%s11646_s1 + $0xc04] sm:$0xf]  ;;  %v6473_v43 = vld [vmem:[%s11646_s1 + $0xd10] sm:$0xf0]  ;;  %v6220_v42 = vor.u32 %v7589_v23, %v6217_v24 }
  0xfd   :  { %v6348_v44 = vor.u32 %v7621_v25, %v6345_v30  ;;  %v7809_v45 = vld [vmem:[%s11646_s1 + $0x11e4] sm:$0xf]  ;;  %v6476_v51 = vor.u32 %v7653_v31, %v6473_v43  ;;  %v6825_v59 = vld [vmem:[%s11646_s1 + $0xfd0] sm:$0xf0] }
  0xfe   :  { %v7709_v55 = vld [vmem:[%s11646_s1 + $0xec4] sm:$0xf]  ;;  %v6953_v62 = vld [vmem:[%s11646_s1 + $0x10d0] sm:$0xf0] }
  0xff   :  { %3900 = vmatpush.bf16.msrb.mxu0 %v6140_v39  ;;  %3913 = vmatpush.bf16.msrb.mxu1 %v6268_v40  ;;  %v6841_v39 = vld [vmem:[%s11646_s1 + $0xff0] sm:$0xf0]  ;;  %v7777_v40 = vld [vmem:[%s11646_s1 + $0x10e4] sm:$0xf]  ;;  %v6700_v5 = vor.u32 %v7709_v55, %v6697_v56 }
 0x100   :  { %3926 = vmatpush.bf16.msrb.mxu2 %v6396_v41  ;;  %3939 = vmatpush.bf16.msrb.mxu3 %v6524_v50  ;;  %v6969_v41 = vld [vmem:[%s11646_s1 + $0x10f0] sm:$0xf0]  ;;  %v6844_v53 = vor.u32 %v7745_v36, %v6841_v39  ;;  %v7741_v57 = vld [vmem:[%s11646_s1 + $0xfc4] sm:$0xf] }
 0x101   :  { %v7097_v50 = vld [vmem:[%s11646_s1 + $0x11f0] sm:$0xf0]  ;;  %v6972_v54 = vor.u32 %v7777_v40, %v6969_v41  ;;  %v6828_v6 = vor.u32 %v7741_v57, %v6825_v59  ;;  %v7737_v10 = vld [vmem:[%s11646_s1 + $0xfa4] sm:$0xf] }
 0x102   :  { %v7100_v58 = vor.u32 %v7809_v45, %v7097_v50  ;;  %v6681_v9 = vld [vmem:[%s11646_s1 + $0xeb0] sm:$0xf0]  ;;  %v7769_v14 = vld [vmem:[%s11646_s1 + $0x10a4] sm:$0xf] }
 0x103   :  { %3901 = vmatpush.bf16.msrb.mxu0 %v6124_v61  ;;  %3914 = vmatpush.bf16.msrb.mxu1 %v6252_v3  ;;  %v7773_v61 = vld [vmem:[%s11646_s1 + $0x10c4] sm:$0xf]  ;;  %v6809_v13 = vld [vmem:[%s11646_s1 + $0xfb0] sm:$0xf0] }
 0x104   :  { %3927 = vmatpush.bf16.msrb.mxu2 %v6380_v4  ;;  %3940 = vmatpush.bf16.msrb.mxu3 %v6508_v8  ;;  %v7805_v3 = vld [vmem:[%s11646_s1 + $0x11c4] sm:$0xf]  ;;  %v7081_v4 = vld [vmem:[%s11646_s1 + $0x11d0] sm:$0xf0]  ;;  %v6956_v7 = vor.u32 %v7773_v61, %v6953_v62 }
 0x105   :  { %v7705_v8 = vld [vmem:[%s11646_s1 + $0xea4] sm:$0xf]  ;;  %v7084_v11 = vor.u32 %v7805_v3, %v7081_v4  ;;  %v7065_v20 = vld [vmem:[%s11646_s1 + $0x11b0] sm:$0xf0] }
 0x106   :  { %v7801_v19 = vld [vmem:[%s11646_s1 + $0x11a4] sm:$0xf]  ;;  %v6665_v25 = vld [vmem:[%s11646_s1 + $0xe90] sm:$0xf0] }
 0x107   :  { %3902 = vmatpush.bf16.msrb.mxu0 %v6108_v18  ;;  %3915 = vmatpush.bf16.msrb.mxu1 %v6236_v21  ;;  %v6937_v18 = vld [vmem:[%s11646_s1 + $0x10b0] sm:$0xf0]  ;;  %v6684_v21 = vor.u32 %v7705_v8, %v6681_v9  ;;  %v7701_v24 = vld [vmem:[%s11646_s1 + $0xe84] sm:$0xf]  ;;  %v7068_v30 = vor.u32 %v7801_v19, %v7065_v20 }
 0x108   :  { %3928 = vmatpush.bf16.msrb.mxu2 %v6364_v22  ;;  %3941 = vmatpush.bf16.msrb.mxu3 %v6492_v26  ;;  %v6812_v22 = vor.u32 %v7737_v10, %v6809_v13  ;;  %v6940_v23 = vor.u32 %v7769_v14, %v6937_v18  ;;  %v7733_v26 = vld [vmem:[%s11646_s1 + $0xf84] sm:$0xf]  ;;  %v6793_v31 = vld [vmem:[%s11646_s1 + $0xf90] sm:$0xf0] }
 0x109   :  { %v7765_v43 = vld [vmem:[%s11646_s1 + $0x1084] sm:$0xf]  ;;  %v6921_v32 = vld [vmem:[%s11646_s1 + $0x1090] sm:$0xf0]  ;;  %v6796_v40 = vor.u32 %v7733_v26, %v6793_v31 }
 0x10a   :  { %v7797_v35 = vld [vmem:[%s11646_s1 + $0x1184] sm:$0xf]  ;;  %v7049_v36 = vld [vmem:[%s11646_s1 + $0x1190] sm:$0xf0]  ;;  %v6924_v41 = vor.u32 %v7765_v43, %v6921_v32 }
 0x10b   :  { %3903 = vmatpush.bf16.msrb.mxu0 %v6092_v38  ;;  %3916 = vmatpush.bf16.msrb.mxu1 %v6220_v42  ;;  %v3697_v33 = vpop.f32.mrf.mxu0  ;;  %v6668_v38 = vor.u32 %v7701_v24, %v6665_v25  ;;  %v3710_v39 = vpop.f32.mrf.mxu1  ;;  %v7697_v42 = vld [vmem:[%s11646_s1 + $0xe64] sm:$0xf]  ;;  %v7033_v55 = vld [vmem:[%s11646_s1 + $0x1170] sm:$0xf0] }
 0x10c   :  { %3929 = vmatpush.bf16.msrb.mxu2 %v6348_v44  ;;  %3942 = vmatpush.bf16.msrb.mxu3 %v6476_v51  ;;  %v3698_v37 = vadd.f32 %v3697_v33, %v9474_v63  ;;  %v6649_v44 = vld [vmem:[%s11646_s1 + $0xe70] sm:$0xf0]  ;;  %v7729_v45 = vld [vmem:[%s11646_s1 + $0xf64] sm:$0xf]  ;;  %v7052_v63 = vor.u32 %v7797_v35, %v7049_v36 }
 0x10d   :  { %v6777_v51 = vld [vmem:[%s11646_s1 + $0xf70] sm:$0xf0]  ;;  %v6652_v56 = vor.u32 %v7697_v42, %v6649_v44  ;;  %v7693_v59 = vld [vmem:[%s11646_s1 + $0xe44] sm:$0xf] }
 0x10e   :  { %3904 = vmatmul.bf16.vlgmr.msrb.gmra.mxu0 %v8569_v15  ;;  %3917 = vmatmul.bf16.vlgmr.msrb.gmra.mxu1 %v8573_v17  ;;  %v3711_v50 = vadd.f32 %v3710_v39, %v3698_v37  ;;  %v6780_v57 = vor.u32 %v7729_v45, %v6777_v51  ;;  %v6633_v61 = vld [vmem:[%s11646_s1 + $0xe50] sm:$0xf0]  ;;  %v7725_v62 = vld [vmem:[%s11646_s1 + $0xf44] sm:$0xf]  ;;  %v4927_v51 = vld [vmem:[%s11646_s1 + $0xe8] sm:$0xf] }
 0x10f   :  { %3948 = vmatpush.bf16.msra.mxu0 %v6716_v52  ;;  %3961 = vmatpush.bf16.msra.mxu1 %v6844_v53  ;;  %v7761_v52 = vld [vmem:[%s11646_s1 + $0x1064] sm:$0xf]  ;;  %v6905_v53 = vld [vmem:[%s11646_s1 + $0x1070] sm:$0xf0]  ;;  %v6636_v14 = vor.u32 %v7693_v59, %v6633_v61 }
 0x110   :  { %3974 = vmatpush.bf16.msra.mxu2 %v6972_v54  ;;  %3987 = vmatpush.bf16.msra.mxu3 %v7100_v58  ;;  %v7793_v54 = vld [vmem:[%s11646_s1 + $0x1164] sm:$0xf]  ;;  %v6908_v58 = vor.u32 %v7761_v52, %v6905_v53  ;;  %v6745_v26 = vld [vmem:[%s11646_s1 + $0xf30] sm:$0xf0]  ;;  %v7268_v52 = vld [vmem:[%s11646_s1 + $0xf4] sm:$0xf0] }
 0x111   :  { %3930 = vmatmul.bf16.vlgmr.msrb.gmra.mxu2 %v8735_v46  ;;  %3943 = vmatmul.bf16.vlgmr.msrb.gmra.mxu3 %v8739_v48  ;;  %v7036_v3 = vor.u32 %v7793_v54, %v7033_v55  ;;  %v7789_v10 = vld [vmem:[%s11646_s1 + $0x1144] sm:$0xf]  ;;  %v6873_v31 = vld [vmem:[%s11646_s1 + $0x1030] sm:$0xf0]  ;;  %v5055_v53 = vld [vmem:[%s11646_s1 + $0x1e8] sm:$0xf] }
 0x112   :  { %v7721_v24 = vld [vmem:[%s11646_s1 + $0xf24] sm:$0xf]  ;;  %v7001_v32 = vld [vmem:[%s11646_s1 + $0x1130] sm:$0xf0] }
 0x113   :  { %3949 = vmatpush.bf16.msra.mxu0 %v6700_v5  ;;  %3962 = vmatpush.bf16.msra.mxu1 %v6828_v6  ;;  %v6761_v5 = vld [vmem:[%s11646_s1 + $0xf50] sm:$0xf0]  ;;  %v7757_v6 = vld [vmem:[%s11646_s1 + $0x1044] sm:$0xf]  ;;  %v3699_v13 = vpop.f32.mrf.mxu0  ;;  %v3712_v18 = vpop.f32.mrf.mxu1  ;;  %v6748_v37 = vor.u32 %v7721_v24, %v6745_v26  ;;  %v7260_v26 = vld [vmem:[%s11646_s1 + $0xb4] sm:$0xf0] }
 0x114   :  { %3975 = vmatpush.bf16.msra.mxu2 %v6956_v7  ;;  %3988 = vmatpush.bf16.msra.mxu3 %v7084_v11  ;;  %v3723_v4 = vpop.f32.mrf.mxu2  ;;  %v6889_v7 = vld [vmem:[%s11646_s1 + $0x1050] sm:$0xf0]  ;;  %v3736_v9 = vpop.f32.mrf.mxu3  ;;  %v6764_v20 = vor.u32 %v7725_v62, %v6761_v5  ;;  %v7785_v43 = vld [vmem:[%s11646_s1 + $0x1124] sm:$0xf]  ;;  %v5311_v62 = vld [vmem:[%s11646_s1 + $0x3e8] sm:$0xf]  ;;  %v4928_v5 = vor.u32 %v7268_v52, %v4927_v51 }
 0x115   :  { %v3724_v8 = vadd.f32 %v3723_v4, %v3711_v50  ;;  %v7017_v11 = vld [vmem:[%s11646_s1 + $0x1150] sm:$0xf0]  ;;  %v7685_v35 = vld [vmem:[%s11646_s1 + $0xe04] sm:$0xf]  ;;  %v7004_v42 = vor.u32 %v7785_v43, %v7001_v32  ;;  %v7296_v13 = vld [vmem:[%s11646_s1 + $0x1d4] sm:$0xf0] }
 0x116   :  { %v7020_v25 = vor.u32 %v7789_v10, %v7017_v11  ;;  %v6601_v36 = vld [vmem:[%s11646_s1 + $0xe10] sm:$0xf0]  ;;  %v7717_v39 = vld [vmem:[%s11646_s1 + $0xf04] sm:$0xf]  ;;  %v5039_v10 = vld [vmem:[%s11646_s1 + $0x1c8] sm:$0xf] }
 0x117   :  { %3950 = vmatpush.bf16.msra.mxu0 %v6684_v21  ;;  %3963 = vmatpush.bf16.msra.mxu1 %v6812_v22  ;;  %v9673_v19 = vadd.f32 %v3736_v9, %v3724_v8  ;;  %v6892_v21 = vor.u32 %v7757_v6, %v6889_v7  ;;  %v7689_v22 = vld [vmem:[%s11646_s1 + $0xe24] sm:$0xf]  ;;  %v6857_v44 = vld [vmem:[%s11646_s1 + $0x1010] sm:$0xf0]  ;;  %v6604_v55 = vor.u32 %v7685_v35, %v6601_v36  ;;  %v4911_v8 = vld [vmem:[%s11646_s1 + $0xc8] sm:$0xf] }
 0x118   :  { %3976 = vmatpush.bf16.msra.mxu2 %v6940_v23  ;;  %3989 = vmatpush.bf16.msra.mxu3 %v7068_v30  ;;  %v6617_v23 = vld [vmem:[%s11646_s1 + $0xe30] sm:$0xf0]  ;;  %v7753_v30 = vld [vmem:[%s11646_s1 + $0x1024] sm:$0xf]  ;;  %v7264_v9 = vld [vmem:[%s11646_s1 + $0xd4] sm:$0xf0] }
 0x119   :  { %v6620_v33 = vor.u32 %v7689_v22, %v6617_v23  ;;  %v7781_v45 = vld [vmem:[%s11646_s1 + $0x1104] sm:$0xf]  ;;  %v7328_v18 = vld [vmem:[%s11646_s1 + $0x2d4] sm:$0xf0]  ;;  %v4912_v22 = vor.u32 %v7264_v9, %v4911_v8  ;;  %v5040_v23 = vor.u32 %v7296_v13, %v5039_v10  ;;  %v5151_v32 = vld [vmem:[%s11646_s1 + $0x2a8] sm:$0xf] }
 0x11a   :  { %v7292_v43 = vld [vmem:[%s11646_s1 + $0x1b4] sm:$0xf0]  ;;  %v7847_v35 = vld [vmem:[#allocation1] sm:$0xff]  ;;  %v5279_v36 = vld [vmem:[%s11646_s1 + $0x3a8] sm:$0xf] }
 0x11b   :  { %3951 = vmatpush.bf16.msra.mxu0 %v6668_v38  ;;  %3964 = vmatpush.bf16.msra.mxu1 %v6796_v40  ;;  %v6876_v38 = vor.u32 %v7753_v30, %v6873_v31  ;;  %v6729_v40 = vld [vmem:[%s11646_s1 + $0xf10] sm:$0xf0]  ;;  %v5023_v30 = vld [vmem:[%s11646_s1 + $0x1a8] sm:$0xf]  ;;  %v7320_v52 = vld [vmem:[%s11646_s1 + $0x294] sm:$0xf0] }
 0x11c   :  { %3977 = vmatpush.bf16.msra.mxu2 %v6924_v41  ;;  %3990 = vmatpush.bf16.msra.mxu3 %v7052_v63  ;;  %v7749_v41 = vld [vmem:[%s11646_s1 + $0x1004] sm:$0xf]  ;;  %v6985_v63 = vld [vmem:[%s11646_s1 + $0x1110] sm:$0xf0]  ;;  %v3725_v50 = vpop.f32.mrf.mxu2  ;;  %v3738_v54 = vpop.f32.mrf.mxu3  ;;  %v6732_v59 = vor.u32 %v7717_v39, %v6729_v40  ;;  %v5024_v40 = vor.u32 %v7292_v43, %v5023_v30  ;;  %v5135_v51 = vld [vmem:[%s11646_s1 + $0x288] sm:$0xf] }
 0x11d   :  { %v6860_v61 = vor.u32 %v7749_v41, %v6857_v44  ;;  %v6988_v4 = vor.u32 %v7781_v45, %v6985_v63  ;;  %v7256_v44 = vld [vmem:[%s11646_s1 + $0x94] sm:$0xf0]  ;;  %v5007_v45 = vld [vmem:[%s11646_s1 + $0x188] sm:$0xf] }
 0x11e   :  { %v7288_v50 = vld [vmem:[%s11646_s1 + $0x194] sm:$0xf0]  ;;  %v5263_v54 = vld [vmem:[%s11646_s1 + $0x388] sm:$0xf] }
 0x11f   :  { %3952 = vmatpush.bf16.msra.mxu0 %v6652_v56  ;;  %3965 = vmatpush.bf16.msra.mxu1 %v6780_v57  ;;  %v7300_v56 = vld [vmem:[%s11646_s1 + $0x1f4] sm:$0xf0]  ;;  %v5183_v57 = vld [vmem:[%s11646_s1 + $0x2e8] sm:$0xf] }
 0x120   :  { %3978 = vmatpush.bf16.msra.mxu2 %v6908_v58  ;;  %3991 = vmatpush.bf16.msra.mxu3 %v7036_v3  ;;  %v7332_v58 = vld [vmem:[%s11646_s1 + $0x2f4] sm:$0xf0]  ;;  %v5056_v6 = vor.u32 %v7300_v56, %v5055_v53  ;;  %v5247_v9 = vld [vmem:[%s11646_s1 + $0x368] sm:$0xf] }
 0x121   :  { %v7364_v3 = vld [vmem:[%s11646_s1 + $0x3f4] sm:$0xf0]  ;;  %v5184_v7 = vor.u32 %v7332_v58, %v5183_v57  ;;  %v5231_v43 = vld [vmem:[%s11646_s1 + $0x348] sm:$0xf] }
 0x122   :  { %v5312_v11 = vor.u32 %v7364_v3, %v5311_v62  ;;  %v4863_v62 = vld [vmem:[%s11646_s1 + $0x68] sm:$0xf]  ;;  %v7252_v3 = vld [vmem:[%s11646_s1 + $0x74] sm:$0xf0] }
 0x123   :  { %3953 = vmatpush.bf16.msra.mxu0 %v6636_v14  ;;  %3966 = vmatpush.bf16.msra.mxu1 %v6764_v20  ;;  %v5167_v14 = vld [vmem:[%s11646_s1 + $0x2c8] sm:$0xf]  ;;  %v7316_v8 = vld [vmem:[%s11646_s1 + $0x274] sm:$0xf0] }
 0x124   :  { %3979 = vmatpush.bf16.msra.mxu2 %v6892_v21  ;;  %3992 = vmatpush.bf16.msra.mxu3 %v7020_v25  ;;  %v5295_v20 = vld [vmem:[%s11646_s1 + $0x3c8] sm:$0xf]  ;;  %v7360_v21 = vld [vmem:[%s11646_s1 + $0x3d4] sm:$0xf0]  ;;  %v5168_v24 = vor.u32 %v7328_v18, %v5167_v14  ;;  %v4864_v14 = vor.u32 %v7252_v3, %v4863_v62 }
 0x125   :  { %v4895_v25 = vld [vmem:[%s11646_s1 + $0xa8] sm:$0xf]  ;;  %v5296_v31 = vor.u32 %v7360_v21, %v5295_v20  ;;  %v7348_v10 = vld [vmem:[%s11646_s1 + $0x374] sm:$0xf0] }
 0x126   :  { %v4896_v39 = vor.u32 %v7260_v26, %v4895_v25  ;;  %v4847_v21 = vld [vmem:[%s11646_s1 + $0x48] sm:$0xf]  ;;  %v7280_v25 = vld [vmem:[%s11646_s1 + $0x154] sm:$0xf0] }
 0x127   :  { %3954 = vmatpush.bf16.msra.mxu0 %v6620_v33  ;;  %3967 = vmatpush.bf16.msra.mxu1 %v6748_v37  ;;  %v7324_v33 = vld [vmem:[%s11646_s1 + $0x2b4] sm:$0xf0]  ;;  %v5103_v26 = vld [vmem:[%s11646_s1 + $0x248] sm:$0xf] }
 0x128   :  { %3980 = vmatpush.bf16.msra.mxu2 %v6876_v38  ;;  %3993 = vmatpush.bf16.msra.mxu3 %v7004_v42  ;;  %v7356_v37 = vld [vmem:[%s11646_s1 + $0x3b4] sm:$0xf0]  ;;  %v7848_v38 = vld [vmem:[#allocation1 + $0x9] sm:$0xff]  ;;  %v5152_v41 = vor.u32 %v7324_v33, %v5151_v32 }
 0x129   :  { %v4879_v42 = vld [vmem:[%s11646_s1 + $0x88] sm:$0xf]  ;;  %v5280_v63 = vor.u32 %v7356_v37, %v5279_v36  ;;  %v7312_v30 = vld [vmem:[%s11646_s1 + $0x254] sm:$0xf0] }
 0x12a   :  { %v4880_v57 = vor.u32 %v7256_v44, %v4879_v42  ;;  %v7344_v32 = vld [vmem:[%s11646_s1 + $0x354] sm:$0xf0]  ;;  %v4959_v44 = vld [vmem:[%s11646_s1 + $0x128] sm:$0xf] }
 0x12b   :  { %3955 = vmatpush.bf16.msra.mxu0 %v6604_v55  ;;  %3968 = vmatpush.bf16.msra.mxu1 %v6732_v59  ;;  %v3749_v53 = vpop.f32.mrf.mxu0  ;;  %v7352_v55 = vld [vmem:[%s11646_s1 + $0x394] sm:$0xf0]  ;;  %v3762_v58 = vpop.f32.mrf.mxu1  ;;  %v5008_v59 = vor.u32 %v7288_v50, %v5007_v45  ;;  %v5071_v3 = vld [vmem:[%s11646_s1 + $0x208] sm:$0xf] }
 0x12c   :  { %3981 = vmatpush.bf16.msra.mxu2 %v6860_v61  ;;  %3994 = vmatpush.bf16.msra.mxu3 %v6988_v4  ;;  %v3750_v56 = vadd.f32 %v3749_v53, %v9673_v19  ;;  %v5136_v61 = vor.u32 %v7320_v52, %v5135_v51  ;;  %v4991_v4 = vld [vmem:[%s11646_s1 + $0x168] sm:$0xf]  ;;  %v5264_v19 = vor.u32 %v7352_v55, %v5263_v54  ;;  %v7244_v42 = vld [vmem:[%s11646_s1 + $0x34] sm:$0xf0] }
 0x12d   :  { %v7276_v50 = vld [vmem:[%s11646_s1 + $0x134] sm:$0xf0]  ;;  %v5087_v51 = vld [vmem:[%s11646_s1 + $0x228] sm:$0xf] }
 0x12e   :  { %3956 = vmatmul.bf16.vlgmr.msra.gmra.mxu0 %v8737_v47  ;;  %3969 = vmatmul.bf16.vlgmr.msra.gmra.mxu1 %v8741_v49  ;;  %v7308_v52 = vld [vmem:[%s11646_s1 + $0x234] sm:$0xf0]  ;;  %v5215_v53 = vld [vmem:[%s11646_s1 + $0x328] sm:$0xf] }
 0x12f   :  { %4000 = vmatpush.bf16.msrb.mxu0 %v4928_v5  ;;  %4013 = vmatpush.bf16.msrb.mxu1 %v5056_v6  ;;  %v9831_v5 = vadd.f32 %v3762_v58, %v3750_v56  ;;  %v7284_v6 = vld [vmem:[%s11646_s1 + $0x174] sm:$0xf0]  ;;  %v4815_v56 = vld [vmem:[%s11646_s1 + $0x8] sm:$0xf]  ;;  %v4960_v58 = vor.u32 %v7276_v50, %v4959_v44 }
 0x130   :  { %4026 = vmatpush.bf16.msrb.mxu2 %v5184_v7  ;;  %4039 = vmatpush.bf16.msrb.mxu3 %v5312_v11  ;;  %v5119_v7 = vld [vmem:[%s11646_s1 + $0x268] sm:$0xf]  ;;  %v7849_v11 = vld [vmem:[%s11647_s2] sm:$0xf]  ;;  %v4992_v18 = vor.u32 %v7284_v6, %v4991_v4  ;;  %v7340_v54 = vld [vmem:[%s11646_s1 + $0x334] sm:$0xf0] }
 0x131   :  { %3982 = vmatmul.bf16.vlgmr.msra.gmra.mxu2 %v7847_v35  ;;  %3995 = vmatmul.bf16.vlgmr.msra.gmra.mxu3 %v7848_v38  ;;  %v603_v13 = vperm.slane %v7849_v11, 1  ;;  %v5120_v20 = vor.u32 %v7316_v8, %v5119_v7  ;;  %v7272_v62 = vld [vmem:[%s11646_s1 + $0x114] sm:$0xf0]  ;;  %v5216_v4 = vor.u32 %v7340_v54, %v5215_v53  ;;  %v5199_v6 = vld [vmem:[%s11646_s1 + $0x308] sm:$0xf] }
 0x132   :  { %v7336_v7 = vld [vmem:[%s11646_s1 + $0x314] sm:$0xf0]  ;;  %v5567_v11 = vld [vmem:[%s11646_s1 + $0x5e8] sm:$0xf] }
 0x133   :  { %4001 = vmatpush.bf16.msrb.mxu0 %v4912_v22  ;;  %4014 = vmatpush.bf16.msrb.mxu1 %v5040_v23  ;;  %v7248_v22 = vld [vmem:[%s11646_s1 + $0x54] sm:$0xf0]  ;;  %v4975_v23 = vld [vmem:[%s11646_s1 + $0x148] sm:$0xf]  ;;  %v3751_v36 = vpop.f32.mrf.mxu0  ;;  %v3764_v38 = vpop.f32.mrf.mxu1 }
 0x134   :  { %4027 = vmatpush.bf16.msrb.mxu2 %v5168_v24  ;;  %4040 = vmatpush.bf16.msrb.mxu3 %v5296_v31  ;;  %v5248_v24 = vor.u32 %v7348_v10, %v5247_v9  ;;  %v3775_v31 = vpop.f32.mrf.mxu2  ;;  %v3788_v35 = vpop.f32.mrf.mxu3  ;;  %v4848_v37 = vor.u32 %v7248_v22, %v4847_v21  ;;  %v5439_v9 = vld [vmem:[%s11646_s1 + $0x4e8] sm:$0xf]  ;;  %v7396_v10 = vld [vmem:[%s11646_s1 + $0x4f4] sm:$0xf0] }
 0x135   :  { %v3776_v33 = vadd.f32 %v3775_v31, %v603_v13  ;;  %v7460_v21 = vld [vmem:[%s11646_s1 + $0x6f4] sm:$0xf0]  ;;  %v5679_v38 = vld [vmem:[%s11646_s1 + $0x6c8] sm:$0xf] }
 0x136   :  { %v5407_v50 = vld [vmem:[%s11646_s1 + $0x4a8] sm:$0xf]  ;;  %v7420_v54 = vld [vmem:[%s11646_s1 + $0x5b4] sm:$0xf0] }
 0x137   :  { %4002 = vmatpush.bf16.msrb.mxu0 %v4896_v39  ;;  %4015 = vmatpush.bf16.msrb.mxu1 %v5024_v40  ;;  %v4976_v39 = vor.u32 %v7280_v25, %v4975_v23  ;;  %v5104_v40 = vor.u32 %v7312_v30, %v5103_v26  ;;  %v9884_v45 = vadd.f32 %v3788_v35, %v3776_v33  ;;  %v7492_v25 = vld [vmem:[%s11646_s1 + $0x7f4] sm:$0xf0]  ;;  %v5551_v35 = vld [vmem:[%s11646_s1 + $0x5c8] sm:$0xf] }
 0x138   :  { %4028 = vmatpush.bf16.msrb.mxu2 %v5152_v41  ;;  %4041 = vmatpush.bf16.msrb.mxu3 %v5280_v63  ;;  %v4831_v41 = vld [vmem:[%s11646_s1 + $0x28] sm:$0xf]  ;;  %v5232_v63 = vor.u32 %v7344_v32, %v5231_v43  ;;  %v5200_v26 = vor.u32 %v7336_v7, %v5199_v6  ;;  %v5440_v30 = vor.u32 %v7396_v10, %v5439_v9  ;;  %v7392_v33 = vld [vmem:[%s11646_s1 + $0x4d4] sm:$0xf0] }
 0x139   :  { %v4832_v55 = vor.u32 %v7244_v42, %v4831_v41  ;;  %v5423_v32 = vld [vmem:[%s11646_s1 + $0x4c8] sm:$0xf]  ;;  %v7488_v41 = vld [vmem:[%s11646_s1 + $0x7d4] sm:$0xf0] }
 0x13a   :  { %v5424_v42 = vor.u32 %v7392_v33, %v5423_v32  ;;  %v7416_v7 = vld [vmem:[%s11646_s1 + $0x594] sm:$0xf0]  ;;  %v5775_v10 = vld [vmem:[%s11646_s1 + $0x788] sm:$0xf] }
 0x13b   :  { %4003 = vmatpush.bf16.msrb.mxu0 %v4880_v57  ;;  %4016 = vmatpush.bf16.msrb.mxu1 %v5008_v59  ;;  %v7240_v57 = vld [vmem:[%s11646_s1 + $0x14] sm:$0xf0]  ;;  %v5088_v59 = vor.u32 %v7308_v52, %v5087_v51  ;;  %v5535_v52 = vld [vmem:[%s11646_s1 + $0x5a8] sm:$0xf] }
 0x13c   :  { %4029 = vmatpush.bf16.msrb.mxu2 %v5136_v61  ;;  %4042 = vmatpush.bf16.msrb.mxu3 %v5264_v19  ;;  %v4943_v61 = vld [vmem:[%s11646_s1 + $0x108] sm:$0xf]  ;;  %v7304_v19 = vld [vmem:[%s11646_s1 + $0x214] sm:$0xf0]  ;;  %v3777_v8 = vpop.f32.mrf.mxu2  ;;  %v3790_v13 = vpop.f32.mrf.mxu3 }
 0x13d   :  { %v4944_v22 = vor.u32 %v7272_v62, %v4943_v61  ;;  %v5072_v23 = vor.u32 %v7304_v19, %v5071_v3  ;;  %v7388_v51 = vld [vmem:[%s11646_s1 + $0x4b4] sm:$0xf0]  ;;  %v5536_v61 = vor.u32 %v7420_v54, %v5535_v52  ;;  %v5391_v3 = vld [vmem:[%s11646_s1 + $0x488] sm:$0xf] }
 0x13e   :  { %v5519_v19 = vld [vmem:[%s11646_s1 + $0x588] sm:$0xf]  ;;  %v7448_v9 = vld [vmem:[%s11646_s1 + $0x694] sm:$0xf0] }
 0x13f   :  { %4004 = vmatpush.bf16.msrb.mxu0 %v4864_v14  ;;  %4017 = vmatpush.bf16.msrb.mxu1 %v4992_v18  ;;  %v4816_v14 = vor.u32 %v7240_v57, %v4815_v56  ;;  %v7428_v18 = vld [vmem:[%s11646_s1 + $0x5f4] sm:$0xf0]  ;;  %v5791_v57 = vld [vmem:[%s11646_s1 + $0x7a8] sm:$0xf] }
 0x140   :  { %4030 = vmatpush.bf16.msrb.mxu2 %v5120_v20  ;;  %4043 = vmatpush.bf16.msrb.mxu3 %v5248_v24  ;;  %v5695_v20 = vld [vmem:[%s11646_s1 + $0x6e8] sm:$0xf]  ;;  %v5568_v31 = vor.u32 %v7428_v18, %v5567_v11  ;;  %v7452_v56 = vld [vmem:[%s11646_s1 + $0x6b4] sm:$0xf0]  ;;  %v5520_v18 = vor.u32 %v7416_v7, %v5519_v19 }
 0x141   :  { %v5823_v24 = vld [vmem:[%s11646_s1 + $0x7e8] sm:$0xf]  ;;  %v5696_v43 = vor.u32 %v7460_v21, %v5695_v20  ;;  %v7480_v11 = vld [vmem:[%s11646_s1 + $0x794] sm:$0xf0] }
 0x142   :  { %v5824_v36 = vor.u32 %v7492_v25, %v5823_v24  ;;  %v5647_v8 = vld [vmem:[%s11646_s1 + $0x688] sm:$0xf]  ;;  %v7472_v54 = vld [vmem:[%s11646_s1 + $0x754] sm:$0xf0] }
 0x143   :  { %4005 = vmatpush.bf16.msrb.mxu0 %v4848_v37  ;;  %4018 = vmatpush.bf16.msrb.mxu1 %v4976_v39  ;;  %v7424_v37 = vld [vmem:[%s11646_s1 + $0x5d4] sm:$0xf0]  ;;  %v5648_v20 = vor.u32 %v7448_v9, %v5647_v8  ;;  %v5375_v21 = vld [vmem:[%s11646_s1 + $0x468] sm:$0xf] }
 0x144   :  { %4031 = vmatpush.bf16.msrb.mxu2 %v5104_v40  ;;  %4044 = vmatpush.bf16.msrb.mxu3 %v5232_v63  ;;  %v7456_v39 = vld [vmem:[%s11646_s1 + $0x6d4] sm:$0xf0]  ;;  %v5807_v40 = vld [vmem:[%s11646_s1 + $0x7c8] sm:$0xf]  ;;  %v5552_v44 = vor.u32 %v7424_v37, %v5551_v35 }
 0x145   :  { %v5680_v63 = vor.u32 %v7456_v39, %v5679_v38  ;;  %v5808_v53 = vor.u32 %v7488_v41, %v5807_v40  ;;  %v5759_v32 = vld [vmem:[%s11646_s1 + $0x768] sm:$0xf]  ;;  %v7376_v39 = vld [vmem:[%s11646_s1 + $0x454] sm:$0xf0] }
 0x146   :  { %v5359_v38 = vld [vmem:[%s11646_s1 + $0x448] sm:$0xf]  ;;  %v7436_v8 = vld [vmem:[%s11646_s1 + $0x634] sm:$0xf0] }
 0x147   :  { %4006 = vmatpush.bf16.msrb.mxu0 %v4832_v55  ;;  %4019 = vmatpush.bf16.msrb.mxu1 %v4960_v58  ;;  %v5663_v55 = vld [vmem:[%s11646_s1 + $0x6a8] sm:$0xf]  ;;  %v7484_v58 = vld [vmem:[%s11646_s1 + $0x7b4] sm:$0xf0] }
 0x148   :  { %4032 = vmatpush.bf16.msrb.mxu2 %v5088_v59  ;;  %4045 = vmatpush.bf16.msrb.mxu3 %v5216_v4  ;;  %v5408_v59 = vor.u32 %v7388_v51, %v5407_v50  ;;  %v5664_v62 = vor.u32 %v7452_v56, %v5663_v55  ;;  %v7384_v4 = vld [vmem:[%s11646_s1 + $0x494] sm:$0xf0]  ;;  %v5792_v6 = vor.u32 %v7484_v58, %v5791_v57  ;;  %v5487_v40 = vld [vmem:[%s11646_s1 + $0x548] sm:$0xf] }
 0x149   :  { %v5392_v13 = vor.u32 %v7384_v4, %v5391_v3  ;;  %v7440_v50 = vld [vmem:[%s11646_s1 + $0x654] sm:$0xf0]  ;;  %v5360_v55 = vor.u32 %v7376_v39, %v5359_v38  ;;  %v5471_v3 = vld [vmem:[%s11646_s1 + $0x528] sm:$0xf] }
 0x14a   :  { %v5599_v7 = vld [vmem:[%s11646_s1 + $0x628] sm:$0xf]  ;;  %v7588_v38 = vld [vmem:[%s11646_s1 + $0xaf4] sm:$0xf0] }
 0x14b   :  { %4007 = vmatpush.bf16.msrb.mxu0 %v4816_v14  ;;  %4020 = vmatpush.bf16.msrb.mxu1 %v4944_v22  ;;  %v3801_v14 = vpop.f32.mrf.mxu0  ;;  %v7380_v22 = vld [vmem:[%s11646_s1 + $0x474] sm:$0xf0]  ;;  %v3814_v25 = vpop.f32.mrf.mxu1  ;;  %v5727_v9 = vld [vmem:[%s11646_s1 + $0x728] sm:$0xf] }
 0x14c   :  { %4033 = vmatpush.bf16.msrb.mxu2 %v5072_v23  ;;  %4046 = vmatpush.bf16.msrb.mxu3 %v5200_v26  ;;  %v5503_v23 = vld [vmem:[%s11646_s1 + $0x568] sm:$0xf]  ;;  %v3802_v24 = vadd.f32 %v3801_v14, %v9884_v45  ;;  %v5776_v26 = vor.u32 %v7480_v11, %v5775_v10  ;;  %v7476_v45 = vld [vmem:[%s11646_s1 + $0x774] sm:$0xf0]  ;;  %v5376_v35 = vor.u32 %v7380_v22, %v5375_v21 }
 0x14d   :  { %v7468_v10 = vld [vmem:[%s11646_s1 + $0x734] sm:$0xf0]  ;;  %v5455_v21 = vld [vmem:[%s11646_s1 + $0x508] sm:$0xf] }
 0x14e   :  { %4008 = vmatmul.bf16.vlgmr.msrb.gmra.mxu0 %v8233_v28  ;;  %4021 = vmatmul.bf16.vlgmr.msrb.gmra.mxu1 %v8243_v34  ;;  %v3815_v33 = vadd.f32 %v3814_v25, %v3802_v24  ;;  %v7368_v14 = vld [vmem:[%s11646_s1 + $0x414] sm:$0xf0]  ;;  %v5728_v25 = vor.u32 %v7468_v10, %v5727_v9 }
 0x14f   :  { %4052 = vmatpush.bf16.msra.mxu0 %v5440_v30  ;;  %4065 = vmatpush.bf16.msra.mxu1 %v5568_v31  ;;  %v7412_v30 = vld [vmem:[%s11646_s1 + $0x574] sm:$0xf0]  ;;  %v5631_v31 = vld [vmem:[%s11646_s1 + $0x668] sm:$0xf] }
 0x150   :  { %4078 = vmatpush.bf16.msra.mxu2 %v5696_v43  ;;  %4091 = vmatpush.bf16.msra.mxu3 %v5824_v36  ;;  %v7444_v43 = vld [vmem:[%s11646_s1 + $0x674] sm:$0xf0]  ;;  %v5504_v36 = vor.u32 %v7412_v30, %v5503_v23  ;;  %v5583_v23 = vld [vmem:[%s11646_s1 + $0x608] sm:$0xf] }
 0x151   :  { %4034 = vmatmul.bf16.vlgmr.msrb.gmra.mxu2 %v8231_v27  ;;  %4047 = vmatmul.bf16.vlgmr.msrb.gmra.mxu3 %v8235_v29  ;;  %v5632_v37 = vor.u32 %v7444_v43, %v5631_v31  ;;  %v7400_v22 = vld [vmem:[%s11646_s1 + $0x514] sm:$0xf0]  ;;  %v5711_v30 = vld [vmem:[%s11646_s1 + $0x708] sm:$0xf] }
 0x152   :  { %v7464_v31 = vld [vmem:[%s11646_s1 + $0x714] sm:$0xf0]  ;;  %v5456_v39 = vor.u32 %v7400_v22, %v5455_v21 }
 0x153   :  { %4053 = vmatpush.bf16.msra.mxu0 %v5424_v42  ;;  %4066 = vmatpush.bf16.msra.mxu1 %v5552_v44  ;;  %v5760_v42 = vor.u32 %v7476_v45, %v5759_v32  ;;  %v7408_v44 = vld [vmem:[%s11646_s1 + $0x554] sm:$0xf0]  ;;  %v3803_v57 = vpop.f32.mrf.mxu0  ;;  %v3816_v4 = vpop.f32.mrf.mxu1  ;;  %v5951_v32 = vld [vmem:[%s11646_s1 + $0x8e8] sm:$0xf] }
 0x154   :  { %4079 = vmatpush.bf16.msra.mxu2 %v5680_v63  ;;  %4092 = vmatpush.bf16.msra.mxu3 %v5808_v53  ;;  %v3827_v41 = vpop.f32.mrf.mxu2  ;;  %v5615_v63 = vld [vmem:[%s11646_s1 + $0x648] sm:$0xf]  ;;  %v3840_v52 = vpop.f32.mrf.mxu3  ;;  %v5488_v58 = vor.u32 %v7408_v44, %v5487_v40  ;;  %v7524_v45 = vld [vmem:[%s11646_s1 + $0x8f4] sm:$0xf0]  ;;  %v5712_v44 = vor.u32 %v7464_v31, %v5711_v30 }
 0x155   :  { %v3828_v51 = vadd.f32 %v3827_v41, %v3815_v33  ;;  %v5743_v53 = vld [vmem:[%s11646_s1 + $0x748] sm:$0xf]  ;;  %v7552_v57 = vld [vmem:[%s11646_s1 + $0x9d4] sm:$0xf0] }
 0x156   :  { %v5744_v19 = vor.u32 %v7472_v54, %v5743_v53  ;;  %v6079_v33 = vld [vmem:[%s11646_s1 + $0x9e8] sm:$0xf]  ;;  %v7520_v53 = vld [vmem:[%s11646_s1 + $0x8d4] sm:$0xf0] }
 0x157   :  { %4054 = vmatpush.bf16.msra.mxu0 %v5408_v59  ;;  %4067 = vmatpush.bf16.msra.mxu1 %v5536_v61  ;;  %v10074_v56 = vadd.f32 %v3840_v52, %v3828_v51  ;;  %v5616_v59 = vor.u32 %v7440_v50, %v5615_v63  ;;  %v5343_v61 = vld [vmem:[%s11646_s1 + $0x428] sm:$0xf]  ;;  %v5952_v63 = vor.u32 %v7524_v45, %v5951_v32  ;;  %v7548_v10 = vld [vmem:[%s11646_s1 + $0x9b4] sm:$0xf0] }
 0x158   :  { %4080 = vmatpush.bf16.msra.mxu2 %v5664_v62  ;;  %4093 = vmatpush.bf16.msra.mxu3 %v5792_v6  ;;  %v7372_v62 = vld [vmem:[%s11646_s1 + $0x434] sm:$0xf0]  ;;  %v6335_v41 = vld [vmem:[%s11646_s1 + $0xbe8] sm:$0xf] }
 0x159   :  { %v7404_v6 = vld [vmem:[%s11646_s1 + $0x534] sm:$0xf0]  ;;  %v5344_v11 = vor.u32 %v7372_v62, %v5343_v61  ;;  %v5935_v52 = vld [vmem:[%s11646_s1 + $0x8c8] sm:$0xf] }
 0x15a   :  { %v6063_v54 = vld [vmem:[%s11646_s1 + $0x9c8] sm:$0xf]  ;;  %v7616_v62 = vld [vmem:[%s11646_s1 + $0xbd4] sm:$0xf0] }
 0x15b   :  { %4055 = vmatpush.bf16.msra.mxu0 %v5392_v13  ;;  %4068 = vmatpush.bf16.msra.mxu1 %v5520_v18  ;;  %v5327_v13 = vld [vmem:[%s11646_s1 + $0x408] sm:$0xf]  ;;  %v5472_v18 = vor.u32 %v7404_v6, %v5471_v3  ;;  %v5936_v3 = vor.u32 %v7520_v53, %v5935_v52  ;;  %v6064_v4 = vor.u32 %v7552_v57, %v6063_v54  ;;  %v7544_v30 = vld [vmem:[%s11646_s1 + $0x994] sm:$0xf0] }
 0x15c   :  { %4081 = vmatpush.bf16.msra.mxu2 %v5648_v20  ;;  %4094 = vmatpush.bf16.msra.mxu3 %v5776_v26  ;;  %v5600_v20 = vor.u32 %v7436_v8, %v5599_v7  ;;  %v3829_v24 = vpop.f32.mrf.mxu2  ;;  %v7432_v26 = vld [vmem:[%s11646_s1 + $0x614] sm:$0xf0]  ;;  %v3842_v43 = vpop.f32.mrf.mxu3  ;;  %v6319_v61 = vld [vmem:[%s11646_s1 + $0xbc8] sm:$0xf] }
 0x15d   :  { %v5584_v40 = vor.u32 %v7432_v26, %v5583_v23  ;;  %v5919_v6 = vld [vmem:[%s11646_s1 + $0x8a8] sm:$0xf]  ;;  %v7516_v7 = vld [vmem:[%s11646_s1 + $0x8b4] sm:$0xf0]  ;;  %v6320_v9 = vor.u32 %v7616_v62, %v6319_v61 }
 0x15e   :  { %v6047_v8 = vld [vmem:[%s11646_s1 + $0x9a8] sm:$0xf]  ;;  %v7512_v24 = vld [vmem:[%s11646_s1 + $0x894] sm:$0xf0] }
 0x15f   :  { %4056 = vmatpush.bf16.msra.mxu0 %v5376_v35  ;;  %4069 = vmatpush.bf16.msra.mxu1 %v5504_v36  ;;  %v5328_v35 = vor.u32 %v7368_v14, %v5327_v13  ;;  %v7556_v36 = vld [vmem:[%s11646_s1 + $0x9f4] sm:$0xf0]  ;;  %v6303_v14 = vld [vmem:[%s11646_s1 + $0xba8] sm:$0xf]  ;;  %v6048_v21 = vor.u32 %v7548_v10, %v6047_v8 }
 0x160   :  { %4082 = vmatpush.bf16.msra.mxu2 %v5632_v37  ;;  %4095 = vmatpush.bf16.msra.mxu3 %v5760_v42  ;;  %v6207_v37 = vld [vmem:[%s11646_s1 + $0xae8] sm:$0xf]  ;;  %v7620_v42 = vld [vmem:[%s11646_s1 + $0xbf4] sm:$0xf0]  ;;  %v6080_v50 = vor.u32 %v7556_v36, %v6079_v33 }
 0x161   :  { %v6208_v51 = vor.u32 %v7588_v38, %v6207_v37  ;;  %v7580_v13 = vld [vmem:[%s11646_s1 + $0xab4] sm:$0xf0]  ;;  %v5903_v23 = vld [vmem:[%s11646_s1 + $0x888] sm:$0xf] }
 0x162   :  { %v6159_v31 = vld [vmem:[%s11646_s1 + $0xa88] sm:$0xf]  ;;  %v7576_v43 = vld [vmem:[%s11646_s1 + $0xa94] sm:$0xf0]  ;;  %v5904_v36 = vor.u32 %v7512_v24, %v5903_v23 }
 0x163   :  { %4057 = vmatpush.bf16.msra.mxu0 %v5360_v55  ;;  %4070 = vmatpush.bf16.msra.mxu1 %v5488_v58  ;;  %v6336_v55 = vor.u32 %v7620_v42, %v6335_v41  ;;  %v6191_v58 = vld [vmem:[%s11646_s1 + $0xac8] sm:$0xf]  ;;  %v7608_v33 = vld [vmem:[%s11646_s1 + $0xb94] sm:$0xf0] }
 0x164   :  { %4083 = vmatpush.bf16.msra.mxu2 %v5616_v59  ;;  %4096 = vmatpush.bf16.msra.mxu3 %v5744_v19  ;;  %v7584_v59 = vld [vmem:[%s11646_s1 + $0xad4] sm:$0xf0]  ;;  %v6287_v45 = vld [vmem:[%s11646_s1 + $0xb88] sm:$0xf] }
 0x165   :  { %v6192_v19 = vor.u32 %v7584_v59, %v6191_v58  ;;  %v7508_v41 = vld [vmem:[%s11646_s1 + $0x874] sm:$0xf0]  ;;  %v6015_v42 = vld [vmem:[%s11646_s1 + $0x968] sm:$0xf] }
 0x166   :  { %v6271_v52 = vld [vmem:[%s11646_s1 + $0xb68] sm:$0xf]  ;;  %v7604_v53 = vld [vmem:[%s11646_s1 + $0xb74] sm:$0xf0] }
 0x167   :  { %4058 = vmatpush.bf16.msra.mxu0 %v5344_v11  ;;  %4071 = vmatpush.bf16.msra.mxu1 %v5472_v18  ;;  %v6175_v11 = vld [vmem:[%s11646_s1 + $0xaa8] sm:$0xf]  ;;  %v7612_v18 = vld [vmem:[%s11646_s1 + $0xbb4] sm:$0xf0]  ;;  %v6272_v62 = vor.u32 %v7604_v53, %v6271_v52 }
 0x168   :  { %4084 = vmatpush.bf16.msra.mxu2 %v5600_v20  ;;  %4097 = vmatpush.bf16.msra.mxu3 %v5728_v25  ;;  %v5920_v20 = vor.u32 %v7516_v7, %v5919_v6  ;;  %v6176_v22 = vor.u32 %v7580_v13, %v6175_v11  ;;  %v6031_v25 = vld [vmem:[%s11646_s1 + $0x988] sm:$0xf]  ;;  %v6304_v26 = vor.u32 %v7612_v18, %v6303_v14  ;;  %v7504_v59 = vld [vmem:[%s11646_s1 + $0x854] sm:$0xf0] }
 0x169   :  { %v6032_v38 = vor.u32 %v7544_v30, %v6031_v25  ;;  %v5871_v58 = vld [vmem:[%s11646_s1 + $0x848] sm:$0xf]  ;;  %v7568_v6 = vld [vmem:[%s11646_s1 + $0xa54] sm:$0xf0] }
 0x16a   :  { %v5999_v61 = vld [vmem:[%s11646_s1 + $0x948] sm:$0xf]  ;;  %v7600_v10 = vld [vmem:[%s11646_s1 + $0xb54] sm:$0xf0]  ;;  %v5872_v13 = vor.u32 %v7504_v59, %v5871_v58 }
 0x16b   :  { %4059 = vmatpush.bf16.msra.mxu0 %v5328_v35  ;;  %4072 = vmatpush.bf16.msra.mxu1 %v5456_v39  ;;  %v3853_v32 = vpop.f32.mrf.mxu0  ;;  %v3866_v37 = vpop.f32.mrf.mxu1  ;;  %v6160_v39 = vor.u32 %v7576_v43, %v6159_v31  ;;  %v7500_v23 = vld [vmem:[%s11646_s1 + $0x834] sm:$0xf0]  ;;  %v5983_v24 = vld [vmem:[%s11646_s1 + $0x928] sm:$0xf] }
 0x16c   :  { %4085 = vmatpush.bf16.msra.mxu2 %v5584_v40  ;;  %4098 = vmatpush.bf16.msra.mxu3 %v5712_v44  ;;  %v3854_v35 = vadd.f32 %v3853_v32, %v10074_v56  ;;  %v5887_v40 = vld [vmem:[%s11646_s1 + $0x868] sm:$0xf]  ;;  %v6288_v56 = vor.u32 %v7608_v33, %v6287_v45  ;;  %v7564_v31 = vld [vmem:[%s11646_s1 + $0xa34] sm:$0xf0] }
 0x16d   :  { %v5888_v54 = vor.u32 %v7508_v41, %v5887_v40  ;;  %v6111_v30 = vld [vmem:[%s11646_s1 + $0xa28] sm:$0xf]  ;;  %v7596_v32 = vld [vmem:[%s11646_s1 + $0xb34] sm:$0xf0] }
 0x16e   :  { %4060 = vmatmul.bf16.vlgmr.msra.gmra.mxu0 %v8311_v0  ;;  %4073 = vmatmul.bf16.vlgmr.msra.gmra.mxu1 %v8315_v2  ;;  %v3867_v44 = vadd.f32 %v3866_v37, %v3854_v35  ;;  %v6239_v43 = vld [vmem:[%s11646_s1 + $0xb28] sm:$0xf]  ;;  %v7496_v35 = vld [vmem:[%s11646_s1 + $0x814] sm:$0xf0]  ;;  %v6112_v37 = vor.u32 %v7564_v31, %v6111_v30 }
 0x16f   :  { %4104 = vmatpush.bf16.msrb.mxu0 %v5952_v63  ;;  %4117 = vmatpush.bf16.msrb.mxu1 %v6080_v50  ;;  %v7540_v63 = vld [vmem:[%s11646_s1 + $0x974] sm:$0xf0]  ;;  %v6143_v50 = vld [vmem:[%s11646_s1 + $0xa68] sm:$0xf]  ;;  %v6240_v41 = vor.u32 %v7596_v32, %v6239_v43 }
 0x170   :  { %4130 = vmatpush.bf16.msrb.mxu2 %v6208_v51  ;;  %4143 = vmatpush.bf16.msrb.mxu3 %v6336_v55  ;;  %v7572_v51 = vld [vmem:[%s11646_s1 + $0xa74] sm:$0xf0]  ;;  %v6016_v55 = vor.u32 %v7540_v63, %v6015_v42  ;;  %v5839_v33 = vld [vmem:[%s11646_s1 + $0x808] sm:$0xf] }
 0x171   :  { %4086 = vmatmul.bf16.vlgmr.msra.gmra.mxu2 %v8306_v60  ;;  %4099 = vmatmul.bf16.vlgmr.msra.gmra.mxu3 %v8313_v1  ;;  %v6144_v57 = vor.u32 %v7572_v51, %v6143_v50  ;;  %v6095_v40 = vld [vmem:[%s11646_s1 + $0xa08] sm:$0xf]  ;;  %v7560_v42 = vld [vmem:[%s11646_s1 + $0xa14] sm:$0xf0] }
 0x172   :  { %v6463_v50 = vld [vmem:[%s11646_s1 + $0xce8] sm:$0xf]  ;;  %v7652_v51 = vld [vmem:[%s11646_s1 + $0xcf4] sm:$0xf0] }
 0x173   :  { %4105 = vmatpush.bf16.msrb.mxu0 %v5936_v3  ;;  %4118 = vmatpush.bf16.msrb.mxu1 %v6064_v4  ;;  %v7536_v4 = vld [vmem:[%s11646_s1 + $0x954] sm:$0xf0]  ;;  %v3855_v11 = vpop.f32.mrf.mxu0  ;;  %v3868_v14 = vpop.f32.mrf.mxu1  ;;  %v6591_v52 = vld [vmem:[%s11646_s1 + $0xde8] sm:$0xf] }
 0x174   :  { %4131 = vmatpush.bf16.msrb.mxu2 %v6192_v19  ;;  %4144 = vmatpush.bf16.msrb.mxu3 %v6320_v9  ;;  %v3879_v3 = vpop.f32.mrf.mxu2  ;;  %v6127_v19 = vld [vmem:[%s11646_s1 + $0xa48] sm:$0xf]  ;;  %v3892_v8 = vpop.f32.mrf.mxu3  ;;  %v7716_v58 = vld [vmem:[%s11646_s1 + $0xef4] sm:$0xf0] }
 0x175   :  { %v3880_v7 = vadd.f32 %v3879_v3, %v3867_v44  ;;  %v6255_v9 = vld [vmem:[%s11646_s1 + $0xb48] sm:$0xf]  ;;  %v7592_v44 = vld [vmem:[%s11646_s1 + $0xb14] sm:$0xf0] }
 0x176   :  { %v6256_v25 = vor.u32 %v7600_v10, %v6255_v9  ;;  %v7748_v3 = vld [vmem:[%s11646_s1 + $0xff4] sm:$0xf0]  ;;  %v6575_v10 = vld [vmem:[%s11646_s1 + $0xdc8] sm:$0xf] }
 0x177   :  { %4106 = vmatpush.bf16.msrb.mxu0 %v5920_v20  ;;  %4119 = vmatpush.bf16.msrb.mxu1 %v6048_v21  ;;  %v10273_v18 = vadd.f32 %v3892_v8, %v3880_v7  ;;  %v6000_v20 = vor.u32 %v7536_v4, %v5999_v61  ;;  %v6128_v21 = vor.u32 %v7568_v6, %v6127_v19  ;;  %v6447_v8 = vld [vmem:[%s11646_s1 + $0xcc8] sm:$0xf]  ;;  %v7648_v9 = vld [vmem:[%s11646_s1 + $0xcd4] sm:$0xf0] }
 0x178   :  { %4132 = vmatpush.bf16.msrb.mxu2 %v6176_v22  ;;  %4145 = vmatpush.bf16.msrb.mxu3 %v6304_v26  ;;  %v5855_v22 = vld [vmem:[%s11646_s1 + $0x828] sm:$0xf]  ;;  %v7532_v26 = vld [vmem:[%s11646_s1 + $0x934] sm:$0xf0]  ;;  %v6096_v61 = vor.u32 %v7560_v42, %v6095_v40  ;;  %v6464_v19 = vor.u32 %v7652_v51, %v6463_v50 }
 0x179   :  { %v5856_v45 = vor.u32 %v7500_v23, %v5855_v22  ;;  %v6703_v14 = vld [vmem:[%s11646_s1 + $0xec8] sm:$0xf]  ;;  %v7744_v22 = vld [vmem:[%s11646_s1 + $0xfd4] sm:$0xf0]  ;;  %v6448_v23 = vor.u32 %v7648_v9, %v6447_v8 }
 0x17a   :  { %v7644_v30 = vld [vmem:[%s11646_s1 + $0xcb4] sm:$0xf0]  ;;  %v6559_v31 = vld [vmem:[%s11646_s1 + $0xda8] sm:$0xf] }
 0x17b   :  { %4107 = vmatpush.bf16.msrb.mxu0 %v5904_v36  ;;  %4120 = vmatpush.bf16.msrb.mxu1 %v6032_v38  ;;  %v5984_v36 = vor.u32 %v7532_v26, %v5983_v24  ;;  %v5967_v38 = vld [vmem:[%s11646_s1 + $0x908] sm:$0xf]  ;;  %v7676_v32 = vld [vmem:[%s11646_s1 + $0xdb4] sm:$0xf0] }
 0x17c   :  { %4133 = vmatpush.bf16.msrb.mxu2 %v6160_v39  ;;  %4146 = vmatpush.bf16.msrb.mxu3 %v6288_v56  ;;  %v7528_v39 = vld [vmem:[%s11646_s1 + $0x914] sm:$0xf0]  ;;  %v6223_v56 = vld [vmem:[%s11646_s1 + $0xb08] sm:$0xf]  ;;  %v3881_v63 = vpop.f32.mrf.mxu2  ;;  %v3894_v53 = vpop.f32.mrf.mxu3 }
 0x17d   :  { %v5968_v59 = vor.u32 %v7528_v39, %v5967_v38  ;;  %v6224_v4 = vor.u32 %v7592_v44, %v6223_v56  ;;  %v6431_v26 = vld [vmem:[%s11646_s1 + $0xca8] sm:$0xf]  ;;  %v6560_v38 = vor.u32 %v7676_v32, %v6559_v31  ;;  %v7672_v44 = vld [vmem:[%s11646_s1 + $0xd94] sm:$0xf0] }
 0x17e   :  { %v6415_v40 = vld [vmem:[%s11646_s1 + $0xc88] sm:$0xf]  ;;  %v7704_v50 = vld [vmem:[%s11646_s1 + $0xe94] sm:$0xf0] }
 0x17f   :  { %4108 = vmatpush.bf16.msrb.mxu0 %v5888_v54  ;;  %4121 = vmatpush.bf16.msrb.mxu1 %v6016_v55  ;;  %v5840_v54 = vor.u32 %v7496_v35, %v5839_v33  ;;  %v7684_v55 = vld [vmem:[%s11646_s1 + $0xdf4] sm:$0xf0]  ;;  %v6815_v35 = vld [vmem:[%s11646_s1 + $0xfa8] sm:$0xf] }
 0x180   :  { %4134 = vmatpush.bf16.msrb.mxu2 %v6144_v57  ;;  %4147 = vmatpush.bf16.msrb.mxu3 %v6272_v62  ;;  %v6719_v57 = vld [vmem:[%s11646_s1 + $0xee8] sm:$0xf]  ;;  %v6592_v6 = vor.u32 %v7684_v55, %v6591_v52  ;;  %v7708_v33 = vld [vmem:[%s11646_s1 + $0xeb4] sm:$0xf0] }
 0x181   :  { %v6847_v62 = vld [vmem:[%s11646_s1 + $0xfe8] sm:$0xf]  ;;  %v6720_v7 = vor.u32 %v7716_v58, %v6719_v57  ;;  %v7736_v53 = vld [vmem:[%s11646_s1 + $0xf94] sm:$0xf0] }
 0x182   :  { %v6848_v11 = vor.u32 %v7748_v3, %v6847_v62  ;;  %v6543_v42 = vld [vmem:[%s11646_s1 + $0xd88] sm:$0xf]  ;;  %v7636_v62 = vld [vmem:[%s11646_s1 + $0xc74] sm:$0xf0] }
 0x183   :  { %4109 = vmatpush.bf16.msrb.mxu0 %v5872_v13  ;;  %4122 = vmatpush.bf16.msrb.mxu1 %v6000_v20  ;;  %v7680_v13 = vld [vmem:[%s11646_s1 + $0xdd4] sm:$0xf0]  ;;  %v6671_v63 = vld [vmem:[%s11646_s1 + $0xe88] sm:$0xf]  ;;  %v6544_v58 = vor.u32 %v7672_v44, %v6543_v42 }
 0x184   :  { %4135 = vmatpush.bf16.msrb.mxu2 %v6128_v21  ;;  %4148 = vmatpush.bf16.msrb.mxu3 %v6256_v25  ;;  %v7712_v20 = vld [vmem:[%s11646_s1 + $0xed4] sm:$0xf0]  ;;  %v6831_v21 = vld [vmem:[%s11646_s1 + $0xfc8] sm:$0xf]  ;;  %v6576_v24 = vor.u32 %v7680_v13, %v6575_v10 }
 0x185   :  { %v6704_v25 = vor.u32 %v7712_v20, %v6703_v14  ;;  %v6832_v43 = vor.u32 %v7744_v22, %v6831_v21  ;;  %v6799_v52 = vld [vmem:[%s11646_s1 + $0xf88] sm:$0xf]  ;;  %v7732_v9 = vld [vmem:[%s11646_s1 + $0xf74] sm:$0xf0] }
 0x186   :  { %v6527_v3 = vld [vmem:[%s11646_s1 + $0xd68] sm:$0xf]  ;;  %v7632_v20 = vld [vmem:[%s11646_s1 + $0xc54] sm:$0xf0] }
 0x187   :  { %4110 = vmatpush.bf16.msrb.mxu0 %v5856_v45  ;;  %4123 = vmatpush.bf16.msrb.mxu1 %v5984_v36  ;;  %v6687_v45 = vld [vmem:[%s11646_s1 + $0xea8] sm:$0xf]  ;;  %v7740_v36 = vld [vmem:[%s11646_s1 + $0xfb4] sm:$0xf0] }
 0x188   :  { %4136 = vmatpush.bf16.msrb.mxu2 %v6112_v37  ;;  %4149 = vmatpush.bf16.msrb.mxu3 %v6240_v41  ;;  %v6432_v37 = vor.u32 %v7644_v30, %v6431_v26  ;;  %v6688_v39 = vor.u32 %v7708_v33, %v6687_v45  ;;  %v7640_v41 = vld [vmem:[%s11646_s1 + $0xc94] sm:$0xf0]  ;;  %v6816_v56 = vor.u32 %v7740_v36, %v6815_v35  ;;  %v6783_v8 = vld [vmem:[%s11646_s1 + $0xf68] sm:$0xf] }
 0x189   :  { %v6416_v55 = vor.u32 %v7640_v41, %v6415_v40  ;;  %v6383_v14 = vld [vmem:[%s11646_s1 + $0xc48] sm:$0xf]  ;;  %v6784_v22 = vor.u32 %v7732_v9, %v6783_v8  ;;  %v7696_v26 = vld [vmem:[%s11646_s1 + $0xe54] sm:$0xf0] }
 0x18a   :  { %v6511_v21 = vld [vmem:[%s11646_s1 + $0xd48] sm:$0xf]  ;;  %v7728_v32 = vld [vmem:[%s11646_s1 + $0xf54] sm:$0xf0]  ;;  %v6384_v33 = vor.u32 %v7632_v20, %v6383_v14  ;;  %v4929_v14 = vld [vmem:[%s11646_s1 + $0xf8] sm:$0xf0] }
 0x18b   :  { %4111 = vmatpush.bf16.msrb.mxu0 %v5840_v54  ;;  %4124 = vmatpush.bf16.msrb.mxu1 %v5968_v59  ;;  %v3905_v51 = vpop.f32.mrf.mxu0  ;;  %v3918_v57 = vpop.f32.mrf.mxu1  ;;  %v6672_v59 = vor.u32 %v7704_v50, %v6671_v63  ;;  %v7628_v40 = vld [vmem:[%s11646_s1 + $0xc34] sm:$0xf0]  ;;  %v6495_v41 = vld [vmem:[%s11646_s1 + $0xd28] sm:$0xf] }
 0x18c   :  { %4137 = vmatpush.bf16.msrb.mxu2 %v6096_v61  ;;  %4150 = vmatpush.bf16.msrb.mxu3 %v6224_v4  ;;  %v3906_v54 = vadd.f32 %v3905_v51, %v10273_v18  ;;  %v6399_v61 = vld [vmem:[%s11646_s1 + $0xc68] sm:$0xf]  ;;  %v6800_v18 = vor.u32 %v7736_v53, %v6799_v52  ;;  %v7692_v63 = vld [vmem:[%s11646_s1 + $0xe34] sm:$0xf0] }
 0x18d   :  { %v6400_v10 = vor.u32 %v7636_v62, %v6399_v61  ;;  %v6623_v44 = vld [vmem:[%s11646_s1 + $0xe28] sm:$0xf]  ;;  %v7724_v51 = vld [vmem:[%s11646_s1 + $0xf34] sm:$0xf0] }
 0x18e   :  { %4112 = vmatmul.bf16.vlgmr.msrb.gmra.mxu0 %v8561_v12  ;;  %4125 = vmatmul.bf16.vlgmr.msrb.gmra.mxu1 %v8571_v16  ;;  %v3919_v4 = vadd.f32 %v3918_v57, %v3906_v54  ;;  %v6751_v50 = vld [vmem:[%s11646_s1 + $0xf28] sm:$0xf]  ;;  %v7624_v54 = vld [vmem:[%s11646_s1 + $0xc14] sm:$0xf0]  ;;  %v6624_v57 = vor.u32 %v7692_v63, %v6623_v44 }
 0x18f   :  { %4156 = vmatpush.bf16.msra.mxu0 %v6464_v19  ;;  %4169 = vmatpush.bf16.msra.mxu1 %v6592_v6  ;;  %v7668_v19 = vld [vmem:[%s11646_s1 + $0xd74] sm:$0xf0]  ;;  %v6655_v6 = vld [vmem:[%s11646_s1 + $0xe68] sm:$0xf]  ;;  %v6752_v62 = vor.u32 %v7724_v51, %v6751_v50 }
 0x190   :  { %4182 = vmatpush.bf16.msra.mxu2 %v6720_v7  ;;  %4195 = vmatpush.bf16.msra.mxu3 %v6848_v11  ;;  %v7700_v7 = vld [vmem:[%s11646_s1 + $0xe74] sm:$0xf0]  ;;  %v6528_v11 = vor.u32 %v7668_v19, %v6527_v3  ;;  %v6351_v53 = vld [vmem:[%s11646_s1 + $0xc08] sm:$0xf] }
 0x191   :  { %4138 = vmatmul.bf16.vlgmr.msrb.gmra.mxu2 %v8569_v15  ;;  %4151 = vmatmul.bf16.vlgmr.msrb.gmra.mxu3 %v8573_v17  ;;  %v6656_v13 = vor.u32 %v7700_v7, %v6655_v6  ;;  %v6607_v61 = vld [vmem:[%s11646_s1 + $0xe08] sm:$0xf]  ;;  %v7688_v3 = vld [vmem:[%s11646_s1 + $0xe14] sm:$0xf0] }
 0x192   :  { %v6975_v6 = vld [vmem:[%s11646_s1 + $0x10e8] sm:$0xf]  ;;  %v7780_v7 = vld [vmem:[%s11646_s1 + $0x10f4] sm:$0xf0] }
 0x193   :  { %4157 = vmatpush.bf16.msra.mxu0 %v6448_v23  ;;  %4170 = vmatpush.bf16.msra.mxu1 %v6576_v24  ;;  %v7664_v24 = vld [vmem:[%s11646_s1 + $0xd54] sm:$0xf0]  ;;  %v3907_v45 = vpop.f32.mrf.mxu0  ;;  %v3920_v35 = vpop.f32.mrf.mxu1  ;;  %v7103_v8 = vld [vmem:[%s11646_s1 + $0x11e8] sm:$0xf] }
 0x194   :  { %4183 = vmatpush.bf16.msra.mxu2 %v6704_v25  ;;  %4196 = vmatpush.bf16.msra.mxu3 %v6832_v43  ;;  %v3931_v23 = vpop.f32.mrf.mxu2  ;;  %v6639_v25 = vld [vmem:[%s11646_s1 + $0xe48] sm:$0xf]  ;;  %v3944_v31 = vpop.f32.mrf.mxu3  ;;  %v7262_v35 = vld [vmem:[%s11646_s1 + $0xcc] sm:$0xf]  ;;  %v7772_v44 = vld [vmem:[%s11646_s1 + $0x10b4] sm:$0xf0] }
 0x195   :  { %v3932_v30 = vadd.f32 %v3931_v23, %v3919_v4  ;;  %v6767_v43 = vld [vmem:[%s11646_s1 + $0xf48] sm:$0xf]  ;;  %v7720_v4 = vld [vmem:[%s11646_s1 + $0xf14] sm:$0xf0]  ;;  %v5057_v23 = vld [vmem:[%s11646_s1 + $0x1f8] sm:$0xf0] }
 0x196   :  { %v6768_v42 = vor.u32 %v7728_v32, %v6767_v43  ;;  %v7776_v43 = vld [vmem:[%s11646_s1 + $0x10d4] sm:$0xf0]  ;;  %v7087_v32 = vld [vmem:[%s11646_s1 + $0x11c8] sm:$0xf] }
 0x197   :  { %4158 = vmatpush.bf16.msra.mxu0 %v6432_v37  ;;  %4171 = vmatpush.bf16.msra.mxu1 %v6560_v38  ;;  %v10472_v36 = vadd.f32 %v3944_v31, %v3932_v30  ;;  %v6512_v37 = vor.u32 %v7664_v24, %v6511_v21  ;;  %v6640_v38 = vor.u32 %v7696_v26, %v6639_v25  ;;  %v6959_v31 = vld [vmem:[%s11646_s1 + $0x10c8] sm:$0xf]  ;;  %v7804_v51 = vld [vmem:[%s11646_s1 + $0x11b4] sm:$0xf0] }
 0x198   :  { %4184 = vmatpush.bf16.msra.mxu2 %v6688_v39  ;;  %4197 = vmatpush.bf16.msra.mxu3 %v6816_v56  ;;  %v6367_v39 = vld [vmem:[%s11646_s1 + $0xc28] sm:$0xf]  ;;  %v7660_v56 = vld [vmem:[%s11646_s1 + $0xd34] sm:$0xf0]  ;;  %v6608_v21 = vor.u32 %v7688_v3, %v6607_v61  ;;  %v6976_v25 = vor.u32 %v7780_v7, %v6975_v6  ;;  %v4881_v6 = vld [vmem:[%s11646_s1 + $0x98] sm:$0xf0] }
 0x199   :  { %v6368_v52 = vor.u32 %v7628_v40, %v6367_v39  ;;  %v5041_v39 = vld [vmem:[%s11646_s1 + $0x1d8] sm:$0xf0]  ;;  %v6960_v40 = vor.u32 %v7776_v43, %v6959_v31  ;;  %v7071_v63 = vld [vmem:[%s11646_s1 + $0x11a8] sm:$0xf]  ;;  %v7282_v31 = vld [vmem:[%s11646_s1 + $0x16c] sm:$0xf] }
 0x19a   :  { %v6927_v61 = vld [vmem:[%s11646_s1 + $0x1088] sm:$0xf]  ;;  %v4993_v43 = vld [vmem:[%s11646_s1 + $0x178] sm:$0xf0] }
 0x19b   :  { %4159 = vmatpush.bf16.msra.mxu0 %v6416_v55  ;;  %4172 = vmatpush.bf16.msra.mxu1 %v6544_v58  ;;  %v6496_v55 = vor.u32 %v7660_v56, %v6495_v41  ;;  %v6479_v58 = vld [vmem:[%s11646_s1 + $0xd08] sm:$0xf] }
 0x19c   :  { %4185 = vmatpush.bf16.msra.mxu2 %v6672_v59  ;;  %4198 = vmatpush.bf16.msra.mxu3 %v6800_v18  ;;  %v7656_v59 = vld [vmem:[%s11646_s1 + $0xd14] sm:$0xf0]  ;;  %v6735_v18 = vld [vmem:[%s11646_s1 + $0xf08] sm:$0xf]  ;;  %v3933_v19 = vpop.f32.mrf.mxu2  ;;  %v3946_v9 = vpop.f32.mrf.mxu3 }
 0x19d   :  { %v6480_v20 = vor.u32 %v7656_v59, %v6479_v58  ;;  %v6736_v24 = vor.u32 %v7720_v4, %v6735_v18  ;;  %v6943_v56 = vld [vmem:[%s11646_s1 + $0x10a8] sm:$0xf]  ;;  %v7072_v58 = vor.u32 %v7804_v51, %v7071_v63  ;;  %v7800_v4 = vld [vmem:[%s11646_s1 + $0x1194] sm:$0xf0]  ;;  %v7254_v19 = vld [vmem:[%s11646_s1 + $0x8c] sm:$0xf] }
 0x19e   :  { %v7055_v3 = vld [vmem:[%s11646_s1 + $0x1188] sm:$0xf]  ;;  %v5009_v9 = vld [vmem:[%s11646_s1 + $0x198] sm:$0xf0] }
 0x19f   :  { %4160 = vmatpush.bf16.msra.mxu0 %v6400_v10  ;;  %4173 = vmatpush.bf16.msra.mxu1 %v6528_v11  ;;  %v6352_v10 = vor.u32 %v7624_v54, %v6351_v53  ;;  %v7812_v11 = vld [vmem:[%s11646_s1 + $0x11f4] sm:$0xf0]  ;;  %v4897_v53 = vld [vmem:[%s11646_s1 + $0xb8] sm:$0xf0]  ;;  %v7290_v54 = vld [vmem:[%s11646_s1 + $0x1ac] sm:$0xf] }
 0x1a0   :  { %4186 = vmatpush.bf16.msra.mxu2 %v6656_v13  ;;  %4199 = vmatpush.bf16.msra.mxu3 %v6784_v22  ;;  %v7266_v13 = vld [vmem:[%s11646_s1 + $0xec] sm:$0xf]  ;;  %v7104_v26 = vor.u32 %v7812_v11, %v7103_v8  ;;  %v4977_v51 = vld [vmem:[%s11646_s1 + $0x158] sm:$0xf0] }
 0x1a1   :  { %v7298_v22 = vld [vmem:[%s11646_s1 + $0x1ec] sm:$0xf]  ;;  %v4932_v30 = vor.u32 %v7266_v13, %v4929_v14  ;;  %v7056_v14 = vor.u32 %v7800_v4, %v7055_v3 }
 0x1a2   :  { %v5060_v45 = vor.u32 %v7298_v22, %v5057_v23  ;;  %v7286_v8 = vld [vmem:[%s11646_s1 + $0x18c] sm:$0xf]  ;;  %v7764_v22 = vld [vmem:[%s11646_s1 + $0x1074] sm:$0xf0]  ;;  %v7039_v23 = vld [vmem:[%s11646_s1 + $0x1168] sm:$0xf] }
 0x1a3   :  { %4161 = vmatpush.bf16.msra.mxu0 %v6384_v33  ;;  %4174 = vmatpush.bf16.msra.mxu1 %v6512_v37  ;;  %v7808_v33 = vld [vmem:[%s11646_s1 + $0x11d4] sm:$0xf0]  ;;  %v4913_v37 = vld [vmem:[%s11646_s1 + $0xd8] sm:$0xf0]  ;;  %v7242_v4 = vld [vmem:[%s11646_s1 + $0x2c] sm:$0xf] }
 0x1a4   :  { %4187 = vmatpush.bf16.msra.mxu2 %v6640_v38  ;;  %4200 = vmatpush.bf16.msra.mxu3 %v6768_v42  ;;  %v7294_v38 = vld [vmem:[%s11646_s1 + $0x1cc] sm:$0xf]  ;;  %v7088_v41 = vor.u32 %v7808_v33, %v7087_v32  ;;  %v4916_v42 = vor.u32 %v7262_v35, %v4913_v37  ;;  %v6895_v35 = vld [vmem:[%s11646_s1 + $0x1048] sm:$0xf]  ;;  %v7760_v37 = vld [vmem:[%s11646_s1 + $0x1054] sm:$0xf0] }
 0x1a5   :  { %v5044_v50 = vor.u32 %v7294_v38, %v5041_v39  ;;  %v7023_v38 = vld [vmem:[%s11646_s1 + $0x1148] sm:$0xf]  ;;  %v4996_v39 = vor.u32 %v7282_v31, %v4993_v43  ;;  %v7362_v31 = vld [vmem:[%s11646_s1 + $0x3ec] sm:$0xf] }
 0x1a7   :  { %4162 = vmatpush.bf16.msra.mxu0 %v6368_v52  ;;  %4175 = vmatpush.bf16.msra.mxu1 %v6496_v55  ;;  %v7258_v52 = vld [vmem:[%s11646_s1 + $0xac] sm:$0xf]  ;;  %v5025_v55 = vld [vmem:[%s11646_s1 + $0x1b8] sm:$0xf0] }
 0x1a8   :  { %4188 = vmatpush.bf16.msra.mxu2 %v6624_v57  ;;  %4201 = vmatpush.bf16.msra.mxu3 %v6752_v62  ;;  %v6944_v57 = vor.u32 %v7772_v44, %v6943_v56  ;;  %v4900_v59 = vor.u32 %v7258_v52, %v4897_v53  ;;  %v7768_v62 = vld [vmem:[%s11646_s1 + $0x1094] sm:$0xf0]  ;;  %v5028_v18 = vor.u32 %v7290_v54, %v5025_v55  ;;  %v4849_v56 = vld [vmem:[%s11646_s1 + $0x58] sm:$0xf0] }
 0x1a9   :  { %v6928_v11 = vor.u32 %v7768_v62, %v6927_v61  ;;  %v6896_v53 = vor.u32 %v7760_v37, %v6895_v35  ;;  %v7756_v61 = vld [vmem:[%s11646_s1 + $0x1034] sm:$0xf0]  ;;  %v7007_v62 = vld [vmem:[%s11646_s1 + $0x1128] sm:$0xf]  ;;  %v5441_v35 = vld [vmem:[%s11646_s1 + $0x4f8] sm:$0xf0] }
 0x1ab   :  { %4163 = vmatpush.bf16.msra.mxu0 %v6352_v10  ;;  %4176 = vmatpush.bf16.msra.mxu1 %v6480_v20  ;;  %v3957_v7 = vpop.f32.mrf.mxu0  ;;  %v3970_v13 = vpop.f32.mrf.mxu1  ;;  %v4884_v20 = vor.u32 %v7254_v19, %v4881_v6  ;;  %v4833_v19 = vld [vmem:[%s11646_s1 + $0x38] sm:$0xf0]  ;;  %v7274_v6 = vld [vmem:[%s11646_s1 + $0x12c] sm:$0xf] }
 0x1ac   :  { %4189 = vmatpush.bf16.msra.mxu2 %v6608_v21  ;;  %4202 = vmatpush.bf16.msra.mxu3 %v6736_v24  ;;  %v3958_v10 = vadd.f32 %v3957_v7, %v10472_v36  ;;  %v6911_v21 = vld [vmem:[%s11646_s1 + $0x1068] sm:$0xf]  ;;  %v5012_v36 = vor.u32 %v7286_v8, %v5009_v9  ;;  %v4961_v7 = vld [vmem:[%s11646_s1 + $0x138] sm:$0xf0] }
 0x1ad   :  { %v6912_v32 = vor.u32 %v7764_v22, %v6911_v21  ;;  %v6863_v9 = vld [vmem:[%s11646_s1 + $0x1008] sm:$0xf]  ;;  %v7238_v21 = vld [vmem:[%s11646_s1 + $0xc] sm:$0xf]  ;;  %v4964_v22 = vor.u32 %v7274_v6, %v4961_v7  ;;  %v7850_v6 = vld [vmem:[#allocation1] sm:$0xff] }
 0x1ae   :  { %4164 = vmatmul.bf16.vlgmr.msra.gmra.mxu0 %v8735_v46  ;;  %4177 = vmatmul.bf16.vlgmr.msra.gmra.mxu1 %v8739_v48  ;;  %v3971_v24 = vadd.f32 %v3970_v13, %v3958_v10  ;;  %v7752_v10 = vld [vmem:[%s11646_s1 + $0x1014] sm:$0xf0]  ;;  %v4836_v13 = vor.u32 %v7242_v4, %v4833_v19  ;;  %v5153_v4 = vld [vmem:[%s11646_s1 + $0x2b8] sm:$0xf0]  ;;  %v7354_v19 = vld [vmem:[%s11646_s1 + $0x3ac] sm:$0xf] }
 0x1af   :  { %4208 = vmatpush.bf16.msrb.mxu0 %v6976_v25  ;;  %4221 = vmatpush.bf16.msrb.mxu1 %v7104_v26  ;;  %v7796_v25 = vld [vmem:[%s11646_s1 + $0x1174] sm:$0xf0]  ;;  %v7250_v26 = vld [vmem:[%s11646_s1 + $0x6c] sm:$0xf] }
 0x1b0   :  { %4234 = vmatpush.bf16.msrb.mxu2 %v4932_v30  ;;  %4247 = vmatpush.bf16.msrb.mxu3 %v5060_v45  ;;  %v4865_v30 = vld [vmem:[%s11646_s1 + $0x78] sm:$0xf0]  ;;  %v7040_v45 = vor.u32 %v7796_v25, %v7039_v23 }
 0x1b1   :  { %4190 = vmatmul.bf16.vlgmr.msra.gmra.mxu2 %v8737_v47  ;;  %4203 = vmatmul.bf16.vlgmr.msra.gmra.mxu3 %v8741_v49  ;;  %v4868_v33 = vor.u32 %v7250_v26, %v4865_v30  ;;  %v4817_v23 = vld [vmem:[%s11646_s1 + $0x18] sm:$0xf0]  ;;  %v7330_v26 = vld [vmem:[%s11646_s1 + $0x2ec] sm:$0xf] }
 0x1b2   :  { %v5185_v30 = vld [vmem:[%s11646_s1 + $0x2f8] sm:$0xf0] }
 0x1b3   :  { %4209 = vmatpush.bf16.msrb.mxu0 %v6960_v40  ;;  %4222 = vmatpush.bf16.msrb.mxu1 %v7088_v41  ;;  %v7792_v41 = vld [vmem:[%s11646_s1 + $0x1154] sm:$0xf0]  ;;  %v3959_v52 = vpop.f32.mrf.mxu0  ;;  %v3972_v54 = vpop.f32.mrf.mxu1 }
 0x1b4   :  { %4235 = vmatpush.bf16.msrb.mxu2 %v4916_v42  ;;  %4248 = vmatpush.bf16.msrb.mxu3 %v5044_v50  ;;  %v3983_v40 = vpop.f32.mrf.mxu2  ;;  %v7246_v42 = vld [vmem:[%s11646_s1 + $0x4c] sm:$0xf]  ;;  %v3996_v63 = vpop.f32.mrf.mxu3 }
 0x1b5   :  { %v3984_v44 = vadd.f32 %v3983_v40, %v3971_v24  ;;  %v7278_v50 = vld [vmem:[%s11646_s1 + $0x14c] sm:$0xf]  ;;  %v4945_v24 = vld [vmem:[%s11646_s1 + $0x118] sm:$0xf0] }
 0x1b6   :  { %v4980_v3 = vor.u32 %v7278_v50, %v4977_v51  ;;  %v5569_v40 = vld [vmem:[%s11646_s1 + $0x5f8] sm:$0xf0]  ;;  %v7358_v51 = vld [vmem:[%s11646_s1 + $0x3cc] sm:$0xf] }
 0x1b7   :  { %4210 = vmatpush.bf16.msrb.mxu0 %v6944_v57  ;;  %4223 = vmatpush.bf16.msrb.mxu1 %v7072_v58  ;;  %v10671_v55 = vadd.f32 %v3996_v63, %v3984_v44  ;;  %v7024_v57 = vor.u32 %v7792_v41, %v7023_v38  ;;  %v4852_v58 = vor.u32 %v7246_v42, %v4849_v56  ;;  %v7326_v63 = vld [vmem:[%s11646_s1 + $0x2cc] sm:$0xf]  ;;  %v5169_v50 = vld [vmem:[%s11646_s1 + $0x2d8] sm:$0xf0] }
 0x1b8   :  { %4236 = vmatpush.bf16.msrb.mxu2 %v4900_v59  ;;  %4249 = vmatpush.bf16.msrb.mxu3 %v5028_v18  ;;  %v6879_v59 = vld [vmem:[%s11646_s1 + $0x1028] sm:$0xf]  ;;  %v7788_v18 = vld [vmem:[%s11646_s1 + $0x1134] sm:$0xf0]  ;;  %v4820_v38 = vor.u32 %v7238_v21, %v4817_v23  ;;  %v5188_v42 = vor.u32 %v7330_v26, %v5185_v30  ;;  %v7390_v54 = vld [vmem:[%s11646_s1 + $0x4cc] sm:$0xf] }
 0x1b9   :  { %v6880_v8 = vor.u32 %v7756_v61, %v6879_v59  ;;  %v5553_v59 = vld [vmem:[%s11646_s1 + $0x5d8] sm:$0xf0]  ;;  %v5172_v61 = vor.u32 %v7326_v63, %v5169_v50  ;;  %v7318_v21 = vld [vmem:[%s11646_s1 + $0x28c] sm:$0xf] }
 0x1ba   :  { %v7382_v30 = vld [vmem:[%s11646_s1 + $0x48c] sm:$0xf]  ;;  %v5377_v50 = vld [vmem:[%s11646_s1 + $0x478] sm:$0xf0] }
 0x1bb   :  { %4211 = vmatpush.bf16.msrb.mxu0 %v6928_v11  ;;  %4224 = vmatpush.bf16.msrb.mxu1 %v7056_v14  ;;  %v7008_v11 = vor.u32 %v7788_v18, %v7007_v62  ;;  %v6991_v14 = vld [vmem:[%s11646_s1 + $0x1108] sm:$0xf]  ;;  %v7322_v18 = vld [vmem:[%s11646_s1 + $0x2ac] sm:$0xf] }
 0x1bc   :  { %4237 = vmatpush.bf16.msrb.mxu2 %v4884_v20  ;;  %4250 = vmatpush.bf16.msrb.mxu3 %v5012_v36  ;;  %v7784_v20 = vld [vmem:[%s11646_s1 + $0x1114] sm:$0xf0]  ;;  %v7270_v36 = vld [vmem:[%s11646_s1 + $0x10c] sm:$0xf]  ;;  %v3985_v25 = vpop.f32.mrf.mxu2  ;;  %v3998_v43 = vpop.f32.mrf.mxu3 }
 0x1bd   :  { %v6992_v37 = vor.u32 %v7784_v20, %v6991_v14  ;;  %v4948_v41 = vor.u32 %v7270_v36, %v4945_v24  ;;  %v5537_v14 = vld [vmem:[%s11646_s1 + $0x5b8] sm:$0xf0]  ;;  %v5156_v20 = vor.u32 %v7322_v18, %v5153_v4  ;;  %v7852_v24 = vld [vmem:[%s11647_s2] sm:$0xf]  ;;  %v7414_v43 = vld [vmem:[%s11646_s1 + $0x58c] sm:$0xf] }
 0x1be   :  { %v5137_v36 = vld [vmem:[%s11646_s1 + $0x298] sm:$0xf0]  ;;  %v604_v25 = vperm.slane %v7852_v24, 2  ;;  %v7378_v63 = vld [vmem:[%s11646_s1 + $0x46c] sm:$0xf] }
 0x1bf   :  { %4212 = vmatpush.bf16.msrb.mxu0 %v6912_v32  ;;  %4225 = vmatpush.bf16.msrb.mxu1 %v7040_v45  ;;  %v6864_v32 = vor.u32 %v7752_v10, %v6863_v9  ;;  %v5313_v45 = vld [vmem:[%s11646_s1 + $0x3f8] sm:$0xf0]  ;;  %v7386_v9 = vld [vmem:[%s11646_s1 + $0x4ac] sm:$0xf] }
 0x1c0   :  { %4238 = vmatpush.bf16.msrb.mxu2 %v4868_v33  ;;  %4251 = vmatpush.bf16.msrb.mxu3 %v4996_v39  ;;  %v7394_v33 = vld [vmem:[%s11646_s1 + $0x4ec] sm:$0xf]  ;;  %v5316_v56 = vor.u32 %v7362_v31, %v5313_v45  ;;  %v5409_v10 = vld [vmem:[%s11646_s1 + $0x4b8] sm:$0xf0]  ;;  %v5140_v45 = vor.u32 %v7318_v21, %v5137_v36 }
 0x1c1   :  { %v7426_v39 = vld [vmem:[%s11646_s1 + $0x5ec] sm:$0xf]  ;;  %v5444_v44 = vor.u32 %v7394_v33, %v5441_v35  ;;  %v5412_v23 = vor.u32 %v7386_v9, %v5409_v10  ;;  %v5393_v31 = vld [vmem:[%s11646_s1 + $0x498] sm:$0xf0] }
 0x1c2   :  { %v5572_v52 = vor.u32 %v7426_v39, %v5569_v40  ;;  %v5121_v39 = vld [vmem:[%s11646_s1 + $0x278] sm:$0xf0]  ;;  %v7346_v40 = vld [vmem:[%s11646_s1 + $0x36c] sm:$0xf] }
 0x1c3   :  { %4213 = vmatpush.bf16.msrb.mxu0 %v6896_v53  ;;  %4226 = vmatpush.bf16.msrb.mxu1 %v7024_v57  ;;  %v5297_v53 = vld [vmem:[%s11646_s1 + $0x3d8] sm:$0xf0]  ;;  %v7406_v9 = vld [vmem:[%s11646_s1 + $0x54c] sm:$0xf] }
 0x1c4   :  { %4239 = vmatpush.bf16.msrb.mxu2 %v4852_v58  ;;  %4252 = vmatpush.bf16.msrb.mxu3 %v4980_v3  ;;  %v5425_v57 = vld [vmem:[%s11646_s1 + $0x4d8] sm:$0xf0]  ;;  %v7422_v58 = vld [vmem:[%s11646_s1 + $0x5cc] sm:$0xf]  ;;  %v5300_v62 = vor.u32 %v7358_v51, %v5297_v53 }
 0x1c5   :  { %v5428_v3 = vor.u32 %v7390_v54, %v5425_v57  ;;  %v5556_v7 = vor.u32 %v7422_v58, %v5553_v59  ;;  %v7410_v51 = vld [vmem:[%s11646_s1 + $0x56c] sm:$0xf]  ;;  %v5380_v58 = vor.u32 %v7378_v63, %v5377_v50  ;;  %v5233_v4 = vld [vmem:[%s11646_s1 + $0x358] sm:$0xf0] }
 0x1c6   :  { %v7310_v59 = vld [vmem:[%s11646_s1 + $0x24c] sm:$0xf]  ;;  %v5489_v10 = vld [vmem:[%s11646_s1 + $0x558] sm:$0xf0] }
 0x1c7   :  { %4214 = vmatpush.bf16.msrb.mxu0 %v6880_v8  ;;  %4227 = vmatpush.bf16.msrb.mxu1 %v7008_v11  ;;  %v5281_v8 = vld [vmem:[%s11646_s1 + $0x3b8] sm:$0xf0]  ;;  %v7851_v11 = vld [vmem:[#allocation1 + $0x9] sm:$0xff]  ;;  %v5492_v24 = vor.u32 %v7406_v9, %v5489_v10 }
 0x1c8   :  { %4240 = vmatpush.bf16.msrb.mxu2 %v4836_v13  ;;  %4253 = vmatpush.bf16.msrb.mxu3 %v4964_v22  ;;  %v7418_v13 = vld [vmem:[%s11646_s1 + $0x5ac] sm:$0xf]  ;;  %v5284_v22 = vor.u32 %v7354_v19, %v5281_v8 }
 0x1c9   :  { %v5540_v26 = vor.u32 %v7418_v13, %v5537_v14  ;;  %v7374_v19 = vld [vmem:[%s11646_s1 + $0x44c] sm:$0xf] }
 0x1ca   :  { %v7338_v36 = vld [vmem:[%s11646_s1 + $0x32c] sm:$0xf] }
 0x1cb   :  { %4215 = vmatpush.bf16.msrb.mxu0 %v6864_v32  ;;  %4228 = vmatpush.bf16.msrb.mxu1 %v6992_v37  ;;  %v5521_v32 = vld [vmem:[%s11646_s1 + $0x598] sm:$0xf0]  ;;  %v4009_v33 = vpop.f32.mrf.mxu0  ;;  %v5396_v37 = vor.u32 %v7382_v30, %v5393_v31  ;;  %v7402_v30 = vld [vmem:[%s11646_s1 + $0x52c] sm:$0xf] }
 0x1cc   :  { %4241 = vmatpush.bf16.msrb.mxu2 %v4820_v38  ;;  %4254 = vmatpush.bf16.msrb.mxu3 %v4948_v41  ;;  %v7314_v38 = vld [vmem:[%s11646_s1 + $0x26c] sm:$0xf]  ;;  %v4010_v41 = vadd.f32 %v4009_v33, %v604_v25  ;;  %v5217_v25 = vld [vmem:[%s11646_s1 + $0x338] sm:$0xf0] }
 0x1cd   :  { %v5124_v54 = vor.u32 %v7314_v38, %v5121_v39  ;;  %v5473_v31 = vld [vmem:[%s11646_s1 + $0x538] sm:$0xf0]  ;;  %v5220_v33 = vor.u32 %v7338_v36, %v5217_v25  ;;  %v7366_v39 = vld [vmem:[%s11646_s1 + $0x40c] sm:$0xf] }
 0x1ce   :  { %4216 = vmatmul.bf16.vlgmr.msrb.gmra.mxu0 %v7850_v6  ;;  %4229 = vmatmul.bf16.vlgmr.msrb.gmra.mxu1 %v7851_v11  ;;  %v5361_v6 = vld [vmem:[%s11646_s1 + $0x458] sm:$0xf0]  ;;  %v7458_v50 = vld [vmem:[%s11646_s1 + $0x6ec] sm:$0xf] }
 0x1cf   :  { %4260 = vmatpush.bf16.msra.mxu0 %v5188_v42  ;;  %4273 = vmatpush.bf16.msra.mxu1 %v5316_v56  ;;  %v4022_v42 = vpop.f32.mrf.mxu1  ;;  %v5524_v56 = vor.u32 %v7414_v43, %v5521_v32  ;;  %v5364_v21 = vor.u32 %v7374_v19, %v5361_v6  ;;  %v7302_v32 = vld [vmem:[%s11646_s1 + $0x20c] sm:$0xf]  ;;  %v5201_v38 = vld [vmem:[%s11646_s1 + $0x318] sm:$0xf0] }
 0x1d0   :  { %4286 = vmatpush.bf16.msra.mxu2 %v5444_v44  ;;  %4299 = vmatpush.bf16.msra.mxu3 %v5572_v52  ;;  %v5249_v44 = vld [vmem:[%s11646_s1 + $0x378] sm:$0xf0]  ;;  %v4023_v53 = vadd.f32 %v4022_v42, %v4010_v41  ;;  %v5476_v41 = vor.u32 %v7402_v30, %v5473_v31  ;;  %v7486_v9 = vld [vmem:[%s11646_s1 + $0x7cc] sm:$0xf] }
 0x1d1   :  { %4242 = vmatmul.bf16.vlgmr.msrb.gmra.mxu2 %v8233_v28  ;;  %4255 = vmatmul.bf16.vlgmr.msrb.gmra.mxu3 %v8243_v34  ;;  %v7350_v28 = vld [vmem:[%s11646_s1 + $0x38c] sm:$0xf]  ;;  %v5265_v34 = vld [vmem:[%s11646_s1 + $0x398] sm:$0xf0]  ;;  %v5252_v57 = vor.u32 %v7346_v40, %v5249_v44 }
 0x1d2   :  { %v5268_v35 = vor.u32 %v7350_v28, %v5265_v34  ;;  %v5505_v52 = vld [vmem:[%s11646_s1 + $0x578] sm:$0xf0]  ;;  %v7514_v31 = vld [vmem:[%s11646_s1 + $0x8ac] sm:$0xf] }
 0x1d3   :  { %4261 = vmatpush.bf16.msra.mxu0 %v5172_v61  ;;  %4274 = vmatpush.bf16.msra.mxu1 %v5300_v62  ;;  %v5105_v61 = vld [vmem:[%s11646_s1 + $0x258] sm:$0xf0]  ;;  %v7342_v62 = vld [vmem:[%s11646_s1 + $0x34c] sm:$0xf]  ;;  %v5508_v18 = vor.u32 %v7410_v51, %v5505_v52  ;;  %v4011_v14 = vpop.f32.mrf.mxu0 }
 0x1d4   :  { %4287 = vmatpush.bf16.msra.mxu2 %v5428_v3  ;;  %4300 = vmatpush.bf16.msra.mxu3 %v5556_v7  ;;  %v4035_v3 = vpop.f32.mrf.mxu2  ;;  %v4048_v8 = vpop.f32.mrf.mxu3  ;;  %v5108_v11 = vor.u32 %v7310_v59, %v5105_v61  ;;  %v5345_v34 = vld [vmem:[%s11646_s1 + $0x438] sm:$0xf0]  ;;  %v7490_v52 = vld [vmem:[%s11646_s1 + $0x7ec] sm:$0xf] }
 0x1d5   :  { %v4036_v7 = vadd.f32 %v4035_v3, %v4023_v53  ;;  %v5329_v42 = vld [vmem:[%s11646_s1 + $0x418] sm:$0xf0]  ;;  %v7518_v14 = vld [vmem:[%s11646_s1 + $0x8cc] sm:$0xf] }
 0x1d6   :  { %v5457_v44 = vld [vmem:[%s11646_s1 + $0x518] sm:$0xf0]  ;;  %v5332_v61 = vor.u32 %v7366_v39, %v5329_v42  ;;  %v7510_v39 = vld [vmem:[%s11646_s1 + $0x88c] sm:$0xf] }
 0x1d7   :  { %4262 = vmatpush.bf16.msra.mxu0 %v5156_v20  ;;  %4275 = vmatpush.bf16.msra.mxu1 %v5284_v22  ;;  %v10870_v13 = vadd.f32 %v4048_v8, %v4036_v7  ;;  %v5236_v20 = vor.u32 %v7342_v62, %v5233_v4  ;;  %v7306_v22 = vld [vmem:[%s11646_s1 + $0x22c] sm:$0xf]  ;;  %v4024_v28 = vpop.f32.mrf.mxu1  ;;  %v5697_v51 = vld [vmem:[%s11646_s1 + $0x6f8] sm:$0xf0] }
 0x1d8   :  { %4288 = vmatpush.bf16.msra.mxu2 %v5412_v23  ;;  %4301 = vmatpush.bf16.msra.mxu3 %v5540_v26  ;;  %v5089_v23 = vld [vmem:[%s11646_s1 + $0x238] sm:$0xf0]  ;;  %v7370_v26 = vld [vmem:[%s11646_s1 + $0x42c] sm:$0xf]  ;;  %v5700_v4 = vor.u32 %v7458_v50, %v5697_v51 }
 0x1d9   :  { %v5092_v43 = vor.u32 %v7306_v22, %v5089_v23  ;;  %v7554_v62 = vld [vmem:[%s11646_s1 + $0x9ec] sm:$0xf]  ;;  %v6081_v3 = vld [vmem:[%s11646_s1 + $0x9f8] sm:$0xf0] }
 0x1da   :  { %v7454_v7 = vld [vmem:[%s11646_s1 + $0x6cc] sm:$0xf]  ;;  %v5681_v8 = vld [vmem:[%s11646_s1 + $0x6d8] sm:$0xf0]  ;;  %v6084_v10 = vor.u32 %v7554_v62, %v6081_v3 }
 0x1db   :  { %4263 = vmatpush.bf16.msra.mxu0 %v5140_v45  ;;  %4276 = vmatpush.bf16.msra.mxu1 %v5268_v35  ;;  %v5073_v45 = vld [vmem:[%s11646_s1 + $0x218] sm:$0xf0]  ;;  %v5348_v35 = vor.u32 %v7370_v26, %v5345_v34  ;;  %v5684_v23 = vor.u32 %v7454_v7, %v5681_v8  ;;  %v7482_v26 = vld [vmem:[%s11646_s1 + $0x7ac] sm:$0xf] }
 0x1dc   :  { %4289 = vmatpush.bf16.msra.mxu2 %v5396_v37  ;;  %4302 = vmatpush.bf16.msra.mxu3 %v5524_v56  ;;  %v7334_v37 = vld [vmem:[%s11646_s1 + $0x30c] sm:$0xf]  ;;  %v4037_v40 = vpop.f32.mrf.mxu2  ;;  %v4050_v63 = vpop.f32.mrf.mxu3  ;;  %v5076_v53 = vor.u32 %v7302_v32, %v5073_v45  ;;  %v6065_v22 = vld [vmem:[%s11646_s1 + $0x9d8] sm:$0xf0] }
 0x1dd   :  { %v7398_v56 = vld [vmem:[%s11646_s1 + $0x50c] sm:$0xf]  ;;  %v5204_v59 = vor.u32 %v7334_v37, %v5201_v38  ;;  %v5665_v25 = vld [vmem:[%s11646_s1 + $0x6b8] sm:$0xf0] }
 0x1de   :  { %v5793_v30 = vld [vmem:[%s11646_s1 + $0x7b8] sm:$0xf0]  ;;  %v7546_v32 = vld [vmem:[%s11646_s1 + $0x9ac] sm:$0xf] }
 0x1df   :  { %4264 = vmatpush.bf16.msra.mxu0 %v5124_v54  ;;  %4277 = vmatpush.bf16.msra.mxu1 %v5252_v57  ;;  %v5825_v54 = vld [vmem:[%s11646_s1 + $0x7f8] sm:$0xf0]  ;;  %v7522_v57 = vld [vmem:[%s11646_s1 + $0x8ec] sm:$0xf] }
 0x1e0   :  { %4290 = vmatpush.bf16.msra.mxu2 %v5380_v58  ;;  %4303 = vmatpush.bf16.msra.mxu3 %v5508_v18  ;;  %v5953_v58 = vld [vmem:[%s11646_s1 + $0x8f8] sm:$0xf0]  ;;  %v5460_v18 = vor.u32 %v7398_v56, %v5457_v44  ;;  %v5828_v19 = vor.u32 %v7490_v52, %v5825_v54  ;;  %v7446_v37 = vld [vmem:[%s11646_s1 + $0x68c] sm:$0xf] }
 0x1e1   :  { %v5956_v6 = vor.u32 %v7522_v57, %v5953_v58  ;;  %v5649_v38 = vld [vmem:[%s11646_s1 + $0x698] sm:$0xf0]  ;;  %v7442_v51 = vld [vmem:[%s11646_s1 + $0x66c] sm:$0xf] }
 0x1e2   :  { %v5905_v40 = vld [vmem:[%s11646_s1 + $0x898] sm:$0xf0]  ;;  %v5652_v56 = vor.u32 %v7446_v37, %v5649_v38  ;;  %v7538_v3 = vld [vmem:[%s11646_s1 + $0x96c] sm:$0xf] }
 0x1e3   :  { %4265 = vmatpush.bf16.msra.mxu0 %v5108_v11  ;;  %4278 = vmatpush.bf16.msra.mxu1 %v5236_v20  ;;  %v5809_v11 = vld [vmem:[%s11646_s1 + $0x7d8] sm:$0xf0]  ;;  %v5908_v50 = vor.u32 %v7510_v39, %v5905_v40  ;;  %v7438_v7 = vld [vmem:[%s11646_s1 + $0x64c] sm:$0xf] }
 0x1e4   :  { %4291 = vmatpush.bf16.msra.mxu2 %v5364_v21  ;;  %4304 = vmatpush.bf16.msra.mxu3 %v5492_v24  ;;  %v5937_v20 = vld [vmem:[%s11646_s1 + $0x8d8] sm:$0xf0]  ;;  %v7550_v21 = vld [vmem:[%s11646_s1 + $0x9cc] sm:$0xf]  ;;  %v5812_v36 = vor.u32 %v7486_v9, %v5809_v11 }
 0x1e5   :  { %v5940_v28 = vor.u32 %v7518_v14, %v5937_v20  ;;  %v7450_v24 = vld [vmem:[%s11646_s1 + $0x6ac] sm:$0xf]  ;;  %v6068_v34 = vor.u32 %v7550_v21, %v6065_v22  ;;  %v6033_v42 = vld [vmem:[%s11646_s1 + $0x998] sm:$0xf0] }
 0x1e6   :  { %v5668_v45 = vor.u32 %v7450_v24, %v5665_v25  ;;  %v5633_v52 = vld [vmem:[%s11646_s1 + $0x678] sm:$0xf0]  ;;  %v7470_v9 = vld [vmem:[%s11646_s1 + $0x74c] sm:$0xf] }
 0x1e7   :  { %4266 = vmatpush.bf16.msra.mxu0 %v5092_v43  ;;  %4279 = vmatpush.bf16.msra.mxu1 %v5220_v33  ;;  %v5921_v43 = vld [vmem:[%s11646_s1 + $0x8b8] sm:$0xf0]  ;;  %v5796_v33 = vor.u32 %v7482_v26, %v5793_v30  ;;  %v7502_v20 = vld [vmem:[%s11646_s1 + $0x84c] sm:$0xf] }
 0x1e8   :  { %4292 = vmatpush.bf16.msra.mxu2 %v5348_v35  ;;  %4305 = vmatpush.bf16.msra.mxu3 %v5476_v41  ;;  %v5924_v35 = vor.u32 %v7514_v31, %v5921_v43  ;;  %v7542_v41 = vld [vmem:[%s11646_s1 + $0x98c] sm:$0xf]  ;;  %v5889_v62 = vld [vmem:[%s11646_s1 + $0x878] sm:$0xf0] }
 0x1e9   :  { %v6036_v58 = vor.u32 %v7542_v41, %v6033_v42  ;;  %v5617_v8 = vld [vmem:[%s11646_s1 + $0x658] sm:$0xf0]  ;;  %v7434_v31 = vld [vmem:[%s11646_s1 + $0x62c] sm:$0xf] }
 0x1ea   :  { %v5745_v14 = vld [vmem:[%s11646_s1 + $0x758] sm:$0xf0]  ;;  %v5620_v24 = vor.u32 %v7438_v7, %v5617_v8  ;;  %v7530_v38 = vld [vmem:[%s11646_s1 + $0x92c] sm:$0xf] }
 0x1eb   :  { %4267 = vmatpush.bf16.msra.mxu0 %v5076_v53  ;;  %4280 = vmatpush.bf16.msra.mxu1 %v5204_v59  ;;  %v4061_v44 = vpop.f32.mrf.mxu0  ;;  %v7474_v53 = vld [vmem:[%s11646_s1 + $0x76c] sm:$0xf]  ;;  %v4074_v57 = vpop.f32.mrf.mxu1  ;;  %v5761_v59 = vld [vmem:[%s11646_s1 + $0x778] sm:$0xf0] }
 0x1ec   :  { %4293 = vmatpush.bf16.msra.mxu2 %v5332_v61  ;;  %4306 = vmatpush.bf16.msra.mxu3 %v5460_v18  ;;  %v4062_v54 = vadd.f32 %v4061_v44, %v10870_v13  ;;  %v7506_v61 = vld [vmem:[%s11646_s1 + $0x86c] sm:$0xf]  ;;  %v6017_v13 = vld [vmem:[%s11646_s1 + $0x978] sm:$0xf0] }
 0x1ed   :  { %v6020_v11 = vor.u32 %v7538_v3, %v6017_v13  ;;  %v5873_v21 = vld [vmem:[%s11646_s1 + $0x858] sm:$0xf0]  ;;  %v7462_v42 = vld [vmem:[%s11646_s1 + $0x70c] sm:$0xf] }
 0x1ee   :  { %4268 = vmatmul.bf16.vlgmr.msra.gmra.mxu0 %v8231_v27  ;;  %4281 = vmatmul.bf16.vlgmr.msra.gmra.mxu1 %v8235_v29  ;;  %v7478_v27 = vld [vmem:[%s11646_s1 + $0x78c] sm:$0xf]  ;;  %v5777_v29 = vld [vmem:[%s11646_s1 + $0x798] sm:$0xf0]  ;;  %v4075_v18 = vadd.f32 %v4074_v57, %v4062_v54  ;;  %v5876_v30 = vor.u32 %v7502_v20, %v5873_v21 }
 0x1ef   :  { %4312 = vmatpush.bf16.msrb.mxu0 %v5700_v4  ;;  %4325 = vmatpush.bf16.msrb.mxu1 %v5828_v19  ;;  %v5780_v63 = vor.u32 %v7478_v27, %v5777_v29  ;;  %v5636_v4 = vor.u32 %v7442_v51, %v5633_v52  ;;  %v5764_v19 = vor.u32 %v7474_v53, %v5761_v59  ;;  %v5601_v43 = vld [vmem:[%s11646_s1 + $0x638] sm:$0xf0]  ;;  %v7430_v29 = vld [vmem:[%s11646_s1 + $0x60c] sm:$0xf] }
 0x1f0   :  { %4338 = vmatpush.bf16.msrb.mxu2 %v5956_v6  ;;  %4351 = vmatpush.bf16.msrb.mxu3 %v6084_v10  ;;  %v5892_v6 = vor.u32 %v7506_v61, %v5889_v62  ;;  %v5857_v37 = vld [vmem:[%s11646_s1 + $0x838] sm:$0xf0]  ;;  %v7494_v44 = vld [vmem:[%s11646_s1 + $0x80c] sm:$0xf] }
 0x1f1   :  { %4294 = vmatmul.bf16.vlgmr.msra.gmra.mxu2 %v8311_v0  ;;  %v6049_v0 = vld [vmem:[%s11646_s1 + $0x9b8] sm:$0xf0]  ;;  %4307 = vmatmul.bf16.vlgmr.msra.gmra.mxu3 %v8315_v2  ;;  %v7526_v52 = vld [vmem:[%s11646_s1 + $0x90c] sm:$0xf] }
 0x1f2   :  { %v6052_v2 = vor.u32 %v7546_v32, %v6049_v0  ;;  %v7466_v32 = vld [vmem:[%s11646_s1 + $0x72c] sm:$0xf]  ;;  %v5985_v27 = vld [vmem:[%s11646_s1 + $0x938] sm:$0xf0] }
 0x1f3   :  { %4313 = vmatpush.bf16.msrb.mxu0 %v5684_v23  ;;  %4326 = vmatpush.bf16.msrb.mxu1 %v5812_v36  ;;  %v7534_v36 = vld [vmem:[%s11646_s1 + $0x94c] sm:$0xf]  ;;  %v4063_v26 = vpop.f32.mrf.mxu0  ;;  %v4076_v0 = vpop.f32.mrf.mxu1  ;;  %v5585_v39 = vld [vmem:[%s11646_s1 + $0x618] sm:$0xf0] }
 0x1f4   :  { %4339 = vmatpush.bf16.msrb.mxu2 %v5940_v28  ;;  %4352 = vmatpush.bf16.msrb.mxu3 %v6068_v34  ;;  %v4087_v10 = vpop.f32.mrf.mxu2  ;;  %v4100_v23 = vpop.f32.mrf.mxu3  ;;  %v6001_v28 = vld [vmem:[%s11646_s1 + $0x958] sm:$0xf0]  ;;  %v5748_v34 = vor.u32 %v7470_v9, %v5745_v14  ;;  %v7586_v57 = vld [vmem:[%s11646_s1 + $0xaec] sm:$0xf]  ;;  %v5588_v61 = vor.u32 %v7430_v29, %v5585_v39 }
 0x1f5   :  { %v4088_v22 = vadd.f32 %v4087_v10, %v4075_v18  ;;  %v5841_v51 = vld [vmem:[%s11646_s1 + $0x818] sm:$0xf0]  ;;  %v7618_v59 = vld [vmem:[%s11646_s1 + $0xbec] sm:$0xf] }
 0x1f6   :  { %v5969_v53 = vld [vmem:[%s11646_s1 + $0x918] sm:$0xf0]  ;;  %v7650_v3 = vld [vmem:[%s11646_s1 + $0xcec] sm:$0xf] }
 0x1f7   :  { %4314 = vmatpush.bf16.msrb.mxu0 %v5668_v45  ;;  %4327 = vmatpush.bf16.msrb.mxu1 %v5796_v33  ;;  %v11069_v25 = vadd.f32 %v4100_v23, %v4088_v22  ;;  %v6004_v45 = vor.u32 %v7534_v36, %v6001_v28  ;;  %v5729_v33 = vld [vmem:[%s11646_s1 + $0x738] sm:$0xf0]  ;;  %v5972_v7 = vor.u32 %v7526_v52, %v5969_v53  ;;  %v7614_v20 = vld [vmem:[%s11646_s1 + $0xbcc] sm:$0xf] }
 0x1f8   :  { %4340 = vmatpush.bf16.msrb.mxu2 %v5924_v35  ;;  %4353 = vmatpush.bf16.msrb.mxu3 %v6052_v2  ;;  %v7498_v35 = vld [vmem:[%s11646_s1 + $0x82c] sm:$0xf]  ;;  %v5604_v2 = vor.u32 %v7434_v31, %v5601_v43  ;;  %v5732_v40 = vor.u32 %v7466_v32, %v5729_v33  ;;  %v6337_v62 = vld [vmem:[%s11646_s1 + $0xbf8] sm:$0xf0] }
 0x1f9   :  { %v5860_v41 = vor.u32 %v7498_v35, %v5857_v37  ;;  %v6465_v13 = vld [vmem:[%s11646_s1 + $0xcf8] sm:$0xf0]  ;;  %v6340_v9 = vor.u32 %v7618_v59, %v6337_v62  ;;  %v7646_v23 = vld [vmem:[%s11646_s1 + $0xccc] sm:$0xf] }
 0x1fa   :  { %v6468_v10 = vor.u32 %v7650_v3, %v6465_v13  ;;  %v6193_v14 = vld [vmem:[%s11646_s1 + $0xad8] sm:$0xf0]  ;;  %v7678_v28 = vld [vmem:[%s11646_s1 + $0xdcc] sm:$0xf] }
 0x1fb   :  { %4315 = vmatpush.bf16.msrb.mxu0 %v5652_v56  ;;  %4328 = vmatpush.bf16.msrb.mxu1 %v5780_v63  ;;  %v5713_v56 = vld [vmem:[%s11646_s1 + $0x718] sm:$0xf0]  ;;  %v7578_v31 = vld [vmem:[%s11646_s1 + $0xaac] sm:$0xf] }
 0x1fc   :  { %4341 = vmatpush.bf16.msrb.mxu2 %v5908_v50  ;;  %4354 = vmatpush.bf16.msrb.mxu3 %v6036_v58  ;;  %v4089_v63 = vpop.f32.mrf.mxu2  ;;  %v5988_v50 = vor.u32 %v7530_v38, %v5985_v27  ;;  %v4102_v54 = vpop.f32.mrf.mxu3  ;;  %v6209_v58 = vld [vmem:[%s11646_s1 + $0xaf8] sm:$0xf0]  ;;  %v5716_v18 = vor.u32 %v7462_v42, %v5713_v56  ;;  %v7610_v32 = vld [vmem:[%s11646_s1 + $0xbac] sm:$0xf] }
 0x1fd   :  { %v6212_v8 = vor.u32 %v7586_v57, %v6209_v58  ;;  %v6321_v22 = vld [vmem:[%s11646_s1 + $0xbd8] sm:$0xf0]  ;;  %v7642_v33 = vld [vmem:[%s11646_s1 + $0xcac] sm:$0xf] }
 0x1fe   :  { %v6449_v36 = vld [vmem:[%s11646_s1 + $0xcd8] sm:$0xf0]  ;;  %v7606_v29 = vld [vmem:[%s11646_s1 + $0xb8c] sm:$0xf] }
 0x1ff   :  { %4316 = vmatpush.bf16.msrb.mxu0 %v5636_v4  ;;  %4329 = vmatpush.bf16.msrb.mxu1 %v5764_v19  ;;  %v5844_v4 = vor.u32 %v7494_v44, %v5841_v51  ;;  %v7682_v19 = vld [vmem:[%s11646_s1 + $0xdec] sm:$0xf]  ;;  %v6177_v43 = vld [vmem:[%s11646_s1 + $0xab8] sm:$0xf0] }
 0x200   :  { %4342 = vmatpush.bf16.msrb.mxu2 %v5892_v6  ;;  %4355 = vmatpush.bf16.msrb.mxu3 %v6020_v11  ;;  %v6593_v6 = vld [vmem:[%s11646_s1 + $0xdf8] sm:$0xf0]  ;;  %v7582_v11 = vld [vmem:[%s11646_s1 + $0xacc] sm:$0xf]  ;;  %v6180_v38 = vor.u32 %v7578_v31, %v6177_v43 }
 0x201   :  { %v6596_v21 = vor.u32 %v7682_v19, %v6593_v6  ;;  %v6196_v26 = vor.u32 %v7582_v11, %v6193_v14  ;;  %v6433_v35 = vld [vmem:[%s11646_s1 + $0xcb8] sm:$0xf0]  ;;  %v7670_v56 = vld [vmem:[%s11646_s1 + $0xd8c] sm:$0xf] }
 0x202   :  { %v6561_v37 = vld [vmem:[%s11646_s1 + $0xdb8] sm:$0xf0]  ;;  %v7570_v53 = vld [vmem:[%s11646_s1 + $0xa6c] sm:$0xf] }
 0x203   :  { %4317 = vmatpush.bf16.msrb.mxu0 %v5620_v24  ;;  %4330 = vmatpush.bf16.msrb.mxu1 %v5748_v34  ;;  %v6577_v24 = vld [vmem:[%s11646_s1 + $0xdd8] sm:$0xf0]  ;;  %v6324_v34 = vor.u32 %v7614_v20, %v6321_v22  ;;  %v7602_v57 = vld [vmem:[%s11646_s1 + $0xb6c] sm:$0xf] }
 0x204   :  { %4343 = vmatpush.bf16.msrb.mxu2 %v5876_v30  ;;  %4356 = vmatpush.bf16.msrb.mxu3 %v6004_v45  ;;  %v6452_v30 = vor.u32 %v7646_v23, %v6449_v36  ;;  %v6580_v0 = vor.u32 %v7678_v28, %v6577_v24  ;;  %v6305_v45 = vld [vmem:[%s11646_s1 + $0xbb8] sm:$0xf0]  ;;  %v7666_v3 = vld [vmem:[%s11646_s1 + $0xd6c] sm:$0xf] }
 0x205   :  { %v6308_v27 = vor.u32 %v7610_v32, %v6305_v45  ;;  %v6289_v39 = vld [vmem:[%s11646_s1 + $0xb98] sm:$0xf0]  ;;  %v7566_v6 = vld [vmem:[%s11646_s1 + $0xa4c] sm:$0xf] }
 0x206   :  { %v6545_v44 = vld [vmem:[%s11646_s1 + $0xd98] sm:$0xf0]  ;;  %v6292_v51 = vor.u32 %v7606_v29, %v6289_v39  ;;  %v7630_v14 = vld [vmem:[%s11646_s1 + $0xc4c] sm:$0xf] }
 0x207   :  { %4318 = vmatpush.bf16.msrb.mxu0 %v5604_v2  ;;  %4331 = vmatpush.bf16.msrb.mxu1 %v5732_v40  ;;  %v6436_v2 = vor.u32 %v7642_v33, %v6433_v35  ;;  %v7638_v40 = vld [vmem:[%s11646_s1 + $0xc8c] sm:$0xf]  ;;  %v6145_v54 = vld [vmem:[%s11646_s1 + $0xa78] sm:$0xf0]  ;;  %v6548_v58 = vor.u32 %v7670_v56, %v6545_v44 }
 0x208   :  { %4344 = vmatpush.bf16.msrb.mxu2 %v5860_v41  ;;  %4357 = vmatpush.bf16.msrb.mxu3 %v5988_v50  ;;  %v6417_v41 = vld [vmem:[%s11646_s1 + $0xc98] sm:$0xf0]  ;;  %v7662_v22 = vld [vmem:[%s11646_s1 + $0xd4c] sm:$0xf] }
 0x209   :  { %v6420_v52 = vor.u32 %v7638_v40, %v6417_v41  ;;  %v6273_v59 = vld [vmem:[%s11646_s1 + $0xb78] sm:$0xf0]  ;;  %v7594_v43 = vld [vmem:[%s11646_s1 + $0xb2c] sm:$0xf] }
 0x20a   :  { %v6401_v62 = vld [vmem:[%s11646_s1 + $0xc78] sm:$0xf0]  ;;  %v7626_v45 = vld [vmem:[%s11646_s1 + $0xc2c] sm:$0xf] }
 0x20b   :  { %4319 = vmatpush.bf16.msrb.mxu0 %v5588_v61  ;;  %4332 = vmatpush.bf16.msrb.mxu1 %v5716_v18  ;;  %v11213_v42 = vpop.f32.mrf.mxu0  ;;  %v11221_v50 = vpop.f32.mrf.mxu1  ;;  %v7634_v61 = vld [vmem:[%s11646_s1 + $0xc6c] sm:$0xf]  ;;  %v6529_v13 = vld [vmem:[%s11646_s1 + $0xd78] sm:$0xf0]  ;;  %v6148_v18 = vor.u32 %v7570_v53, %v6145_v54 }
 0x20c   :  { %4345 = vmatpush.bf16.msrb.mxu2 %v5844_v4  ;;  %4358 = vmatpush.bf16.msrb.mxu3 %v5972_v7  ;;  %v6276_v4 = vor.u32 %v7602_v57, %v6273_v59  ;;  %v6404_v19 = vor.u32 %v7634_v61, %v6401_v62  ;;  %v6129_v7 = vld [vmem:[%s11646_s1 + $0xa58] sm:$0xf0]  ;;  %v7658_v35 = vld [vmem:[%s11646_s1 + $0xd2c] sm:$0xf] }
 0x20d   :  { %v6257_v11 = vld [vmem:[%s11646_s1 + $0xb58] sm:$0xf0]  ;;  %v6132_v28 = vor.u32 %v7566_v6, %v6129_v7  ;;  %v7654_v41 = vld [vmem:[%s11646_s1 + $0xd0c] sm:$0xf] }
 0x20e   :  { %4320 = vmatmul.bf16.vlgmr.msrb.gmra.mxu0 %v8306_v60  ;;  %4333 = vmatmul.bf16.vlgmr.msrb.gmra.mxu1 %v8313_v1  ;;  %v7674_v60 = vld [vmem:[%s11646_s1 + $0xdac] sm:$0xf]  ;;  %v6385_v20 = vld [vmem:[%s11646_s1 + $0xc58] sm:$0xf0] }
 0x20f   :  { %4364 = vmatpush.bf16.msra.mxu0 %v6212_v8  ;;  %4377 = vmatpush.bf16.msra.mxu1 %v6340_v9  ;;  %v7574_v1 = vld [vmem:[%s11646_s1 + $0xa8c] sm:$0xf]  ;;  %v6532_v9 = vor.u32 %v7666_v3, %v6529_v13  ;;  %v6513_v23 = vld [vmem:[%s11646_s1 + $0xd58] sm:$0xf0] }
 0x210   :  { %4390 = vmatpush.bf16.msra.mxu2 %v6468_v10  ;;  %4403 = vmatpush.bf16.msra.mxu3 %v6596_v21  ;;  %v7598_v8 = vld [vmem:[%s11646_s1 + $0xb4c] sm:$0xf]  ;;  %v6113_v31 = vld [vmem:[%s11646_s1 + $0xa38] sm:$0xf0]  ;;  %v6516_v32 = vor.u32 %v7662_v22, %v6513_v23 }
 0x211   :  { %4346 = vmatmul.bf16.vlgmr.msrb.gmra.mxu2 %v8561_v12  ;;  %4359 = vmatmul.bf16.vlgmr.msrb.gmra.mxu3 %v8571_v16  ;;  %v6161_v12 = vld [vmem:[%s11646_s1 + $0xa98] sm:$0xf0]  ;;  %v6564_v16 = vor.u32 %v7674_v60, %v6561_v37  ;;  %v7810_v3 = vld [vmem:[%s11646_s1 + $0x11ec] sm:$0xf] }
 0x212   :  { %v6164_v63 = vor.u32 %v7574_v1, %v6161_v12  ;;  %v6369_v33 = vld [vmem:[%s11646_s1 + $0xc38] sm:$0xf0]  ;;  %v7590_v12 = vld [vmem:[%s11646_s1 + $0xb0c] sm:$0xf] }
 0x213   :  { %4365 = vmatpush.bf16.msra.mxu0 %v6196_v26  ;;  %4378 = vmatpush.bf16.msra.mxu1 %v6324_v34  ;;  %v4115_v36 = vpop.f32.mrf.mxu0  ;;  %v4128_v24 = vpop.f32.mrf.mxu1  ;;  %v6260_v26 = vor.u32 %v7598_v8, %v6257_v11  ;;  %v6388_v34 = vor.u32 %v7630_v14, %v6385_v20  ;;  %v6497_v60 = vld [vmem:[%s11646_s1 + $0xd38] sm:$0xf0]  ;;  %v6372_v1 = vor.u32 %v7626_v45, %v6369_v33  ;;  %v7710_v7 = vld [vmem:[%s11646_s1 + $0xecc] sm:$0xf] }
 0x214   :  { %4391 = vmatpush.bf16.msra.mxu2 %v6452_v30  ;;  %4404 = vmatpush.bf16.msra.mxu3 %v6580_v0  ;;  %v11256_v10 = vpop.f32.mrf.mxu2  ;;  %v11267_v21 = vpop.f32.mrf.mxu3  ;;  %v7562_v30 = vld [vmem:[%s11646_s1 + $0xa2c] sm:$0xf]  ;;  %v6241_v0 = vld [vmem:[%s11646_s1 + $0xb38] sm:$0xf0]  ;;  %v6500_v39 = vor.u32 %v7658_v35, %v6497_v60 }
 0x215   :  { %v6116_v37 = vor.u32 %v7562_v30, %v6113_v31  ;;  %v6225_v29 = vld [vmem:[%s11646_s1 + $0xb18] sm:$0xf0]  ;;  %v7774_v20 = vld [vmem:[%s11646_s1 + $0x10cc] sm:$0xf] }
 0x216   :  { %v6353_v40 = vld [vmem:[%s11646_s1 + $0xc18] sm:$0xf0]  ;;  %v6228_v61 = vor.u32 %v7590_v12, %v6225_v29  ;;  %v7806_v23 = vld [vmem:[%s11646_s1 + $0x11cc] sm:$0xf] }
 0x217   :  { %4366 = vmatpush.bf16.msra.mxu0 %v6180_v38  ;;  %4379 = vmatpush.bf16.msra.mxu1 %v6308_v27  ;;  %v7558_v38 = vld [vmem:[%s11646_s1 + $0xa0c] sm:$0xf]  ;;  %v6097_v27 = vld [vmem:[%s11646_s1 + $0xa18] sm:$0xf0] }
 0x218   :  { %4392 = vmatpush.bf16.msra.mxu2 %v6436_v2  ;;  %4405 = vmatpush.bf16.msra.mxu3 %v6564_v16  ;;  %v6244_v2 = vor.u32 %v7594_v43, %v6241_v0  ;;  %v7622_v16 = vld [vmem:[%s11646_s1 + $0xc0c] sm:$0xf]  ;;  %v6481_v56 = vld [vmem:[%s11646_s1 + $0xd18] sm:$0xf0]  ;;  %v6100_v54 = vor.u32 %v7558_v38, %v6097_v27 }
 0x219   :  { %v6849_v57 = vld [vmem:[%s11646_s1 + $0xff8] sm:$0xf0]  ;;  %v6356_v62 = vor.u32 %v7622_v16, %v6353_v40  ;;  %v7738_v31 = vld [vmem:[%s11646_s1 + $0xfac] sm:$0xf] }
 0x21a   :  { %v6977_v59 = vld [vmem:[%s11646_s1 + $0x10f8] sm:$0xf0]  ;;  %v7770_v0 = vld [vmem:[%s11646_s1 + $0x10ac] sm:$0xf] }
 0x21b   :  { %4367 = vmatpush.bf16.msra.mxu0 %v6164_v63  ;;  %4380 = vmatpush.bf16.msra.mxu1 %v6292_v51  ;;  %v7714_v63 = vld [vmem:[%s11646_s1 + $0xeec] sm:$0xf]  ;;  %v6721_v51 = vld [vmem:[%s11646_s1 + $0xef8] sm:$0xf0] }
 0x21c   :  { %4393 = vmatpush.bf16.msra.mxu2 %v6420_v52  ;;  %4406 = vmatpush.bf16.msra.mxu3 %v6548_v58  ;;  %v4141_v44 = vpop.f32.mrf.mxu2  ;;  %v7746_v52 = vld [vmem:[%s11646_s1 + $0xfec] sm:$0xf]  ;;  %v4154_v53 = vpop.f32.mrf.mxu3  ;;  %v7105_v13 = vld [vmem:[%s11646_s1 + $0x11f8] sm:$0xf0] }
 0x21d   :  { %v7778_v58 = vld [vmem:[%s11646_s1 + $0x10ec] sm:$0xf]  ;;  %v6705_v8 = vld [vmem:[%s11646_s1 + $0xed8] sm:$0xf0]  ;;  %v7108_v11 = vor.u32 %v7810_v3, %v7105_v13 }
 0x21e   :  { %v6980_v6 = vor.u32 %v7778_v58, %v6977_v59  ;;  %v6833_v14 = vld [vmem:[%s11646_s1 + $0xfd8] sm:$0xf0]  ;;  %v7734_v38 = vld [vmem:[%s11646_s1 + $0xf8c] sm:$0xf] }
 0x21f   :  { %4368 = vmatpush.bf16.msra.mxu0 %v6148_v18  ;;  %4381 = vmatpush.bf16.msra.mxu1 %v6276_v4  ;;  %v6484_v18 = vor.u32 %v7654_v41, %v6481_v56  ;;  %v6724_v4 = vor.u32 %v7714_v63, %v6721_v51  ;;  %v6961_v22 = vld [vmem:[%s11646_s1 + $0x10d8] sm:$0xf0]  ;;  %v7798_v29 = vld [vmem:[%s11646_s1 + $0x118c] sm:$0xf] }
 0x220   :  { %4394 = vmatpush.bf16.msra.mxu2 %v6404_v19  ;;  %4407 = vmatpush.bf16.msra.mxu3 %v6532_v9  ;;  %v6852_v19 = vor.u32 %v7746_v52, %v6849_v57  ;;  %v7742_v9 = vld [vmem:[%s11646_s1 + $0xfcc] sm:$0xf]  ;;  %v7089_v36 = vld [vmem:[%s11646_s1 + $0x11d8] sm:$0xf0] }
 0x221   :  { %v6836_v24 = vor.u32 %v7742_v9, %v6833_v14  ;;  %v6689_v30 = vld [vmem:[%s11646_s1 + $0xeb8] sm:$0xf0]  ;;  %v7092_v43 = vor.u32 %v7806_v23, %v7089_v36  ;;  %v7698_v44 = vld [vmem:[%s11646_s1 + $0xe6c] sm:$0xf] }
 0x222   :  { %v6945_v45 = vld [vmem:[%s11646_s1 + $0x10b8] sm:$0xf0]  ;;  %v7730_v51 = vld [vmem:[%s11646_s1 + $0xf6c] sm:$0xf] }
 0x223   :  { %4369 = vmatpush.bf16.msra.mxu0 %v6132_v28  ;;  %4382 = vmatpush.bf16.msra.mxu1 %v6260_v26  ;;  %v6708_v28 = vor.u32 %v7710_v7, %v6705_v8  ;;  %v6964_v26 = vor.u32 %v7774_v20, %v6961_v22  ;;  %v7073_v33 = vld [vmem:[%s11646_s1 + $0x11b8] sm:$0xf0]  ;;  %v7794_v58 = vld [vmem:[%s11646_s1 + $0x116c] sm:$0xf] }
 0x224   :  { %4395 = vmatpush.bf16.msra.mxu2 %v6388_v34  ;;  %4408 = vmatpush.bf16.msra.mxu3 %v6516_v32  ;;  %v7706_v34 = vld [vmem:[%s11646_s1 + $0xeac] sm:$0xf]  ;;  %v6817_v32 = vld [vmem:[%s11646_s1 + $0xfb8] sm:$0xf0] }
 0x225   :  { %v6692_v35 = vor.u32 %v7706_v34, %v6689_v30  ;;  %v6820_v60 = vor.u32 %v7738_v31, %v6817_v32  ;;  %v6801_v27 = vld [vmem:[%s11646_s1 + $0xf98] sm:$0xf0]  ;;  %v7694_v13 = vld [vmem:[%s11646_s1 + $0xe4c] sm:$0xf] }
 0x226   :  { %v7057_v16 = vld [vmem:[%s11646_s1 + $0x1198] sm:$0xf0]  ;;  %v6804_v41 = vor.u32 %v7734_v38, %v6801_v27  ;;  %v7758_v8 = vld [vmem:[%s11646_s1 + $0x104c] sm:$0xf] }
 0x227   :  { %4370 = vmatpush.bf16.msra.mxu0 %v6116_v37  ;;  %4383 = vmatpush.bf16.msra.mxu1 %v6244_v2  ;;  %v6948_v37 = vor.u32 %v7770_v0, %v6945_v45  ;;  %v7766_v2 = vld [vmem:[%s11646_s1 + $0x108c] sm:$0xf]  ;;  %v6657_v63 = vld [vmem:[%s11646_s1 + $0xe78] sm:$0xf0]  ;;  %v7060_v52 = vor.u32 %v7798_v29, %v7057_v16 }
 0x228   :  { %4396 = vmatpush.bf16.msra.mxu2 %v6372_v1  ;;  %4409 = vmatpush.bf16.msra.mxu3 %v6500_v39  ;;  %v6929_v1 = vld [vmem:[%s11646_s1 + $0x1098] sm:$0xf0]  ;;  %v7790_v14 = vld [vmem:[%s11646_s1 + $0x114c] sm:$0xf] }
 0x229   :  { %v6932_v56 = vor.u32 %v7766_v2, %v6929_v1  ;;  %v6785_v53 = vld [vmem:[%s11646_s1 + $0xf78] sm:$0xf0]  ;;  %v7722_v30 = vld [vmem:[%s11646_s1 + $0xf2c] sm:$0xf] }
 0x22a   :  { %v6913_v57 = vld [vmem:[%s11646_s1 + $0x1078] sm:$0xf0]  ;;  %v7754_v32 = vld [vmem:[%s11646_s1 + $0x102c] sm:$0xf] }
 0x22b   :  { %4371 = vmatpush.bf16.msra.mxu0 %v6100_v54  ;;  %4384 = vmatpush.bf16.msra.mxu1 %v6228_v61  ;;  %v11417_v12 = vpop.f32.mrf.mxu0  ;;  %v11425_v40 = vpop.f32.mrf.mxu1  ;;  %v7762_v54 = vld [vmem:[%s11646_s1 + $0x106c] sm:$0xf]  ;;  %v7041_v59 = vld [vmem:[%s11646_s1 + $0x1178] sm:$0xf0]  ;;  %v6660_v61 = vor.u32 %v7698_v44, %v6657_v63 }
 0x22c   :  { %4397 = vmatpush.bf16.msra.mxu2 %v6356_v62  ;;  %4410 = vmatpush.bf16.msra.mxu3 %v6484_v18  ;;  %v6788_v62 = vor.u32 %v7730_v51, %v6785_v53  ;;  %v6916_v3 = vor.u32 %v7762_v54, %v6913_v57  ;;  %v6641_v18 = vld [vmem:[%s11646_s1 + $0xe58] sm:$0xf0]  ;;  %v7786_v45 = vld [vmem:[%s11646_s1 + $0x112c] sm:$0xf]  ;;  %v7819_v57 = vld [vmem:[%s11648_s3 + $0x30] sm:$0xff] }
 0x22d   :  { %v6769_v7 = vld [vmem:[%s11646_s1 + $0xf58] sm:$0xf0]  ;;  %v6644_v23 = vor.u32 %v7694_v13, %v6641_v18  ;;  %v7750_v27 = vld [vmem:[%s11646_s1 + $0x100c] sm:$0xf] }
 0x22e   :  { %4372 = vmatmul.bf16.vlgmr.msra.gmra.mxu0 %v8569_v15  ;;  %4385 = vmatmul.bf16.vlgmr.msra.gmra.mxu1 %v8573_v17  ;;  %v7802_v15 = vld [vmem:[%s11646_s1 + $0x11ac] sm:$0xf]  ;;  %v6897_v9 = vld [vmem:[%s11646_s1 + $0x1058] sm:$0xf0] }
 0x22f   :  { %4416 = vmatpush.bf16.msrb.mxu0 %v6724_v4  ;;  %4429 = vmatpush.bf16.msrb.mxu1 %v6852_v19  ;;  %v7702_v17 = vld [vmem:[%s11646_s1 + $0xe8c] sm:$0xf]  ;;  %v7044_v19 = vor.u32 %v7794_v58, %v7041_v59  ;;  %v7025_v20 = vld [vmem:[%s11646_s1 + $0x1158] sm:$0xf0]  ;;  %v7827_v58 = vld [vmem:[%s11648_s3 + $0x70] sm:$0xff] }
 0x230   :  { %4442 = vmatpush.bf16.msrb.mxu2 %v6980_v6  ;;  %4455 = vmatpush.bf16.msrb.mxu3 %v7108_v11  ;;  %v7726_v4 = vld [vmem:[%s11646_s1 + $0xf4c] sm:$0xf]  ;;  %v6625_v34 = vld [vmem:[%s11646_s1 + $0xe38] sm:$0xf0]  ;;  %v7028_v31 = vor.u32 %v7790_v14, %v7025_v20 }
 0x231   :  { %4398 = vmatmul.bf16.vlgmr.msra.gmra.mxu2 %v8735_v46  ;;  %4411 = vmatmul.bf16.vlgmr.msra.gmra.mxu3 %v8739_v48  ;;  %v6673_v46 = vld [vmem:[%s11646_s1 + $0xe98] sm:$0xf0]  ;;  %v7076_v48 = vor.u32 %v7802_v15, %v7073_v33  ;;  %v7782_v29 = vld [vmem:[%s11646_s1 + $0x110c] sm:$0xf] }
 0x232   :  { %v6676_v39 = vor.u32 %v7702_v17, %v6673_v46  ;;  %v6881_v0 = vld [vmem:[%s11646_s1 + $0x1038] sm:$0xf0]  ;;  %v7718_v46 = vld [vmem:[%s11646_s1 + $0xf0c] sm:$0xf] }
 0x233   :  { %4417 = vmatpush.bf16.msrb.mxu0 %v6708_v28  ;;  %4430 = vmatpush.bf16.msrb.mxu1 %v6836_v24  ;;  %v4167_v22 = vpop.f32.mrf.mxu0  ;;  %v4180_v36 = vpop.f32.mrf.mxu1  ;;  %v6772_v28 = vor.u32 %v7726_v4, %v6769_v7  ;;  %v6900_v24 = vor.u32 %v7758_v8, %v6897_v9  ;;  %v7009_v15 = vld [vmem:[%s11646_s1 + $0x1138] sm:$0xf0]  ;;  %v7854_v59 = vld [vmem:[#allocation1 + $0x9] sm:$0xff]  ;;  %v7825_v4 = vld [vmem:[%s11648_s3 + $0x60] sm:$0xff] }
 0x234   :  { %4443 = vmatpush.bf16.msrb.mxu2 %v6964_v26  ;;  %4456 = vmatpush.bf16.msrb.mxu3 %v7092_v43  ;;  %v11460_v6 = vpop.f32.mrf.mxu2  ;;  %v11471_v11 = vpop.f32.mrf.mxu3  ;;  %v7690_v26 = vld [vmem:[%s11646_s1 + $0xe2c] sm:$0xf]  ;;  %v6753_v43 = vld [vmem:[%s11646_s1 + $0xf38] sm:$0xf0]  ;;  %v7012_v38 = vor.u32 %v7786_v45, %v7009_v15 }
 0x235   :  { %v6628_v33 = vor.u32 %v7690_v26, %v6625_v34  ;;  %v6609_v17 = vld [vmem:[%s11646_s1 + $0xe18] sm:$0xf0]  ;;  %v7823_v34 = vld [vmem:[%s11648_s3 + $0x50] sm:$0xff] }
 0x236   :  { %v6865_v2 = vld [vmem:[%s11646_s1 + $0x1018] sm:$0xf0] }
 0x237   :  { %4418 = vmatpush.bf16.msrb.mxu0 %v6692_v35  ;;  %4431 = vmatpush.bf16.msrb.mxu1 %v6820_v60  ;;  %v6756_v35 = vor.u32 %v7722_v30, %v6753_v43  ;;  %v6884_v60 = vor.u32 %v7754_v32, %v6881_v0  ;;  %v6993_v16 = vld [vmem:[%s11646_s1 + $0x1118] sm:$0xf0]  ;;  %v6868_v63 = vor.u32 %v7750_v27, %v6865_v2  ;;  %v7831_v30 = vld [vmem:[%s11648_s3 + $0x90] sm:$0xff]  ;;  %v7822_v32 = vld [vmem:[%s11648_s3 + $0x48] sm:$0xff] }
 0x238   :  { %4444 = vmatpush.bf16.msrb.mxu2 %v6948_v37  ;;  %4457 = vmatpush.bf16.msrb.mxu3 %v7076_v48  ;;  %v7686_v37 = vld [vmem:[%s11646_s1 + $0xe0c] sm:$0xf]  ;;  %v6737_v48 = vld [vmem:[%s11646_s1 + $0xf18] sm:$0xf0]  ;;  %v6996_v51 = vor.u32 %v7782_v29, %v6993_v16 }
 0x239   :  { %v6740_v44 = vor.u32 %v7718_v46, %v6737_v48  ;;  %v7828_v53 = vld [vmem:[%s11648_s3 + $0x78] sm:$0xff]  ;;  %v7830_v0 = vld [vmem:[%s11648_s3 + $0x88] sm:$0xff]  ;;  %v4469_v46 = vmax.f32 %v10671_v55, 0.0 }
 0x23a   :  { %v7816_v14 = vld [vmem:[%s11648_s3 + $0x18] sm:$0xff] }
 0x23b   :  { %4419 = vmatpush.bf16.msrb.mxu0 %v6676_v39  ;;  %4432 = vmatpush.bf16.msrb.mxu1 %v6804_v41  ;;  %v4114_v41 = vadd.f32 %v11213_v42, %v11069_v25  ;;  %v7836_v25 = vld [vmem:[%s11648_s3 + $0xb8] sm:$0xff]  ;;  %v4473_v27 = vpack.c.bf16 %v4469_v46, %v4469_v46 }
 0x23c   :  { %4445 = vmatpush.bf16.msrb.mxu2 %v6932_v56  ;;  %4458 = vmatpush.bf16.msrb.mxu3 %v7060_v52  ;;  %v4193_v1 = vpop.f32.mrf.mxu2  ;;  %v4206_v39 = vpop.f32.mrf.mxu3  ;;  %v6612_v56 = vor.u32 %v7686_v37, %v6609_v17  ;;  %v7820_v52 = vld [vmem:[%s11648_s3 + $0x38] sm:$0xff]  ;;  %v7821_v37 = vld [vmem:[%s11648_s3 + $0x40] sm:$0xff] }
 0x23d   :  { %v4127_v42 = vadd.f32 %v11221_v50, %v4114_v41  ;;  %v7835_v50 = vld [vmem:[%s11648_s3 + $0xb0] sm:$0xff]  ;;  %v7824_v20 = vld [vmem:[%s11648_s3 + $0x58] sm:$0xff]  ;;  %v7829_v17 = vld [vmem:[%s11648_s3 + $0x80] sm:$0xff] }
 0x23f   :  { %4420 = vmatpush.bf16.msrb.mxu0 %v6660_v61  ;;  %4433 = vmatpush.bf16.msrb.mxu1 %v6788_v62  ;;  %v4140_v54 = vadd.f32 %v11256_v10, %v4127_v42  ;;  %v7853_v10 = vld [vmem:[#allocation1] sm:$0xff]  ;;  %v7818_v62 = vld [vmem:[%s11648_s3 + $0x28] sm:$0xff] }
 0x240   :  { %4446 = vmatpush.bf16.msrb.mxu2 %v6916_v3  ;;  %4459 = vmatpush.bf16.msrb.mxu3 %v7044_v19  ;;  %v7826_v3 = vld [vmem:[%s11648_s3 + $0x68] sm:$0xff]  ;;  %v7833_v19 = vld [vmem:[%s11648_s3 + $0xa0] sm:$0xff] }
 0x241   :  { %v4153_v61 = vadd.f32 %v11267_v21, %v4140_v54  ;;  %v7817_v21 = vld [vmem:[%s11648_s3 + $0x20] sm:$0xff] }
 0x243   :  { %4421 = vmatpush.bf16.msrb.mxu0 %v6644_v23  ;;  %4434 = vmatpush.bf16.msrb.mxu1 %v6772_v28 }
 0x244   :  { %4447 = vmatpush.bf16.msrb.mxu2 %v6900_v24  ;;  %4460 = vmatpush.bf16.msrb.mxu3 %v7028_v31  ;;  %v7815_v24 = vld [vmem:[%s11648_s3 + $0x10] sm:$0xff] }
 0x247   :  { %4422 = vmatpush.bf16.msrb.mxu0 %v6628_v33  ;;  %4435 = vmatpush.bf16.msrb.mxu1 %v6756_v35  ;;  %v7813_v35 = vld [vmem:[%s11648_s3] sm:$0xff] }
 0x248   :  { %4448 = vmatpush.bf16.msrb.mxu2 %v6884_v60  ;;  %4461 = vmatpush.bf16.msrb.mxu3 %v7012_v38  ;;  %v4468_v60 = vmax.f32 %v9831_v5, 0.0 }
 0x24a   :  { %v4472_v48 = vpack.c.bf16 %v4468_v60, %v4468_v60 }
 0x24b   :  { %4423 = vmatpush.bf16.msrb.mxu0 %v6612_v56  ;;  %4436 = vmatpush.bf16.msrb.mxu1 %v6740_v44  ;;  %v4217_v13 = vpop.f32.mrf.mxu0  ;;  %v4230_v18 = vpop.f32.mrf.mxu1 }
 0x24c   :  { %4449 = vmatpush.bf16.msrb.mxu2 %v6868_v63  ;;  %4462 = vmatpush.bf16.msrb.mxu3 %v6996_v51 }
 0x24e   :  { %4424 = vmatmul.bf16.vlgmr.msrb.gmra.mxu0 %v8737_v47  ;;  %4437 = vmatmul.bf16.vlgmr.msrb.gmra.mxu1 %v8741_v49  ;;  %v7834_v47 = vld [vmem:[%s11648_s3 + $0xa8] sm:$0xff]  ;;  %v4166_v49 = vadd.f32 %v11417_v12, %v4153_v61  ;;  %v7855_v12 = vld [vmem:[%s11647_s2] sm:$0xf] }
 0x24f   :  { %4736 = vmatpush.bf16.msra.mxu0 %v7820_v52  ;;  %4749 = vmatpush.bf16.msra.mxu1 %v7828_v53  ;;  %v605_v8 = vperm.slane %v7855_v12, 3 }
 0x250   :  { %4762 = vmatpush.bf16.msra.mxu2 %v7836_v25  ;;  %4463 = vmatmul.bf16.vlgmr.msrb.gmra.mxu3 %v7854_v59  ;;  %v4179_v7 = vadd.f32 %v11425_v40, %v4166_v49  ;;  %v7832_v40 = vld [vmem:[%s11648_s3 + $0x98] sm:$0xff]  ;;  %v7842_v59 = vld [vmem:[%s11648_s3 + $0xe8] sm:$0xff] }
 0x251   :  { %4450 = vmatmul.bf16.vlgmr.msrb.gmra.mxu2 %v7853_v10  ;;  %v7843_v10 = vld [vmem:[%s11648_s3 + $0xf0] sm:$0xff] }
 0x252   :  { %v4192_v9 = vadd.f32 %v11460_v6, %v4179_v7 }
 0x253   :  { %4737 = vmatpush.bf16.msra.mxu0 %v7819_v57  ;;  %4750 = vmatpush.bf16.msra.mxu1 %v7827_v58  ;;  %v4219_v28 = vpop.f32.mrf.mxu0  ;;  %v4232_v26 = vpop.f32.mrf.mxu1  ;;  %v7844_v58 = vld [vmem:[%s11648_s3 + $0xf8] sm:$0xff] }
 0x254   :  { %4763 = vmatpush.bf16.msra.mxu2 %v7835_v50  ;;  %v4243_v22 = vpop.f32.mrf.mxu2  ;;  %v4256_v36 = vpop.f32.mrf.mxu3  ;;  %v4205_v6 = vadd.f32 %v11471_v11, %v4192_v9  ;;  %v7814_v11 = vld [vmem:[%s11648_s3 + $0x8] sm:$0xff]  ;;  %4775 = vmatpush.bf16.msra.mxu3 %v7844_v58  ;;  %v7837_v9 = vld [vmem:[%s11648_s3 + $0xc0] sm:$0xff] }
 0x255   :  { %v4244_v23 = vadd.f32 %v4243_v22, %v605_v8 }
 0x256   :  { %v4218_v43 = vadd.f32 %v4217_v13, %v4205_v6 }
 0x257   :  { %4738 = vmatpush.bf16.msra.mxu0 %v7818_v62  ;;  %4751 = vmatpush.bf16.msra.mxu1 %v7826_v3  ;;  %v4257_v31 = vadd.f32 %v4256_v36, %v4244_v23  ;;  %v7841_v3 = vld [vmem:[%s11648_s3 + $0xe0] sm:$0xff] }
 0x258   :  { %4764 = vmatpush.bf16.msra.mxu2 %v7834_v47  ;;  %v4231_v45 = vadd.f32 %v4230_v18, %v4218_v43  ;;  %4776 = vmatpush.bf16.msra.mxu3 %v7843_v10  ;;  %v7840_v47 = vld [vmem:[%s11648_s3 + $0xd8] sm:$0xff]  ;;  %v7838_v18 = vld [vmem:[%s11648_s3 + $0xc8] sm:$0xff] }
 0x25a   :  { %v4470_v38 = vmax.f32 %v4231_v45, 0.0 }
 0x25b   :  { %4739 = vmatpush.bf16.msra.mxu0 %v7817_v21  ;;  %4752 = vmatpush.bf16.msra.mxu1 %v7825_v4  ;;  %v7839_v21 = vld [vmem:[%s11648_s3 + $0xd0] sm:$0xff] }
 0x25c   :  { %4765 = vmatpush.bf16.msra.mxu2 %v7833_v19  ;;  %v4245_v15 = vpop.f32.mrf.mxu2  ;;  %v4258_v33 = vpop.f32.mrf.mxu3  ;;  %v4474_v2 = vpack.c.bf16 %v4470_v38, %v4470_v38  ;;  %4777 = vmatpush.bf16.msra.mxu3 %v7842_v59 }
 0x25f   :  { %4740 = vmatpush.bf16.msra.mxu0 %v7816_v14  ;;  %4753 = vmatpush.bf16.msra.mxu1 %v7824_v20 }
 0x260   :  { %4766 = vmatpush.bf16.msra.mxu2 %v7832_v40  ;;  %4778 = vmatpush.bf16.msra.mxu3 %v7841_v3 }
 0x263   :  { %4741 = vmatpush.bf16.msra.mxu0 %v7815_v24  ;;  %4754 = vmatpush.bf16.msra.mxu1 %v7823_v34 }
 0x264   :  { %4767 = vmatpush.bf16.msra.mxu2 %v7831_v30  ;;  %4779 = vmatpush.bf16.msra.mxu3 %v7840_v47 }
 0x267   :  { %4742 = vmatpush.bf16.msra.mxu0 %v7814_v11  ;;  %4755 = vmatpush.bf16.msra.mxu1 %v7822_v32 }
 0x268   :  { %4768 = vmatpush.bf16.msra.mxu2 %v7830_v0  ;;  %4780 = vmatpush.bf16.msra.mxu3 %v7839_v21 }
 0x26b   :  { %4743 = vmatpush.bf16.msra.mxu0 %v7813_v35  ;;  %4756 = vmatpush.bf16.msra.mxu1 %v7821_v37  ;;  %v4269_v5 = vpop.f32.mrf.mxu0  ;;  %v4282_v29 = vpop.f32.mrf.mxu1 }
 0x26c   :  { %4769 = vmatpush.bf16.msra.mxu2 %v7829_v17  ;;  %v4270_v1 = vadd.f32 %v4269_v5, %v4257_v31  ;;  %4781 = vmatpush.bf16.msra.mxu3 %v7838_v18  ;;  %v7846_v17 = vld [vmem:[%s11649_s4] ss:$0 sm:$0xff] }
 0x26e   :  { %4744 = vmatmul.bf16.vlgmr.msra.gmra.mxu0 %v4472_v48  ;;  %4757 = vmatmul.bf16.vlgmr.msra.gmra.mxu1 %v4473_v27  ;;  %v4283_v16 = vadd.f32 %v4282_v29, %v4270_v1 }
 0x26f   :  { %4770 = vmatmul.bf16.vlgmr.msra.gmra.mxu2 %v4474_v2 }
 0x270   :  { %4782 = vmatpush.bf16.msra.mxu3 %v7837_v9 }
 0x273   :  { %v4271_v63 = vpop.f32.mrf.mxu0  ;;  %v4284_v55 = vpop.f32.mrf.mxu1 }
 0x274   :  { %v4295_v39 = vpop.f32.mrf.mxu2  ;;  %v4308_v56 = vpop.f32.mrf.mxu3 }
 0x275   :  { %v4296_v41 = vadd.f32 %v4295_v39, %v4283_v16 }
 0x277   :  { %v4309_v44 = vadd.f32 %v4308_v56, %v4296_v41 }
 0x27c   :  { %v4297_v51 = vpop.f32.mrf.mxu2  ;;  %v4310_v52 = vpop.f32.mrf.mxu3 }
 0x28b   :  { %v4321_v53 = vpop.f32.mrf.mxu0  ;;  %v4334_v25 = vpop.f32.mrf.mxu1 }
 0x28c   :  { %v4322_v19 = vadd.f32 %v4321_v53, %v4309_v44 }
 0x28e   :  { %v4335_v14 = vadd.f32 %v4334_v25, %v4322_v19 }
 0x293   :  { %v4323_v57 = vpop.f32.mrf.mxu0  ;;  %v4336_v50 = vpop.f32.mrf.mxu1 }
 0x294   :  { %v4347_v42 = vpop.f32.mrf.mxu2  ;;  %v4360_v54 = vpop.f32.mrf.mxu3 }
 0x295   :  { %v4348_v20 = vadd.f32 %v4347_v42, %v4335_v14 }
 0x297   :  { %v4361_v23 = vadd.f32 %v4360_v54, %v4348_v20 }
 0x29c   :  { %v4349_v61 = vpop.f32.mrf.mxu2  ;;  %v4362_v62 = vpop.f32.mrf.mxu3 }
 0x2ab   :  { %v4373_v49 = vpop.f32.mrf.mxu0  ;;  %v4386_v13 = vpop.f32.mrf.mxu1 }
 0x2ac   :  { %v4374_v36 = vadd.f32 %v4373_v49, %v4361_v23 }
 0x2ae   :  { %v4387_v28 = vadd.f32 %v4386_v13, %v4374_v36 }
 0x2b3   :  { %v4375_v12 = vpop.f32.mrf.mxu0  ;;  %v4388_v8 = vpop.f32.mrf.mxu1 }
 0x2b4   :  { %v4399_v4 = vpop.f32.mrf.mxu2  ;;  %v4412_v7 = vpop.f32.mrf.mxu3 }
 0x2b5   :  { %v4400_v6 = vadd.f32 %v4399_v4, %v4387_v28 }
 0x2b7   :  { %v4413_v24 = vadd.f32 %v4412_v7, %v4400_v6 }
 0x2bc   :  { %v4401_v40 = vpop.f32.mrf.mxu2  ;;  %v4414_v22 = vpop.f32.mrf.mxu3 }
 0x2cb   :  { %v4425_v26 = vpop.f32.mrf.mxu0  ;;  %v4438_v34 = vpop.f32.mrf.mxu1 }
 0x2cc   :  { %v4426_v30 = vadd.f32 %v4425_v26, %v4413_v24 }
 0x2ce   :  { %v4439_v31 = vadd.f32 %v4438_v34, %v4426_v30 }
 0x2d3   :  { %v4464_v11 = vpop.f32.mrf.mxu3  ;;  %v4427_v0 = vpop.f32.mrf.mxu0 }
 0x2d4   :  { %v4451_v43 = vpop.f32.mrf.mxu2  ;;  %v4440_v45 = vpop.f32.mrf.mxu1 }
 0x2d5   :  { %v4452_v32 = vadd.f32 %v4451_v43, %v4439_v31 }
 0x2d7   :  { %v4465_v15 = vadd.f32 %v4464_v11, %v4452_v32 }
 0x2d9   :  { %v4471_v33 = vmax.f32 %v4465_v15, 0.0 }
 0x2db   :  { %v4475_v35 = vpack.c.bf16 %v4471_v33, %v4471_v33  ;;  %v4466_v37 = vpop.f32.mrf.mxu3 }
 0x2dc   :  { %v4453_v60 = vpop.f32.mrf.mxu2 }
 0x2dd   :  { %4783 = vmatmul.bf16.vlgmr.msra.gmra.mxu3 %v4475_v35 }
 0x2eb   :  { %v4745_v46 = vpop.f32.mrf.mxu0  ;;  %v4758_v48 = vpop.f32.mrf.mxu1 }
 0x2ec   :  { %v4746_v38 = vadd.f32 %v7846_v17, %v4745_v46 }
 0x2ee   :  { %v4759_v27 = vadd.f32 %v4758_v48, %v4746_v38 }
 0x2f2   :  { %v4771_v2 = vpop.f32.mrf.mxu2 }
 0x2f3   :  { %v4772_v5 = vadd.f32 %v4771_v2, %v4759_v27  ;;  %v4747_v1 = vpop.f32.mrf.mxu0  ;;  %v4760_v29 = vpop.f32.mrf.mxu1 }
 0x2fa   :  { %v4773_v16 = vpop.f32.mrf.mxu2 }
 0x360   :  { %v4784_v39 = vpop.f32.mrf.mxu3 }
 0x361   :  { %v4785_v41 = vadd.f32 %v4784_v39, %v4772_v5 }
 0x363   :  { %4788 = vst [vmem:[#allocation2] sm:$0x3] %v4785_v41 }
 0x364   :  { %4799 = dma.vmem_to_hbm [thread:$0]  %s4795_s25, 32, %s4797_s28, [#allocation3]  }
 0x368   :  { %v4786_v56 = vpop.f32.mrf.mxu3 }
 0x369   :  { %7880 = dma.done.wait [#allocation3], 32  }
 0x36a   :  { %7881 = vsyncadd [#allocation3], 4294967264 }
 0x36b   :  { %4804 = vsyncpa [#allocation3], 1 }

</bundles_post_ra>
